<compile_context>
chip_gen: v6e
topology: v6e:2x2x1
jax: 0.10.0
libtpu: 0.0.40
codegen_flags: <defaults>
</compile_context>

<pallas_src>
import jax
import jax.numpy as jnp
from jax.experimental import pallas as pl
from jax.experimental.pallas import tpu as pltpu

NUM_CLASSES = 10          # stand-in for len(label_encoder.classes_)
BN_EPS = 1e-5
LANE = 128
CONV1_K = 32              # 3x3x3 = 27 im2col taps, lane-padded to 32


def _vmem_limit_bytes():
    cap = 128 * 1024 * 1024
    try:
        cap = int(pltpu.get_tpu_info().vmem_capacity_bytes)
    except Exception:
        pass
    # Leave headroom for Mosaic scratch / double-buffering (v7x has 64 MiB/TC).
    return max(32 * 1024 * 1024, min(48 * 1024 * 1024, cap - 16 * 1024 * 1024))


_COMPILER_PARAMS = pltpu.CompilerParams(
    dimension_semantics=("parallel",),
    vmem_limit_bytes=_vmem_limit_bytes(),
)


# ----------------------------------------------------------------------------
# In-kernel helpers
# ----------------------------------------------------------------------------
def _store_parity_planes(y, Ho, Wo, o_refs):
    # y: (Ho*Wo, C) f32 pooled activation, raster order p = i*Wo + j.
    # o_refs[a*2+b] (block (1, Ho//2+1, Wo//2+1, C) bf16) receives
    #   plane[a][b][u, v, :] = y_pad[2u+a, 2v+b, :],  y_pad = zero-pad(y, 1px),
    # which is exactly what the next conv block reads with contiguous slices.
    # Only static slices / concats / whole-row stores are used (safe to lower).
    # TODO(synk): vectorised strided de-interleave + row tiling for big images.
    Hq, Wq = Ho // 2, Wo // 2
    C = y.shape[-1]
    dt = o_refs[0].dtype
    yb = y.astype(dt)
    zrow = jnp.zeros((Wq + 1, C), dt)
    zcol = jnp.zeros((1, C), dt)
    for a in (0, 1):
        for b in (0, 1):
            o = o_refs[a * 2 + b]
            o[0, (0 if a == 0 else Hq), :, :] = zrow          # zero border row
            for u in range(Hq):
                i = 2 * u + (1 - a)                           # source row of y
                pieces = []
                for v in range(Wq):
                    p = i * Wo + 2 * v + (1 - b)              # source flat idx
                    pieces.append(yb[p:p + 1, :])
                row = pieces[0] if Wq == 1 else jnp.concatenate(pieces, axis=0)
                row = (jnp.concatenate([zcol, row], axis=0) if b == 0
                       else jnp.concatenate([row, zcol], axis=0))
                o[0, u + (1 if a == 0 else 0), :, :] = row


def _bn_pool_relu(z, s_ref, b_ref, P):
    # z: (4P, Cout) f32 pre-activations stacked by 2x2 pool position.
    z = z * s_ref[...] + b_ref[...]                           # folded BatchNorm
    y = jnp.maximum(jnp.maximum(z[0:P], z[P:2 * P]),
                    jnp.maximum(z[2 * P:3 * P], z[3 * P:4 * P]))
    return jnp.maximum(y, 0.0)                                # ReLU (monotone)


def _conv_taps_pooled(p_refs, w_ref, s_ref, b_ref, lhs_ref, acc_ref, Ho, Wo):
    # p_refs: four parity-plane refs, block (1, Ho+1, Wo+1, Cin) bf16.
    # w_ref:  (9, Cin, Cout) bf16 tap-major (kh*3+kw); s_ref/b_ref: (1, Cout) f32.
    # lhs_ref: VMEM (4P, Cin) bf16 scratch; acc_ref: VMEM (4P, Cout) f32 scratch.
    Cin = p_refs[0].shape[-1]
    P = Ho * Wo
    planes = ((p_refs[0], p_refs[1]), (p_refs[2], p_refs[3]))
    for kh in range(3):
        for kw in range(3):
            for py in range(2):
                for px in range(2):
                    a, dr = (py + kh) % 2, (py + kh) // 2
                    b, dc = (px + kw) % 2, (px + kw) // 2
                    q = py * 2 + px
                    sl = planes[a][b][0, dr:dr + Ho, dc:dc + Wo, :]
                    lhs_ref[q * P:(q + 1) * P, :] = sl.reshape(P, Cin)
            t = jnp.dot(lhs_ref[...], w_ref[kh * 3 + kw],
                        preferred_element_type=jnp.float32)
            if kh == 0 and kw == 0:
                acc_ref[...] = t                              # init with 1st tap
            else:
                acc_ref[...] += t
    return _bn_pool_relu(acc_ref[...], s_ref, b_ref, P)


# ----------------------------------------------------------------------------
# Kernels
# ----------------------------------------------------------------------------
def _make_conv1_kernel(Ho, Wo):
    P = Ho * Wo

    def kernel(pat_ref, w_ref, s_ref, b_ref, o00, o01, o10, o11):
        # pat_ref: (1, 4P, 32) bf16 im2col patches (pool-position major).
        z = jnp.dot(pat_ref[0], w_ref[...], preferred_element_type=jnp.float32)
        y = _bn_pool_relu(z, s_ref, b_ref, P)
        _store_parity_planes(y, Ho, Wo, (o00, o01, o10, o11))

    return kernel


def _make_conv_block_kernel(Ho, Wo):
    def kernel(p00, p01, p10, p11, w_ref, s_ref, b_ref,
               o00, o01, o10, o11, lhs_ref, acc_ref):
        y = _conv_taps_pooled((p00, p01, p10, p11), w_ref, s_ref, b_ref,
                              lhs_ref, acc_ref, Ho, Wo)
        _store_parity_planes(y, Ho, Wo, (o00, o01, o10, o11))

    return kernel


def _make_conv_head_kernel(Ho, Wo):
    def kernel(p00, p01, p10, p11, w_ref, s_ref, b_ref,
               w1_ref, b1_ref, w2_ref, b2_ref, o_ref, lhs_ref, acc_ref):
        y = _conv_taps_pooled((p00, p01, p10, p11), w_ref, s_ref, b_ref,
                              lhs_ref, acc_ref, Ho, Wo)
        gap = jnp.mean(y, axis=0, keepdims=True)              # AdaptiveAvgPool2d
        h = jnp.dot(gap.astype(jnp.bfloat16), w1_ref[...],
                    preferred_element_type=jnp.float32) + b1_ref[...]
        h = jnp.maximum(h, 0.0)
        # Dropout(p=0.4) is the identity at inference time (eval mode).
        logits = jnp.dot(h.astype(jnp.bfloat16), w2_ref[...],
                         preferred_element_type=jnp.float32) + b2_ref[...]
        o_ref[0] = logits                                     # (1, C_pad) f32

    return kernel


# ----------------------------------------------------------------------------
# pallas_call glue
# ----------------------------------------------------------------------------
def _plane_specs(N, Hq, Wq, C):
    shape = jax.ShapeDtypeStruct((N, Hq + 1, Wq + 1, C), jnp.bfloat16)
    spec = pl.BlockSpec((1, Hq + 1, Wq + 1, C), lambda n: (n, 0, 0, 0))
    return (shape,) * 4, (spec,) * 4


def conv1_block(pat, w, scale, bias, Ho, Wo):
    N = pat.shape[0]
    Cout = w.shape[-1]
    out_shapes, out_specs = _plane_specs(N, Ho // 2, Wo // 2, Cout)
    return pl.pallas_call(
        _make_conv1_kernel(Ho, Wo),
        out_shape=out_shapes,
        grid=(N,),
        in_specs=[pl.BlockSpec((1, pat.shape[1], pat.shape[2]),
                               lambda n: (n, 0, 0)),
                  pl.BlockSpec(w.shape, lambda n: (0, 0)),
                  pl.BlockSpec(scale.shape, lambda n: (0, 0)),
                  pl.BlockSpec(bias.shape, lambda n: (0, 0))],
        out_specs=out_specs,
        compiler_params=_COMPILER_PARAMS,
    )(pat, w, scale, bias)


def conv_block(planes, w9, scale, bias, Ho, Wo):
    N, Hp_in, Wp_in, Cin = planes[0].shape
    Cout = w9.shape[-1]
    P = Ho * Wo
    in_spec = pl.BlockSpec((1, Hp_in, Wp_in, Cin), lambda n: (n, 0, 0, 0))
    out_shapes, out_specs = _plane_specs(N, Ho // 2, Wo // 2, Cout)
    return pl.pallas_call(
        _make_conv_block_kernel(Ho, Wo),
        out_shape=out_shapes,
        grid=(N,),
        in_specs=[in_spec] * 4 + [
            pl.BlockSpec(w9.shape, lambda n: (0, 0, 0)),
            pl.BlockSpec(scale.shape, lambda n: (0, 0)),
            pl.BlockSpec(bias.shape, lambda n: (0, 0))],
        out_specs=out_specs,
        scratch_shapes=[pltpu.VMEM((4 * P, Cin), jnp.bfloat16),
                        pltpu.VMEM((4 * P, Cout), jnp.float32)],
        compiler_params=_COMPILER_PARAMS,
    )(*planes, w9, scale, bias)


def conv_head(planes, w9, scale, bias, fc, Ho, Wo):
    w1, b1, w2p, b2p = fc
    N, Hp_in, Wp_in, Cin = planes[0].shape
    Cout = w9.shape[-1]
    P = Ho * Wo
    cpad = w2p.shape[-1]
    in_spec = pl.BlockSpec((1, Hp_in, Wp_in, Cin), lambda n: (n, 0, 0, 0))
    out = pl.pallas_call(
        _make_conv_head_kernel(Ho, Wo),
        out_shape=jax.ShapeDtypeStruct((N, 1, cpad), jnp.float32),
        grid=(N,),
        in_specs=[in_spec] * 4 + [
            pl.BlockSpec(w9.shape, lambda n: (0, 0, 0)),
            pl.BlockSpec(scale.shape, lambda n: (0, 0)),
            pl.BlockSpec(bias.shape, lambda n: (0, 0)),
            pl.BlockSpec(w1.shape, lambda n: (0, 0)),
            pl.BlockSpec(b1.shape, lambda n: (0, 0)),
            pl.BlockSpec(w2p.shape, lambda n: (0, 0)),
            pl.BlockSpec(b2p.shape, lambda n: (0, 0))],
        out_specs=pl.BlockSpec((1, 1, cpad), lambda n: (n, 0, 0)),
        scratch_shapes=[pltpu.VMEM((4 * P, Cin), jnp.bfloat16),
                        pltpu.VMEM((4 * P, Cout), jnp.float32)],
        compiler_params=_COMPILER_PARAMS,
    )(*planes, w9, scale, bias, w1, b1, w2p, b2p)
    return out.reshape(N, cpad)


def _conv1_im2col(x):
    # x: (N, H, W, 3) bf16.  Rows ordered (pool pos q = 2*py+px, pixel i*Wo+j);
    # column k = kh*9 + kw*3 + cin, lane-padded 27 -> 32.  Only touches the
    # tiny 3-channel input, so the extra wrapper HBM traffic is negligible.
    N, H, W, C = x.shape
    Ho, Wo = H // 2, W // 2
    xp = jnp.pad(x, ((0, 0), (1, 1), (1, 1), (0, 0)))
    taps = [xp[:, kh:kh + H, kw:kw + W, :] for kh in range(3) for kw in range(3)]
    pat = jnp.concatenate(taps, axis=-1)                          # (N, H, W, 27)
    pat = jnp.pad(pat, ((0, 0), (0, 0), (0, 0), (0, CONV1_K - 9 * C)))
    pat = pat.reshape(N, Ho, 2, Wo, 2, CONV1_K)
    pat = pat.transpose(0, 2, 4, 1, 3, 5)                         # (N,py,px,i,j,K)
    return pat.reshape(N, 4 * Ho * Wo, CONV1_K)


# ----------------------------------------------------------------------------
# Parameters (deterministic synthetic init; BatchNorm folded to scale/bias)
# ----------------------------------------------------------------------------
def init_params(key, num_classes):
    chans = [3, 32, 64, 128, 256]
    params = {}
    keys = jax.random.split(key, 4 * 4 + 4)
    it = iter(keys)
    for i in range(4):
        cin, cout = chans[i], chans[i + 1]
        w = 0.1 * jax.random.normal(next(it), (3, 3, cin, cout), jnp.float32)
        gamma = 1.0 + 0.1 * jax.random.normal(next(it), (cout,), jnp.float32)
        beta = 0.05 * jax.random.normal(next(it), (cout,), jnp.float32)
        mean = 0.01 * jax.random.normal(next(it), (cout,), jnp.float32)
        var = jnp.ones((cout,), jnp.float32)
        scale = (gamma / jnp.sqrt(var + BN_EPS)).reshape(1, cout)
        bias = beta.reshape(1, cout) - mean.reshape(1, cout) * scale
        if i == 0:
            wk = jnp.zeros((CONV1_K, cout), jnp.float32)
            wk = wk.at[:9 * cin].set(w.reshape(9 * cin, cout))    # (27->32, 32)
            params["conv1"] = (wk.astype(jnp.bfloat16), scale, bias)
        else:
            params[f"conv{i + 1}"] = (
                w.reshape(9, cin, cout).astype(jnp.bfloat16), scale, bias)
    cpad = ((num_classes + LANE - 1) // LANE) * LANE              # 10 -> 128
    w1 = 0.05 * jax.random.normal(next(it), (256, 128), jnp.float32)
    b1 = 0.01 * jax.random.normal(next(it), (1, 128), jnp.float32)
    w2 = 0.05 * jax.random.normal(next(it), (128, num_classes), jnp.float32)
    b2 = 0.01 * jax.random.normal(next(it), (1, num_classes), jnp.float32)
    w2p = jnp.zeros((128, cpad), jnp.float32).at[:, :num_classes].set(w2)
    b2p = jnp.zeros((1, cpad), jnp.float32).at[:, :num_classes].set(b2)
    params["fc"] = (w1.astype(jnp.bfloat16), b1, w2p.astype(jnp.bfloat16), b2p)
    return params


# ----------------------------------------------------------------------------
# Forward pass (matches PlantDiseaseModel.forward, inference mode)
# ----------------------------------------------------------------------------
@jax.jit
def plant_disease_forward(x_nchw, params):
    x = jnp.transpose(x_nchw, (0, 2, 3, 1)).astype(jnp.bfloat16)  # NCHW -> NHWC
    N, H, W, _ = x.shape
    Ho, Wo = H // 2, W // 2
    w1c, s1, b1 = params["conv1"]
    planes = conv1_block(_conv1_im2col(x), w1c, s1, b1, Ho, Wo)
    for name in ("conv2", "conv3"):
        w9, s, b = params[name]
        Ho, Wo = Ho // 2, Wo // 2
        planes = conv_block(planes, w9, s, b, Ho, Wo)
    w9, s, b = params["conv4"]
    Ho, Wo = Ho // 2, Wo // 2
    logits_pad = conv_head(planes, w9, s, b, params["fc"], Ho, Wo)
    return logits_pad[:, :NUM_CLASSES]


if __name__ == "__main__":
    key = jax.random.PRNGKey(0)
    k_param, k_x = jax.random.split(key)
    params = init_params(k_param, NUM_CLASSES)
    # Small NCHW input, consistent with the module (3 input channels).
    x = jax.random.normal(k_x, (2, 3, 16, 16), dtype=jnp.float32)
    logits = plant_disease_forward(x, params)
    jax.block_until_ready(logits)
    assert logits.shape == (2, NUM_CLASSES)
    assert bool(jnp.all(jnp.isfinite(logits)))
    print("KERNEL_OK")
</pallas_src>

<mosaic_0001>
module attributes {stable_mosaic.version = 11 : i64} {
  func.func @kernel(%arg0: i32, %arg1: memref<1x256x32xbf16, #tpu.memory_space<vmem>>, %arg2: memref<32x32xbf16, #tpu.memory_space<vmem>>, %arg3: memref<1x32xf32, #tpu.memory_space<vmem>>, %arg4: memref<1x32xf32, #tpu.memory_space<vmem>>, %arg5: memref<1x5x5x32xbf16, #tpu.memory_space<vmem>>, %arg6: memref<1x5x5x32xbf16, #tpu.memory_space<vmem>>, %arg7: memref<1x5x5x32xbf16, #tpu.memory_space<vmem>>, %arg8: memref<1x5x5x32xbf16, #tpu.memory_space<vmem>>) attributes {dimension_semantics = [#tpu.dimension_semantics<parallel>], iteration_bounds = array<i64: 2>, scalar_prefetch = 0 : i64, scratch_operands = 0 : i64, tpu.core_type = #tpu.core_type<tc>, window_params = [{transform_indices = @transform_0, window_bounds = array<i64: 1, 256, 32>}, {pipeline_mode = #tpu.pipeline_mode<synchronous>, transform_indices = @transform_1, window_bounds = array<i64: 32, 32>}, {pipeline_mode = #tpu.pipeline_mode<synchronous>, transform_indices = @transform_2, window_bounds = array<i64: 1, 32>}, {pipeline_mode = #tpu.pipeline_mode<synchronous>, transform_indices = @transform_3, window_bounds = array<i64: 1, 32>}, {transform_indices = @transform_4, window_bounds = array<i64: 1, 5, 5, 32>}, {transform_indices = @transform_5, window_bounds = array<i64: 1, 5, 5, 32>}, {transform_indices = @transform_6, window_bounds = array<i64: 1, 5, 5, 32>}, {transform_indices = @transform_7, window_bounds = array<i64: 1, 5, 5, 32>}]} {
    %c0 = arith.constant 0 : index
    %c0_0 = arith.constant 0 : index
    %c0_1 = arith.constant 0 : index
    %0 = vector.load %arg1[%c0, %c0_0, %c0_1] : memref<1x256x32xbf16, #tpu.memory_space<vmem>>, vector<1x256x32xbf16>
    %1 = vector.shape_cast %0 : vector<1x256x32xbf16> to vector<256x32xbf16>
    %c0_2 = arith.constant 0 : index
    %c0_3 = arith.constant 0 : index
    %2 = vector.load %arg2[%c0_2, %c0_3] : memref<32x32xbf16, #tpu.memory_space<vmem>>, vector<32x32xbf16>
    %cst = arith.constant dense<0.000000e+00> : vector<256x32xf32>
    %3 = tpu.matmul %1, %2, %cst {dimension_numbers = #tpu.dot_dimension_numbers<[1], [0], [0], [1], [0, 0, 1, 1], [], []>} : vector<256x32xbf16>, vector<32x32xbf16>, vector<256x32xf32> -> vector<256x32xf32>
    %c0_4 = arith.constant 0 : index
    %c0_5 = arith.constant 0 : index
    %4 = vector.load %arg3[%c0_4, %c0_5] : memref<1x32xf32, #tpu.memory_space<vmem>>, vector<1x32xf32>
    %5 = vector.broadcast %4 : vector<1x32xf32> to vector<256x32xf32>
    %6 = arith.mulf %3, %5 : vector<256x32xf32>
    %c0_6 = arith.constant 0 : index
    %c0_7 = arith.constant 0 : index
    %7 = vector.load %arg4[%c0_6, %c0_7] : memref<1x32xf32, #tpu.memory_space<vmem>>, vector<1x32xf32>
    %8 = vector.broadcast %7 : vector<1x32xf32> to vector<256x32xf32>
    %9 = arith.addf %6, %8 : vector<256x32xf32>
    %10 = vector.extract_strided_slice %9 {offsets = [0, 0], sizes = [64, 32], strides = [1, 1]} : vector<256x32xf32> to vector<64x32xf32>
    %11 = vector.extract_strided_slice %9 {offsets = [64, 0], sizes = [64, 32], strides = [1, 1]} : vector<256x32xf32> to vector<64x32xf32>
    %12 = arith.maximumf %10, %11 : vector<64x32xf32>
    %13 = vector.extract_strided_slice %9 {offsets = [128, 0], sizes = [64, 32], strides = [1, 1]} : vector<256x32xf32> to vector<64x32xf32>
    %14 = vector.extract_strided_slice %9 {offsets = [192, 0], sizes = [64, 32], strides = [1, 1]} : vector<256x32xf32> to vector<64x32xf32>
    %15 = arith.maximumf %13, %14 : vector<64x32xf32>
    %16 = arith.maximumf %12, %15 : vector<64x32xf32>
    %cst_8 = arith.constant 0.000000e+00 : f32
    %17 = vector.broadcast %cst_8 : f32 to vector<64x32xf32>
    %18 = arith.maximumf %16, %17 : vector<64x32xf32>
    %19 = arith.truncf %18 : vector<64x32xf32> to vector<64x32xbf16>
    %cst_9 = arith.constant 0.000000e+00 : bf16
    %20 = vector.broadcast %cst_9 : bf16 to vector<5x32xbf16>
    %cst_10 = arith.constant 0.000000e+00 : bf16
    %21 = vector.broadcast %cst_10 : bf16 to vector<1x32xbf16>
    %c0_11 = arith.constant 0 : index
    %c0_12 = arith.constant 0 : index
    %c0_13 = arith.constant 0 : index
    %c0_14 = arith.constant 0 : index
    %22 = vector.load %arg5[%c0_11, %c0_12, %c0_13, %c0_14] : memref<1x5x5x32xbf16, #tpu.memory_space<vmem>>, vector<1x1x5x32xbf16>
    %23 = vector.shape_cast %22 : vector<1x1x5x32xbf16> to vector<5x32xbf16>
    %24 = vector.shape_cast %20 : vector<5x32xbf16> to vector<1x1x5x32xbf16>
    tpu.vector_store %arg5[%c0_11, %c0_12, %c0_13, %c0_14], %24 {strides = array<i32>} : memref<1x5x5x32xbf16, #tpu.memory_space<vmem>>, vector<1x1x5x32xbf16>,
    %25 = vector.extract_strided_slice %19 {offsets = [9, 0], sizes = [1, 32], strides = [1, 1]} : vector<64x32xbf16> to vector<1x32xbf16>
    %26 = vector.extract_strided_slice %19 {offsets = [11, 0], sizes = [1, 32], strides = [1, 1]} : vector<64x32xbf16> to vector<1x32xbf16>
    %27 = vector.extract_strided_slice %19 {offsets = [13, 0], sizes = [1, 32], strides = [1, 1]} : vector<64x32xbf16> to vector<1x32xbf16>
    %28 = vector.extract_strided_slice %19 {offsets = [15, 0], sizes = [1, 32], strides = [1, 1]} : vector<64x32xbf16> to vector<1x32xbf16>
    %29 = tpu.concatenate %25, %26, %27, %28 in 0 : vector<1x32xbf16>, vector<1x32xbf16>, vector<1x32xbf16>, vector<1x32xbf16> -> vector<4x32xbf16>
    %30 = tpu.concatenate %21, %29 in 0 : vector<1x32xbf16>, vector<4x32xbf16> -> vector<5x32xbf16>
    %c0_15 = arith.constant 0 : index
    %c1 = arith.constant 1 : index
    %c0_16 = arith.constant 0 : index
    %c0_17 = arith.constant 0 : index
    %31 = vector.load %arg5[%c0_15, %c1, %c0_16, %c0_17] : memref<1x5x5x32xbf16, #tpu.memory_space<vmem>>, vector<1x1x5x32xbf16>
    %32 = vector.shape_cast %31 : vector<1x1x5x32xbf16> to vector<5x32xbf16>
    %33 = vector.shape_cast %30 : vector<5x32xbf16> to vector<1x1x5x32xbf16>
    tpu.vector_store %arg5[%c0_15, %c1, %c0_16, %c0_17], %33 {strides = array<i32>} : memref<1x5x5x32xbf16, #tpu.memory_space<vmem>>, vector<1x1x5x32xbf16>,
    %34 = vector.extract_strided_slice %19 {offsets = [25, 0], sizes = [1, 32], strides = [1, 1]} : vector<64x32xbf16> to vector<1x32xbf16>
    %35 = vector.extract_strided_slice %19 {offsets = [27, 0], sizes = [1, 32], strides = [1, 1]} : vector<64x32xbf16> to vector<1x32xbf16>
    %36 = vector.extract_strided_slice %19 {offsets = [29, 0], sizes = [1, 32], strides = [1, 1]} : vector<64x32xbf16> to vector<1x32xbf16>
    %37 = vector.extract_strided_slice %19 {offsets = [31, 0], sizes = [1, 32], strides = [1, 1]} : vector<64x32xbf16> to vector<1x32xbf16>
    %38 = tpu.concatenate %34, %35, %36, %37 in 0 : vector<1x32xbf16>, vector<1x32xbf16>, vector<1x32xbf16>, vector<1x32xbf16> -> vector<4x32xbf16>
    %39 = tpu.concatenate %21, %38 in 0 : vector<1x32xbf16>, vector<4x32xbf16> -> vector<5x32xbf16>
    %c0_18 = arith.constant 0 : index
    %c2 = arith.constant 2 : index
    %c0_19 = arith.constant 0 : index
    %c0_20 = arith.constant 0 : index
    %40 = vector.load %arg5[%c0_18, %c2, %c0_19, %c0_20] : memref<1x5x5x32xbf16, #tpu.memory_space<vmem>>, vector<1x1x5x32xbf16>
    %41 = vector.shape_cast %40 : vector<1x1x5x32xbf16> to vector<5x32xbf16>
    %42 = vector.shape_cast %39 : vector<5x32xbf16> to vector<1x1x5x32xbf16>
    tpu.vector_store %arg5[%c0_18, %c2, %c0_19, %c0_20], %42 {strides = array<i32>} : memref<1x5x5x32xbf16, #tpu.memory_space<vmem>>, vector<1x1x5x32xbf16>,
    %43 = vector.extract_strided_slice %19 {offsets = [41, 0], sizes = [1, 32], strides = [1, 1]} : vector<64x32xbf16> to vector<1x32xbf16>
    %44 = vector.extract_strided_slice %19 {offsets = [43, 0], sizes = [1, 32], strides = [1, 1]} : vector<64x32xbf16> to vector<1x32xbf16>
    %45 = vector.extract_strided_slice %19 {offsets = [45, 0], sizes = [1, 32], strides = [1, 1]} : vector<64x32xbf16> to vector<1x32xbf16>
    %46 = vector.extract_strided_slice %19 {offsets = [47, 0], sizes = [1, 32], strides = [1, 1]} : vector<64x32xbf16> to vector<1x32xbf16>
    %47 = tpu.concatenate %43, %44, %45, %46 in 0 : vector<1x32xbf16>, vector<1x32xbf16>, vector<1x32xbf16>, vector<1x32xbf16> -> vector<4x32xbf16>
    %48 = tpu.concatenate %21, %47 in 0 : vector<1x32xbf16>, vector<4x32xbf16> -> vector<5x32xbf16>
    %c0_21 = arith.constant 0 : index
    %c3 = arith.constant 3 : index
    %c0_22 = arith.constant 0 : index
    %c0_23 = arith.constant 0 : index
    %49 = vector.load %arg5[%c0_21, %c3, %c0_22, %c0_23] : memref<1x5x5x32xbf16, #tpu.memory_space<vmem>>, vector<1x1x5x32xbf16>
    %50 = vector.shape_cast %49 : vector<1x1x5x32xbf16> to vector<5x32xbf16>
    %51 = vector.shape_cast %48 : vector<5x32xbf16> to vector<1x1x5x32xbf16>
    tpu.vector_store %arg5[%c0_21, %c3, %c0_22, %c0_23], %51 {strides = array<i32>} : memref<1x5x5x32xbf16, #tpu.memory_space<vmem>>, vector<1x1x5x32xbf16>,
    %52 = vector.extract_strided_slice %19 {offsets = [57, 0], sizes = [1, 32], strides = [1, 1]} : vector<64x32xbf16> to vector<1x32xbf16>
    %53 = vector.extract_strided_slice %19 {offsets = [59, 0], sizes = [1, 32], strides = [1, 1]} : vector<64x32xbf16> to vector<1x32xbf16>
    %54 = vector.extract_strided_slice %19 {offsets = [61, 0], sizes = [1, 32], strides = [1, 1]} : vector<64x32xbf16> to vector<1x32xbf16>
    %55 = vector.extract_strided_slice %19 {offsets = [63, 0], sizes = [1, 32], strides = [1, 1]} : vector<64x32xbf16> to vector<1x32xbf16>
    %56 = tpu.concatenate %52, %53, %54, %55 in 0 : vector<1x32xbf16>, vector<1x32xbf16>, vector<1x32xbf16>, vector<1x32xbf16> -> vector<4x32xbf16>
    %57 = tpu.concatenate %21, %56 in 0 : vector<1x32xbf16>, vector<4x32xbf16> -> vector<5x32xbf16>
    %c0_24 = arith.constant 0 : index
    %c4 = arith.constant 4 : index
    %c0_25 = arith.constant 0 : index
    %c0_26 = arith.constant 0 : index
    %58 = vector.load %arg5[%c0_24, %c4, %c0_25, %c0_26] : memref<1x5x5x32xbf16, #tpu.memory_space<vmem>>, vector<1x1x5x32xbf16>
    %59 = vector.shape_cast %58 : vector<1x1x5x32xbf16> to vector<5x32xbf16>
    %60 = vector.shape_cast %57 : vector<5x32xbf16> to vector<1x1x5x32xbf16>
    tpu.vector_store %arg5[%c0_24, %c4, %c0_25, %c0_26], %60 {strides = array<i32>} : memref<1x5x5x32xbf16, #tpu.memory_space<vmem>>, vector<1x1x5x32xbf16>,
    %c0_27 = arith.constant 0 : index
    %c0_28 = arith.constant 0 : index
    %c0_29 = arith.constant 0 : index
    %c0_30 = arith.constant 0 : index
    %61 = vector.load %arg6[%c0_27, %c0_28, %c0_29, %c0_30] : memref<1x5x5x32xbf16, #tpu.memory_space<vmem>>, vector<1x1x5x32xbf16>
    %62 = vector.shape_cast %61 : vector<1x1x5x32xbf16> to vector<5x32xbf16>
    %63 = vector.shape_cast %20 : vector<5x32xbf16> to vector<1x1x5x32xbf16>
    tpu.vector_store %arg6[%c0_27, %c0_28, %c0_29, %c0_30], %63 {strides = array<i32>} : memref<1x5x5x32xbf16, #tpu.memory_space<vmem>>, vector<1x1x5x32xbf16>,
    %64 = vector.extract_strided_slice %19 {offsets = [8, 0], sizes = [1, 32], strides = [1, 1]} : vector<64x32xbf16> to vector<1x32xbf16>
    %65 = vector.extract_strided_slice %19 {offsets = [10, 0], sizes = [1, 32], strides = [1, 1]} : vector<64x32xbf16> to vector<1x32xbf16>
    %66 = vector.extract_strided_slice %19 {offsets = [12, 0], sizes = [1, 32], strides = [1, 1]} : vector<64x32xbf16> to vector<1x32xbf16>
    %67 = vector.extract_strided_slice %19 {offsets = [14, 0], sizes = [1, 32], strides = [1, 1]} : vector<64x32xbf16> to vector<1x32xbf16>
    %68 = tpu.concatenate %64, %65, %66, %67 in 0 : vector<1x32xbf16>, vector<1x32xbf16>, vector<1x32xbf16>, vector<1x32xbf16> -> vector<4x32xbf16>
    %69 = tpu.concatenate %68, %21 in 0 : vector<4x32xbf16>, vector<1x32xbf16> -> vector<5x32xbf16>
    %c0_31 = arith.constant 0 : index
    %c1_32 = arith.constant 1 : index
    %c0_33 = arith.constant 0 : index
    %c0_34 = arith.constant 0 : index
    %70 = vector.load %arg6[%c0_31, %c1_32, %c0_33, %c0_34] : memref<1x5x5x32xbf16, #tpu.memory_space<vmem>>, vector<1x1x5x32xbf16>
    %71 = vector.shape_cast %70 : vector<1x1x5x32xbf16> to vector<5x32xbf16>
    %72 = vector.shape_cast %69 : vector<5x32xbf16> to vector<1x1x5x32xbf16>
    tpu.vector_store %arg6[%c0_31, %c1_32, %c0_33, %c0_34], %72 {strides = array<i32>} : memref<1x5x5x32xbf16, #tpu.memory_space<vmem>>, vector<1x1x5x32xbf16>,
    %73 = vector.extract_strided_slice %19 {offsets = [24, 0], sizes = [1, 32], strides = [1, 1]} : vector<64x32xbf16> to vector<1x32xbf16>
    %74 = vector.extract_strided_slice %19 {offsets = [26, 0], sizes = [1, 32], strides = [1, 1]} : vector<64x32xbf16> to vector<1x32xbf16>
    %75 = vector.extract_strided_slice %19 {offsets = [28, 0], sizes = [1, 32], strides = [1, 1]} : vector<64x32xbf16> to vector<1x32xbf16>
    %76 = vector.extract_strided_slice %19 {offsets = [30, 0], sizes = [1, 32], strides = [1, 1]} : vector<64x32xbf16> to vector<1x32xbf16>
    %77 = tpu.concatenate %73, %74, %75, %76 in 0 : vector<1x32xbf16>, vector<1x32xbf16>, vector<1x32xbf16>, vector<1x32xbf16> -> vector<4x32xbf16>
    %78 = tpu.concatenate %77, %21 in 0 : vector<4x32xbf16>, vector<1x32xbf16> -> vector<5x32xbf16>
    %c0_35 = arith.constant 0 : index
    %c2_36 = arith.constant 2 : index
    %c0_37 = arith.constant 0 : index
    %c0_38 = arith.constant 0 : index
    %79 = vector.load %arg6[%c0_35, %c2_36, %c0_37, %c0_38] : memref<1x5x5x32xbf16, #tpu.memory_space<vmem>>, vector<1x1x5x32xbf16>
    %80 = vector.shape_cast %79 : vector<1x1x5x32xbf16> to vector<5x32xbf16>
    %81 = vector.shape_cast %78 : vector<5x32xbf16> to vector<1x1x5x32xbf16>
    tpu.vector_store %arg6[%c0_35, %c2_36, %c0_37, %c0_38], %81 {strides = array<i32>} : memref<1x5x5x32xbf16, #tpu.memory_space<vmem>>, vector<1x1x5x32xbf16>,
    %82 = vector.extract_strided_slice %19 {offsets = [40, 0], sizes = [1, 32], strides = [1, 1]} : vector<64x32xbf16> to vector<1x32xbf16>
    %83 = vector.extract_strided_slice %19 {offsets = [42, 0], sizes = [1, 32], strides = [1, 1]} : vector<64x32xbf16> to vector<1x32xbf16>
    %84 = vector.extract_strided_slice %19 {offsets = [44, 0], sizes = [1, 32], strides = [1, 1]} : vector<64x32xbf16> to vector<1x32xbf16>
    %85 = vector.extract_strided_slice %19 {offsets = [46, 0], sizes = [1, 32], strides = [1, 1]} : vector<64x32xbf16> to vector<1x32xbf16>
    %86 = tpu.concatenate %82, %83, %84, %85 in 0 : vector<1x32xbf16>, vector<1x32xbf16>, vector<1x32xbf16>, vector<1x32xbf16> -> vector<4x32xbf16>
    %87 = tpu.concatenate %86, %21 in 0 : vector<4x32xbf16>, vector<1x32xbf16> -> vector<5x32xbf16>
    %c0_39 = arith.constant 0 : index
    %c3_40 = arith.constant 3 : index
    %c0_41 = arith.constant 0 : index
    %c0_42 = arith.constant 0 : index
    %88 = vector.load %arg6[%c0_39, %c3_40, %c0_41, %c0_42] : memref<1x5x5x32xbf16, #tpu.memory_space<vmem>>, vector<1x1x5x32xbf16>
    %89 = vector.shape_cast %88 : vector<1x1x5x32xbf16> to vector<5x32xbf16>
    %90 = vector.shape_cast %87 : vector<5x32xbf16> to vector<1x1x5x32xbf16>
    tpu.vector_store %arg6[%c0_39, %c3_40, %c0_41, %c0_42], %90 {strides = array<i32>} : memref<1x5x5x32xbf16, #tpu.memory_space<vmem>>, vector<1x1x5x32xbf16>,
    %91 = vector.extract_strided_slice %19 {offsets = [56, 0], sizes = [1, 32], strides = [1, 1]} : vector<64x32xbf16> to vector<1x32xbf16>
    %92 = vector.extract_strided_slice %19 {offsets = [58, 0], sizes = [1, 32], strides = [1, 1]} : vector<64x32xbf16> to vector<1x32xbf16>
    %93 = vector.extract_strided_slice %19 {offsets = [60, 0], sizes = [1, 32], strides = [1, 1]} : vector<64x32xbf16> to vector<1x32xbf16>
    %94 = vector.extract_strided_slice %19 {offsets = [62, 0], sizes = [1, 32], strides = [1, 1]} : vector<64x32xbf16> to vector<1x32xbf16>
    %95 = tpu.concatenate %91, %92, %93, %94 in 0 : vector<1x32xbf16>, vector<1x32xbf16>, vector<1x32xbf16>, vector<1x32xbf16> -> vector<4x32xbf16>
    %96 = tpu.concatenate %95, %21 in 0 : vector<4x32xbf16>, vector<1x32xbf16> -> vector<5x32xbf16>
    %c0_43 = arith.constant 0 : index
    %c4_44 = arith.constant 4 : index
    %c0_45 = arith.constant 0 : index
    %c0_46 = arith.constant 0 : index
    %97 = vector.load %arg6[%c0_43, %c4_44, %c0_45, %c0_46] : memref<1x5x5x32xbf16, #tpu.memory_space<vmem>>, vector<1x1x5x32xbf16>
    %98 = vector.shape_cast %97 : vector<1x1x5x32xbf16> to vector<5x32xbf16>
    %99 = vector.shape_cast %96 : vector<5x32xbf16> to vector<1x1x5x32xbf16>
    tpu.vector_store %arg6[%c0_43, %c4_44, %c0_45, %c0_46], %99 {strides = array<i32>} : memref<1x5x5x32xbf16, #tpu.memory_space<vmem>>, vector<1x1x5x32xbf16>,
    %c0_47 = arith.constant 0 : index
    %c4_48 = arith.constant 4 : index
    %c0_49 = arith.constant 0 : index
    %c0_50 = arith.constant 0 : index
    %100 = vector.load %arg7[%c0_47, %c4_48, %c0_49, %c0_50] : memref<1x5x5x32xbf16, #tpu.memory_space<vmem>>, vector<1x1x5x32xbf16>
    %101 = vector.shape_cast %100 : vector<1x1x5x32xbf16> to vector<5x32xbf16>
    %102 = vector.shape_cast %20 : vector<5x32xbf16> to vector<1x1x5x32xbf16>
    tpu.vector_store %arg7[%c0_47, %c4_48, %c0_49, %c0_50], %102 {strides = array<i32>} : memref<1x5x5x32xbf16, #tpu.memory_space<vmem>>, vector<1x1x5x32xbf16>,
    %103 = vector.extract_strided_slice %19 {offsets = [1, 0], sizes = [1, 32], strides = [1, 1]} : vector<64x32xbf16> to vector<1x32xbf16>
    %104 = vector.extract_strided_slice %19 {offsets = [3, 0], sizes = [1, 32], strides = [1, 1]} : vector<64x32xbf16> to vector<1x32xbf16>
    %105 = vector.extract_strided_slice %19 {offsets = [5, 0], sizes = [1, 32], strides = [1, 1]} : vector<64x32xbf16> to vector<1x32xbf16>
    %106 = vector.extract_strided_slice %19 {offsets = [7, 0], sizes = [1, 32], strides = [1, 1]} : vector<64x32xbf16> to vector<1x32xbf16>
    %107 = tpu.concatenate %103, %104, %105, %106 in 0 : vector<1x32xbf16>, vector<1x32xbf16>, vector<1x32xbf16>, vector<1x32xbf16> -> vector<4x32xbf16>
    %108 = tpu.concatenate %21, %107 in 0 : vector<1x32xbf16>, vector<4x32xbf16> -> vector<5x32xbf16>
    %c0_51 = arith.constant 0 : index
    %c0_52 = arith.constant 0 : index
    %c0_53 = arith.constant 0 : index
    %c0_54 = arith.constant 0 : index
    %109 = vector.load %arg7[%c0_51, %c0_52, %c0_53, %c0_54] : memref<1x5x5x32xbf16, #tpu.memory_space<vmem>>, vector<1x1x5x32xbf16>
    %110 = vector.shape_cast %109 : vector<1x1x5x32xbf16> to vector<5x32xbf16>
    %111 = vector.shape_cast %108 : vector<5x32xbf16> to vector<1x1x5x32xbf16>
    tpu.vector_store %arg7[%c0_51, %c0_52, %c0_53, %c0_54], %111 {strides = array<i32>} : memref<1x5x5x32xbf16, #tpu.memory_space<vmem>>, vector<1x1x5x32xbf16>,
    %112 = vector.extract_strided_slice %19 {offsets = [17, 0], sizes = [1, 32], strides = [1, 1]} : vector<64x32xbf16> to vector<1x32xbf16>
    %113 = vector.extract_strided_slice %19 {offsets = [19, 0], sizes = [1, 32], strides = [1, 1]} : vector<64x32xbf16> to vector<1x32xbf16>
    %114 = vector.extract_strided_slice %19 {offsets = [21, 0], sizes = [1, 32], strides = [1, 1]} : vector<64x32xbf16> to vector<1x32xbf16>
    %115 = vector.extract_strided_slice %19 {offsets = [23, 0], sizes = [1, 32], strides = [1, 1]} : vector<64x32xbf16> to vector<1x32xbf16>
    %116 = tpu.concatenate %112, %113, %114, %115 in 0 : vector<1x32xbf16>, vector<1x32xbf16>, vector<1x32xbf16>, vector<1x32xbf16> -> vector<4x32xbf16>
    %117 = tpu.concatenate %21, %116 in 0 : vector<1x32xbf16>, vector<4x32xbf16> -> vector<5x32xbf16>
    %c0_55 = arith.constant 0 : index
    %c1_56 = arith.constant 1 : index
    %c0_57 = arith.constant 0 : index
    %c0_58 = arith.constant 0 : index
    %118 = vector.load %arg7[%c0_55, %c1_56, %c0_57, %c0_58] : memref<1x5x5x32xbf16, #tpu.memory_space<vmem>>, vector<1x1x5x32xbf16>
    %119 = vector.shape_cast %118 : vector<1x1x5x32xbf16> to vector<5x32xbf16>
    %120 = vector.shape_cast %117 : vector<5x32xbf16> to vector<1x1x5x32xbf16>
    tpu.vector_store %arg7[%c0_55, %c1_56, %c0_57, %c0_58], %120 {strides = array<i32>} : memref<1x5x5x32xbf16, #tpu.memory_space<vmem>>, vector<1x1x5x32xbf16>,
    %121 = vector.extract_strided_slice %19 {offsets = [33, 0], sizes = [1, 32], strides = [1, 1]} : vector<64x32xbf16> to vector<1x32xbf16>
    %122 = vector.extract_strided_slice %19 {offsets = [35, 0], sizes = [1, 32], strides = [1, 1]} : vector<64x32xbf16> to vector<1x32xbf16>
    %123 = vector.extract_strided_slice %19 {offsets = [37, 0], sizes = [1, 32], strides = [1, 1]} : vector<64x32xbf16> to vector<1x32xbf16>
    %124 = vector.extract_strided_slice %19 {offsets = [39, 0], sizes = [1, 32], strides = [1, 1]} : vector<64x32xbf16> to vector<1x32xbf16>
    %125 = tpu.concatenate %121, %122, %123, %124 in 0 : vector<1x32xbf16>, vector<1x32xbf16>, vector<1x32xbf16>, vector<1x32xbf16> -> vector<4x32xbf16>
    %126 = tpu.concatenate %21, %125 in 0 : vector<1x32xbf16>, vector<4x32xbf16> -> vector<5x32xbf16>
    %c0_59 = arith.constant 0 : index
    %c2_60 = arith.constant 2 : index
    %c0_61 = arith.constant 0 : index
    %c0_62 = arith.constant 0 : index
    %127 = vector.load %arg7[%c0_59, %c2_60, %c0_61, %c0_62] : memref<1x5x5x32xbf16, #tpu.memory_space<vmem>>, vector<1x1x5x32xbf16>
    %128 = vector.shape_cast %127 : vector<1x1x5x32xbf16> to vector<5x32xbf16>
    %129 = vector.shape_cast %126 : vector<5x32xbf16> to vector<1x1x5x32xbf16>
    tpu.vector_store %arg7[%c0_59, %c2_60, %c0_61, %c0_62], %129 {strides = array<i32>} : memref<1x5x5x32xbf16, #tpu.memory_space<vmem>>, vector<1x1x5x32xbf16>,
    %130 = vector.extract_strided_slice %19 {offsets = [49, 0], sizes = [1, 32], strides = [1, 1]} : vector<64x32xbf16> to vector<1x32xbf16>
    %131 = vector.extract_strided_slice %19 {offsets = [51, 0], sizes = [1, 32], strides = [1, 1]} : vector<64x32xbf16> to vector<1x32xbf16>
    %132 = vector.extract_strided_slice %19 {offsets = [53, 0], sizes = [1, 32], strides = [1, 1]} : vector<64x32xbf16> to vector<1x32xbf16>
    %133 = vector.extract_strided_slice %19 {offsets = [55, 0], sizes = [1, 32], strides = [1, 1]} : vector<64x32xbf16> to vector<1x32xbf16>
    %134 = tpu.concatenate %130, %131, %132, %133 in 0 : vector<1x32xbf16>, vector<1x32xbf16>, vector<1x32xbf16>, vector<1x32xbf16> -> vector<4x32xbf16>
    %135 = tpu.concatenate %21, %134 in 0 : vector<1x32xbf16>, vector<4x32xbf16> -> vector<5x32xbf16>
    %c0_63 = arith.constant 0 : index
    %c3_64 = arith.constant 3 : index
    %c0_65 = arith.constant 0 : index
    %c0_66 = arith.constant 0 : index
    %136 = vector.load %arg7[%c0_63, %c3_64, %c0_65, %c0_66] : memref<1x5x5x32xbf16, #tpu.memory_space<vmem>>, vector<1x1x5x32xbf16>
    %137 = vector.shape_cast %136 : vector<1x1x5x32xbf16> to vector<5x32xbf16>
    %138 = vector.shape_cast %135 : vector<5x32xbf16> to vector<1x1x5x32xbf16>
    tpu.vector_store %arg7[%c0_63, %c3_64, %c0_65, %c0_66], %138 {strides = array<i32>} : memref<1x5x5x32xbf16, #tpu.memory_space<vmem>>, vector<1x1x5x32xbf16>,
    %c0_67 = arith.constant 0 : index
    %c4_68 = arith.constant 4 : index
    %c0_69 = arith.constant 0 : index
    %c0_70 = arith.constant 0 : index
    %139 = vector.load %arg8[%c0_67, %c4_68, %c0_69, %c0_70] : memref<1x5x5x32xbf16, #tpu.memory_space<vmem>>, vector<1x1x5x32xbf16>
    %140 = vector.shape_cast %139 : vector<1x1x5x32xbf16> to vector<5x32xbf16>
    %141 = vector.shape_cast %20 : vector<5x32xbf16> to vector<1x1x5x32xbf16>
    tpu.vector_store %arg8[%c0_67, %c4_68, %c0_69, %c0_70], %141 {strides = array<i32>} : memref<1x5x5x32xbf16, #tpu.memory_space<vmem>>, vector<1x1x5x32xbf16>,
    %142 = vector.extract_strided_slice %19 {offsets = [0, 0], sizes = [1, 32], strides = [1, 1]} : vector<64x32xbf16> to vector<1x32xbf16>
    %143 = vector.extract_strided_slice %19 {offsets = [2, 0], sizes = [1, 32], strides = [1, 1]} : vector<64x32xbf16> to vector<1x32xbf16>
    %144 = vector.extract_strided_slice %19 {offsets = [4, 0], sizes = [1, 32], strides = [1, 1]} : vector<64x32xbf16> to vector<1x32xbf16>
    %145 = vector.extract_strided_slice %19 {offsets = [6, 0], sizes = [1, 32], strides = [1, 1]} : vector<64x32xbf16> to vector<1x32xbf16>
    %146 = tpu.concatenate %142, %143, %144, %145 in 0 : vector<1x32xbf16>, vector<1x32xbf16>, vector<1x32xbf16>, vector<1x32xbf16> -> vector<4x32xbf16>
    %147 = tpu.concatenate %146, %21 in 0 : vector<4x32xbf16>, vector<1x32xbf16> -> vector<5x32xbf16>
    %c0_71 = arith.constant 0 : index
    %c0_72 = arith.constant 0 : index
    %c0_73 = arith.constant 0 : index
    %c0_74 = arith.constant 0 : index
    %148 = vector.load %arg8[%c0_71, %c0_72, %c0_73, %c0_74] : memref<1x5x5x32xbf16, #tpu.memory_space<vmem>>, vector<1x1x5x32xbf16>
    %149 = vector.shape_cast %148 : vector<1x1x5x32xbf16> to vector<5x32xbf16>
    %150 = vector.shape_cast %147 : vector<5x32xbf16> to vector<1x1x5x32xbf16>
    tpu.vector_store %arg8[%c0_71, %c0_72, %c0_73, %c0_74], %150 {strides = array<i32>} : memref<1x5x5x32xbf16, #tpu.memory_space<vmem>>, vector<1x1x5x32xbf16>,
    %151 = vector.extract_strided_slice %19 {offsets = [16, 0], sizes = [1, 32], strides = [1, 1]} : vector<64x32xbf16> to vector<1x32xbf16>
    %152 = vector.extract_strided_slice %19 {offsets = [18, 0], sizes = [1, 32], strides = [1, 1]} : vector<64x32xbf16> to vector<1x32xbf16>
    %153 = vector.extract_strided_slice %19 {offsets = [20, 0], sizes = [1, 32], strides = [1, 1]} : vector<64x32xbf16> to vector<1x32xbf16>
    %154 = vector.extract_strided_slice %19 {offsets = [22, 0], sizes = [1, 32], strides = [1, 1]} : vector<64x32xbf16> to vector<1x32xbf16>
    %155 = tpu.concatenate %151, %152, %153, %154 in 0 : vector<1x32xbf16>, vector<1x32xbf16>, vector<1x32xbf16>, vector<1x32xbf16> -> vector<4x32xbf16>
    %156 = tpu.concatenate %155, %21 in 0 : vector<4x32xbf16>, vector<1x32xbf16> -> vector<5x32xbf16>
    %c0_75 = arith.constant 0 : index
    %c1_76 = arith.constant 1 : index
    %c0_77 = arith.constant 0 : index
    %c0_78 = arith.constant 0 : index
    %157 = vector.load %arg8[%c0_75, %c1_76, %c0_77, %c0_78] : memref<1x5x5x32xbf16, #tpu.memory_space<vmem>>, vector<1x1x5x32xbf16>
    %158 = vector.shape_cast %157 : vector<1x1x5x32xbf16> to vector<5x32xbf16>
    %159 = vector.shape_cast %156 : vector<5x32xbf16> to vector<1x1x5x32xbf16>
    tpu.vector_store %arg8[%c0_75, %c1_76, %c0_77, %c0_78], %159 {strides = array<i32>} : memref<1x5x5x32xbf16, #tpu.memory_space<vmem>>, vector<1x1x5x32xbf16>,
    %160 = vector.extract_strided_slice %19 {offsets = [32, 0], sizes = [1, 32], strides = [1, 1]} : vector<64x32xbf16> to vector<1x32xbf16>
    %161 = vector.extract_strided_slice %19 {offsets = [34, 0], sizes = [1, 32], strides = [1, 1]} : vector<64x32xbf16> to vector<1x32xbf16>
    %162 = vector.extract_strided_slice %19 {offsets = [36, 0], sizes = [1, 32], strides = [1, 1]} : vector<64x32xbf16> to vector<1x32xbf16>
    %163 = vector.extract_strided_slice %19 {offsets = [38, 0], sizes = [1, 32], strides = [1, 1]} : vector<64x32xbf16> to vector<1x32xbf16>
    %164 = tpu.concatenate %160, %161, %162, %163 in 0 : vector<1x32xbf16>, vector<1x32xbf16>, vector<1x32xbf16>, vector<1x32xbf16> -> vector<4x32xbf16>
    %165 = tpu.concatenate %164, %21 in 0 : vector<4x32xbf16>, vector<1x32xbf16> -> vector<5x32xbf16>
    %c0_79 = arith.constant 0 : index
    %c2_80 = arith.constant 2 : index
    %c0_81 = arith.constant 0 : index
    %c0_82 = arith.constant 0 : index
    %166 = vector.load %arg8[%c0_79, %c2_80, %c0_81, %c0_82] : memref<1x5x5x32xbf16, #tpu.memory_space<vmem>>, vector<1x1x5x32xbf16>
    %167 = vector.shape_cast %166 : vector<1x1x5x32xbf16> to vector<5x32xbf16>
    %168 = vector.shape_cast %165 : vector<5x32xbf16> to vector<1x1x5x32xbf16>
    tpu.vector_store %arg8[%c0_79, %c2_80, %c0_81, %c0_82], %168 {strides = array<i32>} : memref<1x5x5x32xbf16, #tpu.memory_space<vmem>>, vector<1x1x5x32xbf16>,
    %169 = vector.extract_strided_slice %19 {offsets = [48, 0], sizes = [1, 32], strides = [1, 1]} : vector<64x32xbf16> to vector<1x32xbf16>
    %170 = vector.extract_strided_slice %19 {offsets = [50, 0], sizes = [1, 32], strides = [1, 1]} : vector<64x32xbf16> to vector<1x32xbf16>
    %171 = vector.extract_strided_slice %19 {offsets = [52, 0], sizes = [1, 32], strides = [1, 1]} : vector<64x32xbf16> to vector<1x32xbf16>
    %172 = vector.extract_strided_slice %19 {offsets = [54, 0], sizes = [1, 32], strides = [1, 1]} : vector<64x32xbf16> to vector<1x32xbf16>
    %173 = tpu.concatenate %169, %170, %171, %172 in 0 : vector<1x32xbf16>, vector<1x32xbf16>, vector<1x32xbf16>, vector<1x32xbf16> -> vector<4x32xbf16>
    %174 = tpu.concatenate %173, %21 in 0 : vector<4x32xbf16>, vector<1x32xbf16> -> vector<5x32xbf16>
    %c0_83 = arith.constant 0 : index
    %c3_84 = arith.constant 3 : index
    %c0_85 = arith.constant 0 : index
    %c0_86 = arith.constant 0 : index
    %175 = vector.load %arg8[%c0_83, %c3_84, %c0_85, %c0_86] : memref<1x5x5x32xbf16, #tpu.memory_space<vmem>>, vector<1x1x5x32xbf16>
    %176 = vector.shape_cast %175 : vector<1x1x5x32xbf16> to vector<5x32xbf16>
    %177 = vector.shape_cast %174 : vector<5x32xbf16> to vector<1x1x5x32xbf16>
    tpu.vector_store %arg8[%c0_83, %c3_84, %c0_85, %c0_86], %177 {strides = array<i32>} : memref<1x5x5x32xbf16, #tpu.memory_space<vmem>>, vector<1x1x5x32xbf16>,
    return
  }
  func.func @transform_0(%arg0: i32) -> (i32, i32, i32) {
    %c0_i32 = arith.constant 0 : i32
    %c0_i32_0 = arith.constant 0 : i32
    %c0_i32_1 = arith.constant 0 : i32
    return %arg0, %c0_i32, %c0_i32_0 : i32, i32, i32
  }
  func.func @transform_1(%arg0: i32) -> (i32, i32) {
    %c0_i32 = arith.constant 0 : i32
    %c0_i32_0 = arith.constant 0 : i32
    %c0_i32_1 = arith.constant 0 : i32
    return %c0_i32, %c0_i32_0 : i32, i32
  }
  func.func @transform_2(%arg0: i32) -> (i32, i32) {
    %c0_i32 = arith.constant 0 : i32
    %c0_i32_0 = arith.constant 0 : i32
    %c0_i32_1 = arith.constant 0 : i32
    return %c0_i32, %c0_i32_0 : i32, i32
  }
  func.func @transform_3(%arg0: i32) -> (i32, i32) {
    %c0_i32 = arith.constant 0 : i32
    %c0_i32_0 = arith.constant 0 : i32
    %c0_i32_1 = arith.constant 0 : i32
    return %c0_i32, %c0_i32_0 : i32, i32
  }
  func.func @transform_4(%arg0: i32) -> (i32, i32, i32, i32) {
    %c0_i32 = arith.constant 0 : i32
    %c0_i32_0 = arith.constant 0 : i32
    %c0_i32_1 = arith.constant 0 : i32
    %c0_i32_2 = arith.constant 0 : i32
    return %arg0, %c0_i32, %c0_i32_0, %c0_i32_1 : i32, i32, i32, i32
  }
  func.func @transform_5(%arg0: i32) -> (i32, i32, i32, i32) {
    %c0_i32 = arith.constant 0 : i32
    %c0_i32_0 = arith.constant 0 : i32
    %c0_i32_1 = arith.constant 0 : i32
    %c0_i32_2 = arith.constant 0 : i32
    return %arg0, %c0_i32, %c0_i32_0, %c0_i32_1 : i32, i32, i32, i32
  }
  func.func @transform_6(%arg0: i32) -> (i32, i32, i32, i32) {
    %c0_i32 = arith.constant 0 : i32
    %c0_i32_0 = arith.constant 0 : i32
    %c0_i32_1 = arith.constant 0 : i32
    %c0_i32_2 = arith.constant 0 : i32
    return %arg0, %c0_i32, %c0_i32_0, %c0_i32_1 : i32, i32, i32, i32
  }
  func.func @transform_7(%arg0: i32) -> (i32, i32, i32, i32) {
    %c0_i32 = arith.constant 0 : i32
    %c0_i32_0 = arith.constant 0 : i32
    %c0_i32_1 = arith.constant 0 : i32
    %c0_i32_2 = arith.constant 0 : i32
    return %arg0, %c0_i32, %c0_i32_0, %c0_i32_1 : i32, i32, i32, i32
  }
}

module attributes {stable_mosaic.version = 11 : i64} {
  func.func @kernel(%arg0: i32, %arg1: memref<1x5x5x32xbf16, #tpu.memory_space<vmem>>, %arg2: memref<1x5x5x32xbf16, #tpu.memory_space<vmem>>, %arg3: memref<1x5x5x32xbf16, #tpu.memory_space<vmem>>, %arg4: memref<1x5x5x32xbf16, #tpu.memory_space<vmem>>, %arg5: memref<9x32x64xbf16, #tpu.memory_space<vmem>>, %arg6: memref<1x64xf32, #tpu.memory_space<vmem>>, %arg7: memref<1x64xf32, #tpu.memory_space<vmem>>, %arg8: memref<1x3x3x64xbf16, #tpu.memory_space<vmem>>, %arg9: memref<1x3x3x64xbf16, #tpu.memory_space<vmem>>, %arg10: memref<1x3x3x64xbf16, #tpu.memory_space<vmem>>, %arg11: memref<1x3x3x64xbf16, #tpu.memory_space<vmem>>, %arg12: memref<64x32xbf16, #tpu.memory_space<vmem>>, %arg13: memref<64x64xf32, #tpu.memory_space<vmem>>) attributes {dimension_semantics = [#tpu.dimension_semantics<parallel>], iteration_bounds = array<i64: 2>, scalar_prefetch = 0 : i64, scratch_operands = 2 : i64, tpu.core_type = #tpu.core_type<tc>, window_params = [{transform_indices = @transform_0, window_bounds = array<i64: 1, 5, 5, 32>}, {transform_indices = @transform_1, window_bounds = array<i64: 1, 5, 5, 32>}, {transform_indices = @transform_2, window_bounds = array<i64: 1, 5, 5, 32>}, {transform_indices = @transform_3, window_bounds = array<i64: 1, 5, 5, 32>}, {pipeline_mode = #tpu.pipeline_mode<synchronous>, transform_indices = @transform_4, window_bounds = array<i64: 9, 32, 64>}, {pipeline_mode = #tpu.pipeline_mode<synchronous>, transform_indices = @transform_5, window_bounds = array<i64: 1, 64>}, {pipeline_mode = #tpu.pipeline_mode<synchronous>, transform_indices = @transform_6, window_bounds = array<i64: 1, 64>}, {transform_indices = @transform_7, window_bounds = array<i64: 1, 3, 3, 64>}, {transform_indices = @transform_8, window_bounds = array<i64: 1, 3, 3, 64>}, {transform_indices = @transform_9, window_bounds = array<i64: 1, 3, 3, 64>}, {transform_indices = @transform_10, window_bounds = array<i64: 1, 3, 3, 64>}]} {
    %c0 = arith.constant 0 : index
    %c0_0 = arith.constant 0 : index
    %c0_1 = arith.constant 0 : index
    %c0_2 = arith.constant 0 : index
    %0 = vector.load %arg1[%c0, %c0_0, %c0_1, %c0_2] : memref<1x5x5x32xbf16, #tpu.memory_space<vmem>>, vector<1x4x4x32xbf16>
    %1 = vector.shape_cast %0 : vector<1x4x4x32xbf16> to vector<4x4x32xbf16>
    %2 = vector.shape_cast %1 : vector<4x4x32xbf16> to vector<16x32xbf16>
    %c0_3 = arith.constant 0 : index
    %c0_4 = arith.constant 0 : index
    %3 = vector.load %arg12[%c0_3, %c0_4] : memref<64x32xbf16, #tpu.memory_space<vmem>>, vector<16x32xbf16>
    tpu.vector_store %arg12[%c0_3, %c0_4], %2 {strides = array<i32>} : memref<64x32xbf16, #tpu.memory_space<vmem>>, vector<16x32xbf16>,
    %c0_5 = arith.constant 0 : index
    %c0_6 = arith.constant 0 : index
    %c0_7 = arith.constant 0 : index
    %c0_8 = arith.constant 0 : index
    %4 = vector.load %arg2[%c0_5, %c0_6, %c0_7, %c0_8] : memref<1x5x5x32xbf16, #tpu.memory_space<vmem>>, vector<1x4x4x32xbf16>
    %5 = vector.shape_cast %4 : vector<1x4x4x32xbf16> to vector<4x4x32xbf16>
    %6 = vector.shape_cast %5 : vector<4x4x32xbf16> to vector<16x32xbf16>
    %c16 = arith.constant 16 : index
    %c0_9 = arith.constant 0 : index
    %7 = vector.load %arg12[%c16, %c0_9] : memref<64x32xbf16, #tpu.memory_space<vmem>>, vector<16x32xbf16>
    tpu.vector_store %arg12[%c16, %c0_9], %6 {strides = array<i32>} : memref<64x32xbf16, #tpu.memory_space<vmem>>, vector<16x32xbf16>,
    %c0_10 = arith.constant 0 : index
    %c0_11 = arith.constant 0 : index
    %c0_12 = arith.constant 0 : index
    %c0_13 = arith.constant 0 : index
    %8 = vector.load %arg3[%c0_10, %c0_11, %c0_12, %c0_13] : memref<1x5x5x32xbf16, #tpu.memory_space<vmem>>, vector<1x4x4x32xbf16>
    %9 = vector.shape_cast %8 : vector<1x4x4x32xbf16> to vector<4x4x32xbf16>
    %10 = vector.shape_cast %9 : vector<4x4x32xbf16> to vector<16x32xbf16>
    %c32 = arith.constant 32 : index
    %c0_14 = arith.constant 0 : index
    %11 = vector.load %arg12[%c32, %c0_14] : memref<64x32xbf16, #tpu.memory_space<vmem>>, vector<16x32xbf16>
    tpu.vector_store %arg12[%c32, %c0_14], %10 {strides = array<i32>} : memref<64x32xbf16, #tpu.memory_space<vmem>>, vector<16x32xbf16>,
    %c0_15 = arith.constant 0 : index
    %c0_16 = arith.constant 0 : index
    %c0_17 = arith.constant 0 : index
    %c0_18 = arith.constant 0 : index
    %12 = vector.load %arg4[%c0_15, %c0_16, %c0_17, %c0_18] : memref<1x5x5x32xbf16, #tpu.memory_space<vmem>>, vector<1x4x4x32xbf16>
    %13 = vector.shape_cast %12 : vector<1x4x4x32xbf16> to vector<4x4x32xbf16>
    %14 = vector.shape_cast %13 : vector<4x4x32xbf16> to vector<16x32xbf16>
    %c48 = arith.constant 48 : index
    %c0_19 = arith.constant 0 : index
    %15 = vector.load %arg12[%c48, %c0_19] : memref<64x32xbf16, #tpu.memory_space<vmem>>, vector<16x32xbf16>
    tpu.vector_store %arg12[%c48, %c0_19], %14 {strides = array<i32>} : memref<64x32xbf16, #tpu.memory_space<vmem>>, vector<16x32xbf16>,
    %c0_20 = arith.constant 0 : index
    %c0_21 = arith.constant 0 : index
    %16 = vector.load %arg12[%c0_20, %c0_21] : memref<64x32xbf16, #tpu.memory_space<vmem>>, vector<64x32xbf16>
    %c0_22 = arith.constant 0 : index
    %c0_23 = arith.constant 0 : index
    %c0_24 = arith.constant 0 : index
    %17 = vector.load %arg5[%c0_22, %c0_23, %c0_24] : memref<9x32x64xbf16, #tpu.memory_space<vmem>>, vector<1x32x64xbf16>
    %18 = vector.shape_cast %17 : vector<1x32x64xbf16> to vector<32x64xbf16>
    %cst = arith.constant dense<0.000000e+00> : vector<64x64xf32>
    %19 = tpu.matmul %16, %18, %cst {dimension_numbers = #tpu.dot_dimension_numbers<[1], [0], [0], [1], [0, 0, 1, 1], [], []>} : vector<64x32xbf16>, vector<32x64xbf16>, vector<64x64xf32> -> vector<64x64xf32>
    %c0_25 = arith.constant 0 : index
    %c0_26 = arith.constant 0 : index
    %20 = vector.load %arg13[%c0_25, %c0_26] : memref<64x64xf32, #tpu.memory_space<vmem>>, vector<64x64xf32>
    tpu.vector_store %arg13[%c0_25, %c0_26], %19 {strides = array<i32>} : memref<64x64xf32, #tpu.memory_space<vmem>>, vector<64x64xf32>,
    %c0_27 = arith.constant 0 : index
    %c0_28 = arith.constant 0 : index
    %c0_29 = arith.constant 0 : index
    %c0_30 = arith.constant 0 : index
    %21 = vector.load %arg2[%c0_27, %c0_28, %c0_29, %c0_30] : memref<1x5x5x32xbf16, #tpu.memory_space<vmem>>, vector<1x4x4x32xbf16>
    %22 = vector.shape_cast %21 : vector<1x4x4x32xbf16> to vector<4x4x32xbf16>
    %23 = vector.shape_cast %22 : vector<4x4x32xbf16> to vector<16x32xbf16>
    %c0_31 = arith.constant 0 : index
    %c0_32 = arith.constant 0 : index
    %24 = vector.load %arg12[%c0_31, %c0_32] : memref<64x32xbf16, #tpu.memory_space<vmem>>, vector<16x32xbf16>
    tpu.vector_store %arg12[%c0_31, %c0_32], %23 {strides = array<i32>} : memref<64x32xbf16, #tpu.memory_space<vmem>>, vector<16x32xbf16>,
    %c0_33 = arith.constant 0 : index
    %c0_34 = arith.constant 0 : index
    %c1 = arith.constant 1 : index
    %c0_35 = arith.constant 0 : index
    %25 = vector.load %arg1[%c0_33, %c0_34, %c1, %c0_35] : memref<1x5x5x32xbf16, #tpu.memory_space<vmem>>, vector<1x4x4x32xbf16>
    %26 = vector.shape_cast %25 : vector<1x4x4x32xbf16> to vector<4x4x32xbf16>
    %27 = vector.shape_cast %26 : vector<4x4x32xbf16> to vector<16x32xbf16>
    %c16_36 = arith.constant 16 : index
    %c0_37 = arith.constant 0 : index
    %28 = vector.load %arg12[%c16_36, %c0_37] : memref<64x32xbf16, #tpu.memory_space<vmem>>, vector<16x32xbf16>
    tpu.vector_store %arg12[%c16_36, %c0_37], %27 {strides = array<i32>} : memref<64x32xbf16, #tpu.memory_space<vmem>>, vector<16x32xbf16>,
    %c0_38 = arith.constant 0 : index
    %c0_39 = arith.constant 0 : index
    %c0_40 = arith.constant 0 : index
    %c0_41 = arith.constant 0 : index
    %29 = vector.load %arg4[%c0_38, %c0_39, %c0_40, %c0_41] : memref<1x5x5x32xbf16, #tpu.memory_space<vmem>>, vector<1x4x4x32xbf16>
    %30 = vector.shape_cast %29 : vector<1x4x4x32xbf16> to vector<4x4x32xbf16>
    %31 = vector.shape_cast %30 : vector<4x4x32xbf16> to vector<16x32xbf16>
    %c32_42 = arith.constant 32 : index
    %c0_43 = arith.constant 0 : index
    %32 = vector.load %arg12[%c32_42, %c0_43] : memref<64x32xbf16, #tpu.memory_space<vmem>>, vector<16x32xbf16>
    tpu.vector_store %arg12[%c32_42, %c0_43], %31 {strides = array<i32>} : memref<64x32xbf16, #tpu.memory_space<vmem>>, vector<16x32xbf16>,
    %c0_44 = arith.constant 0 : index
    %c0_45 = arith.constant 0 : index
    %c1_46 = arith.constant 1 : index
    %c0_47 = arith.constant 0 : index
    %33 = vector.load %arg3[%c0_44, %c0_45, %c1_46, %c0_47] : memref<1x5x5x32xbf16, #tpu.memory_space<vmem>>, vector<1x4x4x32xbf16>
    %34 = vector.shape_cast %33 : vector<1x4x4x32xbf16> to vector<4x4x32xbf16>
    %35 = vector.shape_cast %34 : vector<4x4x32xbf16> to vector<16x32xbf16>
    %c48_48 = arith.constant 48 : index
    %c0_49 = arith.constant 0 : index
    %36 = vector.load %arg12[%c48_48, %c0_49] : memref<64x32xbf16, #tpu.memory_space<vmem>>, vector<16x32xbf16>
    tpu.vector_store %arg12[%c48_48, %c0_49], %35 {strides = array<i32>} : memref<64x32xbf16, #tpu.memory_space<vmem>>, vector<16x32xbf16>,
    %c0_50 = arith.constant 0 : index
    %c0_51 = arith.constant 0 : index
    %37 = vector.load %arg12[%c0_50, %c0_51] : memref<64x32xbf16, #tpu.memory_space<vmem>>, vector<64x32xbf16>
    %c1_52 = arith.constant 1 : index
    %c0_53 = arith.constant 0 : index
    %c0_54 = arith.constant 0 : index
    %38 = vector.load %arg5[%c1_52, %c0_53, %c0_54] : memref<9x32x64xbf16, #tpu.memory_space<vmem>>, vector<1x32x64xbf16>
    %39 = vector.shape_cast %38 : vector<1x32x64xbf16> to vector<32x64xbf16>
    %cst_55 = arith.constant dense<0.000000e+00> : vector<64x64xf32>
    %40 = tpu.matmul %37, %39, %cst_55 {dimension_numbers = #tpu.dot_dimension_numbers<[1], [0], [0], [1], [0, 0, 1, 1], [], []>} : vector<64x32xbf16>, vector<32x64xbf16>, vector<64x64xf32> -> vector<64x64xf32>
    %c0_56 = arith.constant 0 : index
    %c0_57 = arith.constant 0 : index
    %41 = vector.load %arg13[%c0_56, %c0_57] : memref<64x64xf32, #tpu.memory_space<vmem>>, vector<64x64xf32>
    %42 = arith.addf %41, %40 : vector<64x64xf32>
    %c0_58 = arith.constant 0 : index
    %c0_59 = arith.constant 0 : index
    %43 = vector.load %arg13[%c0_58, %c0_59] : memref<64x64xf32, #tpu.memory_space<vmem>>, vector<64x64xf32>
    tpu.vector_store %arg13[%c0_58, %c0_59], %42 {strides = array<i32>} : memref<64x64xf32, #tpu.memory_space<vmem>>, vector<64x64xf32>,
    %c0_60 = arith.constant 0 : index
    %c0_61 = arith.constant 0 : index
    %c1_62 = arith.constant 1 : index
    %c0_63 = arith.constant 0 : index
    %44 = vector.load %arg1[%c0_60, %c0_61, %c1_62, %c0_63] : memref<1x5x5x32xbf16, #tpu.memory_space<vmem>>, vector<1x4x4x32xbf16>
    %45 = vector.shape_cast %44 : vector<1x4x4x32xbf16> to vector<4x4x32xbf16>
    %46 = vector.shape_cast %45 : vector<4x4x32xbf16> to vector<16x32xbf16>
    %c0_64 = arith.constant 0 : index
    %c0_65 = arith.constant 0 : index
    %47 = vector.load %arg12[%c0_64, %c0_65] : memref<64x32xbf16, #tpu.memory_space<vmem>>, vector<16x32xbf16>
    tpu.vector_store %arg12[%c0_64, %c0_65], %46 {strides = array<i32>} : memref<64x32xbf16, #tpu.memory_space<vmem>>, vector<16x32xbf16>,
    %c0_66 = arith.constant 0 : index
    %c0_67 = arith.constant 0 : index
    %c1_68 = arith.constant 1 : index
    %c0_69 = arith.constant 0 : index
    %48 = vector.load %arg2[%c0_66, %c0_67, %c1_68, %c0_69] : memref<1x5x5x32xbf16, #tpu.memory_space<vmem>>, vector<1x4x4x32xbf16>
    %49 = vector.shape_cast %48 : vector<1x4x4x32xbf16> to vector<4x4x32xbf16>
    %50 = vector.shape_cast %49 : vector<4x4x32xbf16> to vector<16x32xbf16>
    %c16_70 = arith.constant 16 : index
    %c0_71 = arith.constant 0 : index
    %51 = vector.load %arg12[%c16_70, %c0_71] : memref<64x32xbf16, #tpu.memory_space<vmem>>, vector<16x32xbf16>
    tpu.vector_store %arg12[%c16_70, %c0_71], %50 {strides = array<i32>} : memref<64x32xbf16, #tpu.memory_space<vmem>>, vector<16x32xbf16>,
    %c0_72 = arith.constant 0 : index
    %c0_73 = arith.constant 0 : index
    %c1_74 = arith.constant 1 : index
    %c0_75 = arith.constant 0 : index
    %52 = vector.load %arg3[%c0_72, %c0_73, %c1_74, %c0_75] : memref<1x5x5x32xbf16, #tpu.memory_space<vmem>>, vector<1x4x4x32xbf16>
    %53 = vector.shape_cast %52 : vector<1x4x4x32xbf16> to vector<4x4x32xbf16>
    %54 = vector.shape_cast %53 : vector<4x4x32xbf16> to vector<16x32xbf16>
    %c32_76 = arith.constant 32 : index
    %c0_77 = arith.constant 0 : index
    %55 = vector.load %arg12[%c32_76, %c0_77] : memref<64x32xbf16, #tpu.memory_space<vmem>>, vector<16x32xbf16>
    tpu.vector_store %arg12[%c32_76, %c0_77], %54 {strides = array<i32>} : memref<64x32xbf16, #tpu.memory_space<vmem>>, vector<16x32xbf16>,
    %c0_78 = arith.constant 0 : index
    %c0_79 = arith.constant 0 : index
    %c1_80 = arith.constant 1 : index
    %c0_81 = arith.constant 0 : index
    %56 = vector.load %arg4[%c0_78, %c0_79, %c1_80, %c0_81] : memref<1x5x5x32xbf16, #tpu.memory_space<vmem>>, vector<1x4x4x32xbf16>
    %57 = vector.shape_cast %56 : vector<1x4x4x32xbf16> to vector<4x4x32xbf16>
    %58 = vector.shape_cast %57 : vector<4x4x32xbf16> to vector<16x32xbf16>
    %c48_82 = arith.constant 48 : index
    %c0_83 = arith.constant 0 : index
    %59 = vector.load %arg12[%c48_82, %c0_83] : memref<64x32xbf16, #tpu.memory_space<vmem>>, vector<16x32xbf16>
    tpu.vector_store %arg12[%c48_82, %c0_83], %58 {strides = array<i32>} : memref<64x32xbf16, #tpu.memory_space<vmem>>, vector<16x32xbf16>,
    %c0_84 = arith.constant 0 : index
    %c0_85 = arith.constant 0 : index
    %60 = vector.load %arg12[%c0_84, %c0_85] : memref<64x32xbf16, #tpu.memory_space<vmem>>, vector<64x32xbf16>
    %c2 = arith.constant 2 : index
    %c0_86 = arith.constant 0 : index
    %c0_87 = arith.constant 0 : index
    %61 = vector.load %arg5[%c2, %c0_86, %c0_87] : memref<9x32x64xbf16, #tpu.memory_space<vmem>>, vector<1x32x64xbf16>
    %62 = vector.shape_cast %61 : vector<1x32x64xbf16> to vector<32x64xbf16>
    %cst_88 = arith.constant dense<0.000000e+00> : vector<64x64xf32>
    %63 = tpu.matmul %60, %62, %cst_88 {dimension_numbers = #tpu.dot_dimension_numbers<[1], [0], [0], [1], [0, 0, 1, 1], [], []>} : vector<64x32xbf16>, vector<32x64xbf16>, vector<64x64xf32> -> vector<64x64xf32>
    %c0_89 = arith.constant 0 : index
    %c0_90 = arith.constant 0 : index
    %64 = vector.load %arg13[%c0_89, %c0_90] : memref<64x64xf32, #tpu.memory_space<vmem>>, vector<64x64xf32>
    %65 = arith.addf %64, %63 : vector<64x64xf32>
    %c0_91 = arith.constant 0 : index
    %c0_92 = arith.constant 0 : index
    %66 = vector.load %arg13[%c0_91, %c0_92] : memref<64x64xf32, #tpu.memory_space<vmem>>, vector<64x64xf32>
    tpu.vector_store %arg13[%c0_91, %c0_92], %65 {strides = array<i32>} : memref<64x64xf32, #tpu.memory_space<vmem>>, vector<64x64xf32>,
    %c0_93 = arith.constant 0 : index
    %c0_94 = arith.constant 0 : index
    %c0_95 = arith.constant 0 : index
    %c0_96 = arith.constant 0 : index
    %67 = vector.load %arg3[%c0_93, %c0_94, %c0_95, %c0_96] : memref<1x5x5x32xbf16, #tpu.memory_space<vmem>>, vector<1x4x4x32xbf16>
    %68 = vector.shape_cast %67 : vector<1x4x4x32xbf16> to vector<4x4x32xbf16>
    %69 = vector.shape_cast %68 : vector<4x4x32xbf16> to vector<16x32xbf16>
    %c0_97 = arith.constant 0 : index
    %c0_98 = arith.constant 0 : index
    %70 = vector.load %arg12[%c0_97, %c0_98] : memref<64x32xbf16, #tpu.memory_space<vmem>>, vector<16x32xbf16>
    tpu.vector_store %arg12[%c0_97, %c0_98], %69 {strides = array<i32>} : memref<64x32xbf16, #tpu.memory_space<vmem>>, vector<16x32xbf16>,
    %c0_99 = arith.constant 0 : index
    %c0_100 = arith.constant 0 : index
    %c0_101 = arith.constant 0 : index
    %c0_102 = arith.constant 0 : index
    %71 = vector.load %arg4[%c0_99, %c0_100, %c0_101, %c0_102] : memref<1x5x5x32xbf16, #tpu.memory_space<vmem>>, vector<1x4x4x32xbf16>
    %72 = vector.shape_cast %71 : vector<1x4x4x32xbf16> to vector<4x4x32xbf16>
    %73 = vector.shape_cast %72 : vector<4x4x32xbf16> to vector<16x32xbf16>
    %c16_103 = arith.constant 16 : index
    %c0_104 = arith.constant 0 : index
    %74 = vector.load %arg12[%c16_103, %c0_104] : memref<64x32xbf16, #tpu.memory_space<vmem>>, vector<16x32xbf16>
    tpu.vector_store %arg12[%c16_103, %c0_104], %73 {strides = array<i32>} : memref<64x32xbf16, #tpu.memory_space<vmem>>, vector<16x32xbf16>,
    %c0_105 = arith.constant 0 : index
    %c1_106 = arith.constant 1 : index
    %c0_107 = arith.constant 0 : index
    %c0_108 = arith.constant 0 : index
    %75 = vector.load %arg1[%c0_105, %c1_106, %c0_107, %c0_108] : memref<1x5x5x32xbf16, #tpu.memory_space<vmem>>, vector<1x4x4x32xbf16>
    %76 = vector.shape_cast %75 : vector<1x4x4x32xbf16> to vector<4x4x32xbf16>
    %77 = vector.shape_cast %76 : vector<4x4x32xbf16> to vector<16x32xbf16>
    %c32_109 = arith.constant 32 : index
    %c0_110 = arith.constant 0 : index
    %78 = vector.load %arg12[%c32_109, %c0_110] : memref<64x32xbf16, #tpu.memory_space<vmem>>, vector<16x32xbf16>
    tpu.vector_store %arg12[%c32_109, %c0_110], %77 {strides = array<i32>} : memref<64x32xbf16, #tpu.memory_space<vmem>>, vector<16x32xbf16>,
    %c0_111 = arith.constant 0 : index
    %c1_112 = arith.constant 1 : index
    %c0_113 = arith.constant 0 : index
    %c0_114 = arith.constant 0 : index
    %79 = vector.load %arg2[%c0_111, %c1_112, %c0_113, %c0_114] : memref<1x5x5x32xbf16, #tpu.memory_space<vmem>>, vector<1x4x4x32xbf16>
    %80 = vector.shape_cast %79 : vector<1x4x4x32xbf16> to vector<4x4x32xbf16>
    %81 = vector.shape_cast %80 : vector<4x4x32xbf16> to vector<16x32xbf16>
    %c48_115 = arith.constant 48 : index
    %c0_116 = arith.constant 0 : index
    %82 = vector.load %arg12[%c48_115, %c0_116] : memref<64x32xbf16, #tpu.memory_space<vmem>>, vector<16x32xbf16>
    tpu.vector_store %arg12[%c48_115, %c0_116], %81 {strides = array<i32>} : memref<64x32xbf16, #tpu.memory_space<vmem>>, vector<16x32xbf16>,
    %c0_117 = arith.constant 0 : index
    %c0_118 = arith.constant 0 : index
    %83 = vector.load %arg12[%c0_117, %c0_118] : memref<64x32xbf16, #tpu.memory_space<vmem>>, vector<64x32xbf16>
    %c3 = arith.constant 3 : index
    %c0_119 = arith.constant 0 : index
    %c0_120 = arith.constant 0 : index
    %84 = vector.load %arg5[%c3, %c0_119, %c0_120] : memref<9x32x64xbf16, #tpu.memory_space<vmem>>, vector<1x32x64xbf16>
    %85 = vector.shape_cast %84 : vector<1x32x64xbf16> to vector<32x64xbf16>
    %cst_121 = arith.constant dense<0.000000e+00> : vector<64x64xf32>
    %86 = tpu.matmul %83, %85, %cst_121 {dimension_numbers = #tpu.dot_dimension_numbers<[1], [0], [0], [1], [0, 0, 1, 1], [], []>} : vector<64x32xbf16>, vector<32x64xbf16>, vector<64x64xf32> -> vector<64x64xf32>
    %c0_122 = arith.constant 0 : index
    %c0_123 = arith.constant 0 : index
    %87 = vector.load %arg13[%c0_122, %c0_123] : memref<64x64xf32, #tpu.memory_space<vmem>>, vector<64x64xf32>
    %88 = arith.addf %87, %86 : vector<64x64xf32>
    %c0_124 = arith.constant 0 : index
    %c0_125 = arith.constant 0 : index
    %89 = vector.load %arg13[%c0_124, %c0_125] : memref<64x64xf32, #tpu.memory_space<vmem>>, vector<64x64xf32>
    tpu.vector_store %arg13[%c0_124, %c0_125], %88 {strides = array<i32>} : memref<64x64xf32, #tpu.memory_space<vmem>>, vector<64x64xf32>,
    %c0_126 = arith.constant 0 : index
    %c0_127 = arith.constant 0 : index
    %c0_128 = arith.constant 0 : index
    %c0_129 = arith.constant 0 : index
    %90 = vector.load %arg4[%c0_126, %c0_127, %c0_128, %c0_129] : memref<1x5x5x32xbf16, #tpu.memory_space<vmem>>, vector<1x4x4x32xbf16>
    %91 = vector.shape_cast %90 : vector<1x4x4x32xbf16> to vector<4x4x32xbf16>
    %92 = vector.shape_cast %91 : vector<4x4x32xbf16> to vector<16x32xbf16>
    %c0_130 = arith.constant 0 : index
    %c0_131 = arith.constant 0 : index
    %93 = vector.load %arg12[%c0_130, %c0_131] : memref<64x32xbf16, #tpu.memory_space<vmem>>, vector<16x32xbf16>
    tpu.vector_store %arg12[%c0_130, %c0_131], %92 {strides = array<i32>} : memref<64x32xbf16, #tpu.memory_space<vmem>>, vector<16x32xbf16>,
    %c0_132 = arith.constant 0 : index
    %c0_133 = arith.constant 0 : index
    %c1_134 = arith.constant 1 : index
    %c0_135 = arith.constant 0 : index
    %94 = vector.load %arg3[%c0_132, %c0_133, %c1_134, %c0_135] : memref<1x5x5x32xbf16, #tpu.memory_space<vmem>>, vector<1x4x4x32xbf16>
    %95 = vector.shape_cast %94 : vector<1x4x4x32xbf16> to vector<4x4x32xbf16>
    %96 = vector.shape_cast %95 : vector<4x4x32xbf16> to vector<16x32xbf16>
    %c16_136 = arith.constant 16 : index
    %c0_137 = arith.constant 0 : index
    %97 = vector.load %arg12[%c16_136, %c0_137] : memref<64x32xbf16, #tpu.memory_space<vmem>>, vector<16x32xbf16>
    tpu.vector_store %arg12[%c16_136, %c0_137], %96 {strides = array<i32>} : memref<64x32xbf16, #tpu.memory_space<vmem>>, vector<16x32xbf16>,
    %c0_138 = arith.constant 0 : index
    %c1_139 = arith.constant 1 : index
    %c0_140 = arith.constant 0 : index
    %c0_141 = arith.constant 0 : index
    %98 = vector.load %arg2[%c0_138, %c1_139, %c0_140, %c0_141] : memref<1x5x5x32xbf16, #tpu.memory_space<vmem>>, vector<1x4x4x32xbf16>
    %99 = vector.shape_cast %98 : vector<1x4x4x32xbf16> to vector<4x4x32xbf16>
    %100 = vector.shape_cast %99 : vector<4x4x32xbf16> to vector<16x32xbf16>
    %c32_142 = arith.constant 32 : index
    %c0_143 = arith.constant 0 : index
    %101 = vector.load %arg12[%c32_142, %c0_143] : memref<64x32xbf16, #tpu.memory_space<vmem>>, vector<16x32xbf16>
    tpu.vector_store %arg12[%c32_142, %c0_143], %100 {strides = array<i32>} : memref<64x32xbf16, #tpu.memory_space<vmem>>, vector<16x32xbf16>,
    %c0_144 = arith.constant 0 : index
    %c1_145 = arith.constant 1 : index
    %c1_146 = arith.constant 1 : index
    %c0_147 = arith.constant 0 : index
    %102 = vector.load %arg1[%c0_144, %c1_145, %c1_146, %c0_147] : memref<1x5x5x32xbf16, #tpu.memory_space<vmem>>, vector<1x4x4x32xbf16>
    %103 = vector.shape_cast %102 : vector<1x4x4x32xbf16> to vector<4x4x32xbf16>
    %104 = vector.shape_cast %103 : vector<4x4x32xbf16> to vector<16x32xbf16>
    %c48_148 = arith.constant 48 : index
    %c0_149 = arith.constant 0 : index
    %105 = vector.load %arg12[%c48_148, %c0_149] : memref<64x32xbf16, #tpu.memory_space<vmem>>, vector<16x32xbf16>
    tpu.vector_store %arg12[%c48_148, %c0_149], %104 {strides = array<i32>} : memref<64x32xbf16, #tpu.memory_space<vmem>>, vector<16x32xbf16>,
    %c0_150 = arith.constant 0 : index
    %c0_151 = arith.constant 0 : index
    %106 = vector.load %arg12[%c0_150, %c0_151] : memref<64x32xbf16, #tpu.memory_space<vmem>>, vector<64x32xbf16>
    %c4 = arith.constant 4 : index
    %c0_152 = arith.constant 0 : index
    %c0_153 = arith.constant 0 : index
    %107 = vector.load %arg5[%c4, %c0_152, %c0_153] : memref<9x32x64xbf16, #tpu.memory_space<vmem>>, vector<1x32x64xbf16>
    %108 = vector.shape_cast %107 : vector<1x32x64xbf16> to vector<32x64xbf16>
    %cst_154 = arith.constant dense<0.000000e+00> : vector<64x64xf32>
    %109 = tpu.matmul %106, %108, %cst_154 {dimension_numbers = #tpu.dot_dimension_numbers<[1], [0], [0], [1], [0, 0, 1, 1], [], []>} : vector<64x32xbf16>, vector<32x64xbf16>, vector<64x64xf32> -> vector<64x64xf32>
    %c0_155 = arith.constant 0 : index
    %c0_156 = arith.constant 0 : index
    %110 = vector.load %arg13[%c0_155, %c0_156] : memref<64x64xf32, #tpu.memory_space<vmem>>, vector<64x64xf32>
    %111 = arith.addf %110, %109 : vector<64x64xf32>
    %c0_157 = arith.constant 0 : index
    %c0_158 = arith.constant 0 : index
    %112 = vector.load %arg13[%c0_157, %c0_158] : memref<64x64xf32, #tpu.memory_space<vmem>>, vector<64x64xf32>
    tpu.vector_store %arg13[%c0_157, %c0_158], %111 {strides = array<i32>} : memref<64x64xf32, #tpu.memory_space<vmem>>, vector<64x64xf32>,
    %c0_159 = arith.constant 0 : index
    %c0_160 = arith.constant 0 : index
    %c1_161 = arith.constant 1 : index
    %c0_162 = arith.constant 0 : index
    %113 = vector.load %arg3[%c0_159, %c0_160, %c1_161, %c0_162] : memref<1x5x5x32xbf16, #tpu.memory_space<vmem>>, vector<1x4x4x32xbf16>
    %114 = vector.shape_cast %113 : vector<1x4x4x32xbf16> to vector<4x4x32xbf16>
    %115 = vector.shape_cast %114 : vector<4x4x32xbf16> to vector<16x32xbf16>
    %c0_163 = arith.constant 0 : index
    %c0_164 = arith.constant 0 : index
    %116 = vector.load %arg12[%c0_163, %c0_164] : memref<64x32xbf16, #tpu.memory_space<vmem>>, vector<16x32xbf16>
    tpu.vector_store %arg12[%c0_163, %c0_164], %115 {strides = array<i32>} : memref<64x32xbf16, #tpu.memory_space<vmem>>, vector<16x32xbf16>,
    %c0_165 = arith.constant 0 : index
    %c0_166 = arith.constant 0 : index
    %c1_167 = arith.constant 1 : index
    %c0_168 = arith.constant 0 : index
    %117 = vector.load %arg4[%c0_165, %c0_166, %c1_167, %c0_168] : memref<1x5x5x32xbf16, #tpu.memory_space<vmem>>, vector<1x4x4x32xbf16>
    %118 = vector.shape_cast %117 : vector<1x4x4x32xbf16> to vector<4x4x32xbf16>
    %119 = vector.shape_cast %118 : vector<4x4x32xbf16> to vector<16x32xbf16>
    %c16_169 = arith.constant 16 : index
    %c0_170 = arith.constant 0 : index
    %120 = vector.load %arg12[%c16_169, %c0_170] : memref<64x32xbf16, #tpu.memory_space<vmem>>, vector<16x32xbf16>
    tpu.vector_store %arg12[%c16_169, %c0_170], %119 {strides = array<i32>} : memref<64x32xbf16, #tpu.memory_space<vmem>>, vector<16x32xbf16>,
    %c0_171 = arith.constant 0 : index
    %c1_172 = arith.constant 1 : index
    %c1_173 = arith.constant 1 : index
    %c0_174 = arith.constant 0 : index
    %121 = vector.load %arg1[%c0_171, %c1_172, %c1_173, %c0_174] : memref<1x5x5x32xbf16, #tpu.memory_space<vmem>>, vector<1x4x4x32xbf16>
    %122 = vector.shape_cast %121 : vector<1x4x4x32xbf16> to vector<4x4x32xbf16>
    %123 = vector.shape_cast %122 : vector<4x4x32xbf16> to vector<16x32xbf16>
    %c32_175 = arith.constant 32 : index
    %c0_176 = arith.constant 0 : index
    %124 = vector.load %arg12[%c32_175, %c0_176] : memref<64x32xbf16, #tpu.memory_space<vmem>>, vector<16x32xbf16>
    tpu.vector_store %arg12[%c32_175, %c0_176], %123 {strides = array<i32>} : memref<64x32xbf16, #tpu.memory_space<vmem>>, vector<16x32xbf16>,
    %c0_177 = arith.constant 0 : index
    %c1_178 = arith.constant 1 : index
    %c1_179 = arith.constant 1 : index
    %c0_180 = arith.constant 0 : index
    %125 = vector.load %arg2[%c0_177, %c1_178, %c1_179, %c0_180] : memref<1x5x5x32xbf16, #tpu.memory_space<vmem>>, vector<1x4x4x32xbf16>
    %126 = vector.shape_cast %125 : vector<1x4x4x32xbf16> to vector<4x4x32xbf16>
    %127 = vector.shape_cast %126 : vector<4x4x32xbf16> to vector<16x32xbf16>
    %c48_181 = arith.constant 48 : index
    %c0_182 = arith.constant 0 : index
    %128 = vector.load %arg12[%c48_181, %c0_182] : memref<64x32xbf16, #tpu.memory_space<vmem>>, vector<16x32xbf16>
    tpu.vector_store %arg12[%c48_181, %c0_182], %127 {strides = array<i32>} : memref<64x32xbf16, #tpu.memory_space<vmem>>, vector<16x32xbf16>,
    %c0_183 = arith.constant 0 : index
    %c0_184 = arith.constant 0 : index
    %129 = vector.load %arg12[%c0_183, %c0_184] : memref<64x32xbf16, #tpu.memory_space<vmem>>, vector<64x32xbf16>
    %c5 = arith.constant 5 : index
    %c0_185 = arith.constant 0 : index
    %c0_186 = arith.constant 0 : index
    %130 = vector.load %arg5[%c5, %c0_185, %c0_186] : memref<9x32x64xbf16, #tpu.memory_space<vmem>>, vector<1x32x64xbf16>
    %131 = vector.shape_cast %130 : vector<1x32x64xbf16> to vector<32x64xbf16>
    %cst_187 = arith.constant dense<0.000000e+00> : vector<64x64xf32>
    %132 = tpu.matmul %129, %131, %cst_187 {dimension_numbers = #tpu.dot_dimension_numbers<[1], [0], [0], [1], [0, 0, 1, 1], [], []>} : vector<64x32xbf16>, vector<32x64xbf16>, vector<64x64xf32> -> vector<64x64xf32>
    %c0_188 = arith.constant 0 : index
    %c0_189 = arith.constant 0 : index
    %133 = vector.load %arg13[%c0_188, %c0_189] : memref<64x64xf32, #tpu.memory_space<vmem>>, vector<64x64xf32>
    %134 = arith.addf %133, %132 : vector<64x64xf32>
    %c0_190 = arith.constant 0 : index
    %c0_191 = arith.constant 0 : index
    %135 = vector.load %arg13[%c0_190, %c0_191] : memref<64x64xf32, #tpu.memory_space<vmem>>, vector<64x64xf32>
    tpu.vector_store %arg13[%c0_190, %c0_191], %134 {strides = array<i32>} : memref<64x64xf32, #tpu.memory_space<vmem>>, vector<64x64xf32>,
    %c0_192 = arith.constant 0 : index
    %c1_193 = arith.constant 1 : index
    %c0_194 = arith.constant 0 : index
    %c0_195 = arith.constant 0 : index
    %136 = vector.load %arg1[%c0_192, %c1_193, %c0_194, %c0_195] : memref<1x5x5x32xbf16, #tpu.memory_space<vmem>>, vector<1x4x4x32xbf16>
    %137 = vector.shape_cast %136 : vector<1x4x4x32xbf16> to vector<4x4x32xbf16>
    %138 = vector.shape_cast %137 : vector<4x4x32xbf16> to vector<16x32xbf16>
    %c0_196 = arith.constant 0 : index
    %c0_197 = arith.constant 0 : index
    %139 = vector.load %arg12[%c0_196, %c0_197] : memref<64x32xbf16, #tpu.memory_space<vmem>>, vector<16x32xbf16>
    tpu.vector_store %arg12[%c0_196, %c0_197], %138 {strides = array<i32>} : memref<64x32xbf16, #tpu.memory_space<vmem>>, vector<16x32xbf16>,
    %c0_198 = arith.constant 0 : index
    %c1_199 = arith.constant 1 : index
    %c0_200 = arith.constant 0 : index
    %c0_201 = arith.constant 0 : index
    %140 = vector.load %arg2[%c0_198, %c1_199, %c0_200, %c0_201] : memref<1x5x5x32xbf16, #tpu.memory_space<vmem>>, vector<1x4x4x32xbf16>
    %141 = vector.shape_cast %140 : vector<1x4x4x32xbf16> to vector<4x4x32xbf16>
    %142 = vector.shape_cast %141 : vector<4x4x32xbf16> to vector<16x32xbf16>
    %c16_202 = arith.constant 16 : index
    %c0_203 = arith.constant 0 : index
    %143 = vector.load %arg12[%c16_202, %c0_203] : memref<64x32xbf16, #tpu.memory_space<vmem>>, vector<16x32xbf16>
    tpu.vector_store %arg12[%c16_202, %c0_203], %142 {strides = array<i32>} : memref<64x32xbf16, #tpu.memory_space<vmem>>, vector<16x32xbf16>,
    %c0_204 = arith.constant 0 : index
    %c1_205 = arith.constant 1 : index
    %c0_206 = arith.constant 0 : index
    %c0_207 = arith.constant 0 : index
    %144 = vector.load %arg3[%c0_204, %c1_205, %c0_206, %c0_207] : memref<1x5x5x32xbf16, #tpu.memory_space<vmem>>, vector<1x4x4x32xbf16>
    %145 = vector.shape_cast %144 : vector<1x4x4x32xbf16> to vector<4x4x32xbf16>
    %146 = vector.shape_cast %145 : vector<4x4x32xbf16> to vector<16x32xbf16>
    %c32_208 = arith.constant 32 : index
    %c0_209 = arith.constant 0 : index
    %147 = vector.load %arg12[%c32_208, %c0_209] : memref<64x32xbf16, #tpu.memory_space<vmem>>, vector<16x32xbf16>
    tpu.vector_store %arg12[%c32_208, %c0_209], %146 {strides = array<i32>} : memref<64x32xbf16, #tpu.memory_space<vmem>>, vector<16x32xbf16>,
    %c0_210 = arith.constant 0 : index
    %c1_211 = arith.constant 1 : index
    %c0_212 = arith.constant 0 : index
    %c0_213 = arith.constant 0 : index
    %148 = vector.load %arg4[%c0_210, %c1_211, %c0_212, %c0_213] : memref<1x5x5x32xbf16, #tpu.memory_space<vmem>>, vector<1x4x4x32xbf16>
    %149 = vector.shape_cast %148 : vector<1x4x4x32xbf16> to vector<4x4x32xbf16>
    %150 = vector.shape_cast %149 : vector<4x4x32xbf16> to vector<16x32xbf16>
    %c48_214 = arith.constant 48 : index
    %c0_215 = arith.constant 0 : index
    %151 = vector.load %arg12[%c48_214, %c0_215] : memref<64x32xbf16, #tpu.memory_space<vmem>>, vector<16x32xbf16>
    tpu.vector_store %arg12[%c48_214, %c0_215], %150 {strides = array<i32>} : memref<64x32xbf16, #tpu.memory_space<vmem>>, vector<16x32xbf16>,
    %c0_216 = arith.constant 0 : index
    %c0_217 = arith.constant 0 : index
    %152 = vector.load %arg12[%c0_216, %c0_217] : memref<64x32xbf16, #tpu.memory_space<vmem>>, vector<64x32xbf16>
    %c6 = arith.constant 6 : index
    %c0_218 = arith.constant 0 : index
    %c0_219 = arith.constant 0 : index
    %153 = vector.load %arg5[%c6, %c0_218, %c0_219] : memref<9x32x64xbf16, #tpu.memory_space<vmem>>, vector<1x32x64xbf16>
    %154 = vector.shape_cast %153 : vector<1x32x64xbf16> to vector<32x64xbf16>
    %cst_220 = arith.constant dense<0.000000e+00> : vector<64x64xf32>
    %155 = tpu.matmul %152, %154, %cst_220 {dimension_numbers = #tpu.dot_dimension_numbers<[1], [0], [0], [1], [0, 0, 1, 1], [], []>} : vector<64x32xbf16>, vector<32x64xbf16>, vector<64x64xf32> -> vector<64x64xf32>
    %c0_221 = arith.constant 0 : index
    %c0_222 = arith.constant 0 : index
    %156 = vector.load %arg13[%c0_221, %c0_222] : memref<64x64xf32, #tpu.memory_space<vmem>>, vector<64x64xf32>
    %157 = arith.addf %156, %155 : vector<64x64xf32>
    %c0_223 = arith.constant 0 : index
    %c0_224 = arith.constant 0 : index
    %158 = vector.load %arg13[%c0_223, %c0_224] : memref<64x64xf32, #tpu.memory_space<vmem>>, vector<64x64xf32>
    tpu.vector_store %arg13[%c0_223, %c0_224], %157 {strides = array<i32>} : memref<64x64xf32, #tpu.memory_space<vmem>>, vector<64x64xf32>,
    %c0_225 = arith.constant 0 : index
    %c1_226 = arith.constant 1 : index
    %c0_227 = arith.constant 0 : index
    %c0_228 = arith.constant 0 : index
    %159 = vector.load %arg2[%c0_225, %c1_226, %c0_227, %c0_228] : memref<1x5x5x32xbf16, #tpu.memory_space<vmem>>, vector<1x4x4x32xbf16>
    %160 = vector.shape_cast %159 : vector<1x4x4x32xbf16> to vector<4x4x32xbf16>
    %161 = vector.shape_cast %160 : vector<4x4x32xbf16> to vector<16x32xbf16>
    %c0_229 = arith.constant 0 : index
    %c0_230 = arith.constant 0 : index
    %162 = vector.load %arg12[%c0_229, %c0_230] : memref<64x32xbf16, #tpu.memory_space<vmem>>, vector<16x32xbf16>
    tpu.vector_store %arg12[%c0_229, %c0_230], %161 {strides = array<i32>} : memref<64x32xbf16, #tpu.memory_space<vmem>>, vector<16x32xbf16>,
    %c0_231 = arith.constant 0 : index
    %c1_232 = arith.constant 1 : index
    %c1_233 = arith.constant 1 : index
    %c0_234 = arith.constant 0 : index
    %163 = vector.load %arg1[%c0_231, %c1_232, %c1_233, %c0_234] : memref<1x5x5x32xbf16, #tpu.memory_space<vmem>>, vector<1x4x4x32xbf16>
    %164 = vector.shape_cast %163 : vector<1x4x4x32xbf16> to vector<4x4x32xbf16>
    %165 = vector.shape_cast %164 : vector<4x4x32xbf16> to vector<16x32xbf16>
    %c16_235 = arith.constant 16 : index
    %c0_236 = arith.constant 0 : index
    %166 = vector.load %arg12[%c16_235, %c0_236] : memref<64x32xbf16, #tpu.memory_space<vmem>>, vector<16x32xbf16>
    tpu.vector_store %arg12[%c16_235, %c0_236], %165 {strides = array<i32>} : memref<64x32xbf16, #tpu.memory_space<vmem>>, vector<16x32xbf16>,
    %c0_237 = arith.constant 0 : index
    %c1_238 = arith.constant 1 : index
    %c0_239 = arith.constant 0 : index
    %c0_240 = arith.constant 0 : index
    %167 = vector.load %arg4[%c0_237, %c1_238, %c0_239, %c0_240] : memref<1x5x5x32xbf16, #tpu.memory_space<vmem>>, vector<1x4x4x32xbf16>
    %168 = vector.shape_cast %167 : vector<1x4x4x32xbf16> to vector<4x4x32xbf16>
    %169 = vector.shape_cast %168 : vector<4x4x32xbf16> to vector<16x32xbf16>
    %c32_241 = arith.constant 32 : index
    %c0_242 = arith.constant 0 : index
    %170 = vector.load %arg12[%c32_241, %c0_242] : memref<64x32xbf16, #tpu.memory_space<vmem>>, vector<16x32xbf16>
    tpu.vector_store %arg12[%c32_241, %c0_242], %169 {strides = array<i32>} : memref<64x32xbf16, #tpu.memory_space<vmem>>, vector<16x32xbf16>,
    %c0_243 = arith.constant 0 : index
    %c1_244 = arith.constant 1 : index
    %c1_245 = arith.constant 1 : index
    %c0_246 = arith.constant 0 : index
    %171 = vector.load %arg3[%c0_243, %c1_244, %c1_245, %c0_246] : memref<1x5x5x32xbf16, #tpu.memory_space<vmem>>, vector<1x4x4x32xbf16>
    %172 = vector.shape_cast %171 : vector<1x4x4x32xbf16> to vector<4x4x32xbf16>
    %173 = vector.shape_cast %172 : vector<4x4x32xbf16> to vector<16x32xbf16>
    %c48_247 = arith.constant 48 : index
    %c0_248 = arith.constant 0 : index
    %174 = vector.load %arg12[%c48_247, %c0_248] : memref<64x32xbf16, #tpu.memory_space<vmem>>, vector<16x32xbf16>
    tpu.vector_store %arg12[%c48_247, %c0_248], %173 {strides = array<i32>} : memref<64x32xbf16, #tpu.memory_space<vmem>>, vector<16x32xbf16>,
    %c0_249 = arith.constant 0 : index
    %c0_250 = arith.constant 0 : index
    %175 = vector.load %arg12[%c0_249, %c0_250] : memref<64x32xbf16, #tpu.memory_space<vmem>>, vector<64x32xbf16>
    %c7 = arith.constant 7 : index
    %c0_251 = arith.constant 0 : index
    %c0_252 = arith.constant 0 : index
    %176 = vector.load %arg5[%c7, %c0_251, %c0_252] : memref<9x32x64xbf16, #tpu.memory_space<vmem>>, vector<1x32x64xbf16>
    %177 = vector.shape_cast %176 : vector<1x32x64xbf16> to vector<32x64xbf16>
    %cst_253 = arith.constant dense<0.000000e+00> : vector<64x64xf32>
    %178 = tpu.matmul %175, %177, %cst_253 {dimension_numbers = #tpu.dot_dimension_numbers<[1], [0], [0], [1], [0, 0, 1, 1], [], []>} : vector<64x32xbf16>, vector<32x64xbf16>, vector<64x64xf32> -> vector<64x64xf32>
    %c0_254 = arith.constant 0 : index
    %c0_255 = arith.constant 0 : index
    %179 = vector.load %arg13[%c0_254, %c0_255] : memref<64x64xf32, #tpu.memory_space<vmem>>, vector<64x64xf32>
    %180 = arith.addf %179, %178 : vector<64x64xf32>
    %c0_256 = arith.constant 0 : index
    %c0_257 = arith.constant 0 : index
    %181 = vector.load %arg13[%c0_256, %c0_257] : memref<64x64xf32, #tpu.memory_space<vmem>>, vector<64x64xf32>
    tpu.vector_store %arg13[%c0_256, %c0_257], %180 {strides = array<i32>} : memref<64x64xf32, #tpu.memory_space<vmem>>, vector<64x64xf32>,
    %c0_258 = arith.constant 0 : index
    %c1_259 = arith.constant 1 : index
    %c1_260 = arith.constant 1 : index
    %c0_261 = arith.constant 0 : index
    %182 = vector.load %arg1[%c0_258, %c1_259, %c1_260, %c0_261] : memref<1x5x5x32xbf16, #tpu.memory_space<vmem>>, vector<1x4x4x32xbf16>
    %183 = vector.shape_cast %182 : vector<1x4x4x32xbf16> to vector<4x4x32xbf16>
    %184 = vector.shape_cast %183 : vector<4x4x32xbf16> to vector<16x32xbf16>
    %c0_262 = arith.constant 0 : index
    %c0_263 = arith.constant 0 : index
    %185 = vector.load %arg12[%c0_262, %c0_263] : memref<64x32xbf16, #tpu.memory_space<vmem>>, vector<16x32xbf16>
    tpu.vector_store %arg12[%c0_262, %c0_263], %184 {strides = array<i32>} : memref<64x32xbf16, #tpu.memory_space<vmem>>, vector<16x32xbf16>,
    %c0_264 = arith.constant 0 : index
    %c1_265 = arith.constant 1 : index
    %c1_266 = arith.constant 1 : index
    %c0_267 = arith.constant 0 : index
    %186 = vector.load %arg2[%c0_264, %c1_265, %c1_266, %c0_267] : memref<1x5x5x32xbf16, #tpu.memory_space<vmem>>, vector<1x4x4x32xbf16>
    %187 = vector.shape_cast %186 : vector<1x4x4x32xbf16> to vector<4x4x32xbf16>
    %188 = vector.shape_cast %187 : vector<4x4x32xbf16> to vector<16x32xbf16>
    %c16_268 = arith.constant 16 : index
    %c0_269 = arith.constant 0 : index
    %189 = vector.load %arg12[%c16_268, %c0_269] : memref<64x32xbf16, #tpu.memory_space<vmem>>, vector<16x32xbf16>
    tpu.vector_store %arg12[%c16_268, %c0_269], %188 {strides = array<i32>} : memref<64x32xbf16, #tpu.memory_space<vmem>>, vector<16x32xbf16>,
    %c0_270 = arith.constant 0 : index
    %c1_271 = arith.constant 1 : index
    %c1_272 = arith.constant 1 : index
    %c0_273 = arith.constant 0 : index
    %190 = vector.load %arg3[%c0_270, %c1_271, %c1_272, %c0_273] : memref<1x5x5x32xbf16, #tpu.memory_space<vmem>>, vector<1x4x4x32xbf16>
    %191 = vector.shape_cast %190 : vector<1x4x4x32xbf16> to vector<4x4x32xbf16>
    %192 = vector.shape_cast %191 : vector<4x4x32xbf16> to vector<16x32xbf16>
    %c32_274 = arith.constant 32 : index
    %c0_275 = arith.constant 0 : index
    %193 = vector.load %arg12[%c32_274, %c0_275] : memref<64x32xbf16, #tpu.memory_space<vmem>>, vector<16x32xbf16>
    tpu.vector_store %arg12[%c32_274, %c0_275], %192 {strides = array<i32>} : memref<64x32xbf16, #tpu.memory_space<vmem>>, vector<16x32xbf16>,
    %c0_276 = arith.constant 0 : index
    %c1_277 = arith.constant 1 : index
    %c1_278 = arith.constant 1 : index
    %c0_279 = arith.constant 0 : index
    %194 = vector.load %arg4[%c0_276, %c1_277, %c1_278, %c0_279] : memref<1x5x5x32xbf16, #tpu.memory_space<vmem>>, vector<1x4x4x32xbf16>
    %195 = vector.shape_cast %194 : vector<1x4x4x32xbf16> to vector<4x4x32xbf16>
    %196 = vector.shape_cast %195 : vector<4x4x32xbf16> to vector<16x32xbf16>
    %c48_280 = arith.constant 48 : index
    %c0_281 = arith.constant 0 : index
    %197 = vector.load %arg12[%c48_280, %c0_281] : memref<64x32xbf16, #tpu.memory_space<vmem>>, vector<16x32xbf16>
    tpu.vector_store %arg12[%c48_280, %c0_281], %196 {strides = array<i32>} : memref<64x32xbf16, #tpu.memory_space<vmem>>, vector<16x32xbf16>,
    %c0_282 = arith.constant 0 : index
    %c0_283 = arith.constant 0 : index
    %198 = vector.load %arg12[%c0_282, %c0_283] : memref<64x32xbf16, #tpu.memory_space<vmem>>, vector<64x32xbf16>
    %c8 = arith.constant 8 : index
    %c0_284 = arith.constant 0 : index
    %c0_285 = arith.constant 0 : index
    %199 = vector.load %arg5[%c8, %c0_284, %c0_285] : memref<9x32x64xbf16, #tpu.memory_space<vmem>>, vector<1x32x64xbf16>
    %200 = vector.shape_cast %199 : vector<1x32x64xbf16> to vector<32x64xbf16>
    %cst_286 = arith.constant dense<0.000000e+00> : vector<64x64xf32>
    %201 = tpu.matmul %198, %200, %cst_286 {dimension_numbers = #tpu.dot_dimension_numbers<[1], [0], [0], [1], [0, 0, 1, 1], [], []>} : vector<64x32xbf16>, vector<32x64xbf16>, vector<64x64xf32> -> vector<64x64xf32>
    %c0_287 = arith.constant 0 : index
    %c0_288 = arith.constant 0 : index
    %202 = vector.load %arg13[%c0_287, %c0_288] : memref<64x64xf32, #tpu.memory_space<vmem>>, vector<64x64xf32>
    %203 = arith.addf %202, %201 : vector<64x64xf32>
    %c0_289 = arith.constant 0 : index
    %c0_290 = arith.constant 0 : index
    %204 = vector.load %arg13[%c0_289, %c0_290] : memref<64x64xf32, #tpu.memory_space<vmem>>, vector<64x64xf32>
    tpu.vector_store %arg13[%c0_289, %c0_290], %203 {strides = array<i32>} : memref<64x64xf32, #tpu.memory_space<vmem>>, vector<64x64xf32>,
    %c0_291 = arith.constant 0 : index
    %c0_292 = arith.constant 0 : index
    %205 = vector.load %arg13[%c0_291, %c0_292] : memref<64x64xf32, #tpu.memory_space<vmem>>, vector<64x64xf32>
    %c0_293 = arith.constant 0 : index
    %c0_294 = arith.constant 0 : index
    %206 = vector.load %arg6[%c0_293, %c0_294] : memref<1x64xf32, #tpu.memory_space<vmem>>, vector<1x64xf32>
    %207 = vector.broadcast %206 : vector<1x64xf32> to vector<64x64xf32>
    %208 = arith.mulf %205, %207 : vector<64x64xf32>
    %c0_295 = arith.constant 0 : index
    %c0_296 = arith.constant 0 : index
    %209 = vector.load %arg7[%c0_295, %c0_296] : memref<1x64xf32, #tpu.memory_space<vmem>>, vector<1x64xf32>
    %210 = vector.broadcast %209 : vector<1x64xf32> to vector<64x64xf32>
    %211 = arith.addf %208, %210 : vector<64x64xf32>
    %212 = vector.extract_strided_slice %211 {offsets = [0, 0], sizes = [16, 64], strides = [1, 1]} : vector<64x64xf32> to vector<16x64xf32>
    %213 = vector.extract_strided_slice %211 {offsets = [16, 0], sizes = [16, 64], strides = [1, 1]} : vector<64x64xf32> to vector<16x64xf32>
    %214 = arith.maximumf %212, %213 : vector<16x64xf32>
    %215 = vector.extract_strided_slice %211 {offsets = [32, 0], sizes = [16, 64], strides = [1, 1]} : vector<64x64xf32> to vector<16x64xf32>
    %216 = vector.extract_strided_slice %211 {offsets = [48, 0], sizes = [16, 64], strides = [1, 1]} : vector<64x64xf32> to vector<16x64xf32>
    %217 = arith.maximumf %215, %216 : vector<16x64xf32>
    %218 = arith.maximumf %214, %217 : vector<16x64xf32>
    %cst_297 = arith.constant 0.000000e+00 : f32
    %219 = vector.broadcast %cst_297 : f32 to vector<16x64xf32>
    %220 = arith.maximumf %218, %219 : vector<16x64xf32>
    %221 = arith.truncf %220 : vector<16x64xf32> to vector<16x64xbf16>
    %cst_298 = arith.constant 0.000000e+00 : bf16
    %222 = vector.broadcast %cst_298 : bf16 to vector<3x64xbf16>
    %cst_299 = arith.constant 0.000000e+00 : bf16
    %223 = vector.broadcast %cst_299 : bf16 to vector<1x64xbf16>
    %c0_300 = arith.constant 0 : index
    %c0_301 = arith.constant 0 : index
    %c0_302 = arith.constant 0 : index
    %c0_303 = arith.constant 0 : index
    %224 = vector.load %arg8[%c0_300, %c0_301, %c0_302, %c0_303] : memref<1x3x3x64xbf16, #tpu.memory_space<vmem>>, vector<1x1x3x64xbf16>
    %225 = vector.shape_cast %224 : vector<1x1x3x64xbf16> to vector<3x64xbf16>
    %226 = vector.shape_cast %222 : vector<3x64xbf16> to vector<1x1x3x64xbf16>
    tpu.vector_store %arg8[%c0_300, %c0_301, %c0_302, %c0_303], %226 {strides = array<i32>} : memref<1x3x3x64xbf16, #tpu.memory_space<vmem>>, vector<1x1x3x64xbf16>,
    %227 = vector.extract_strided_slice %221 {offsets = [5, 0], sizes = [1, 64], strides = [1, 1]} : vector<16x64xbf16> to vector<1x64xbf16>
    %228 = vector.extract_strided_slice %221 {offsets = [7, 0], sizes = [1, 64], strides = [1, 1]} : vector<16x64xbf16> to vector<1x64xbf16>
    %229 = tpu.concatenate %227, %228 in 0 : vector<1x64xbf16>, vector<1x64xbf16> -> vector<2x64xbf16>
    %230 = tpu.concatenate %223, %229 in 0 : vector<1x64xbf16>, vector<2x64xbf16> -> vector<3x64xbf16>
    %c0_304 = arith.constant 0 : index
    %c1_305 = arith.constant 1 : index
    %c0_306 = arith.constant 0 : index
    %c0_307 = arith.constant 0 : index
    %231 = vector.load %arg8[%c0_304, %c1_305, %c0_306, %c0_307] : memref<1x3x3x64xbf16, #tpu.memory_space<vmem>>, vector<1x1x3x64xbf16>
    %232 = vector.shape_cast %231 : vector<1x1x3x64xbf16> to vector<3x64xbf16>
    %233 = vector.shape_cast %230 : vector<3x64xbf16> to vector<1x1x3x64xbf16>
    tpu.vector_store %arg8[%c0_304, %c1_305, %c0_306, %c0_307], %233 {strides = array<i32>} : memref<1x3x3x64xbf16, #tpu.memory_space<vmem>>, vector<1x1x3x64xbf16>,
    %234 = vector.extract_strided_slice %221 {offsets = [13, 0], sizes = [1, 64], strides = [1, 1]} : vector<16x64xbf16> to vector<1x64xbf16>
    %235 = vector.extract_strided_slice %221 {offsets = [15, 0], sizes = [1, 64], strides = [1, 1]} : vector<16x64xbf16> to vector<1x64xbf16>
    %236 = tpu.concatenate %234, %235 in 0 : vector<1x64xbf16>, vector<1x64xbf16> -> vector<2x64xbf16>
    %237 = tpu.concatenate %223, %236 in 0 : vector<1x64xbf16>, vector<2x64xbf16> -> vector<3x64xbf16>
    %c0_308 = arith.constant 0 : index
    %c2_309 = arith.constant 2 : index
    %c0_310 = arith.constant 0 : index
    %c0_311 = arith.constant 0 : index
    %238 = vector.load %arg8[%c0_308, %c2_309, %c0_310, %c0_311] : memref<1x3x3x64xbf16, #tpu.memory_space<vmem>>, vector<1x1x3x64xbf16>
    %239 = vector.shape_cast %238 : vector<1x1x3x64xbf16> to vector<3x64xbf16>
    %240 = vector.shape_cast %237 : vector<3x64xbf16> to vector<1x1x3x64xbf16>
    tpu.vector_store %arg8[%c0_308, %c2_309, %c0_310, %c0_311], %240 {strides = array<i32>} : memref<1x3x3x64xbf16, #tpu.memory_space<vmem>>, vector<1x1x3x64xbf16>,
    %c0_312 = arith.constant 0 : index
    %c0_313 = arith.constant 0 : index
    %c0_314 = arith.constant 0 : index
    %c0_315 = arith.constant 0 : index
    %241 = vector.load %arg9[%c0_312, %c0_313, %c0_314, %c0_315] : memref<1x3x3x64xbf16, #tpu.memory_space<vmem>>, vector<1x1x3x64xbf16>
    %242 = vector.shape_cast %241 : vector<1x1x3x64xbf16> to vector<3x64xbf16>
    %243 = vector.shape_cast %222 : vector<3x64xbf16> to vector<1x1x3x64xbf16>
    tpu.vector_store %arg9[%c0_312, %c0_313, %c0_314, %c0_315], %243 {strides = array<i32>} : memref<1x3x3x64xbf16, #tpu.memory_space<vmem>>, vector<1x1x3x64xbf16>,
    %244 = vector.extract_strided_slice %221 {offsets = [4, 0], sizes = [1, 64], strides = [1, 1]} : vector<16x64xbf16> to vector<1x64xbf16>
    %245 = vector.extract_strided_slice %221 {offsets = [6, 0], sizes = [1, 64], strides = [1, 1]} : vector<16x64xbf16> to vector<1x64xbf16>
    %246 = tpu.concatenate %244, %245 in 0 : vector<1x64xbf16>, vector<1x64xbf16> -> vector<2x64xbf16>
    %247 = tpu.concatenate %246, %223 in 0 : vector<2x64xbf16>, vector<1x64xbf16> -> vector<3x64xbf16>
    %c0_316 = arith.constant 0 : index
    %c1_317 = arith.constant 1 : index
    %c0_318 = arith.constant 0 : index
    %c0_319 = arith.constant 0 : index
    %248 = vector.load %arg9[%c0_316, %c1_317, %c0_318, %c0_319] : memref<1x3x3x64xbf16, #tpu.memory_space<vmem>>, vector<1x1x3x64xbf16>
    %249 = vector.shape_cast %248 : vector<1x1x3x64xbf16> to vector<3x64xbf16>
    %250 = vector.shape_cast %247 : vector<3x64xbf16> to vector<1x1x3x64xbf16>
    tpu.vector_store %arg9[%c0_316, %c1_317, %c0_318, %c0_319], %250 {strides = array<i32>} : memref<1x3x3x64xbf16, #tpu.memory_space<vmem>>, vector<1x1x3x64xbf16>,
    %251 = vector.extract_strided_slice %221 {offsets = [12, 0], sizes = [1, 64], strides = [1, 1]} : vector<16x64xbf16> to vector<1x64xbf16>
    %252 = vector.extract_strided_slice %221 {offsets = [14, 0], sizes = [1, 64], strides = [1, 1]} : vector<16x64xbf16> to vector<1x64xbf16>
    %253 = tpu.concatenate %251, %252 in 0 : vector<1x64xbf16>, vector<1x64xbf16> -> vector<2x64xbf16>
    %254 = tpu.concatenate %253, %223 in 0 : vector<2x64xbf16>, vector<1x64xbf16> -> vector<3x64xbf16>
    %c0_320 = arith.constant 0 : index
    %c2_321 = arith.constant 2 : index
    %c0_322 = arith.constant 0 : index
    %c0_323 = arith.constant 0 : index
    %255 = vector.load %arg9[%c0_320, %c2_321, %c0_322, %c0_323] : memref<1x3x3x64xbf16, #tpu.memory_space<vmem>>, vector<1x1x3x64xbf16>
    %256 = vector.shape_cast %255 : vector<1x1x3x64xbf16> to vector<3x64xbf16>
    %257 = vector.shape_cast %254 : vector<3x64xbf16> to vector<1x1x3x64xbf16>
    tpu.vector_store %arg9[%c0_320, %c2_321, %c0_322, %c0_323], %257 {strides = array<i32>} : memref<1x3x3x64xbf16, #tpu.memory_space<vmem>>, vector<1x1x3x64xbf16>,
    %c0_324 = arith.constant 0 : index
    %c2_325 = arith.constant 2 : index
    %c0_326 = arith.constant 0 : index
    %c0_327 = arith.constant 0 : index
    %258 = vector.load %arg10[%c0_324, %c2_325, %c0_326, %c0_327] : memref<1x3x3x64xbf16, #tpu.memory_space<vmem>>, vector<1x1x3x64xbf16>
    %259 = vector.shape_cast %258 : vector<1x1x3x64xbf16> to vector<3x64xbf16>
    %260 = vector.shape_cast %222 : vector<3x64xbf16> to vector<1x1x3x64xbf16>
    tpu.vector_store %arg10[%c0_324, %c2_325, %c0_326, %c0_327], %260 {strides = array<i32>} : memref<1x3x3x64xbf16, #tpu.memory_space<vmem>>, vector<1x1x3x64xbf16>,
    %261 = vector.extract_strided_slice %221 {offsets = [1, 0], sizes = [1, 64], strides = [1, 1]} : vector<16x64xbf16> to vector<1x64xbf16>
    %262 = vector.extract_strided_slice %221 {offsets = [3, 0], sizes = [1, 64], strides = [1, 1]} : vector<16x64xbf16> to vector<1x64xbf16>
    %263 = tpu.concatenate %261, %262 in 0 : vector<1x64xbf16>, vector<1x64xbf16> -> vector<2x64xbf16>
    %264 = tpu.concatenate %223, %263 in 0 : vector<1x64xbf16>, vector<2x64xbf16> -> vector<3x64xbf16>
    %c0_328 = arith.constant 0 : index
    %c0_329 = arith.constant 0 : index
    %c0_330 = arith.constant 0 : index
    %c0_331 = arith.constant 0 : index
    %265 = vector.load %arg10[%c0_328, %c0_329, %c0_330, %c0_331] : memref<1x3x3x64xbf16, #tpu.memory_space<vmem>>, vector<1x1x3x64xbf16>
    %266 = vector.shape_cast %265 : vector<1x1x3x64xbf16> to vector<3x64xbf16>
    %267 = vector.shape_cast %264 : vector<3x64xbf16> to vector<1x1x3x64xbf16>
    tpu.vector_store %arg10[%c0_328, %c0_329, %c0_330, %c0_331], %267 {strides = array<i32>} : memref<1x3x3x64xbf16, #tpu.memory_space<vmem>>, vector<1x1x3x64xbf16>,
    %268 = vector.extract_strided_slice %221 {offsets = [9, 0], sizes = [1, 64], strides = [1, 1]} : vector<16x64xbf16> to vector<1x64xbf16>
    %269 = vector.extract_strided_slice %221 {offsets = [11, 0], sizes = [1, 64], strides = [1, 1]} : vector<16x64xbf16> to vector<1x64xbf16>
    %270 = tpu.concatenate %268, %269 in 0 : vector<1x64xbf16>, vector<1x64xbf16> -> vector<2x64xbf16>
    %271 = tpu.concatenate %223, %270 in 0 : vector<1x64xbf16>, vector<2x64xbf16> -> vector<3x64xbf16>
    %c0_332 = arith.constant 0 : index
    %c1_333 = arith.constant 1 : index
    %c0_334 = arith.constant 0 : index
    %c0_335 = arith.constant 0 : index
    %272 = vector.load %arg10[%c0_332, %c1_333, %c0_334, %c0_335] : memref<1x3x3x64xbf16, #tpu.memory_space<vmem>>, vector<1x1x3x64xbf16>
    %273 = vector.shape_cast %272 : vector<1x1x3x64xbf16> to vector<3x64xbf16>
    %274 = vector.shape_cast %271 : vector<3x64xbf16> to vector<1x1x3x64xbf16>
    tpu.vector_store %arg10[%c0_332, %c1_333, %c0_334, %c0_335], %274 {strides = array<i32>} : memref<1x3x3x64xbf16, #tpu.memory_space<vmem>>, vector<1x1x3x64xbf16>,
    %c0_336 = arith.constant 0 : index
    %c2_337 = arith.constant 2 : index
    %c0_338 = arith.constant 0 : index
    %c0_339 = arith.constant 0 : index
    %275 = vector.load %arg11[%c0_336, %c2_337, %c0_338, %c0_339] : memref<1x3x3x64xbf16, #tpu.memory_space<vmem>>, vector<1x1x3x64xbf16>
    %276 = vector.shape_cast %275 : vector<1x1x3x64xbf16> to vector<3x64xbf16>
    %277 = vector.shape_cast %222 : vector<3x64xbf16> to vector<1x1x3x64xbf16>
    tpu.vector_store %arg11[%c0_336, %c2_337, %c0_338, %c0_339], %277 {strides = array<i32>} : memref<1x3x3x64xbf16, #tpu.memory_space<vmem>>, vector<1x1x3x64xbf16>,
    %278 = vector.extract_strided_slice %221 {offsets = [0, 0], sizes = [1, 64], strides = [1, 1]} : vector<16x64xbf16> to vector<1x64xbf16>
    %279 = vector.extract_strided_slice %221 {offsets = [2, 0], sizes = [1, 64], strides = [1, 1]} : vector<16x64xbf16> to vector<1x64xbf16>
    %280 = tpu.concatenate %278, %279 in 0 : vector<1x64xbf16>, vector<1x64xbf16> -> vector<2x64xbf16>
    %281 = tpu.concatenate %280, %223 in 0 : vector<2x64xbf16>, vector<1x64xbf16> -> vector<3x64xbf16>
    %c0_340 = arith.constant 0 : index
    %c0_341 = arith.constant 0 : index
    %c0_342 = arith.constant 0 : index
    %c0_343 = arith.constant 0 : index
    %282 = vector.load %arg11[%c0_340, %c0_341, %c0_342, %c0_343] : memref<1x3x3x64xbf16, #tpu.memory_space<vmem>>, vector<1x1x3x64xbf16>
    %283 = vector.shape_cast %282 : vector<1x1x3x64xbf16> to vector<3x64xbf16>
    %284 = vector.shape_cast %281 : vector<3x64xbf16> to vector<1x1x3x64xbf16>
    tpu.vector_store %arg11[%c0_340, %c0_341, %c0_342, %c0_343], %284 {strides = array<i32>} : memref<1x3x3x64xbf16, #tpu.memory_space<vmem>>, vector<1x1x3x64xbf16>,
    %285 = vector.extract_strided_slice %221 {offsets = [8, 0], sizes = [1, 64], strides = [1, 1]} : vector<16x64xbf16> to vector<1x64xbf16>
    %286 = vector.extract_strided_slice %221 {offsets = [10, 0], sizes = [1, 64], strides = [1, 1]} : vector<16x64xbf16> to vector<1x64xbf16>
    %287 = tpu.concatenate %285, %286 in 0 : vector<1x64xbf16>, vector<1x64xbf16> -> vector<2x64xbf16>
    %288 = tpu.concatenate %287, %223 in 0 : vector<2x64xbf16>, vector<1x64xbf16> -> vector<3x64xbf16>
    %c0_344 = arith.constant 0 : index
    %c1_345 = arith.constant 1 : index
    %c0_346 = arith.constant 0 : index
    %c0_347 = arith.constant 0 : index
    %289 = vector.load %arg11[%c0_344, %c1_345, %c0_346, %c0_347] : memref<1x3x3x64xbf16, #tpu.memory_space<vmem>>, vector<1x1x3x64xbf16>
    %290 = vector.shape_cast %289 : vector<1x1x3x64xbf16> to vector<3x64xbf16>
    %291 = vector.shape_cast %288 : vector<3x64xbf16> to vector<1x1x3x64xbf16>
    tpu.vector_store %arg11[%c0_344, %c1_345, %c0_346, %c0_347], %291 {strides = array<i32>} : memref<1x3x3x64xbf16, #tpu.memory_space<vmem>>, vector<1x1x3x64xbf16>,
    return
  }
  func.func @transform_0(%arg0: i32) -> (i32, i32, i32, i32) {
    %c0_i32 = arith.constant 0 : i32
    %c0_i32_0 = arith.constant 0 : i32
    %c0_i32_1 = arith.constant 0 : i32
    %c0_i32_2 = arith.constant 0 : i32
    return %arg0, %c0_i32, %c0_i32_0, %c0_i32_1 : i32, i32, i32, i32
  }
  func.func @transform_1(%arg0: i32) -> (i32, i32, i32, i32) {
    %c0_i32 = arith.constant 0 : i32
    %c0_i32_0 = arith.constant 0 : i32
    %c0_i32_1 = arith.constant 0 : i32
    %c0_i32_2 = arith.constant 0 : i32
    return %arg0, %c0_i32, %c0_i32_0, %c0_i32_1 : i32, i32, i32, i32
  }
  func.func @transform_2(%arg0: i32) -> (i32, i32, i32, i32) {
    %c0_i32 = arith.constant 0 : i32
    %c0_i32_0 = arith.constant 0 : i32
    %c0_i32_1 = arith.constant 0 : i32
    %c0_i32_2 = arith.constant 0 : i32
    return %arg0, %c0_i32, %c0_i32_0, %c0_i32_1 : i32, i32, i32, i32
  }
  func.func @transform_3(%arg0: i32) -> (i32, i32, i32, i32) {
    %c0_i32 = arith.constant 0 : i32
    %c0_i32_0 = arith.constant 0 : i32
    %c0_i32_1 = arith.constant 0 : i32
    %c0_i32_2 = arith.constant 0 : i32
    return %arg0, %c0_i32, %c0_i32_0, %c0_i32_1 : i32, i32, i32, i32
  }
  func.func @transform_4(%arg0: i32) -> (i32, i32, i32) {
    %c0_i32 = arith.constant 0 : i32
    %c0_i32_0 = arith.constant 0 : i32
    %c0_i32_1 = arith.constant 0 : i32
    %c0_i32_2 = arith.constant 0 : i32
    return %c0_i32, %c0_i32_0, %c0_i32_1 : i32, i32, i32
  }
  func.func @transform_5(%arg0: i32) -> (i32, i32) {
    %c0_i32 = arith.constant 0 : i32
    %c0_i32_0 = arith.constant 0 : i32
    %c0_i32_1 = arith.constant 0 : i32
    return %c0_i32, %c0_i32_0 : i32, i32
  }
  func.func @transform_6(%arg0: i32) -> (i32, i32) {
    %c0_i32 = arith.constant 0 : i32
    %c0_i32_0 = arith.constant 0 : i32
    %c0_i32_1 = arith.constant 0 : i32
    return %c0_i32, %c0_i32_0 : i32, i32
  }
  func.func @transform_7(%arg0: i32) -> (i32, i32, i32, i32) {
    %c0_i32 = arith.constant 0 : i32
    %c0_i32_0 = arith.constant 0 : i32
    %c0_i32_1 = arith.constant 0 : i32
    %c0_i32_2 = arith.constant 0 : i32
    return %arg0, %c0_i32, %c0_i32_0, %c0_i32_1 : i32, i32, i32, i32
  }
  func.func @transform_8(%arg0: i32) -> (i32, i32, i32, i32) {
    %c0_i32 = arith.constant 0 : i32
    %c0_i32_0 = arith.constant 0 : i32
    %c0_i32_1 = arith.constant 0 : i32
    %c0_i32_2 = arith.constant 0 : i32
    return %arg0, %c0_i32, %c0_i32_0, %c0_i32_1 : i32, i32, i32, i32
  }
  func.func @transform_9(%arg0: i32) -> (i32, i32, i32, i32) {
    %c0_i32 = arith.constant 0 : i32
    %c0_i32_0 = arith.constant 0 : i32
    %c0_i32_1 = arith.constant 0 : i32
    %c0_i32_2 = arith.constant 0 : i32
    return %arg0, %c0_i32, %c0_i32_0, %c0_i32_1 : i32, i32, i32, i32
  }
  func.func @transform_10(%arg0: i32) -> (i32, i32, i32, i32) {
    %c0_i32 = arith.constant 0 : i32
    %c0_i32_0 = arith.constant 0 : i32
    %c0_i32_1 = arith.constant 0 : i32
    %c0_i32_2 = arith.constant 0 : i32
    return %arg0, %c0_i32, %c0_i32_0, %c0_i32_1 : i32, i32, i32, i32
  }
}

module attributes {stable_mosaic.version = 11 : i64} {
  func.func @kernel(%arg0: i32, %arg1: memref<1x3x3x64xbf16, #tpu.memory_space<vmem>>, %arg2: memref<1x3x3x64xbf16, #tpu.memory_space<vmem>>, %arg3: memref<1x3x3x64xbf16, #tpu.memory_space<vmem>>, %arg4: memref<1x3x3x64xbf16, #tpu.memory_space<vmem>>, %arg5: memref<9x64x128xbf16, #tpu.memory_space<vmem>>, %arg6: memref<1x128xf32, #tpu.memory_space<vmem>>, %arg7: memref<1x128xf32, #tpu.memory_space<vmem>>, %arg8: memref<1x2x2x128xbf16, #tpu.memory_space<vmem>>, %arg9: memref<1x2x2x128xbf16, #tpu.memory_space<vmem>>, %arg10: memref<1x2x2x128xbf16, #tpu.memory_space<vmem>>, %arg11: memref<1x2x2x128xbf16, #tpu.memory_space<vmem>>, %arg12: memref<16x64xbf16, #tpu.memory_space<vmem>>, %arg13: memref<16x128xf32, #tpu.memory_space<vmem>>) attributes {dimension_semantics = [#tpu.dimension_semantics<parallel>], iteration_bounds = array<i64: 2>, scalar_prefetch = 0 : i64, scratch_operands = 2 : i64, tpu.core_type = #tpu.core_type<tc>, window_params = [{transform_indices = @transform_0, window_bounds = array<i64: 1, 3, 3, 64>}, {transform_indices = @transform_1, window_bounds = array<i64: 1, 3, 3, 64>}, {transform_indices = @transform_2, window_bounds = array<i64: 1, 3, 3, 64>}, {transform_indices = @transform_3, window_bounds = array<i64: 1, 3, 3, 64>}, {pipeline_mode = #tpu.pipeline_mode<synchronous>, transform_indices = @transform_4, window_bounds = array<i64: 9, 64, 128>}, {pipeline_mode = #tpu.pipeline_mode<synchronous>, transform_indices = @transform_5, window_bounds = array<i64: 1, 128>}, {pipeline_mode = #tpu.pipeline_mode<synchronous>, transform_indices = @transform_6, window_bounds = array<i64: 1, 128>}, {transform_indices = @transform_7, window_bounds = array<i64: 1, 2, 2, 128>}, {transform_indices = @transform_8, window_bounds = array<i64: 1, 2, 2, 128>}, {transform_indices = @transform_9, window_bounds = array<i64: 1, 2, 2, 128>}, {transform_indices = @transform_10, window_bounds = array<i64: 1, 2, 2, 128>}]} {
    %c0 = arith.constant 0 : index
    %c0_0 = arith.constant 0 : index
    %c0_1 = arith.constant 0 : index
    %c0_2 = arith.constant 0 : index
    %0 = vector.load %arg1[%c0, %c0_0, %c0_1, %c0_2] : memref<1x3x3x64xbf16, #tpu.memory_space<vmem>>, vector<1x2x2x64xbf16>
    %1 = vector.shape_cast %0 : vector<1x2x2x64xbf16> to vector<2x2x64xbf16>
    %2 = vector.shape_cast %1 : vector<2x2x64xbf16> to vector<4x64xbf16>
    %c0_3 = arith.constant 0 : index
    %c0_4 = arith.constant 0 : index
    %3 = vector.load %arg12[%c0_3, %c0_4] : memref<16x64xbf16, #tpu.memory_space<vmem>>, vector<4x64xbf16>
    tpu.vector_store %arg12[%c0_3, %c0_4], %2 {strides = array<i32>} : memref<16x64xbf16, #tpu.memory_space<vmem>>, vector<4x64xbf16>,
    %c0_5 = arith.constant 0 : index
    %c0_6 = arith.constant 0 : index
    %c0_7 = arith.constant 0 : index
    %c0_8 = arith.constant 0 : index
    %4 = vector.load %arg2[%c0_5, %c0_6, %c0_7, %c0_8] : memref<1x3x3x64xbf16, #tpu.memory_space<vmem>>, vector<1x2x2x64xbf16>
    %5 = vector.shape_cast %4 : vector<1x2x2x64xbf16> to vector<2x2x64xbf16>
    %6 = vector.shape_cast %5 : vector<2x2x64xbf16> to vector<4x64xbf16>
    %c4 = arith.constant 4 : index
    %c0_9 = arith.constant 0 : index
    %7 = vector.load %arg12[%c4, %c0_9] : memref<16x64xbf16, #tpu.memory_space<vmem>>, vector<4x64xbf16>
    tpu.vector_store %arg12[%c4, %c0_9], %6 {strides = array<i32>} : memref<16x64xbf16, #tpu.memory_space<vmem>>, vector<4x64xbf16>,
    %c0_10 = arith.constant 0 : index
    %c0_11 = arith.constant 0 : index
    %c0_12 = arith.constant 0 : index
    %c0_13 = arith.constant 0 : index
    %8 = vector.load %arg3[%c0_10, %c0_11, %c0_12, %c0_13] : memref<1x3x3x64xbf16, #tpu.memory_space<vmem>>, vector<1x2x2x64xbf16>
    %9 = vector.shape_cast %8 : vector<1x2x2x64xbf16> to vector<2x2x64xbf16>
    %10 = vector.shape_cast %9 : vector<2x2x64xbf16> to vector<4x64xbf16>
    %c8 = arith.constant 8 : index
    %c0_14 = arith.constant 0 : index
    %11 = vector.load %arg12[%c8, %c0_14] : memref<16x64xbf16, #tpu.memory_space<vmem>>, vector<4x64xbf16>
    tpu.vector_store %arg12[%c8, %c0_14], %10 {strides = array<i32>} : memref<16x64xbf16, #tpu.memory_space<vmem>>, vector<4x64xbf16>,
    %c0_15 = arith.constant 0 : index
    %c0_16 = arith.constant 0 : index
    %c0_17 = arith.constant 0 : index
    %c0_18 = arith.constant 0 : index
    %12 = vector.load %arg4[%c0_15, %c0_16, %c0_17, %c0_18] : memref<1x3x3x64xbf16, #tpu.memory_space<vmem>>, vector<1x2x2x64xbf16>
    %13 = vector.shape_cast %12 : vector<1x2x2x64xbf16> to vector<2x2x64xbf16>
    %14 = vector.shape_cast %13 : vector<2x2x64xbf16> to vector<4x64xbf16>
    %c12 = arith.constant 12 : index
    %c0_19 = arith.constant 0 : index
    %15 = vector.load %arg12[%c12, %c0_19] : memref<16x64xbf16, #tpu.memory_space<vmem>>, vector<4x64xbf16>
    tpu.vector_store %arg12[%c12, %c0_19], %14 {strides = array<i32>} : memref<16x64xbf16, #tpu.memory_space<vmem>>, vector<4x64xbf16>,
    %c0_20 = arith.constant 0 : index
    %c0_21 = arith.constant 0 : index
    %16 = vector.load %arg12[%c0_20, %c0_21] : memref<16x64xbf16, #tpu.memory_space<vmem>>, vector<16x64xbf16>
    %c0_22 = arith.constant 0 : index
    %c0_23 = arith.constant 0 : index
    %c0_24 = arith.constant 0 : index
    %17 = vector.load %arg5[%c0_22, %c0_23, %c0_24] : memref<9x64x128xbf16, #tpu.memory_space<vmem>>, vector<1x64x128xbf16>
    %18 = vector.shape_cast %17 : vector<1x64x128xbf16> to vector<64x128xbf16>
    %cst = arith.constant dense<0.000000e+00> : vector<16x128xf32>
    %19 = tpu.matmul %16, %18, %cst {dimension_numbers = #tpu.dot_dimension_numbers<[1], [0], [0], [1], [0, 0, 1, 1], [], []>} : vector<16x64xbf16>, vector<64x128xbf16>, vector<16x128xf32> -> vector<16x128xf32>
    %c0_25 = arith.constant 0 : index
    %c0_26 = arith.constant 0 : index
    %20 = vector.load %arg13[%c0_25, %c0_26] : memref<16x128xf32, #tpu.memory_space<vmem>>, vector<16x128xf32>
    tpu.vector_store %arg13[%c0_25, %c0_26], %19 {strides = array<i32>} : memref<16x128xf32, #tpu.memory_space<vmem>>, vector<16x128xf32>,
    %c0_27 = arith.constant 0 : index
    %c0_28 = arith.constant 0 : index
    %c0_29 = arith.constant 0 : index
    %c0_30 = arith.constant 0 : index
    %21 = vector.load %arg2[%c0_27, %c0_28, %c0_29, %c0_30] : memref<1x3x3x64xbf16, #tpu.memory_space<vmem>>, vector<1x2x2x64xbf16>
    %22 = vector.shape_cast %21 : vector<1x2x2x64xbf16> to vector<2x2x64xbf16>
    %23 = vector.shape_cast %22 : vector<2x2x64xbf16> to vector<4x64xbf16>
    %c0_31 = arith.constant 0 : index
    %c0_32 = arith.constant 0 : index
    %24 = vector.load %arg12[%c0_31, %c0_32] : memref<16x64xbf16, #tpu.memory_space<vmem>>, vector<4x64xbf16>
    tpu.vector_store %arg12[%c0_31, %c0_32], %23 {strides = array<i32>} : memref<16x64xbf16, #tpu.memory_space<vmem>>, vector<4x64xbf16>,
    %c0_33 = arith.constant 0 : index
    %c0_34 = arith.constant 0 : index
    %c1 = arith.constant 1 : index
    %c0_35 = arith.constant 0 : index
    %25 = vector.load %arg1[%c0_33, %c0_34, %c1, %c0_35] : memref<1x3x3x64xbf16, #tpu.memory_space<vmem>>, vector<1x2x2x64xbf16>
    %26 = vector.shape_cast %25 : vector<1x2x2x64xbf16> to vector<2x2x64xbf16>
    %27 = vector.shape_cast %26 : vector<2x2x64xbf16> to vector<4x64xbf16>
    %c4_36 = arith.constant 4 : index
    %c0_37 = arith.constant 0 : index
    %28 = vector.load %arg12[%c4_36, %c0_37] : memref<16x64xbf16, #tpu.memory_space<vmem>>, vector<4x64xbf16>
    tpu.vector_store %arg12[%c4_36, %c0_37], %27 {strides = array<i32>} : memref<16x64xbf16, #tpu.memory_space<vmem>>, vector<4x64xbf16>,
    %c0_38 = arith.constant 0 : index
    %c0_39 = arith.constant 0 : index
    %c0_40 = arith.constant 0 : index
    %c0_41 = arith.constant 0 : index
    %29 = vector.load %arg4[%c0_38, %c0_39, %c0_40, %c0_41] : memref<1x3x3x64xbf16, #tpu.memory_space<vmem>>, vector<1x2x2x64xbf16>
    %30 = vector.shape_cast %29 : vector<1x2x2x64xbf16> to vector<2x2x64xbf16>
    %31 = vector.shape_cast %30 : vector<2x2x64xbf16> to vector<4x64xbf16>
    %c8_42 = arith.constant 8 : index
    %c0_43 = arith.constant 0 : index
    %32 = vector.load %arg12[%c8_42, %c0_43] : memref<16x64xbf16, #tpu.memory_space<vmem>>, vector<4x64xbf16>
    tpu.vector_store %arg12[%c8_42, %c0_43], %31 {strides = array<i32>} : memref<16x64xbf16, #tpu.memory_space<vmem>>, vector<4x64xbf16>,
    %c0_44 = arith.constant 0 : index
    %c0_45 = arith.constant 0 : index
    %c1_46 = arith.constant 1 : index
    %c0_47 = arith.constant 0 : index
    %33 = vector.load %arg3[%c0_44, %c0_45, %c1_46, %c0_47] : memref<1x3x3x64xbf16, #tpu.memory_space<vmem>>, vector<1x2x2x64xbf16>
    %34 = vector.shape_cast %33 : vector<1x2x2x64xbf16> to vector<2x2x64xbf16>
    %35 = vector.shape_cast %34 : vector<2x2x64xbf16> to vector<4x64xbf16>
    %c12_48 = arith.constant 12 : index
    %c0_49 = arith.constant 0 : index
    %36 = vector.load %arg12[%c12_48, %c0_49] : memref<16x64xbf16, #tpu.memory_space<vmem>>, vector<4x64xbf16>
    tpu.vector_store %arg12[%c12_48, %c0_49], %35 {strides = array<i32>} : memref<16x64xbf16, #tpu.memory_space<vmem>>, vector<4x64xbf16>,
    %c0_50 = arith.constant 0 : index
    %c0_51 = arith.constant 0 : index
    %37 = vector.load %arg12[%c0_50, %c0_51] : memref<16x64xbf16, #tpu.memory_space<vmem>>, vector<16x64xbf16>
    %c1_52 = arith.constant 1 : index
    %c0_53 = arith.constant 0 : index
    %c0_54 = arith.constant 0 : index
    %38 = vector.load %arg5[%c1_52, %c0_53, %c0_54] : memref<9x64x128xbf16, #tpu.memory_space<vmem>>, vector<1x64x128xbf16>
    %39 = vector.shape_cast %38 : vector<1x64x128xbf16> to vector<64x128xbf16>
    %cst_55 = arith.constant dense<0.000000e+00> : vector<16x128xf32>
    %40 = tpu.matmul %37, %39, %cst_55 {dimension_numbers = #tpu.dot_dimension_numbers<[1], [0], [0], [1], [0, 0, 1, 1], [], []>} : vector<16x64xbf16>, vector<64x128xbf16>, vector<16x128xf32> -> vector<16x128xf32>
    %c0_56 = arith.constant 0 : index
    %c0_57 = arith.constant 0 : index
    %41 = vector.load %arg13[%c0_56, %c0_57] : memref<16x128xf32, #tpu.memory_space<vmem>>, vector<16x128xf32>
    %42 = arith.addf %41, %40 : vector<16x128xf32>
    %c0_58 = arith.constant 0 : index
    %c0_59 = arith.constant 0 : index
    %43 = vector.load %arg13[%c0_58, %c0_59] : memref<16x128xf32, #tpu.memory_space<vmem>>, vector<16x128xf32>
    tpu.vector_store %arg13[%c0_58, %c0_59], %42 {strides = array<i32>} : memref<16x128xf32, #tpu.memory_space<vmem>>, vector<16x128xf32>,
    %c0_60 = arith.constant 0 : index
    %c0_61 = arith.constant 0 : index
    %c1_62 = arith.constant 1 : index
    %c0_63 = arith.constant 0 : index
    %44 = vector.load %arg1[%c0_60, %c0_61, %c1_62, %c0_63] : memref<1x3x3x64xbf16, #tpu.memory_space<vmem>>, vector<1x2x2x64xbf16>
    %45 = vector.shape_cast %44 : vector<1x2x2x64xbf16> to vector<2x2x64xbf16>
    %46 = vector.shape_cast %45 : vector<2x2x64xbf16> to vector<4x64xbf16>
    %c0_64 = arith.constant 0 : index
    %c0_65 = arith.constant 0 : index
    %47 = vector.load %arg12[%c0_64, %c0_65] : memref<16x64xbf16, #tpu.memory_space<vmem>>, vector<4x64xbf16>
    tpu.vector_store %arg12[%c0_64, %c0_65], %46 {strides = array<i32>} : memref<16x64xbf16, #tpu.memory_space<vmem>>, vector<4x64xbf16>,
    %c0_66 = arith.constant 0 : index
    %c0_67 = arith.constant 0 : index
    %c1_68 = arith.constant 1 : index
    %c0_69 = arith.constant 0 : index
    %48 = vector.load %arg2[%c0_66, %c0_67, %c1_68, %c0_69] : memref<1x3x3x64xbf16, #tpu.memory_space<vmem>>, vector<1x2x2x64xbf16>
    %49 = vector.shape_cast %48 : vector<1x2x2x64xbf16> to vector<2x2x64xbf16>
    %50 = vector.shape_cast %49 : vector<2x2x64xbf16> to vector<4x64xbf16>
    %c4_70 = arith.constant 4 : index
    %c0_71 = arith.constant 0 : index
    %51 = vector.load %arg12[%c4_70, %c0_71] : memref<16x64xbf16, #tpu.memory_space<vmem>>, vector<4x64xbf16>
    tpu.vector_store %arg12[%c4_70, %c0_71], %50 {strides = array<i32>} : memref<16x64xbf16, #tpu.memory_space<vmem>>, vector<4x64xbf16>,
    %c0_72 = arith.constant 0 : index
    %c0_73 = arith.constant 0 : index
    %c1_74 = arith.constant 1 : index
    %c0_75 = arith.constant 0 : index
    %52 = vector.load %arg3[%c0_72, %c0_73, %c1_74, %c0_75] : memref<1x3x3x64xbf16, #tpu.memory_space<vmem>>, vector<1x2x2x64xbf16>
    %53 = vector.shape_cast %52 : vector<1x2x2x64xbf16> to vector<2x2x64xbf16>
    %54 = vector.shape_cast %53 : vector<2x2x64xbf16> to vector<4x64xbf16>
    %c8_76 = arith.constant 8 : index
    %c0_77 = arith.constant 0 : index
    %55 = vector.load %arg12[%c8_76, %c0_77] : memref<16x64xbf16, #tpu.memory_space<vmem>>, vector<4x64xbf16>
    tpu.vector_store %arg12[%c8_76, %c0_77], %54 {strides = array<i32>} : memref<16x64xbf16, #tpu.memory_space<vmem>>, vector<4x64xbf16>,
    %c0_78 = arith.constant 0 : index
    %c0_79 = arith.constant 0 : index
    %c1_80 = arith.constant 1 : index
    %c0_81 = arith.constant 0 : index
    %56 = vector.load %arg4[%c0_78, %c0_79, %c1_80, %c0_81] : memref<1x3x3x64xbf16, #tpu.memory_space<vmem>>, vector<1x2x2x64xbf16>
    %57 = vector.shape_cast %56 : vector<1x2x2x64xbf16> to vector<2x2x64xbf16>
    %58 = vector.shape_cast %57 : vector<2x2x64xbf16> to vector<4x64xbf16>
    %c12_82 = arith.constant 12 : index
    %c0_83 = arith.constant 0 : index
    %59 = vector.load %arg12[%c12_82, %c0_83] : memref<16x64xbf16, #tpu.memory_space<vmem>>, vector<4x64xbf16>
    tpu.vector_store %arg12[%c12_82, %c0_83], %58 {strides = array<i32>} : memref<16x64xbf16, #tpu.memory_space<vmem>>, vector<4x64xbf16>,
    %c0_84 = arith.constant 0 : index
    %c0_85 = arith.constant 0 : index
    %60 = vector.load %arg12[%c0_84, %c0_85] : memref<16x64xbf16, #tpu.memory_space<vmem>>, vector<16x64xbf16>
    %c2 = arith.constant 2 : index
    %c0_86 = arith.constant 0 : index
    %c0_87 = arith.constant 0 : index
    %61 = vector.load %arg5[%c2, %c0_86, %c0_87] : memref<9x64x128xbf16, #tpu.memory_space<vmem>>, vector<1x64x128xbf16>
    %62 = vector.shape_cast %61 : vector<1x64x128xbf16> to vector<64x128xbf16>
    %cst_88 = arith.constant dense<0.000000e+00> : vector<16x128xf32>
    %63 = tpu.matmul %60, %62, %cst_88 {dimension_numbers = #tpu.dot_dimension_numbers<[1], [0], [0], [1], [0, 0, 1, 1], [], []>} : vector<16x64xbf16>, vector<64x128xbf16>, vector<16x128xf32> -> vector<16x128xf32>
    %c0_89 = arith.constant 0 : index
    %c0_90 = arith.constant 0 : index
    %64 = vector.load %arg13[%c0_89, %c0_90] : memref<16x128xf32, #tpu.memory_space<vmem>>, vector<16x128xf32>
    %65 = arith.addf %64, %63 : vector<16x128xf32>
    %c0_91 = arith.constant 0 : index
    %c0_92 = arith.constant 0 : index
    %66 = vector.load %arg13[%c0_91, %c0_92] : memref<16x128xf32, #tpu.memory_space<vmem>>, vector<16x128xf32>
    tpu.vector_store %arg13[%c0_91, %c0_92], %65 {strides = array<i32>} : memref<16x128xf32, #tpu.memory_space<vmem>>, vector<16x128xf32>,
    %c0_93 = arith.constant 0 : index
    %c0_94 = arith.constant 0 : index
    %c0_95 = arith.constant 0 : index
    %c0_96 = arith.constant 0 : index
    %67 = vector.load %arg3[%c0_93, %c0_94, %c0_95, %c0_96] : memref<1x3x3x64xbf16, #tpu.memory_space<vmem>>, vector<1x2x2x64xbf16>
    %68 = vector.shape_cast %67 : vector<1x2x2x64xbf16> to vector<2x2x64xbf16>
    %69 = vector.shape_cast %68 : vector<2x2x64xbf16> to vector<4x64xbf16>
    %c0_97 = arith.constant 0 : index
    %c0_98 = arith.constant 0 : index
    %70 = vector.load %arg12[%c0_97, %c0_98] : memref<16x64xbf16, #tpu.memory_space<vmem>>, vector<4x64xbf16>
    tpu.vector_store %arg12[%c0_97, %c0_98], %69 {strides = array<i32>} : memref<16x64xbf16, #tpu.memory_space<vmem>>, vector<4x64xbf16>,
    %c0_99 = arith.constant 0 : index
    %c0_100 = arith.constant 0 : index
    %c0_101 = arith.constant 0 : index
    %c0_102 = arith.constant 0 : index
    %71 = vector.load %arg4[%c0_99, %c0_100, %c0_101, %c0_102] : memref<1x3x3x64xbf16, #tpu.memory_space<vmem>>, vector<1x2x2x64xbf16>
    %72 = vector.shape_cast %71 : vector<1x2x2x64xbf16> to vector<2x2x64xbf16>
    %73 = vector.shape_cast %72 : vector<2x2x64xbf16> to vector<4x64xbf16>
    %c4_103 = arith.constant 4 : index
    %c0_104 = arith.constant 0 : index
    %74 = vector.load %arg12[%c4_103, %c0_104] : memref<16x64xbf16, #tpu.memory_space<vmem>>, vector<4x64xbf16>
    tpu.vector_store %arg12[%c4_103, %c0_104], %73 {strides = array<i32>} : memref<16x64xbf16, #tpu.memory_space<vmem>>, vector<4x64xbf16>,
    %c0_105 = arith.constant 0 : index
    %c1_106 = arith.constant 1 : index
    %c0_107 = arith.constant 0 : index
    %c0_108 = arith.constant 0 : index
    %75 = vector.load %arg1[%c0_105, %c1_106, %c0_107, %c0_108] : memref<1x3x3x64xbf16, #tpu.memory_space<vmem>>, vector<1x2x2x64xbf16>
    %76 = vector.shape_cast %75 : vector<1x2x2x64xbf16> to vector<2x2x64xbf16>
    %77 = vector.shape_cast %76 : vector<2x2x64xbf16> to vector<4x64xbf16>
    %c8_109 = arith.constant 8 : index
    %c0_110 = arith.constant 0 : index
    %78 = vector.load %arg12[%c8_109, %c0_110] : memref<16x64xbf16, #tpu.memory_space<vmem>>, vector<4x64xbf16>
    tpu.vector_store %arg12[%c8_109, %c0_110], %77 {strides = array<i32>} : memref<16x64xbf16, #tpu.memory_space<vmem>>, vector<4x64xbf16>,
    %c0_111 = arith.constant 0 : index
    %c1_112 = arith.constant 1 : index
    %c0_113 = arith.constant 0 : index
    %c0_114 = arith.constant 0 : index
    %79 = vector.load %arg2[%c0_111, %c1_112, %c0_113, %c0_114] : memref<1x3x3x64xbf16, #tpu.memory_space<vmem>>, vector<1x2x2x64xbf16>
    %80 = vector.shape_cast %79 : vector<1x2x2x64xbf16> to vector<2x2x64xbf16>
    %81 = vector.shape_cast %80 : vector<2x2x64xbf16> to vector<4x64xbf16>
    %c12_115 = arith.constant 12 : index
    %c0_116 = arith.constant 0 : index
    %82 = vector.load %arg12[%c12_115, %c0_116] : memref<16x64xbf16, #tpu.memory_space<vmem>>, vector<4x64xbf16>
    tpu.vector_store %arg12[%c12_115, %c0_116], %81 {strides = array<i32>} : memref<16x64xbf16, #tpu.memory_space<vmem>>, vector<4x64xbf16>,
    %c0_117 = arith.constant 0 : index
    %c0_118 = arith.constant 0 : index
    %83 = vector.load %arg12[%c0_117, %c0_118] : memref<16x64xbf16, #tpu.memory_space<vmem>>, vector<16x64xbf16>
    %c3 = arith.constant 3 : index
    %c0_119 = arith.constant 0 : index
    %c0_120 = arith.constant 0 : index
    %84 = vector.load %arg5[%c3, %c0_119, %c0_120] : memref<9x64x128xbf16, #tpu.memory_space<vmem>>, vector<1x64x128xbf16>
    %85 = vector.shape_cast %84 : vector<1x64x128xbf16> to vector<64x128xbf16>
    %cst_121 = arith.constant dense<0.000000e+00> : vector<16x128xf32>
    %86 = tpu.matmul %83, %85, %cst_121 {dimension_numbers = #tpu.dot_dimension_numbers<[1], [0], [0], [1], [0, 0, 1, 1], [], []>} : vector<16x64xbf16>, vector<64x128xbf16>, vector<16x128xf32> -> vector<16x128xf32>
    %c0_122 = arith.constant 0 : index
    %c0_123 = arith.constant 0 : index
    %87 = vector.load %arg13[%c0_122, %c0_123] : memref<16x128xf32, #tpu.memory_space<vmem>>, vector<16x128xf32>
    %88 = arith.addf %87, %86 : vector<16x128xf32>
    %c0_124 = arith.constant 0 : index
    %c0_125 = arith.constant 0 : index
    %89 = vector.load %arg13[%c0_124, %c0_125] : memref<16x128xf32, #tpu.memory_space<vmem>>, vector<16x128xf32>
    tpu.vector_store %arg13[%c0_124, %c0_125], %88 {strides = array<i32>} : memref<16x128xf32, #tpu.memory_space<vmem>>, vector<16x128xf32>,
    %c0_126 = arith.constant 0 : index
    %c0_127 = arith.constant 0 : index
    %c0_128 = arith.constant 0 : index
    %c0_129 = arith.constant 0 : index
    %90 = vector.load %arg4[%c0_126, %c0_127, %c0_128, %c0_129] : memref<1x3x3x64xbf16, #tpu.memory_space<vmem>>, vector<1x2x2x64xbf16>
    %91 = vector.shape_cast %90 : vector<1x2x2x64xbf16> to vector<2x2x64xbf16>
    %92 = vector.shape_cast %91 : vector<2x2x64xbf16> to vector<4x64xbf16>
    %c0_130 = arith.constant 0 : index
    %c0_131 = arith.constant 0 : index
    %93 = vector.load %arg12[%c0_130, %c0_131] : memref<16x64xbf16, #tpu.memory_space<vmem>>, vector<4x64xbf16>
    tpu.vector_store %arg12[%c0_130, %c0_131], %92 {strides = array<i32>} : memref<16x64xbf16, #tpu.memory_space<vmem>>, vector<4x64xbf16>,
    %c0_132 = arith.constant 0 : index
    %c0_133 = arith.constant 0 : index
    %c1_134 = arith.constant 1 : index
    %c0_135 = arith.constant 0 : index
    %94 = vector.load %arg3[%c0_132, %c0_133, %c1_134, %c0_135] : memref<1x3x3x64xbf16, #tpu.memory_space<vmem>>, vector<1x2x2x64xbf16>
    %95 = vector.shape_cast %94 : vector<1x2x2x64xbf16> to vector<2x2x64xbf16>
    %96 = vector.shape_cast %95 : vector<2x2x64xbf16> to vector<4x64xbf16>
    %c4_136 = arith.constant 4 : index
    %c0_137 = arith.constant 0 : index
    %97 = vector.load %arg12[%c4_136, %c0_137] : memref<16x64xbf16, #tpu.memory_space<vmem>>, vector<4x64xbf16>
    tpu.vector_store %arg12[%c4_136, %c0_137], %96 {strides = array<i32>} : memref<16x64xbf16, #tpu.memory_space<vmem>>, vector<4x64xbf16>,
    %c0_138 = arith.constant 0 : index
    %c1_139 = arith.constant 1 : index
    %c0_140 = arith.constant 0 : index
    %c0_141 = arith.constant 0 : index
    %98 = vector.load %arg2[%c0_138, %c1_139, %c0_140, %c0_141] : memref<1x3x3x64xbf16, #tpu.memory_space<vmem>>, vector<1x2x2x64xbf16>
    %99 = vector.shape_cast %98 : vector<1x2x2x64xbf16> to vector<2x2x64xbf16>
    %100 = vector.shape_cast %99 : vector<2x2x64xbf16> to vector<4x64xbf16>
    %c8_142 = arith.constant 8 : index
    %c0_143 = arith.constant 0 : index
    %101 = vector.load %arg12[%c8_142, %c0_143] : memref<16x64xbf16, #tpu.memory_space<vmem>>, vector<4x64xbf16>
    tpu.vector_store %arg12[%c8_142, %c0_143], %100 {strides = array<i32>} : memref<16x64xbf16, #tpu.memory_space<vmem>>, vector<4x64xbf16>,
    %c0_144 = arith.constant 0 : index
    %c1_145 = arith.constant 1 : index
    %c1_146 = arith.constant 1 : index
    %c0_147 = arith.constant 0 : index
    %102 = vector.load %arg1[%c0_144, %c1_145, %c1_146, %c0_147] : memref<1x3x3x64xbf16, #tpu.memory_space<vmem>>, vector<1x2x2x64xbf16>
    %103 = vector.shape_cast %102 : vector<1x2x2x64xbf16> to vector<2x2x64xbf16>
    %104 = vector.shape_cast %103 : vector<2x2x64xbf16> to vector<4x64xbf16>
    %c12_148 = arith.constant 12 : index
    %c0_149 = arith.constant 0 : index
    %105 = vector.load %arg12[%c12_148, %c0_149] : memref<16x64xbf16, #tpu.memory_space<vmem>>, vector<4x64xbf16>
    tpu.vector_store %arg12[%c12_148, %c0_149], %104 {strides = array<i32>} : memref<16x64xbf16, #tpu.memory_space<vmem>>, vector<4x64xbf16>,
    %c0_150 = arith.constant 0 : index
    %c0_151 = arith.constant 0 : index
    %106 = vector.load %arg12[%c0_150, %c0_151] : memref<16x64xbf16, #tpu.memory_space<vmem>>, vector<16x64xbf16>
    %c4_152 = arith.constant 4 : index
    %c0_153 = arith.constant 0 : index
    %c0_154 = arith.constant 0 : index
    %107 = vector.load %arg5[%c4_152, %c0_153, %c0_154] : memref<9x64x128xbf16, #tpu.memory_space<vmem>>, vector<1x64x128xbf16>
    %108 = vector.shape_cast %107 : vector<1x64x128xbf16> to vector<64x128xbf16>
    %cst_155 = arith.constant dense<0.000000e+00> : vector<16x128xf32>
    %109 = tpu.matmul %106, %108, %cst_155 {dimension_numbers = #tpu.dot_dimension_numbers<[1], [0], [0], [1], [0, 0, 1, 1], [], []>} : vector<16x64xbf16>, vector<64x128xbf16>, vector<16x128xf32> -> vector<16x128xf32>
    %c0_156 = arith.constant 0 : index
    %c0_157 = arith.constant 0 : index
    %110 = vector.load %arg13[%c0_156, %c0_157] : memref<16x128xf32, #tpu.memory_space<vmem>>, vector<16x128xf32>
    %111 = arith.addf %110, %109 : vector<16x128xf32>
    %c0_158 = arith.constant 0 : index
    %c0_159 = arith.constant 0 : index
    %112 = vector.load %arg13[%c0_158, %c0_159] : memref<16x128xf32, #tpu.memory_space<vmem>>, vector<16x128xf32>
    tpu.vector_store %arg13[%c0_158, %c0_159], %111 {strides = array<i32>} : memref<16x128xf32, #tpu.memory_space<vmem>>, vector<16x128xf32>,
    %c0_160 = arith.constant 0 : index
    %c0_161 = arith.constant 0 : index
    %c1_162 = arith.constant 1 : index
    %c0_163 = arith.constant 0 : index
    %113 = vector.load %arg3[%c0_160, %c0_161, %c1_162, %c0_163] : memref<1x3x3x64xbf16, #tpu.memory_space<vmem>>, vector<1x2x2x64xbf16>
    %114 = vector.shape_cast %113 : vector<1x2x2x64xbf16> to vector<2x2x64xbf16>
    %115 = vector.shape_cast %114 : vector<2x2x64xbf16> to vector<4x64xbf16>
    %c0_164 = arith.constant 0 : index
    %c0_165 = arith.constant 0 : index
    %116 = vector.load %arg12[%c0_164, %c0_165] : memref<16x64xbf16, #tpu.memory_space<vmem>>, vector<4x64xbf16>
    tpu.vector_store %arg12[%c0_164, %c0_165], %115 {strides = array<i32>} : memref<16x64xbf16, #tpu.memory_space<vmem>>, vector<4x64xbf16>,
    %c0_166 = arith.constant 0 : index
    %c0_167 = arith.constant 0 : index
    %c1_168 = arith.constant 1 : index
    %c0_169 = arith.constant 0 : index
    %117 = vector.load %arg4[%c0_166, %c0_167, %c1_168, %c0_169] : memref<1x3x3x64xbf16, #tpu.memory_space<vmem>>, vector<1x2x2x64xbf16>
    %118 = vector.shape_cast %117 : vector<1x2x2x64xbf16> to vector<2x2x64xbf16>
    %119 = vector.shape_cast %118 : vector<2x2x64xbf16> to vector<4x64xbf16>
    %c4_170 = arith.constant 4 : index
    %c0_171 = arith.constant 0 : index
    %120 = vector.load %arg12[%c4_170, %c0_171] : memref<16x64xbf16, #tpu.memory_space<vmem>>, vector<4x64xbf16>
    tpu.vector_store %arg12[%c4_170, %c0_171], %119 {strides = array<i32>} : memref<16x64xbf16, #tpu.memory_space<vmem>>, vector<4x64xbf16>,
    %c0_172 = arith.constant 0 : index
    %c1_173 = arith.constant 1 : index
    %c1_174 = arith.constant 1 : index
    %c0_175 = arith.constant 0 : index
    %121 = vector.load %arg1[%c0_172, %c1_173, %c1_174, %c0_175] : memref<1x3x3x64xbf16, #tpu.memory_space<vmem>>, vector<1x2x2x64xbf16>
    %122 = vector.shape_cast %121 : vector<1x2x2x64xbf16> to vector<2x2x64xbf16>
    %123 = vector.shape_cast %122 : vector<2x2x64xbf16> to vector<4x64xbf16>
    %c8_176 = arith.constant 8 : index
    %c0_177 = arith.constant 0 : index
    %124 = vector.load %arg12[%c8_176, %c0_177] : memref<16x64xbf16, #tpu.memory_space<vmem>>, vector<4x64xbf16>
    tpu.vector_store %arg12[%c8_176, %c0_177], %123 {strides = array<i32>} : memref<16x64xbf16, #tpu.memory_space<vmem>>, vector<4x64xbf16>,
    %c0_178 = arith.constant 0 : index
    %c1_179 = arith.constant 1 : index
    %c1_180 = arith.constant 1 : index
    %c0_181 = arith.constant 0 : index
    %125 = vector.load %arg2[%c0_178, %c1_179, %c1_180, %c0_181] : memref<1x3x3x64xbf16, #tpu.memory_space<vmem>>, vector<1x2x2x64xbf16>
    %126 = vector.shape_cast %125 : vector<1x2x2x64xbf16> to vector<2x2x64xbf16>
    %127 = vector.shape_cast %126 : vector<2x2x64xbf16> to vector<4x64xbf16>
    %c12_182 = arith.constant 12 : index
    %c0_183 = arith.constant 0 : index
    %128 = vector.load %arg12[%c12_182, %c0_183] : memref<16x64xbf16, #tpu.memory_space<vmem>>, vector<4x64xbf16>
    tpu.vector_store %arg12[%c12_182, %c0_183], %127 {strides = array<i32>} : memref<16x64xbf16, #tpu.memory_space<vmem>>, vector<4x64xbf16>,
    %c0_184 = arith.constant 0 : index
    %c0_185 = arith.constant 0 : index
    %129 = vector.load %arg12[%c0_184, %c0_185] : memref<16x64xbf16, #tpu.memory_space<vmem>>, vector<16x64xbf16>
    %c5 = arith.constant 5 : index
    %c0_186 = arith.constant 0 : index
    %c0_187 = arith.constant 0 : index
    %130 = vector.load %arg5[%c5, %c0_186, %c0_187] : memref<9x64x128xbf16, #tpu.memory_space<vmem>>, vector<1x64x128xbf16>
    %131 = vector.shape_cast %130 : vector<1x64x128xbf16> to vector<64x128xbf16>
    %cst_188 = arith.constant dense<0.000000e+00> : vector<16x128xf32>
    %132 = tpu.matmul %129, %131, %cst_188 {dimension_numbers = #tpu.dot_dimension_numbers<[1], [0], [0], [1], [0, 0, 1, 1], [], []>} : vector<16x64xbf16>, vector<64x128xbf16>, vector<16x128xf32> -> vector<16x128xf32>
    %c0_189 = arith.constant 0 : index
    %c0_190 = arith.constant 0 : index
    %133 = vector.load %arg13[%c0_189, %c0_190] : memref<16x128xf32, #tpu.memory_space<vmem>>, vector<16x128xf32>
    %134 = arith.addf %133, %132 : vector<16x128xf32>
    %c0_191 = arith.constant 0 : index
    %c0_192 = arith.constant 0 : index
    %135 = vector.load %arg13[%c0_191, %c0_192] : memref<16x128xf32, #tpu.memory_space<vmem>>, vector<16x128xf32>
    tpu.vector_store %arg13[%c0_191, %c0_192], %134 {strides = array<i32>} : memref<16x128xf32, #tpu.memory_space<vmem>>, vector<16x128xf32>,
    %c0_193 = arith.constant 0 : index
    %c1_194 = arith.constant 1 : index
    %c0_195 = arith.constant 0 : index
    %c0_196 = arith.constant 0 : index
    %136 = vector.load %arg1[%c0_193, %c1_194, %c0_195, %c0_196] : memref<1x3x3x64xbf16, #tpu.memory_space<vmem>>, vector<1x2x2x64xbf16>
    %137 = vector.shape_cast %136 : vector<1x2x2x64xbf16> to vector<2x2x64xbf16>
    %138 = vector.shape_cast %137 : vector<2x2x64xbf16> to vector<4x64xbf16>
    %c0_197 = arith.constant 0 : index
    %c0_198 = arith.constant 0 : index
    %139 = vector.load %arg12[%c0_197, %c0_198] : memref<16x64xbf16, #tpu.memory_space<vmem>>, vector<4x64xbf16>
    tpu.vector_store %arg12[%c0_197, %c0_198], %138 {strides = array<i32>} : memref<16x64xbf16, #tpu.memory_space<vmem>>, vector<4x64xbf16>,
    %c0_199 = arith.constant 0 : index
    %c1_200 = arith.constant 1 : index
    %c0_201 = arith.constant 0 : index
    %c0_202 = arith.constant 0 : index
    %140 = vector.load %arg2[%c0_199, %c1_200, %c0_201, %c0_202] : memref<1x3x3x64xbf16, #tpu.memory_space<vmem>>, vector<1x2x2x64xbf16>
    %141 = vector.shape_cast %140 : vector<1x2x2x64xbf16> to vector<2x2x64xbf16>
    %142 = vector.shape_cast %141 : vector<2x2x64xbf16> to vector<4x64xbf16>
    %c4_203 = arith.constant 4 : index
    %c0_204 = arith.constant 0 : index
    %143 = vector.load %arg12[%c4_203, %c0_204] : memref<16x64xbf16, #tpu.memory_space<vmem>>, vector<4x64xbf16>
    tpu.vector_store %arg12[%c4_203, %c0_204], %142 {strides = array<i32>} : memref<16x64xbf16, #tpu.memory_space<vmem>>, vector<4x64xbf16>,
    %c0_205 = arith.constant 0 : index
    %c1_206 = arith.constant 1 : index
    %c0_207 = arith.constant 0 : index
    %c0_208 = arith.constant 0 : index
    %144 = vector.load %arg3[%c0_205, %c1_206, %c0_207, %c0_208] : memref<1x3x3x64xbf16, #tpu.memory_space<vmem>>, vector<1x2x2x64xbf16>
    %145 = vector.shape_cast %144 : vector<1x2x2x64xbf16> to vector<2x2x64xbf16>
    %146 = vector.shape_cast %145 : vector<2x2x64xbf16> to vector<4x64xbf16>
    %c8_209 = arith.constant 8 : index
    %c0_210 = arith.constant 0 : index
    %147 = vector.load %arg12[%c8_209, %c0_210] : memref<16x64xbf16, #tpu.memory_space<vmem>>, vector<4x64xbf16>
    tpu.vector_store %arg12[%c8_209, %c0_210], %146 {strides = array<i32>} : memref<16x64xbf16, #tpu.memory_space<vmem>>, vector<4x64xbf16>,
    %c0_211 = arith.constant 0 : index
    %c1_212 = arith.constant 1 : index
    %c0_213 = arith.constant 0 : index
    %c0_214 = arith.constant 0 : index
    %148 = vector.load %arg4[%c0_211, %c1_212, %c0_213, %c0_214] : memref<1x3x3x64xbf16, #tpu.memory_space<vmem>>, vector<1x2x2x64xbf16>
    %149 = vector.shape_cast %148 : vector<1x2x2x64xbf16> to vector<2x2x64xbf16>
    %150 = vector.shape_cast %149 : vector<2x2x64xbf16> to vector<4x64xbf16>
    %c12_215 = arith.constant 12 : index
    %c0_216 = arith.constant 0 : index
    %151 = vector.load %arg12[%c12_215, %c0_216] : memref<16x64xbf16, #tpu.memory_space<vmem>>, vector<4x64xbf16>
    tpu.vector_store %arg12[%c12_215, %c0_216], %150 {strides = array<i32>} : memref<16x64xbf16, #tpu.memory_space<vmem>>, vector<4x64xbf16>,
    %c0_217 = arith.constant 0 : index
    %c0_218 = arith.constant 0 : index
    %152 = vector.load %arg12[%c0_217, %c0_218] : memref<16x64xbf16, #tpu.memory_space<vmem>>, vector<16x64xbf16>
    %c6 = arith.constant 6 : index
    %c0_219 = arith.constant 0 : index
    %c0_220 = arith.constant 0 : index
    %153 = vector.load %arg5[%c6, %c0_219, %c0_220] : memref<9x64x128xbf16, #tpu.memory_space<vmem>>, vector<1x64x128xbf16>
    %154 = vector.shape_cast %153 : vector<1x64x128xbf16> to vector<64x128xbf16>
    %cst_221 = arith.constant dense<0.000000e+00> : vector<16x128xf32>
    %155 = tpu.matmul %152, %154, %cst_221 {dimension_numbers = #tpu.dot_dimension_numbers<[1], [0], [0], [1], [0, 0, 1, 1], [], []>} : vector<16x64xbf16>, vector<64x128xbf16>, vector<16x128xf32> -> vector<16x128xf32>
    %c0_222 = arith.constant 0 : index
    %c0_223 = arith.constant 0 : index
    %156 = vector.load %arg13[%c0_222, %c0_223] : memref<16x128xf32, #tpu.memory_space<vmem>>, vector<16x128xf32>
    %157 = arith.addf %156, %155 : vector<16x128xf32>
    %c0_224 = arith.constant 0 : index
    %c0_225 = arith.constant 0 : index
    %158 = vector.load %arg13[%c0_224, %c0_225] : memref<16x128xf32, #tpu.memory_space<vmem>>, vector<16x128xf32>
    tpu.vector_store %arg13[%c0_224, %c0_225], %157 {strides = array<i32>} : memref<16x128xf32, #tpu.memory_space<vmem>>, vector<16x128xf32>,
    %c0_226 = arith.constant 0 : index
    %c1_227 = arith.constant 1 : index
    %c0_228 = arith.constant 0 : index
    %c0_229 = arith.constant 0 : index
    %159 = vector.load %arg2[%c0_226, %c1_227, %c0_228, %c0_229] : memref<1x3x3x64xbf16, #tpu.memory_space<vmem>>, vector<1x2x2x64xbf16>
    %160 = vector.shape_cast %159 : vector<1x2x2x64xbf16> to vector<2x2x64xbf16>
    %161 = vector.shape_cast %160 : vector<2x2x64xbf16> to vector<4x64xbf16>
    %c0_230 = arith.constant 0 : index
    %c0_231 = arith.constant 0 : index
    %162 = vector.load %arg12[%c0_230, %c0_231] : memref<16x64xbf16, #tpu.memory_space<vmem>>, vector<4x64xbf16>
    tpu.vector_store %arg12[%c0_230, %c0_231], %161 {strides = array<i32>} : memref<16x64xbf16, #tpu.memory_space<vmem>>, vector<4x64xbf16>,
    %c0_232 = arith.constant 0 : index
    %c1_233 = arith.constant 1 : index
    %c1_234 = arith.constant 1 : index
    %c0_235 = arith.constant 0 : index
    %163 = vector.load %arg1[%c0_232, %c1_233, %c1_234, %c0_235] : memref<1x3x3x64xbf16, #tpu.memory_space<vmem>>, vector<1x2x2x64xbf16>
    %164 = vector.shape_cast %163 : vector<1x2x2x64xbf16> to vector<2x2x64xbf16>
    %165 = vector.shape_cast %164 : vector<2x2x64xbf16> to vector<4x64xbf16>
    %c4_236 = arith.constant 4 : index
    %c0_237 = arith.constant 0 : index
    %166 = vector.load %arg12[%c4_236, %c0_237] : memref<16x64xbf16, #tpu.memory_space<vmem>>, vector<4x64xbf16>
    tpu.vector_store %arg12[%c4_236, %c0_237], %165 {strides = array<i32>} : memref<16x64xbf16, #tpu.memory_space<vmem>>, vector<4x64xbf16>,
    %c0_238 = arith.constant 0 : index
    %c1_239 = arith.constant 1 : index
    %c0_240 = arith.constant 0 : index
    %c0_241 = arith.constant 0 : index
    %167 = vector.load %arg4[%c0_238, %c1_239, %c0_240, %c0_241] : memref<1x3x3x64xbf16, #tpu.memory_space<vmem>>, vector<1x2x2x64xbf16>
    %168 = vector.shape_cast %167 : vector<1x2x2x64xbf16> to vector<2x2x64xbf16>
    %169 = vector.shape_cast %168 : vector<2x2x64xbf16> to vector<4x64xbf16>
    %c8_242 = arith.constant 8 : index
    %c0_243 = arith.constant 0 : index
    %170 = vector.load %arg12[%c8_242, %c0_243] : memref<16x64xbf16, #tpu.memory_space<vmem>>, vector<4x64xbf16>
    tpu.vector_store %arg12[%c8_242, %c0_243], %169 {strides = array<i32>} : memref<16x64xbf16, #tpu.memory_space<vmem>>, vector<4x64xbf16>,
    %c0_244 = arith.constant 0 : index
    %c1_245 = arith.constant 1 : index
    %c1_246 = arith.constant 1 : index
    %c0_247 = arith.constant 0 : index
    %171 = vector.load %arg3[%c0_244, %c1_245, %c1_246, %c0_247] : memref<1x3x3x64xbf16, #tpu.memory_space<vmem>>, vector<1x2x2x64xbf16>
    %172 = vector.shape_cast %171 : vector<1x2x2x64xbf16> to vector<2x2x64xbf16>
    %173 = vector.shape_cast %172 : vector<2x2x64xbf16> to vector<4x64xbf16>
    %c12_248 = arith.constant 12 : index
    %c0_249 = arith.constant 0 : index
    %174 = vector.load %arg12[%c12_248, %c0_249] : memref<16x64xbf16, #tpu.memory_space<vmem>>, vector<4x64xbf16>
    tpu.vector_store %arg12[%c12_248, %c0_249], %173 {strides = array<i32>} : memref<16x64xbf16, #tpu.memory_space<vmem>>, vector<4x64xbf16>,
    %c0_250 = arith.constant 0 : index
    %c0_251 = arith.constant 0 : index
    %175 = vector.load %arg12[%c0_250, %c0_251] : memref<16x64xbf16, #tpu.memory_space<vmem>>, vector<16x64xbf16>
    %c7 = arith.constant 7 : index
    %c0_252 = arith.constant 0 : index
    %c0_253 = arith.constant 0 : index
    %176 = vector.load %arg5[%c7, %c0_252, %c0_253] : memref<9x64x128xbf16, #tpu.memory_space<vmem>>, vector<1x64x128xbf16>
    %177 = vector.shape_cast %176 : vector<1x64x128xbf16> to vector<64x128xbf16>
    %cst_254 = arith.constant dense<0.000000e+00> : vector<16x128xf32>
    %178 = tpu.matmul %175, %177, %cst_254 {dimension_numbers = #tpu.dot_dimension_numbers<[1], [0], [0], [1], [0, 0, 1, 1], [], []>} : vector<16x64xbf16>, vector<64x128xbf16>, vector<16x128xf32> -> vector<16x128xf32>
    %c0_255 = arith.constant 0 : index
    %c0_256 = arith.constant 0 : index
    %179 = vector.load %arg13[%c0_255, %c0_256] : memref<16x128xf32, #tpu.memory_space<vmem>>, vector<16x128xf32>
    %180 = arith.addf %179, %178 : vector<16x128xf32>
    %c0_257 = arith.constant 0 : index
    %c0_258 = arith.constant 0 : index
    %181 = vector.load %arg13[%c0_257, %c0_258] : memref<16x128xf32, #tpu.memory_space<vmem>>, vector<16x128xf32>
    tpu.vector_store %arg13[%c0_257, %c0_258], %180 {strides = array<i32>} : memref<16x128xf32, #tpu.memory_space<vmem>>, vector<16x128xf32>,
    %c0_259 = arith.constant 0 : index
    %c1_260 = arith.constant 1 : index
    %c1_261 = arith.constant 1 : index
    %c0_262 = arith.constant 0 : index
    %182 = vector.load %arg1[%c0_259, %c1_260, %c1_261, %c0_262] : memref<1x3x3x64xbf16, #tpu.memory_space<vmem>>, vector<1x2x2x64xbf16>
    %183 = vector.shape_cast %182 : vector<1x2x2x64xbf16> to vector<2x2x64xbf16>
    %184 = vector.shape_cast %183 : vector<2x2x64xbf16> to vector<4x64xbf16>
    %c0_263 = arith.constant 0 : index
    %c0_264 = arith.constant 0 : index
    %185 = vector.load %arg12[%c0_263, %c0_264] : memref<16x64xbf16, #tpu.memory_space<vmem>>, vector<4x64xbf16>
    tpu.vector_store %arg12[%c0_263, %c0_264], %184 {strides = array<i32>} : memref<16x64xbf16, #tpu.memory_space<vmem>>, vector<4x64xbf16>,
    %c0_265 = arith.constant 0 : index
    %c1_266 = arith.constant 1 : index
    %c1_267 = arith.constant 1 : index
    %c0_268 = arith.constant 0 : index
    %186 = vector.load %arg2[%c0_265, %c1_266, %c1_267, %c0_268] : memref<1x3x3x64xbf16, #tpu.memory_space<vmem>>, vector<1x2x2x64xbf16>
    %187 = vector.shape_cast %186 : vector<1x2x2x64xbf16> to vector<2x2x64xbf16>
    %188 = vector.shape_cast %187 : vector<2x2x64xbf16> to vector<4x64xbf16>
    %c4_269 = arith.constant 4 : index
    %c0_270 = arith.constant 0 : index
    %189 = vector.load %arg12[%c4_269, %c0_270] : memref<16x64xbf16, #tpu.memory_space<vmem>>, vector<4x64xbf16>
    tpu.vector_store %arg12[%c4_269, %c0_270], %188 {strides = array<i32>} : memref<16x64xbf16, #tpu.memory_space<vmem>>, vector<4x64xbf16>,
    %c0_271 = arith.constant 0 : index
    %c1_272 = arith.constant 1 : index
    %c1_273 = arith.constant 1 : index
    %c0_274 = arith.constant 0 : index
    %190 = vector.load %arg3[%c0_271, %c1_272, %c1_273, %c0_274] : memref<1x3x3x64xbf16, #tpu.memory_space<vmem>>, vector<1x2x2x64xbf16>
    %191 = vector.shape_cast %190 : vector<1x2x2x64xbf16> to vector<2x2x64xbf16>
    %192 = vector.shape_cast %191 : vector<2x2x64xbf16> to vector<4x64xbf16>
    %c8_275 = arith.constant 8 : index
    %c0_276 = arith.constant 0 : index
    %193 = vector.load %arg12[%c8_275, %c0_276] : memref<16x64xbf16, #tpu.memory_space<vmem>>, vector<4x64xbf16>
    tpu.vector_store %arg12[%c8_275, %c0_276], %192 {strides = array<i32>} : memref<16x64xbf16, #tpu.memory_space<vmem>>, vector<4x64xbf16>,
    %c0_277 = arith.constant 0 : index
    %c1_278 = arith.constant 1 : index
    %c1_279 = arith.constant 1 : index
    %c0_280 = arith.constant 0 : index
    %194 = vector.load %arg4[%c0_277, %c1_278, %c1_279, %c0_280] : memref<1x3x3x64xbf16, #tpu.memory_space<vmem>>, vector<1x2x2x64xbf16>
    %195 = vector.shape_cast %194 : vector<1x2x2x64xbf16> to vector<2x2x64xbf16>
    %196 = vector.shape_cast %195 : vector<2x2x64xbf16> to vector<4x64xbf16>
    %c12_281 = arith.constant 12 : index
    %c0_282 = arith.constant 0 : index
    %197 = vector.load %arg12[%c12_281, %c0_282] : memref<16x64xbf16, #tpu.memory_space<vmem>>, vector<4x64xbf16>
    tpu.vector_store %arg12[%c12_281, %c0_282], %196 {strides = array<i32>} : memref<16x64xbf16, #tpu.memory_space<vmem>>, vector<4x64xbf16>,
    %c0_283 = arith.constant 0 : index
    %c0_284 = arith.constant 0 : index
    %198 = vector.load %arg12[%c0_283, %c0_284] : memref<16x64xbf16, #tpu.memory_space<vmem>>, vector<16x64xbf16>
    %c8_285 = arith.constant 8 : index
    %c0_286 = arith.constant 0 : index
    %c0_287 = arith.constant 0 : index
    %199 = vector.load %arg5[%c8_285, %c0_286, %c0_287] : memref<9x64x128xbf16, #tpu.memory_space<vmem>>, vector<1x64x128xbf16>
    %200 = vector.shape_cast %199 : vector<1x64x128xbf16> to vector<64x128xbf16>
    %cst_288 = arith.constant dense<0.000000e+00> : vector<16x128xf32>
    %201 = tpu.matmul %198, %200, %cst_288 {dimension_numbers = #tpu.dot_dimension_numbers<[1], [0], [0], [1], [0, 0, 1, 1], [], []>} : vector<16x64xbf16>, vector<64x128xbf16>, vector<16x128xf32> -> vector<16x128xf32>
    %c0_289 = arith.constant 0 : index
    %c0_290 = arith.constant 0 : index
    %202 = vector.load %arg13[%c0_289, %c0_290] : memref<16x128xf32, #tpu.memory_space<vmem>>, vector<16x128xf32>
    %203 = arith.addf %202, %201 : vector<16x128xf32>
    %c0_291 = arith.constant 0 : index
    %c0_292 = arith.constant 0 : index
    %204 = vector.load %arg13[%c0_291, %c0_292] : memref<16x128xf32, #tpu.memory_space<vmem>>, vector<16x128xf32>
    tpu.vector_store %arg13[%c0_291, %c0_292], %203 {strides = array<i32>} : memref<16x128xf32, #tpu.memory_space<vmem>>, vector<16x128xf32>,
    %c0_293 = arith.constant 0 : index
    %c0_294 = arith.constant 0 : index
    %205 = vector.load %arg13[%c0_293, %c0_294] : memref<16x128xf32, #tpu.memory_space<vmem>>, vector<16x128xf32>
    %c0_295 = arith.constant 0 : index
    %c0_296 = arith.constant 0 : index
    %206 = vector.load %arg6[%c0_295, %c0_296] : memref<1x128xf32, #tpu.memory_space<vmem>>, vector<1x128xf32>
    %207 = vector.broadcast %206 : vector<1x128xf32> to vector<16x128xf32>
    %208 = arith.mulf %205, %207 : vector<16x128xf32>
    %c0_297 = arith.constant 0 : index
    %c0_298 = arith.constant 0 : index
    %209 = vector.load %arg7[%c0_297, %c0_298] : memref<1x128xf32, #tpu.memory_space<vmem>>, vector<1x128xf32>
    %210 = vector.broadcast %209 : vector<1x128xf32> to vector<16x128xf32>
    %211 = arith.addf %208, %210 : vector<16x128xf32>
    %212 = vector.extract_strided_slice %211 {offsets = [0, 0], sizes = [4, 128], strides = [1, 1]} : vector<16x128xf32> to vector<4x128xf32>
    %213 = vector.extract_strided_slice %211 {offsets = [4, 0], sizes = [4, 128], strides = [1, 1]} : vector<16x128xf32> to vector<4x128xf32>
    %214 = arith.maximumf %212, %213 : vector<4x128xf32>
    %215 = vector.extract_strided_slice %211 {offsets = [8, 0], sizes = [4, 128], strides = [1, 1]} : vector<16x128xf32> to vector<4x128xf32>
    %216 = vector.extract_strided_slice %211 {offsets = [12, 0], sizes = [4, 128], strides = [1, 1]} : vector<16x128xf32> to vector<4x128xf32>
    %217 = arith.maximumf %215, %216 : vector<4x128xf32>
    %218 = arith.maximumf %214, %217 : vector<4x128xf32>
    %cst_299 = arith.constant 0.000000e+00 : f32
    %219 = vector.broadcast %cst_299 : f32 to vector<4x128xf32>
    %220 = arith.maximumf %218, %219 : vector<4x128xf32>
    %221 = arith.truncf %220 : vector<4x128xf32> to vector<4x128xbf16>
    %cst_300 = arith.constant 0.000000e+00 : bf16
    %222 = vector.broadcast %cst_300 : bf16 to vector<2x128xbf16>
    %cst_301 = arith.constant 0.000000e+00 : bf16
    %223 = vector.broadcast %cst_301 : bf16 to vector<1x128xbf16>
    %c0_302 = arith.constant 0 : index
    %c0_303 = arith.constant 0 : index
    %c0_304 = arith.constant 0 : index
    %c0_305 = arith.constant 0 : index
    %224 = vector.load %arg8[%c0_302, %c0_303, %c0_304, %c0_305] : memref<1x2x2x128xbf16, #tpu.memory_space<vmem>>, vector<1x1x2x128xbf16>
    %225 = vector.shape_cast %224 : vector<1x1x2x128xbf16> to vector<2x128xbf16>
    %226 = vector.shape_cast %222 : vector<2x128xbf16> to vector<1x1x2x128xbf16>
    tpu.vector_store %arg8[%c0_302, %c0_303, %c0_304, %c0_305], %226 {strides = array<i32>} : memref<1x2x2x128xbf16, #tpu.memory_space<vmem>>, vector<1x1x2x128xbf16>,
    %227 = vector.extract_strided_slice %221 {offsets = [3, 0], sizes = [1, 128], strides = [1, 1]} : vector<4x128xbf16> to vector<1x128xbf16>
    %228 = tpu.concatenate %223, %227 in 0 : vector<1x128xbf16>, vector<1x128xbf16> -> vector<2x128xbf16>
    %c0_306 = arith.constant 0 : index
    %c1_307 = arith.constant 1 : index
    %c0_308 = arith.constant 0 : index
    %c0_309 = arith.constant 0 : index
    %229 = vector.load %arg8[%c0_306, %c1_307, %c0_308, %c0_309] : memref<1x2x2x128xbf16, #tpu.memory_space<vmem>>, vector<1x1x2x128xbf16>
    %230 = vector.shape_cast %229 : vector<1x1x2x128xbf16> to vector<2x128xbf16>
    %231 = vector.shape_cast %228 : vector<2x128xbf16> to vector<1x1x2x128xbf16>
    tpu.vector_store %arg8[%c0_306, %c1_307, %c0_308, %c0_309], %231 {strides = array<i32>} : memref<1x2x2x128xbf16, #tpu.memory_space<vmem>>, vector<1x1x2x128xbf16>,
    %c0_310 = arith.constant 0 : index
    %c0_311 = arith.constant 0 : index
    %c0_312 = arith.constant 0 : index
    %c0_313 = arith.constant 0 : index
    %232 = vector.load %arg9[%c0_310, %c0_311, %c0_312, %c0_313] : memref<1x2x2x128xbf16, #tpu.memory_space<vmem>>, vector<1x1x2x128xbf16>
    %233 = vector.shape_cast %232 : vector<1x1x2x128xbf16> to vector<2x128xbf16>
    %234 = vector.shape_cast %222 : vector<2x128xbf16> to vector<1x1x2x128xbf16>
    tpu.vector_store %arg9[%c0_310, %c0_311, %c0_312, %c0_313], %234 {strides = array<i32>} : memref<1x2x2x128xbf16, #tpu.memory_space<vmem>>, vector<1x1x2x128xbf16>,
    %235 = vector.extract_strided_slice %221 {offsets = [2, 0], sizes = [1, 128], strides = [1, 1]} : vector<4x128xbf16> to vector<1x128xbf16>
    %236 = tpu.concatenate %235, %223 in 0 : vector<1x128xbf16>, vector<1x128xbf16> -> vector<2x128xbf16>
    %c0_314 = arith.constant 0 : index
    %c1_315 = arith.constant 1 : index
    %c0_316 = arith.constant 0 : index
    %c0_317 = arith.constant 0 : index
    %237 = vector.load %arg9[%c0_314, %c1_315, %c0_316, %c0_317] : memref<1x2x2x128xbf16, #tpu.memory_space<vmem>>, vector<1x1x2x128xbf16>
    %238 = vector.shape_cast %237 : vector<1x1x2x128xbf16> to vector<2x128xbf16>
    %239 = vector.shape_cast %236 : vector<2x128xbf16> to vector<1x1x2x128xbf16>
    tpu.vector_store %arg9[%c0_314, %c1_315, %c0_316, %c0_317], %239 {strides = array<i32>} : memref<1x2x2x128xbf16, #tpu.memory_space<vmem>>, vector<1x1x2x128xbf16>,
    %c0_318 = arith.constant 0 : index
    %c1_319 = arith.constant 1 : index
    %c0_320 = arith.constant 0 : index
    %c0_321 = arith.constant 0 : index
    %240 = vector.load %arg10[%c0_318, %c1_319, %c0_320, %c0_321] : memref<1x2x2x128xbf16, #tpu.memory_space<vmem>>, vector<1x1x2x128xbf16>
    %241 = vector.shape_cast %240 : vector<1x1x2x128xbf16> to vector<2x128xbf16>
    %242 = vector.shape_cast %222 : vector<2x128xbf16> to vector<1x1x2x128xbf16>
    tpu.vector_store %arg10[%c0_318, %c1_319, %c0_320, %c0_321], %242 {strides = array<i32>} : memref<1x2x2x128xbf16, #tpu.memory_space<vmem>>, vector<1x1x2x128xbf16>,
    %243 = vector.extract_strided_slice %221 {offsets = [1, 0], sizes = [1, 128], strides = [1, 1]} : vector<4x128xbf16> to vector<1x128xbf16>
    %244 = tpu.concatenate %223, %243 in 0 : vector<1x128xbf16>, vector<1x128xbf16> -> vector<2x128xbf16>
    %c0_322 = arith.constant 0 : index
    %c0_323 = arith.constant 0 : index
    %c0_324 = arith.constant 0 : index
    %c0_325 = arith.constant 0 : index
    %245 = vector.load %arg10[%c0_322, %c0_323, %c0_324, %c0_325] : memref<1x2x2x128xbf16, #tpu.memory_space<vmem>>, vector<1x1x2x128xbf16>
    %246 = vector.shape_cast %245 : vector<1x1x2x128xbf16> to vector<2x128xbf16>
    %247 = vector.shape_cast %244 : vector<2x128xbf16> to vector<1x1x2x128xbf16>
    tpu.vector_store %arg10[%c0_322, %c0_323, %c0_324, %c0_325], %247 {strides = array<i32>} : memref<1x2x2x128xbf16, #tpu.memory_space<vmem>>, vector<1x1x2x128xbf16>,
    %c0_326 = arith.constant 0 : index
    %c1_327 = arith.constant 1 : index
    %c0_328 = arith.constant 0 : index
    %c0_329 = arith.constant 0 : index
    %248 = vector.load %arg11[%c0_326, %c1_327, %c0_328, %c0_329] : memref<1x2x2x128xbf16, #tpu.memory_space<vmem>>, vector<1x1x2x128xbf16>
    %249 = vector.shape_cast %248 : vector<1x1x2x128xbf16> to vector<2x128xbf16>
    %250 = vector.shape_cast %222 : vector<2x128xbf16> to vector<1x1x2x128xbf16>
    tpu.vector_store %arg11[%c0_326, %c1_327, %c0_328, %c0_329], %250 {strides = array<i32>} : memref<1x2x2x128xbf16, #tpu.memory_space<vmem>>, vector<1x1x2x128xbf16>,
    %251 = vector.extract_strided_slice %221 {offsets = [0, 0], sizes = [1, 128], strides = [1, 1]} : vector<4x128xbf16> to vector<1x128xbf16>
    %252 = tpu.concatenate %251, %223 in 0 : vector<1x128xbf16>, vector<1x128xbf16> -> vector<2x128xbf16>
    %c0_330 = arith.constant 0 : index
    %c0_331 = arith.constant 0 : index
    %c0_332 = arith.constant 0 : index
    %c0_333 = arith.constant 0 : index
    %253 = vector.load %arg11[%c0_330, %c0_331, %c0_332, %c0_333] : memref<1x2x2x128xbf16, #tpu.memory_space<vmem>>, vector<1x1x2x128xbf16>
    %254 = vector.shape_cast %253 : vector<1x1x2x128xbf16> to vector<2x128xbf16>
    %255 = vector.shape_cast %252 : vector<2x128xbf16> to vector<1x1x2x128xbf16>
    tpu.vector_store %arg11[%c0_330, %c0_331, %c0_332, %c0_333], %255 {strides = array<i32>} : memref<1x2x2x128xbf16, #tpu.memory_space<vmem>>, vector<1x1x2x128xbf16>,
    return
  }
  func.func @transform_0(%arg0: i32) -> (i32, i32, i32, i32) {
    %c0_i32 = arith.constant 0 : i32
    %c0_i32_0 = arith.constant 0 : i32
    %c0_i32_1 = arith.constant 0 : i32
    %c0_i32_2 = arith.constant 0 : i32
    return %arg0, %c0_i32, %c0_i32_0, %c0_i32_1 : i32, i32, i32, i32
  }
  func.func @transform_1(%arg0: i32) -> (i32, i32, i32, i32) {
    %c0_i32 = arith.constant 0 : i32
    %c0_i32_0 = arith.constant 0 : i32
    %c0_i32_1 = arith.constant 0 : i32
    %c0_i32_2 = arith.constant 0 : i32
    return %arg0, %c0_i32, %c0_i32_0, %c0_i32_1 : i32, i32, i32, i32
  }
  func.func @transform_2(%arg0: i32) -> (i32, i32, i32, i32) {
    %c0_i32 = arith.constant 0 : i32
    %c0_i32_0 = arith.constant 0 : i32
    %c0_i32_1 = arith.constant 0 : i32
    %c0_i32_2 = arith.constant 0 : i32
    return %arg0, %c0_i32, %c0_i32_0, %c0_i32_1 : i32, i32, i32, i32
  }
  func.func @transform_3(%arg0: i32) -> (i32, i32, i32, i32) {
    %c0_i32 = arith.constant 0 : i32
    %c0_i32_0 = arith.constant 0 : i32
    %c0_i32_1 = arith.constant 0 : i32
    %c0_i32_2 = arith.constant 0 : i32
    return %arg0, %c0_i32, %c0_i32_0, %c0_i32_1 : i32, i32, i32, i32
  }
  func.func @transform_4(%arg0: i32) -> (i32, i32, i32) {
    %c0_i32 = arith.constant 0 : i32
    %c0_i32_0 = arith.constant 0 : i32
    %c0_i32_1 = arith.constant 0 : i32
    %c0_i32_2 = arith.constant 0 : i32
    return %c0_i32, %c0_i32_0, %c0_i32_1 : i32, i32, i32
  }
  func.func @transform_5(%arg0: i32) -> (i32, i32) {
    %c0_i32 = arith.constant 0 : i32
    %c0_i32_0 = arith.constant 0 : i32
    %c0_i32_1 = arith.constant 0 : i32
    return %c0_i32, %c0_i32_0 : i32, i32
  }
  func.func @transform_6(%arg0: i32) -> (i32, i32) {
    %c0_i32 = arith.constant 0 : i32
    %c0_i32_0 = arith.constant 0 : i32
    %c0_i32_1 = arith.constant 0 : i32
    return %c0_i32, %c0_i32_0 : i32, i32
  }
  func.func @transform_7(%arg0: i32) -> (i32, i32, i32, i32) {
    %c0_i32 = arith.constant 0 : i32
    %c0_i32_0 = arith.constant 0 : i32
    %c0_i32_1 = arith.constant 0 : i32
    %c0_i32_2 = arith.constant 0 : i32
    return %arg0, %c0_i32, %c0_i32_0, %c0_i32_1 : i32, i32, i32, i32
  }
  func.func @transform_8(%arg0: i32) -> (i32, i32, i32, i32) {
    %c0_i32 = arith.constant 0 : i32
    %c0_i32_0 = arith.constant 0 : i32
    %c0_i32_1 = arith.constant 0 : i32
    %c0_i32_2 = arith.constant 0 : i32
    return %arg0, %c0_i32, %c0_i32_0, %c0_i32_1 : i32, i32, i32, i32
  }
  func.func @transform_9(%arg0: i32) -> (i32, i32, i32, i32) {
    %c0_i32 = arith.constant 0 : i32
    %c0_i32_0 = arith.constant 0 : i32
    %c0_i32_1 = arith.constant 0 : i32
    %c0_i32_2 = arith.constant 0 : i32
    return %arg0, %c0_i32, %c0_i32_0, %c0_i32_1 : i32, i32, i32, i32
  }
  func.func @transform_10(%arg0: i32) -> (i32, i32, i32, i32) {
    %c0_i32 = arith.constant 0 : i32
    %c0_i32_0 = arith.constant 0 : i32
    %c0_i32_1 = arith.constant 0 : i32
    %c0_i32_2 = arith.constant 0 : i32
    return %arg0, %c0_i32, %c0_i32_0, %c0_i32_1 : i32, i32, i32, i32
  }
}

module attributes {stable_mosaic.version = 11 : i64} {
  func.func @kernel(%arg0: i32, %arg1: memref<1x2x2x128xbf16, #tpu.memory_space<vmem>>, %arg2: memref<1x2x2x128xbf16, #tpu.memory_space<vmem>>, %arg3: memref<1x2x2x128xbf16, #tpu.memory_space<vmem>>, %arg4: memref<1x2x2x128xbf16, #tpu.memory_space<vmem>>, %arg5: memref<9x128x256xbf16, #tpu.memory_space<vmem>>, %arg6: memref<1x256xf32, #tpu.memory_space<vmem>>, %arg7: memref<1x256xf32, #tpu.memory_space<vmem>>, %arg8: memref<256x128xbf16, #tpu.memory_space<vmem>>, %arg9: memref<1x128xf32, #tpu.memory_space<vmem>>, %arg10: memref<128x128xbf16, #tpu.memory_space<vmem>>, %arg11: memref<1x128xf32, #tpu.memory_space<vmem>>, %arg12: memref<1x1x128xf32, #tpu.memory_space<vmem>>, %arg13: memref<4x128xbf16, #tpu.memory_space<vmem>>, %arg14: memref<4x256xf32, #tpu.memory_space<vmem>>) attributes {dimension_semantics = [#tpu.dimension_semantics<parallel>], iteration_bounds = array<i64: 2>, scalar_prefetch = 0 : i64, scratch_operands = 2 : i64, tpu.core_type = #tpu.core_type<tc>, window_params = [{transform_indices = @transform_0, window_bounds = array<i64: 1, 2, 2, 128>}, {transform_indices = @transform_1, window_bounds = array<i64: 1, 2, 2, 128>}, {transform_indices = @transform_2, window_bounds = array<i64: 1, 2, 2, 128>}, {transform_indices = @transform_3, window_bounds = array<i64: 1, 2, 2, 128>}, {pipeline_mode = #tpu.pipeline_mode<synchronous>, transform_indices = @transform_4, window_bounds = array<i64: 9, 128, 256>}, {pipeline_mode = #tpu.pipeline_mode<synchronous>, transform_indices = @transform_5, window_bounds = array<i64: 1, 256>}, {pipeline_mode = #tpu.pipeline_mode<synchronous>, transform_indices = @transform_6, window_bounds = array<i64: 1, 256>}, {pipeline_mode = #tpu.pipeline_mode<synchronous>, transform_indices = @transform_7, window_bounds = array<i64: 256, 128>}, {pipeline_mode = #tpu.pipeline_mode<synchronous>, transform_indices = @transform_8, window_bounds = array<i64: 1, 128>}, {pipeline_mode = #tpu.pipeline_mode<synchronous>, transform_indices = @transform_9, window_bounds = array<i64: 128, 128>}, {pipeline_mode = #tpu.pipeline_mode<synchronous>, transform_indices = @transform_10, window_bounds = array<i64: 1, 128>}, {transform_indices = @transform_11, window_bounds = array<i64: 1, 1, 128>}]} {
    %c0 = arith.constant 0 : index
    %c0_0 = arith.constant 0 : index
    %c0_1 = arith.constant 0 : index
    %c0_2 = arith.constant 0 : index
    %0 = vector.load %arg1[%c0, %c0_0, %c0_1, %c0_2] : memref<1x2x2x128xbf16, #tpu.memory_space<vmem>>, vector<1x1x1x128xbf16>
    %1 = vector.shape_cast %0 : vector<1x1x1x128xbf16> to vector<1x1x128xbf16>
    %2 = vector.shape_cast %1 : vector<1x1x128xbf16> to vector<1x128xbf16>
    %c0_3 = arith.constant 0 : index
    %c0_4 = arith.constant 0 : index
    %3 = vector.load %arg13[%c0_3, %c0_4] : memref<4x128xbf16, #tpu.memory_space<vmem>>, vector<1x128xbf16>
    tpu.vector_store %arg13[%c0_3, %c0_4], %2 {strides = array<i32>} : memref<4x128xbf16, #tpu.memory_space<vmem>>, vector<1x128xbf16>,
    %c0_5 = arith.constant 0 : index
    %c0_6 = arith.constant 0 : index
    %c0_7 = arith.constant 0 : index
    %c0_8 = arith.constant 0 : index
    %4 = vector.load %arg2[%c0_5, %c0_6, %c0_7, %c0_8] : memref<1x2x2x128xbf16, #tpu.memory_space<vmem>>, vector<1x1x1x128xbf16>
    %5 = vector.shape_cast %4 : vector<1x1x1x128xbf16> to vector<1x1x128xbf16>
    %6 = vector.shape_cast %5 : vector<1x1x128xbf16> to vector<1x128xbf16>
    %c1 = arith.constant 1 : index
    %c0_9 = arith.constant 0 : index
    %7 = vector.load %arg13[%c1, %c0_9] : memref<4x128xbf16, #tpu.memory_space<vmem>>, vector<1x128xbf16>
    tpu.vector_store %arg13[%c1, %c0_9], %6 {strides = array<i32>} : memref<4x128xbf16, #tpu.memory_space<vmem>>, vector<1x128xbf16>,
    %c0_10 = arith.constant 0 : index
    %c0_11 = arith.constant 0 : index
    %c0_12 = arith.constant 0 : index
    %c0_13 = arith.constant 0 : index
    %8 = vector.load %arg3[%c0_10, %c0_11, %c0_12, %c0_13] : memref<1x2x2x128xbf16, #tpu.memory_space<vmem>>, vector<1x1x1x128xbf16>
    %9 = vector.shape_cast %8 : vector<1x1x1x128xbf16> to vector<1x1x128xbf16>
    %10 = vector.shape_cast %9 : vector<1x1x128xbf16> to vector<1x128xbf16>
    %c2 = arith.constant 2 : index
    %c0_14 = arith.constant 0 : index
    %11 = vector.load %arg13[%c2, %c0_14] : memref<4x128xbf16, #tpu.memory_space<vmem>>, vector<1x128xbf16>
    tpu.vector_store %arg13[%c2, %c0_14], %10 {strides = array<i32>} : memref<4x128xbf16, #tpu.memory_space<vmem>>, vector<1x128xbf16>,
    %c0_15 = arith.constant 0 : index
    %c0_16 = arith.constant 0 : index
    %c0_17 = arith.constant 0 : index
    %c0_18 = arith.constant 0 : index
    %12 = vector.load %arg4[%c0_15, %c0_16, %c0_17, %c0_18] : memref<1x2x2x128xbf16, #tpu.memory_space<vmem>>, vector<1x1x1x128xbf16>
    %13 = vector.shape_cast %12 : vector<1x1x1x128xbf16> to vector<1x1x128xbf16>
    %14 = vector.shape_cast %13 : vector<1x1x128xbf16> to vector<1x128xbf16>
    %c3 = arith.constant 3 : index
    %c0_19 = arith.constant 0 : index
    %15 = vector.load %arg13[%c3, %c0_19] : memref<4x128xbf16, #tpu.memory_space<vmem>>, vector<1x128xbf16>
    tpu.vector_store %arg13[%c3, %c0_19], %14 {strides = array<i32>} : memref<4x128xbf16, #tpu.memory_space<vmem>>, vector<1x128xbf16>,
    %c0_20 = arith.constant 0 : index
    %c0_21 = arith.constant 0 : index
    %16 = vector.load %arg13[%c0_20, %c0_21] : memref<4x128xbf16, #tpu.memory_space<vmem>>, vector<4x128xbf16>
    %c0_22 = arith.constant 0 : index
    %c0_23 = arith.constant 0 : index
    %c0_24 = arith.constant 0 : index
    %17 = vector.load %arg5[%c0_22, %c0_23, %c0_24] : memref<9x128x256xbf16, #tpu.memory_space<vmem>>, vector<1x128x256xbf16>
    %18 = vector.shape_cast %17 : vector<1x128x256xbf16> to vector<128x256xbf16>
    %cst = arith.constant dense<0.000000e+00> : vector<4x256xf32>
    %19 = tpu.matmul %16, %18, %cst {dimension_numbers = #tpu.dot_dimension_numbers<[1], [0], [0], [1], [0, 0, 1, 1], [], []>} : vector<4x128xbf16>, vector<128x256xbf16>, vector<4x256xf32> -> vector<4x256xf32>
    %c0_25 = arith.constant 0 : index
    %c0_26 = arith.constant 0 : index
    %20 = vector.load %arg14[%c0_25, %c0_26] : memref<4x256xf32, #tpu.memory_space<vmem>>, vector<4x256xf32>
    tpu.vector_store %arg14[%c0_25, %c0_26], %19 {strides = array<i32>} : memref<4x256xf32, #tpu.memory_space<vmem>>, vector<4x256xf32>,
    %c0_27 = arith.constant 0 : index
    %c0_28 = arith.constant 0 : index
    %c0_29 = arith.constant 0 : index
    %c0_30 = arith.constant 0 : index
    %21 = vector.load %arg2[%c0_27, %c0_28, %c0_29, %c0_30] : memref<1x2x2x128xbf16, #tpu.memory_space<vmem>>, vector<1x1x1x128xbf16>
    %22 = vector.shape_cast %21 : vector<1x1x1x128xbf16> to vector<1x1x128xbf16>
    %23 = vector.shape_cast %22 : vector<1x1x128xbf16> to vector<1x128xbf16>
    %c0_31 = arith.constant 0 : index
    %c0_32 = arith.constant 0 : index
    %24 = vector.load %arg13[%c0_31, %c0_32] : memref<4x128xbf16, #tpu.memory_space<vmem>>, vector<1x128xbf16>
    tpu.vector_store %arg13[%c0_31, %c0_32], %23 {strides = array<i32>} : memref<4x128xbf16, #tpu.memory_space<vmem>>, vector<1x128xbf16>,
    %c0_33 = arith.constant 0 : index
    %c0_34 = arith.constant 0 : index
    %c1_35 = arith.constant 1 : index
    %c0_36 = arith.constant 0 : index
    %25 = vector.load %arg1[%c0_33, %c0_34, %c1_35, %c0_36] : memref<1x2x2x128xbf16, #tpu.memory_space<vmem>>, vector<1x1x1x128xbf16>
    %26 = vector.shape_cast %25 : vector<1x1x1x128xbf16> to vector<1x1x128xbf16>
    %27 = vector.shape_cast %26 : vector<1x1x128xbf16> to vector<1x128xbf16>
    %c1_37 = arith.constant 1 : index
    %c0_38 = arith.constant 0 : index
    %28 = vector.load %arg13[%c1_37, %c0_38] : memref<4x128xbf16, #tpu.memory_space<vmem>>, vector<1x128xbf16>
    tpu.vector_store %arg13[%c1_37, %c0_38], %27 {strides = array<i32>} : memref<4x128xbf16, #tpu.memory_space<vmem>>, vector<1x128xbf16>,
    %c0_39 = arith.constant 0 : index
    %c0_40 = arith.constant 0 : index
    %c0_41 = arith.constant 0 : index
    %c0_42 = arith.constant 0 : index
    %29 = vector.load %arg4[%c0_39, %c0_40, %c0_41, %c0_42] : memref<1x2x2x128xbf16, #tpu.memory_space<vmem>>, vector<1x1x1x128xbf16>
    %30 = vector.shape_cast %29 : vector<1x1x1x128xbf16> to vector<1x1x128xbf16>
    %31 = vector.shape_cast %30 : vector<1x1x128xbf16> to vector<1x128xbf16>
    %c2_43 = arith.constant 2 : index
    %c0_44 = arith.constant 0 : index
    %32 = vector.load %arg13[%c2_43, %c0_44] : memref<4x128xbf16, #tpu.memory_space<vmem>>, vector<1x128xbf16>
    tpu.vector_store %arg13[%c2_43, %c0_44], %31 {strides = array<i32>} : memref<4x128xbf16, #tpu.memory_space<vmem>>, vector<1x128xbf16>,
    %c0_45 = arith.constant 0 : index
    %c0_46 = arith.constant 0 : index
    %c1_47 = arith.constant 1 : index
    %c0_48 = arith.constant 0 : index
    %33 = vector.load %arg3[%c0_45, %c0_46, %c1_47, %c0_48] : memref<1x2x2x128xbf16, #tpu.memory_space<vmem>>, vector<1x1x1x128xbf16>
    %34 = vector.shape_cast %33 : vector<1x1x1x128xbf16> to vector<1x1x128xbf16>
    %35 = vector.shape_cast %34 : vector<1x1x128xbf16> to vector<1x128xbf16>
    %c3_49 = arith.constant 3 : index
    %c0_50 = arith.constant 0 : index
    %36 = vector.load %arg13[%c3_49, %c0_50] : memref<4x128xbf16, #tpu.memory_space<vmem>>, vector<1x128xbf16>
    tpu.vector_store %arg13[%c3_49, %c0_50], %35 {strides = array<i32>} : memref<4x128xbf16, #tpu.memory_space<vmem>>, vector<1x128xbf16>,
    %c0_51 = arith.constant 0 : index
    %c0_52 = arith.constant 0 : index
    %37 = vector.load %arg13[%c0_51, %c0_52] : memref<4x128xbf16, #tpu.memory_space<vmem>>, vector<4x128xbf16>
    %c1_53 = arith.constant 1 : index
    %c0_54 = arith.constant 0 : index
    %c0_55 = arith.constant 0 : index
    %38 = vector.load %arg5[%c1_53, %c0_54, %c0_55] : memref<9x128x256xbf16, #tpu.memory_space<vmem>>, vector<1x128x256xbf16>
    %39 = vector.shape_cast %38 : vector<1x128x256xbf16> to vector<128x256xbf16>
    %cst_56 = arith.constant dense<0.000000e+00> : vector<4x256xf32>
    %40 = tpu.matmul %37, %39, %cst_56 {dimension_numbers = #tpu.dot_dimension_numbers<[1], [0], [0], [1], [0, 0, 1, 1], [], []>} : vector<4x128xbf16>, vector<128x256xbf16>, vector<4x256xf32> -> vector<4x256xf32>
    %c0_57 = arith.constant 0 : index
    %c0_58 = arith.constant 0 : index
    %41 = vector.load %arg14[%c0_57, %c0_58] : memref<4x256xf32, #tpu.memory_space<vmem>>, vector<4x256xf32>
    %42 = arith.addf %41, %40 : vector<4x256xf32>
    %c0_59 = arith.constant 0 : index
    %c0_60 = arith.constant 0 : index
    %43 = vector.load %arg14[%c0_59, %c0_60] : memref<4x256xf32, #tpu.memory_space<vmem>>, vector<4x256xf32>
    tpu.vector_store %arg14[%c0_59, %c0_60], %42 {strides = array<i32>} : memref<4x256xf32, #tpu.memory_space<vmem>>, vector<4x256xf32>,
    %c0_61 = arith.constant 0 : index
    %c0_62 = arith.constant 0 : index
    %c1_63 = arith.constant 1 : index
    %c0_64 = arith.constant 0 : index
    %44 = vector.load %arg1[%c0_61, %c0_62, %c1_63, %c0_64] : memref<1x2x2x128xbf16, #tpu.memory_space<vmem>>, vector<1x1x1x128xbf16>
    %45 = vector.shape_cast %44 : vector<1x1x1x128xbf16> to vector<1x1x128xbf16>
    %46 = vector.shape_cast %45 : vector<1x1x128xbf16> to vector<1x128xbf16>
    %c0_65 = arith.constant 0 : index
    %c0_66 = arith.constant 0 : index
    %47 = vector.load %arg13[%c0_65, %c0_66] : memref<4x128xbf16, #tpu.memory_space<vmem>>, vector<1x128xbf16>
    tpu.vector_store %arg13[%c0_65, %c0_66], %46 {strides = array<i32>} : memref<4x128xbf16, #tpu.memory_space<vmem>>, vector<1x128xbf16>,
    %c0_67 = arith.constant 0 : index
    %c0_68 = arith.constant 0 : index
    %c1_69 = arith.constant 1 : index
    %c0_70 = arith.constant 0 : index
    %48 = vector.load %arg2[%c0_67, %c0_68, %c1_69, %c0_70] : memref<1x2x2x128xbf16, #tpu.memory_space<vmem>>, vector<1x1x1x128xbf16>
    %49 = vector.shape_cast %48 : vector<1x1x1x128xbf16> to vector<1x1x128xbf16>
    %50 = vector.shape_cast %49 : vector<1x1x128xbf16> to vector<1x128xbf16>
    %c1_71 = arith.constant 1 : index
    %c0_72 = arith.constant 0 : index
    %51 = vector.load %arg13[%c1_71, %c0_72] : memref<4x128xbf16, #tpu.memory_space<vmem>>, vector<1x128xbf16>
    tpu.vector_store %arg13[%c1_71, %c0_72], %50 {strides = array<i32>} : memref<4x128xbf16, #tpu.memory_space<vmem>>, vector<1x128xbf16>,
    %c0_73 = arith.constant 0 : index
    %c0_74 = arith.constant 0 : index
    %c1_75 = arith.constant 1 : index
    %c0_76 = arith.constant 0 : index
    %52 = vector.load %arg3[%c0_73, %c0_74, %c1_75, %c0_76] : memref<1x2x2x128xbf16, #tpu.memory_space<vmem>>, vector<1x1x1x128xbf16>
    %53 = vector.shape_cast %52 : vector<1x1x1x128xbf16> to vector<1x1x128xbf16>
    %54 = vector.shape_cast %53 : vector<1x1x128xbf16> to vector<1x128xbf16>
    %c2_77 = arith.constant 2 : index
    %c0_78 = arith.constant 0 : index
    %55 = vector.load %arg13[%c2_77, %c0_78] : memref<4x128xbf16, #tpu.memory_space<vmem>>, vector<1x128xbf16>
    tpu.vector_store %arg13[%c2_77, %c0_78], %54 {strides = array<i32>} : memref<4x128xbf16, #tpu.memory_space<vmem>>, vector<1x128xbf16>,
    %c0_79 = arith.constant 0 : index
    %c0_80 = arith.constant 0 : index
    %c1_81 = arith.constant 1 : index
    %c0_82 = arith.constant 0 : index
    %56 = vector.load %arg4[%c0_79, %c0_80, %c1_81, %c0_82] : memref<1x2x2x128xbf16, #tpu.memory_space<vmem>>, vector<1x1x1x128xbf16>
    %57 = vector.shape_cast %56 : vector<1x1x1x128xbf16> to vector<1x1x128xbf16>
    %58 = vector.shape_cast %57 : vector<1x1x128xbf16> to vector<1x128xbf16>
    %c3_83 = arith.constant 3 : index
    %c0_84 = arith.constant 0 : index
    %59 = vector.load %arg13[%c3_83, %c0_84] : memref<4x128xbf16, #tpu.memory_space<vmem>>, vector<1x128xbf16>
    tpu.vector_store %arg13[%c3_83, %c0_84], %58 {strides = array<i32>} : memref<4x128xbf16, #tpu.memory_space<vmem>>, vector<1x128xbf16>,
    %c0_85 = arith.constant 0 : index
    %c0_86 = arith.constant 0 : index
    %60 = vector.load %arg13[%c0_85, %c0_86] : memref<4x128xbf16, #tpu.memory_space<vmem>>, vector<4x128xbf16>
    %c2_87 = arith.constant 2 : index
    %c0_88 = arith.constant 0 : index
    %c0_89 = arith.constant 0 : index
    %61 = vector.load %arg5[%c2_87, %c0_88, %c0_89] : memref<9x128x256xbf16, #tpu.memory_space<vmem>>, vector<1x128x256xbf16>
    %62 = vector.shape_cast %61 : vector<1x128x256xbf16> to vector<128x256xbf16>
    %cst_90 = arith.constant dense<0.000000e+00> : vector<4x256xf32>
    %63 = tpu.matmul %60, %62, %cst_90 {dimension_numbers = #tpu.dot_dimension_numbers<[1], [0], [0], [1], [0, 0, 1, 1], [], []>} : vector<4x128xbf16>, vector<128x256xbf16>, vector<4x256xf32> -> vector<4x256xf32>
    %c0_91 = arith.constant 0 : index
    %c0_92 = arith.constant 0 : index
    %64 = vector.load %arg14[%c0_91, %c0_92] : memref<4x256xf32, #tpu.memory_space<vmem>>, vector<4x256xf32>
    %65 = arith.addf %64, %63 : vector<4x256xf32>
    %c0_93 = arith.constant 0 : index
    %c0_94 = arith.constant 0 : index
    %66 = vector.load %arg14[%c0_93, %c0_94] : memref<4x256xf32, #tpu.memory_space<vmem>>, vector<4x256xf32>
    tpu.vector_store %arg14[%c0_93, %c0_94], %65 {strides = array<i32>} : memref<4x256xf32, #tpu.memory_space<vmem>>, vector<4x256xf32>,
    %c0_95 = arith.constant 0 : index
    %c0_96 = arith.constant 0 : index
    %c0_97 = arith.constant 0 : index
    %c0_98 = arith.constant 0 : index
    %67 = vector.load %arg3[%c0_95, %c0_96, %c0_97, %c0_98] : memref<1x2x2x128xbf16, #tpu.memory_space<vmem>>, vector<1x1x1x128xbf16>
    %68 = vector.shape_cast %67 : vector<1x1x1x128xbf16> to vector<1x1x128xbf16>
    %69 = vector.shape_cast %68 : vector<1x1x128xbf16> to vector<1x128xbf16>
    %c0_99 = arith.constant 0 : index
    %c0_100 = arith.constant 0 : index
    %70 = vector.load %arg13[%c0_99, %c0_100] : memref<4x128xbf16, #tpu.memory_space<vmem>>, vector<1x128xbf16>
    tpu.vector_store %arg13[%c0_99, %c0_100], %69 {strides = array<i32>} : memref<4x128xbf16, #tpu.memory_space<vmem>>, vector<1x128xbf16>,
    %c0_101 = arith.constant 0 : index
    %c0_102 = arith.constant 0 : index
    %c0_103 = arith.constant 0 : index
    %c0_104 = arith.constant 0 : index
    %71 = vector.load %arg4[%c0_101, %c0_102, %c0_103, %c0_104] : memref<1x2x2x128xbf16, #tpu.memory_space<vmem>>, vector<1x1x1x128xbf16>
    %72 = vector.shape_cast %71 : vector<1x1x1x128xbf16> to vector<1x1x128xbf16>
    %73 = vector.shape_cast %72 : vector<1x1x128xbf16> to vector<1x128xbf16>
    %c1_105 = arith.constant 1 : index
    %c0_106 = arith.constant 0 : index
    %74 = vector.load %arg13[%c1_105, %c0_106] : memref<4x128xbf16, #tpu.memory_space<vmem>>, vector<1x128xbf16>
    tpu.vector_store %arg13[%c1_105, %c0_106], %73 {strides = array<i32>} : memref<4x128xbf16, #tpu.memory_space<vmem>>, vector<1x128xbf16>,
    %c0_107 = arith.constant 0 : index
    %c1_108 = arith.constant 1 : index
    %c0_109 = arith.constant 0 : index
    %c0_110 = arith.constant 0 : index
    %75 = vector.load %arg1[%c0_107, %c1_108, %c0_109, %c0_110] : memref<1x2x2x128xbf16, #tpu.memory_space<vmem>>, vector<1x1x1x128xbf16>
    %76 = vector.shape_cast %75 : vector<1x1x1x128xbf16> to vector<1x1x128xbf16>
    %77 = vector.shape_cast %76 : vector<1x1x128xbf16> to vector<1x128xbf16>
    %c2_111 = arith.constant 2 : index
    %c0_112 = arith.constant 0 : index
    %78 = vector.load %arg13[%c2_111, %c0_112] : memref<4x128xbf16, #tpu.memory_space<vmem>>, vector<1x128xbf16>
    tpu.vector_store %arg13[%c2_111, %c0_112], %77 {strides = array<i32>} : memref<4x128xbf16, #tpu.memory_space<vmem>>, vector<1x128xbf16>,
    %c0_113 = arith.constant 0 : index
    %c1_114 = arith.constant 1 : index
    %c0_115 = arith.constant 0 : index
    %c0_116 = arith.constant 0 : index
    %79 = vector.load %arg2[%c0_113, %c1_114, %c0_115, %c0_116] : memref<1x2x2x128xbf16, #tpu.memory_space<vmem>>, vector<1x1x1x128xbf16>
    %80 = vector.shape_cast %79 : vector<1x1x1x128xbf16> to vector<1x1x128xbf16>
    %81 = vector.shape_cast %80 : vector<1x1x128xbf16> to vector<1x128xbf16>
    %c3_117 = arith.constant 3 : index
    %c0_118 = arith.constant 0 : index
    %82 = vector.load %arg13[%c3_117, %c0_118] : memref<4x128xbf16, #tpu.memory_space<vmem>>, vector<1x128xbf16>
    tpu.vector_store %arg13[%c3_117, %c0_118], %81 {strides = array<i32>} : memref<4x128xbf16, #tpu.memory_space<vmem>>, vector<1x128xbf16>,
    %c0_119 = arith.constant 0 : index
    %c0_120 = arith.constant 0 : index
    %83 = vector.load %arg13[%c0_119, %c0_120] : memref<4x128xbf16, #tpu.memory_space<vmem>>, vector<4x128xbf16>
    %c3_121 = arith.constant 3 : index
    %c0_122 = arith.constant 0 : index
    %c0_123 = arith.constant 0 : index
    %84 = vector.load %arg5[%c3_121, %c0_122, %c0_123] : memref<9x128x256xbf16, #tpu.memory_space<vmem>>, vector<1x128x256xbf16>
    %85 = vector.shape_cast %84 : vector<1x128x256xbf16> to vector<128x256xbf16>
    %cst_124 = arith.constant dense<0.000000e+00> : vector<4x256xf32>
    %86 = tpu.matmul %83, %85, %cst_124 {dimension_numbers = #tpu.dot_dimension_numbers<[1], [0], [0], [1], [0, 0, 1, 1], [], []>} : vector<4x128xbf16>, vector<128x256xbf16>, vector<4x256xf32> -> vector<4x256xf32>
    %c0_125 = arith.constant 0 : index
    %c0_126 = arith.constant 0 : index
    %87 = vector.load %arg14[%c0_125, %c0_126] : memref<4x256xf32, #tpu.memory_space<vmem>>, vector<4x256xf32>
    %88 = arith.addf %87, %86 : vector<4x256xf32>
    %c0_127 = arith.constant 0 : index
    %c0_128 = arith.constant 0 : index
    %89 = vector.load %arg14[%c0_127, %c0_128] : memref<4x256xf32, #tpu.memory_space<vmem>>, vector<4x256xf32>
    tpu.vector_store %arg14[%c0_127, %c0_128], %88 {strides = array<i32>} : memref<4x256xf32, #tpu.memory_space<vmem>>, vector<4x256xf32>,
    %c0_129 = arith.constant 0 : index
    %c0_130 = arith.constant 0 : index
    %c0_131 = arith.constant 0 : index
    %c0_132 = arith.constant 0 : index
    %90 = vector.load %arg4[%c0_129, %c0_130, %c0_131, %c0_132] : memref<1x2x2x128xbf16, #tpu.memory_space<vmem>>, vector<1x1x1x128xbf16>
    %91 = vector.shape_cast %90 : vector<1x1x1x128xbf16> to vector<1x1x128xbf16>
    %92 = vector.shape_cast %91 : vector<1x1x128xbf16> to vector<1x128xbf16>
    %c0_133 = arith.constant 0 : index
    %c0_134 = arith.constant 0 : index
    %93 = vector.load %arg13[%c0_133, %c0_134] : memref<4x128xbf16, #tpu.memory_space<vmem>>, vector<1x128xbf16>
    tpu.vector_store %arg13[%c0_133, %c0_134], %92 {strides = array<i32>} : memref<4x128xbf16, #tpu.memory_space<vmem>>, vector<1x128xbf16>,
    %c0_135 = arith.constant 0 : index
    %c0_136 = arith.constant 0 : index
    %c1_137 = arith.constant 1 : index
    %c0_138 = arith.constant 0 : index
    %94 = vector.load %arg3[%c0_135, %c0_136, %c1_137, %c0_138] : memref<1x2x2x128xbf16, #tpu.memory_space<vmem>>, vector<1x1x1x128xbf16>
    %95 = vector.shape_cast %94 : vector<1x1x1x128xbf16> to vector<1x1x128xbf16>
    %96 = vector.shape_cast %95 : vector<1x1x128xbf16> to vector<1x128xbf16>
    %c1_139 = arith.constant 1 : index
    %c0_140 = arith.constant 0 : index
    %97 = vector.load %arg13[%c1_139, %c0_140] : memref<4x128xbf16, #tpu.memory_space<vmem>>, vector<1x128xbf16>
    tpu.vector_store %arg13[%c1_139, %c0_140], %96 {strides = array<i32>} : memref<4x128xbf16, #tpu.memory_space<vmem>>, vector<1x128xbf16>,
    %c0_141 = arith.constant 0 : index
    %c1_142 = arith.constant 1 : index
    %c0_143 = arith.constant 0 : index
    %c0_144 = arith.constant 0 : index
    %98 = vector.load %arg2[%c0_141, %c1_142, %c0_143, %c0_144] : memref<1x2x2x128xbf16, #tpu.memory_space<vmem>>, vector<1x1x1x128xbf16>
    %99 = vector.shape_cast %98 : vector<1x1x1x128xbf16> to vector<1x1x128xbf16>
    %100 = vector.shape_cast %99 : vector<1x1x128xbf16> to vector<1x128xbf16>
    %c2_145 = arith.constant 2 : index
    %c0_146 = arith.constant 0 : index
    %101 = vector.load %arg13[%c2_145, %c0_146] : memref<4x128xbf16, #tpu.memory_space<vmem>>, vector<1x128xbf16>
    tpu.vector_store %arg13[%c2_145, %c0_146], %100 {strides = array<i32>} : memref<4x128xbf16, #tpu.memory_space<vmem>>, vector<1x128xbf16>,
    %c0_147 = arith.constant 0 : index
    %c1_148 = arith.constant 1 : index
    %c1_149 = arith.constant 1 : index
    %c0_150 = arith.constant 0 : index
    %102 = vector.load %arg1[%c0_147, %c1_148, %c1_149, %c0_150] : memref<1x2x2x128xbf16, #tpu.memory_space<vmem>>, vector<1x1x1x128xbf16>
    %103 = vector.shape_cast %102 : vector<1x1x1x128xbf16> to vector<1x1x128xbf16>
    %104 = vector.shape_cast %103 : vector<1x1x128xbf16> to vector<1x128xbf16>
    %c3_151 = arith.constant 3 : index
    %c0_152 = arith.constant 0 : index
    %105 = vector.load %arg13[%c3_151, %c0_152] : memref<4x128xbf16, #tpu.memory_space<vmem>>, vector<1x128xbf16>
    tpu.vector_store %arg13[%c3_151, %c0_152], %104 {strides = array<i32>} : memref<4x128xbf16, #tpu.memory_space<vmem>>, vector<1x128xbf16>,
    %c0_153 = arith.constant 0 : index
    %c0_154 = arith.constant 0 : index
    %106 = vector.load %arg13[%c0_153, %c0_154] : memref<4x128xbf16, #tpu.memory_space<vmem>>, vector<4x128xbf16>
    %c4 = arith.constant 4 : index
    %c0_155 = arith.constant 0 : index
    %c0_156 = arith.constant 0 : index
    %107 = vector.load %arg5[%c4, %c0_155, %c0_156] : memref<9x128x256xbf16, #tpu.memory_space<vmem>>, vector<1x128x256xbf16>
    %108 = vector.shape_cast %107 : vector<1x128x256xbf16> to vector<128x256xbf16>
    %cst_157 = arith.constant dense<0.000000e+00> : vector<4x256xf32>
    %109 = tpu.matmul %106, %108, %cst_157 {dimension_numbers = #tpu.dot_dimension_numbers<[1], [0], [0], [1], [0, 0, 1, 1], [], []>} : vector<4x128xbf16>, vector<128x256xbf16>, vector<4x256xf32> -> vector<4x256xf32>
    %c0_158 = arith.constant 0 : index
    %c0_159 = arith.constant 0 : index
    %110 = vector.load %arg14[%c0_158, %c0_159] : memref<4x256xf32, #tpu.memory_space<vmem>>, vector<4x256xf32>
    %111 = arith.addf %110, %109 : vector<4x256xf32>
    %c0_160 = arith.constant 0 : index
    %c0_161 = arith.constant 0 : index
    %112 = vector.load %arg14[%c0_160, %c0_161] : memref<4x256xf32, #tpu.memory_space<vmem>>, vector<4x256xf32>
    tpu.vector_store %arg14[%c0_160, %c0_161], %111 {strides = array<i32>} : memref<4x256xf32, #tpu.memory_space<vmem>>, vector<4x256xf32>,
    %c0_162 = arith.constant 0 : index
    %c0_163 = arith.constant 0 : index
    %c1_164 = arith.constant 1 : index
    %c0_165 = arith.constant 0 : index
    %113 = vector.load %arg3[%c0_162, %c0_163, %c1_164, %c0_165] : memref<1x2x2x128xbf16, #tpu.memory_space<vmem>>, vector<1x1x1x128xbf16>
    %114 = vector.shape_cast %113 : vector<1x1x1x128xbf16> to vector<1x1x128xbf16>
    %115 = vector.shape_cast %114 : vector<1x1x128xbf16> to vector<1x128xbf16>
    %c0_166 = arith.constant 0 : index
    %c0_167 = arith.constant 0 : index
    %116 = vector.load %arg13[%c0_166, %c0_167] : memref<4x128xbf16, #tpu.memory_space<vmem>>, vector<1x128xbf16>
    tpu.vector_store %arg13[%c0_166, %c0_167], %115 {strides = array<i32>} : memref<4x128xbf16, #tpu.memory_space<vmem>>, vector<1x128xbf16>,
    %c0_168 = arith.constant 0 : index
    %c0_169 = arith.constant 0 : index
    %c1_170 = arith.constant 1 : index
    %c0_171 = arith.constant 0 : index
    %117 = vector.load %arg4[%c0_168, %c0_169, %c1_170, %c0_171] : memref<1x2x2x128xbf16, #tpu.memory_space<vmem>>, vector<1x1x1x128xbf16>
    %118 = vector.shape_cast %117 : vector<1x1x1x128xbf16> to vector<1x1x128xbf16>
    %119 = vector.shape_cast %118 : vector<1x1x128xbf16> to vector<1x128xbf16>
    %c1_172 = arith.constant 1 : index
    %c0_173 = arith.constant 0 : index
    %120 = vector.load %arg13[%c1_172, %c0_173] : memref<4x128xbf16, #tpu.memory_space<vmem>>, vector<1x128xbf16>
    tpu.vector_store %arg13[%c1_172, %c0_173], %119 {strides = array<i32>} : memref<4x128xbf16, #tpu.memory_space<vmem>>, vector<1x128xbf16>,
    %c0_174 = arith.constant 0 : index
    %c1_175 = arith.constant 1 : index
    %c1_176 = arith.constant 1 : index
    %c0_177 = arith.constant 0 : index
    %121 = vector.load %arg1[%c0_174, %c1_175, %c1_176, %c0_177] : memref<1x2x2x128xbf16, #tpu.memory_space<vmem>>, vector<1x1x1x128xbf16>
    %122 = vector.shape_cast %121 : vector<1x1x1x128xbf16> to vector<1x1x128xbf16>
    %123 = vector.shape_cast %122 : vector<1x1x128xbf16> to vector<1x128xbf16>
    %c2_178 = arith.constant 2 : index
    %c0_179 = arith.constant 0 : index
    %124 = vector.load %arg13[%c2_178, %c0_179] : memref<4x128xbf16, #tpu.memory_space<vmem>>, vector<1x128xbf16>
    tpu.vector_store %arg13[%c2_178, %c0_179], %123 {strides = array<i32>} : memref<4x128xbf16, #tpu.memory_space<vmem>>, vector<1x128xbf16>,
    %c0_180 = arith.constant 0 : index
    %c1_181 = arith.constant 1 : index
    %c1_182 = arith.constant 1 : index
    %c0_183 = arith.constant 0 : index
    %125 = vector.load %arg2[%c0_180, %c1_181, %c1_182, %c0_183] : memref<1x2x2x128xbf16, #tpu.memory_space<vmem>>, vector<1x1x1x128xbf16>
    %126 = vector.shape_cast %125 : vector<1x1x1x128xbf16> to vector<1x1x128xbf16>
    %127 = vector.shape_cast %126 : vector<1x1x128xbf16> to vector<1x128xbf16>
    %c3_184 = arith.constant 3 : index
    %c0_185 = arith.constant 0 : index
    %128 = vector.load %arg13[%c3_184, %c0_185] : memref<4x128xbf16, #tpu.memory_space<vmem>>, vector<1x128xbf16>
    tpu.vector_store %arg13[%c3_184, %c0_185], %127 {strides = array<i32>} : memref<4x128xbf16, #tpu.memory_space<vmem>>, vector<1x128xbf16>,
    %c0_186 = arith.constant 0 : index
    %c0_187 = arith.constant 0 : index
    %129 = vector.load %arg13[%c0_186, %c0_187] : memref<4x128xbf16, #tpu.memory_space<vmem>>, vector<4x128xbf16>
    %c5 = arith.constant 5 : index
    %c0_188 = arith.constant 0 : index
    %c0_189 = arith.constant 0 : index
    %130 = vector.load %arg5[%c5, %c0_188, %c0_189] : memref<9x128x256xbf16, #tpu.memory_space<vmem>>, vector<1x128x256xbf16>
    %131 = vector.shape_cast %130 : vector<1x128x256xbf16> to vector<128x256xbf16>
    %cst_190 = arith.constant dense<0.000000e+00> : vector<4x256xf32>
    %132 = tpu.matmul %129, %131, %cst_190 {dimension_numbers = #tpu.dot_dimension_numbers<[1], [0], [0], [1], [0, 0, 1, 1], [], []>} : vector<4x128xbf16>, vector<128x256xbf16>, vector<4x256xf32> -> vector<4x256xf32>
    %c0_191 = arith.constant 0 : index
    %c0_192 = arith.constant 0 : index
    %133 = vector.load %arg14[%c0_191, %c0_192] : memref<4x256xf32, #tpu.memory_space<vmem>>, vector<4x256xf32>
    %134 = arith.addf %133, %132 : vector<4x256xf32>
    %c0_193 = arith.constant 0 : index
    %c0_194 = arith.constant 0 : index
    %135 = vector.load %arg14[%c0_193, %c0_194] : memref<4x256xf32, #tpu.memory_space<vmem>>, vector<4x256xf32>
    tpu.vector_store %arg14[%c0_193, %c0_194], %134 {strides = array<i32>} : memref<4x256xf32, #tpu.memory_space<vmem>>, vector<4x256xf32>,
    %c0_195 = arith.constant 0 : index
    %c1_196 = arith.constant 1 : index
    %c0_197 = arith.constant 0 : index
    %c0_198 = arith.constant 0 : index
    %136 = vector.load %arg1[%c0_195, %c1_196, %c0_197, %c0_198] : memref<1x2x2x128xbf16, #tpu.memory_space<vmem>>, vector<1x1x1x128xbf16>
    %137 = vector.shape_cast %136 : vector<1x1x1x128xbf16> to vector<1x1x128xbf16>
    %138 = vector.shape_cast %137 : vector<1x1x128xbf16> to vector<1x128xbf16>
    %c0_199 = arith.constant 0 : index
    %c0_200 = arith.constant 0 : index
    %139 = vector.load %arg13[%c0_199, %c0_200] : memref<4x128xbf16, #tpu.memory_space<vmem>>, vector<1x128xbf16>
    tpu.vector_store %arg13[%c0_199, %c0_200], %138 {strides = array<i32>} : memref<4x128xbf16, #tpu.memory_space<vmem>>, vector<1x128xbf16>,
    %c0_201 = arith.constant 0 : index
    %c1_202 = arith.constant 1 : index
    %c0_203 = arith.constant 0 : index
    %c0_204 = arith.constant 0 : index
    %140 = vector.load %arg2[%c0_201, %c1_202, %c0_203, %c0_204] : memref<1x2x2x128xbf16, #tpu.memory_space<vmem>>, vector<1x1x1x128xbf16>
    %141 = vector.shape_cast %140 : vector<1x1x1x128xbf16> to vector<1x1x128xbf16>
    %142 = vector.shape_cast %141 : vector<1x1x128xbf16> to vector<1x128xbf16>
    %c1_205 = arith.constant 1 : index
    %c0_206 = arith.constant 0 : index
    %143 = vector.load %arg13[%c1_205, %c0_206] : memref<4x128xbf16, #tpu.memory_space<vmem>>, vector<1x128xbf16>
    tpu.vector_store %arg13[%c1_205, %c0_206], %142 {strides = array<i32>} : memref<4x128xbf16, #tpu.memory_space<vmem>>, vector<1x128xbf16>,
    %c0_207 = arith.constant 0 : index
    %c1_208 = arith.constant 1 : index
    %c0_209 = arith.constant 0 : index
    %c0_210 = arith.constant 0 : index
    %144 = vector.load %arg3[%c0_207, %c1_208, %c0_209, %c0_210] : memref<1x2x2x128xbf16, #tpu.memory_space<vmem>>, vector<1x1x1x128xbf16>
    %145 = vector.shape_cast %144 : vector<1x1x1x128xbf16> to vector<1x1x128xbf16>
    %146 = vector.shape_cast %145 : vector<1x1x128xbf16> to vector<1x128xbf16>
    %c2_211 = arith.constant 2 : index
    %c0_212 = arith.constant 0 : index
    %147 = vector.load %arg13[%c2_211, %c0_212] : memref<4x128xbf16, #tpu.memory_space<vmem>>, vector<1x128xbf16>
    tpu.vector_store %arg13[%c2_211, %c0_212], %146 {strides = array<i32>} : memref<4x128xbf16, #tpu.memory_space<vmem>>, vector<1x128xbf16>,
    %c0_213 = arith.constant 0 : index
    %c1_214 = arith.constant 1 : index
    %c0_215 = arith.constant 0 : index
    %c0_216 = arith.constant 0 : index
    %148 = vector.load %arg4[%c0_213, %c1_214, %c0_215, %c0_216] : memref<1x2x2x128xbf16, #tpu.memory_space<vmem>>, vector<1x1x1x128xbf16>
    %149 = vector.shape_cast %148 : vector<1x1x1x128xbf16> to vector<1x1x128xbf16>
    %150 = vector.shape_cast %149 : vector<1x1x128xbf16> to vector<1x128xbf16>
    %c3_217 = arith.constant 3 : index
    %c0_218 = arith.constant 0 : index
    %151 = vector.load %arg13[%c3_217, %c0_218] : memref<4x128xbf16, #tpu.memory_space<vmem>>, vector<1x128xbf16>
    tpu.vector_store %arg13[%c3_217, %c0_218], %150 {strides = array<i32>} : memref<4x128xbf16, #tpu.memory_space<vmem>>, vector<1x128xbf16>,
    %c0_219 = arith.constant 0 : index
    %c0_220 = arith.constant 0 : index
    %152 = vector.load %arg13[%c0_219, %c0_220] : memref<4x128xbf16, #tpu.memory_space<vmem>>, vector<4x128xbf16>
    %c6 = arith.constant 6 : index
    %c0_221 = arith.constant 0 : index
    %c0_222 = arith.constant 0 : index
    %153 = vector.load %arg5[%c6, %c0_221, %c0_222] : memref<9x128x256xbf16, #tpu.memory_space<vmem>>, vector<1x128x256xbf16>
    %154 = vector.shape_cast %153 : vector<1x128x256xbf16> to vector<128x256xbf16>
    %cst_223 = arith.constant dense<0.000000e+00> : vector<4x256xf32>
    %155 = tpu.matmul %152, %154, %cst_223 {dimension_numbers = #tpu.dot_dimension_numbers<[1], [0], [0], [1], [0, 0, 1, 1], [], []>} : vector<4x128xbf16>, vector<128x256xbf16>, vector<4x256xf32> -> vector<4x256xf32>
    %c0_224 = arith.constant 0 : index
    %c0_225 = arith.constant 0 : index
    %156 = vector.load %arg14[%c0_224, %c0_225] : memref<4x256xf32, #tpu.memory_space<vmem>>, vector<4x256xf32>
    %157 = arith.addf %156, %155 : vector<4x256xf32>
    %c0_226 = arith.constant 0 : index
    %c0_227 = arith.constant 0 : index
    %158 = vector.load %arg14[%c0_226, %c0_227] : memref<4x256xf32, #tpu.memory_space<vmem>>, vector<4x256xf32>
    tpu.vector_store %arg14[%c0_226, %c0_227], %157 {strides = array<i32>} : memref<4x256xf32, #tpu.memory_space<vmem>>, vector<4x256xf32>,
    %c0_228 = arith.constant 0 : index
    %c1_229 = arith.constant 1 : index
    %c0_230 = arith.constant 0 : index
    %c0_231 = arith.constant 0 : index
    %159 = vector.load %arg2[%c0_228, %c1_229, %c0_230, %c0_231] : memref<1x2x2x128xbf16, #tpu.memory_space<vmem>>, vector<1x1x1x128xbf16>
    %160 = vector.shape_cast %159 : vector<1x1x1x128xbf16> to vector<1x1x128xbf16>
    %161 = vector.shape_cast %160 : vector<1x1x128xbf16> to vector<1x128xbf16>
    %c0_232 = arith.constant 0 : index
    %c0_233 = arith.constant 0 : index
    %162 = vector.load %arg13[%c0_232, %c0_233] : memref<4x128xbf16, #tpu.memory_space<vmem>>, vector<1x128xbf16>
    tpu.vector_store %arg13[%c0_232, %c0_233], %161 {strides = array<i32>} : memref<4x128xbf16, #tpu.memory_space<vmem>>, vector<1x128xbf16>,
    %c0_234 = arith.constant 0 : index
    %c1_235 = arith.constant 1 : index
    %c1_236 = arith.constant 1 : index
    %c0_237 = arith.constant 0 : index
    %163 = vector.load %arg1[%c0_234, %c1_235, %c1_236, %c0_237] : memref<1x2x2x128xbf16, #tpu.memory_space<vmem>>, vector<1x1x1x128xbf16>
    %164 = vector.shape_cast %163 : vector<1x1x1x128xbf16> to vector<1x1x128xbf16>
    %165 = vector.shape_cast %164 : vector<1x1x128xbf16> to vector<1x128xbf16>
    %c1_238 = arith.constant 1 : index
    %c0_239 = arith.constant 0 : index
    %166 = vector.load %arg13[%c1_238, %c0_239] : memref<4x128xbf16, #tpu.memory_space<vmem>>, vector<1x128xbf16>
    tpu.vector_store %arg13[%c1_238, %c0_239], %165 {strides = array<i32>} : memref<4x128xbf16, #tpu.memory_space<vmem>>, vector<1x128xbf16>,
    %c0_240 = arith.constant 0 : index
    %c1_241 = arith.constant 1 : index
    %c0_242 = arith.constant 0 : index
    %c0_243 = arith.constant 0 : index
    %167 = vector.load %arg4[%c0_240, %c1_241, %c0_242, %c0_243] : memref<1x2x2x128xbf16, #tpu.memory_space<vmem>>, vector<1x1x1x128xbf16>
    %168 = vector.shape_cast %167 : vector<1x1x1x128xbf16> to vector<1x1x128xbf16>
    %169 = vector.shape_cast %168 : vector<1x1x128xbf16> to vector<1x128xbf16>
    %c2_244 = arith.constant 2 : index
    %c0_245 = arith.constant 0 : index
    %170 = vector.load %arg13[%c2_244, %c0_245] : memref<4x128xbf16, #tpu.memory_space<vmem>>, vector<1x128xbf16>
    tpu.vector_store %arg13[%c2_244, %c0_245], %169 {strides = array<i32>} : memref<4x128xbf16, #tpu.memory_space<vmem>>, vector<1x128xbf16>,
    %c0_246 = arith.constant 0 : index
    %c1_247 = arith.constant 1 : index
    %c1_248 = arith.constant 1 : index
    %c0_249 = arith.constant 0 : index
    %171 = vector.load %arg3[%c0_246, %c1_247, %c1_248, %c0_249] : memref<1x2x2x128xbf16, #tpu.memory_space<vmem>>, vector<1x1x1x128xbf16>
    %172 = vector.shape_cast %171 : vector<1x1x1x128xbf16> to vector<1x1x128xbf16>
    %173 = vector.shape_cast %172 : vector<1x1x128xbf16> to vector<1x128xbf16>
    %c3_250 = arith.constant 3 : index
    %c0_251 = arith.constant 0 : index
    %174 = vector.load %arg13[%c3_250, %c0_251] : memref<4x128xbf16, #tpu.memory_space<vmem>>, vector<1x128xbf16>
    tpu.vector_store %arg13[%c3_250, %c0_251], %173 {strides = array<i32>} : memref<4x128xbf16, #tpu.memory_space<vmem>>, vector<1x128xbf16>,
    %c0_252 = arith.constant 0 : index
    %c0_253 = arith.constant 0 : index
    %175 = vector.load %arg13[%c0_252, %c0_253] : memref<4x128xbf16, #tpu.memory_space<vmem>>, vector<4x128xbf16>
    %c7 = arith.constant 7 : index
    %c0_254 = arith.constant 0 : index
    %c0_255 = arith.constant 0 : index
    %176 = vector.load %arg5[%c7, %c0_254, %c0_255] : memref<9x128x256xbf16, #tpu.memory_space<vmem>>, vector<1x128x256xbf16>
    %177 = vector.shape_cast %176 : vector<1x128x256xbf16> to vector<128x256xbf16>
    %cst_256 = arith.constant dense<0.000000e+00> : vector<4x256xf32>
    %178 = tpu.matmul %175, %177, %cst_256 {dimension_numbers = #tpu.dot_dimension_numbers<[1], [0], [0], [1], [0, 0, 1, 1], [], []>} : vector<4x128xbf16>, vector<128x256xbf16>, vector<4x256xf32> -> vector<4x256xf32>
    %c0_257 = arith.constant 0 : index
    %c0_258 = arith.constant 0 : index
    %179 = vector.load %arg14[%c0_257, %c0_258] : memref<4x256xf32, #tpu.memory_space<vmem>>, vector<4x256xf32>
    %180 = arith.addf %179, %178 : vector<4x256xf32>
    %c0_259 = arith.constant 0 : index
    %c0_260 = arith.constant 0 : index
    %181 = vector.load %arg14[%c0_259, %c0_260] : memref<4x256xf32, #tpu.memory_space<vmem>>, vector<4x256xf32>
    tpu.vector_store %arg14[%c0_259, %c0_260], %180 {strides = array<i32>} : memref<4x256xf32, #tpu.memory_space<vmem>>, vector<4x256xf32>,
    %c0_261 = arith.constant 0 : index
    %c1_262 = arith.constant 1 : index
    %c1_263 = arith.constant 1 : index
    %c0_264 = arith.constant 0 : index
    %182 = vector.load %arg1[%c0_261, %c1_262, %c1_263, %c0_264] : memref<1x2x2x128xbf16, #tpu.memory_space<vmem>>, vector<1x1x1x128xbf16>
    %183 = vector.shape_cast %182 : vector<1x1x1x128xbf16> to vector<1x1x128xbf16>
    %184 = vector.shape_cast %183 : vector<1x1x128xbf16> to vector<1x128xbf16>
    %c0_265 = arith.constant 0 : index
    %c0_266 = arith.constant 0 : index
    %185 = vector.load %arg13[%c0_265, %c0_266] : memref<4x128xbf16, #tpu.memory_space<vmem>>, vector<1x128xbf16>
    tpu.vector_store %arg13[%c0_265, %c0_266], %184 {strides = array<i32>} : memref<4x128xbf16, #tpu.memory_space<vmem>>, vector<1x128xbf16>,
    %c0_267 = arith.constant 0 : index
    %c1_268 = arith.constant 1 : index
    %c1_269 = arith.constant 1 : index
    %c0_270 = arith.constant 0 : index
    %186 = vector.load %arg2[%c0_267, %c1_268, %c1_269, %c0_270] : memref<1x2x2x128xbf16, #tpu.memory_space<vmem>>, vector<1x1x1x128xbf16>
    %187 = vector.shape_cast %186 : vector<1x1x1x128xbf16> to vector<1x1x128xbf16>
    %188 = vector.shape_cast %187 : vector<1x1x128xbf16> to vector<1x128xbf16>
    %c1_271 = arith.constant 1 : index
    %c0_272 = arith.constant 0 : index
    %189 = vector.load %arg13[%c1_271, %c0_272] : memref<4x128xbf16, #tpu.memory_space<vmem>>, vector<1x128xbf16>
    tpu.vector_store %arg13[%c1_271, %c0_272], %188 {strides = array<i32>} : memref<4x128xbf16, #tpu.memory_space<vmem>>, vector<1x128xbf16>,
    %c0_273 = arith.constant 0 : index
    %c1_274 = arith.constant 1 : index
    %c1_275 = arith.constant 1 : index
    %c0_276 = arith.constant 0 : index
    %190 = vector.load %arg3[%c0_273, %c1_274, %c1_275, %c0_276] : memref<1x2x2x128xbf16, #tpu.memory_space<vmem>>, vector<1x1x1x128xbf16>
    %191 = vector.shape_cast %190 : vector<1x1x1x128xbf16> to vector<1x1x128xbf16>
    %192 = vector.shape_cast %191 : vector<1x1x128xbf16> to vector<1x128xbf16>
    %c2_277 = arith.constant 2 : index
    %c0_278 = arith.constant 0 : index
    %193 = vector.load %arg13[%c2_277, %c0_278] : memref<4x128xbf16, #tpu.memory_space<vmem>>, vector<1x128xbf16>
    tpu.vector_store %arg13[%c2_277, %c0_278], %192 {strides = array<i32>} : memref<4x128xbf16, #tpu.memory_space<vmem>>, vector<1x128xbf16>,
    %c0_279 = arith.constant 0 : index
    %c1_280 = arith.constant 1 : index
    %c1_281 = arith.constant 1 : index
    %c0_282 = arith.constant 0 : index
    %194 = vector.load %arg4[%c0_279, %c1_280, %c1_281, %c0_282] : memref<1x2x2x128xbf16, #tpu.memory_space<vmem>>, vector<1x1x1x128xbf16>
    %195 = vector.shape_cast %194 : vector<1x1x1x128xbf16> to vector<1x1x128xbf16>
    %196 = vector.shape_cast %195 : vector<1x1x128xbf16> to vector<1x128xbf16>
    %c3_283 = arith.constant 3 : index
    %c0_284 = arith.constant 0 : index
    %197 = vector.load %arg13[%c3_283, %c0_284] : memref<4x128xbf16, #tpu.memory_space<vmem>>, vector<1x128xbf16>
    tpu.vector_store %arg13[%c3_283, %c0_284], %196 {strides = array<i32>} : memref<4x128xbf16, #tpu.memory_space<vmem>>, vector<1x128xbf16>,
    %c0_285 = arith.constant 0 : index
    %c0_286 = arith.constant 0 : index
    %198 = vector.load %arg13[%c0_285, %c0_286] : memref<4x128xbf16, #tpu.memory_space<vmem>>, vector<4x128xbf16>
    %c8 = arith.constant 8 : index
    %c0_287 = arith.constant 0 : index
    %c0_288 = arith.constant 0 : index
    %199 = vector.load %arg5[%c8, %c0_287, %c0_288] : memref<9x128x256xbf16, #tpu.memory_space<vmem>>, vector<1x128x256xbf16>
    %200 = vector.shape_cast %199 : vector<1x128x256xbf16> to vector<128x256xbf16>
    %cst_289 = arith.constant dense<0.000000e+00> : vector<4x256xf32>
    %201 = tpu.matmul %198, %200, %cst_289 {dimension_numbers = #tpu.dot_dimension_numbers<[1], [0], [0], [1], [0, 0, 1, 1], [], []>} : vector<4x128xbf16>, vector<128x256xbf16>, vector<4x256xf32> -> vector<4x256xf32>
    %c0_290 = arith.constant 0 : index
    %c0_291 = arith.constant 0 : index
    %202 = vector.load %arg14[%c0_290, %c0_291] : memref<4x256xf32, #tpu.memory_space<vmem>>, vector<4x256xf32>
    %203 = arith.addf %202, %201 : vector<4x256xf32>
    %c0_292 = arith.constant 0 : index
    %c0_293 = arith.constant 0 : index
    %204 = vector.load %arg14[%c0_292, %c0_293] : memref<4x256xf32, #tpu.memory_space<vmem>>, vector<4x256xf32>
    tpu.vector_store %arg14[%c0_292, %c0_293], %203 {strides = array<i32>} : memref<4x256xf32, #tpu.memory_space<vmem>>, vector<4x256xf32>,
    %c0_294 = arith.constant 0 : index
    %c0_295 = arith.constant 0 : index
    %205 = vector.load %arg14[%c0_294, %c0_295] : memref<4x256xf32, #tpu.memory_space<vmem>>, vector<4x256xf32>
    %c0_296 = arith.constant 0 : index
    %c0_297 = arith.constant 0 : index
    %206 = vector.load %arg6[%c0_296, %c0_297] : memref<1x256xf32, #tpu.memory_space<vmem>>, vector<1x256xf32>
    %207 = vector.broadcast %206 : vector<1x256xf32> to vector<4x256xf32>
    %208 = arith.mulf %205, %207 : vector<4x256xf32>
    %c0_298 = arith.constant 0 : index
    %c0_299 = arith.constant 0 : index
    %209 = vector.load %arg7[%c0_298, %c0_299] : memref<1x256xf32, #tpu.memory_space<vmem>>, vector<1x256xf32>
    %210 = vector.broadcast %209 : vector<1x256xf32> to vector<4x256xf32>
    %211 = arith.addf %208, %210 : vector<4x256xf32>
    %212 = vector.extract_strided_slice %211 {offsets = [0, 0], sizes = [1, 256], strides = [1, 1]} : vector<4x256xf32> to vector<1x256xf32>
    %213 = vector.extract_strided_slice %211 {offsets = [1, 0], sizes = [1, 256], strides = [1, 1]} : vector<4x256xf32> to vector<1x256xf32>
    %214 = arith.maximumf %212, %213 : vector<1x256xf32>
    %215 = vector.extract_strided_slice %211 {offsets = [2, 0], sizes = [1, 256], strides = [1, 1]} : vector<4x256xf32> to vector<1x256xf32>
    %216 = vector.extract_strided_slice %211 {offsets = [3, 0], sizes = [1, 256], strides = [1, 1]} : vector<4x256xf32> to vector<1x256xf32>
    %217 = arith.maximumf %215, %216 : vector<1x256xf32>
    %218 = arith.maximumf %214, %217 : vector<1x256xf32>
    %cst_300 = arith.constant 0.000000e+00 : f32
    %219 = vector.broadcast %cst_300 : f32 to vector<1x256xf32>
    %220 = arith.maximumf %218, %219 : vector<1x256xf32>
    %cst_301 = arith.constant dense<0.000000e+00> : vector<256xf32>
    %221 = vector.multi_reduction <add>, %220, %cst_301 [0] : vector<1x256xf32> to vector<256xf32>
    %222 = vector.shape_cast %221 : vector<256xf32> to vector<1x256xf32>
    %cst_302 = arith.constant 1.000000e+00 : f32
    %223 = vector.broadcast %cst_302 : f32 to vector<1x256xf32>
    %224 = arith.divf %222, %223 : vector<1x256xf32>
    %225 = arith.truncf %224 : vector<1x256xf32> to vector<1x256xbf16>
    %c0_303 = arith.constant 0 : index
    %c0_304 = arith.constant 0 : index
    %226 = vector.load %arg8[%c0_303, %c0_304] : memref<256x128xbf16, #tpu.memory_space<vmem>>, vector<256x128xbf16>
    %cst_305 = arith.constant dense<0.000000e+00> : vector<1x128xf32>
    %227 = tpu.matmul %225, %226, %cst_305 {dimension_numbers = #tpu.dot_dimension_numbers<[1], [0], [0], [1], [0, 0, 1, 1], [], []>} : vector<1x256xbf16>, vector<256x128xbf16>, vector<1x128xf32> -> vector<1x128xf32>
    %c0_306 = arith.constant 0 : index
    %c0_307 = arith.constant 0 : index
    %228 = vector.load %arg9[%c0_306, %c0_307] : memref<1x128xf32, #tpu.memory_space<vmem>>, vector<1x128xf32>
    %229 = arith.addf %227, %228 : vector<1x128xf32>
    %cst_308 = arith.constant 0.000000e+00 : f32
    %230 = vector.broadcast %cst_308 : f32 to vector<1x128xf32>
    %231 = arith.maximumf %229, %230 : vector<1x128xf32>
    %232 = arith.truncf %231 : vector<1x128xf32> to vector<1x128xbf16>
    %c0_309 = arith.constant 0 : index
    %c0_310 = arith.constant 0 : index
    %233 = vector.load %arg10[%c0_309, %c0_310] : memref<128x128xbf16, #tpu.memory_space<vmem>>, vector<128x128xbf16>
    %cst_311 = arith.constant dense<0.000000e+00> : vector<1x128xf32>
    %234 = tpu.matmul %232, %233, %cst_311 {dimension_numbers = #tpu.dot_dimension_numbers<[1], [0], [0], [1], [0, 0, 1, 1], [], []>} : vector<1x128xbf16>, vector<128x128xbf16>, vector<1x128xf32> -> vector<1x128xf32>
    %c0_312 = arith.constant 0 : index
    %c0_313 = arith.constant 0 : index
    %235 = vector.load %arg11[%c0_312, %c0_313] : memref<1x128xf32, #tpu.memory_space<vmem>>, vector<1x128xf32>
    %236 = arith.addf %234, %235 : vector<1x128xf32>
    %c0_314 = arith.constant 0 : index
    %c0_315 = arith.constant 0 : index
    %c0_316 = arith.constant 0 : index
    %237 = vector.load %arg12[%c0_314, %c0_315, %c0_316] : memref<1x1x128xf32, #tpu.memory_space<vmem>>, vector<1x1x128xf32>
    %238 = vector.shape_cast %237 : vector<1x1x128xf32> to vector<1x128xf32>
    %239 = vector.shape_cast %236 : vector<1x128xf32> to vector<1x1x128xf32>
    tpu.vector_store %arg12[%c0_314, %c0_315, %c0_316], %239 {strides = array<i32>} : memref<1x1x128xf32, #tpu.memory_space<vmem>>, vector<1x1x128xf32>,
    return
  }
  func.func @transform_0(%arg0: i32) -> (i32, i32, i32, i32) {
    %c0_i32 = arith.constant 0 : i32
    %c0_i32_0 = arith.constant 0 : i32
    %c0_i32_1 = arith.constant 0 : i32
    %c0_i32_2 = arith.constant 0 : i32
    return %arg0, %c0_i32, %c0_i32_0, %c0_i32_1 : i32, i32, i32, i32
  }
  func.func @transform_1(%arg0: i32) -> (i32, i32, i32, i32) {
    %c0_i32 = arith.constant 0 : i32
    %c0_i32_0 = arith.constant 0 : i32
    %c0_i32_1 = arith.constant 0 : i32
    %c0_i32_2 = arith.constant 0 : i32
    return %arg0, %c0_i32, %c0_i32_0, %c0_i32_1 : i32, i32, i32, i32
  }
  func.func @transform_2(%arg0: i32) -> (i32, i32, i32, i32) {
    %c0_i32 = arith.constant 0 : i32
    %c0_i32_0 = arith.constant 0 : i32
    %c0_i32_1 = arith.constant 0 : i32
    %c0_i32_2 = arith.constant 0 : i32
    return %arg0, %c0_i32, %c0_i32_0, %c0_i32_1 : i32, i32, i32, i32
  }
  func.func @transform_3(%arg0: i32) -> (i32, i32, i32, i32) {
    %c0_i32 = arith.constant 0 : i32
    %c0_i32_0 = arith.constant 0 : i32
    %c0_i32_1 = arith.constant 0 : i32
    %c0_i32_2 = arith.constant 0 : i32
    return %arg0, %c0_i32, %c0_i32_0, %c0_i32_1 : i32, i32, i32, i32
  }
  func.func @transform_4(%arg0: i32) -> (i32, i32, i32) {
    %c0_i32 = arith.constant 0 : i32
    %c0_i32_0 = arith.constant 0 : i32
    %c0_i32_1 = arith.constant 0 : i32
    %c0_i32_2 = arith.constant 0 : i32
    return %c0_i32, %c0_i32_0, %c0_i32_1 : i32, i32, i32
  }
  func.func @transform_5(%arg0: i32) -> (i32, i32) {
    %c0_i32 = arith.constant 0 : i32
    %c0_i32_0 = arith.constant 0 : i32
    %c0_i32_1 = arith.constant 0 : i32
    return %c0_i32, %c0_i32_0 : i32, i32
  }
  func.func @transform_6(%arg0: i32) -> (i32, i32) {
    %c0_i32 = arith.constant 0 : i32
    %c0_i32_0 = arith.constant 0 : i32
    %c0_i32_1 = arith.constant 0 : i32
    return %c0_i32, %c0_i32_0 : i32, i32
  }
  func.func @transform_7(%arg0: i32) -> (i32, i32) {
    %c0_i32 = arith.constant 0 : i32
    %c0_i32_0 = arith.constant 0 : i32
    %c0_i32_1 = arith.constant 0 : i32
    return %c0_i32, %c0_i32_0 : i32, i32
  }
  func.func @transform_8(%arg0: i32) -> (i32, i32) {
    %c0_i32 = arith.constant 0 : i32
    %c0_i32_0 = arith.constant 0 : i32
    %c0_i32_1 = arith.constant 0 : i32
    return %c0_i32, %c0_i32_0 : i32, i32
  }
  func.func @transform_9(%arg0: i32) -> (i32, i32) {
    %c0_i32 = arith.constant 0 : i32
    %c0_i32_0 = arith.constant 0 : i32
    %c0_i32_1 = arith.constant 0 : i32
    return %c0_i32, %c0_i32_0 : i32, i32
  }
  func.func @transform_10(%arg0: i32) -> (i32, i32) {
    %c0_i32 = arith.constant 0 : i32
    %c0_i32_0 = arith.constant 0 : i32
    %c0_i32_1 = arith.constant 0 : i32
    return %c0_i32, %c0_i32_0 : i32, i32
  }
  func.func @transform_11(%arg0: i32) -> (i32, i32, i32) {
    %c0_i32 = arith.constant 0 : i32
    %c0_i32_0 = arith.constant 0 : i32
    %c0_i32_1 = arith.constant 0 : i32
    return %arg0, %c0_i32, %c0_i32_0 : i32, i32, i32
  }
}

</mosaic_0001>

<bundles_post_ra>
// kernel: plant_disease_forward.4
= control target key start
LH: loop header
LB: loop body
LE: loop exit
PB: predicated region body
PF: predicated region fallthrough
CT: control target
= control target key end

     0   :  { %s1534_s24 = smov 0   ;;  %s1966_s0 = inlined_call_operand.vmem [shape: bf16[2,256,32], index: 0, kind: input, shape index: {}]   ;;  %s1967_s1 = inlined_call_operand.vmem [shape: bf16[32,32], index: 1, kind: input, shape index: {}]   ;;  %s1968_s2 = inlined_call_operand.vmem [shape: f32[1,32], index: 2, kind: input, shape index: {}]   ;;  %s1969_s3 = inlined_call_operand.vmem [shape: f32[1,32], index: 3, kind: input, shape index: {}]   ;;  %s1970_s4 = inlined_call_operand.vmem [shape: bf16[2,5,5,32], index: 4, kind: output, shape index: {0}]   ;;  %s1971_s5 = inlined_call_operand.vmem [shape: bf16[2,5,5,32], index: 5, kind: output, shape index: {1}]   ;;  %s1972_s6 = inlined_call_operand.vmem [shape: bf16[2,5,5,32], index: 6, kind: output, shape index: {2}]   ;;  %s1973_s7 = inlined_call_operand.vmem [shape: bf16[2,5,5,32], index: 7, kind: output, shape index: {3}]  }
   0x1 LB: > { %s1319_s25 = sadd.s32 4294967295, %s1492_s24   ;;  %p1323_p0 = scmp.ge.s32.totalorder %s1492_s24, 1  ;;  %s1492_s24 = sphi %s1534_s24, %s18_s24  }
   0x2   : > { %p244_p1 = scmp.lt.s32.totalorder %s1492_s24, 3 }
   0x4   : > { %p245_p2 = pnand %p1323_p0, %p244_p1 }
   0x5   : > { %p291_p3 = scmp.lt.s32.totalorder (!%p245_p2), %s1319_s25, 1 }
   0x6   : > { %248 = sbr.rel (%p245_p2) target bundleno = 300 (0x12c), region = 36 }
   0xb   : > { %v1468_v0 = vld [vmem:[%s1967_s1 + $0x8] sm:$0xff]   ;;  %v1469_v1 = vld [vmem:[%s1967_s1] sm:$0xff]   ;;  %s1981_s25 = smov (!%p291_p3, %s1319_s25), 1  ;;  %vm445_vm0 = vcmask 261120   ;;  %vm769_vm1 = vcmask 256000   ;;  %vm786_vm4 = vcmask 1040384  }
   0xc   : > { %1419 = vmatprep.subr.bf16.mxu0 %v1468_v0  ;;  %1455 = vmatprep.subr.bf16.mxu1 %v1468_v0  ;;  %s1400_s30 = sshll.u32 %s1981_s25, 7  ;;  %s1459_s11 = smul.u32 20, %s1981_s25  ;;  %vm770_vm2 = vsmask.f32 2304  ;;  %v1632_v35 = vld [vmem:[%s1968_s2] ss:$0 sm:$0xff] }
   0xd   : > { %1420 = vmatpush3.bf16.msra.mxu0 %v1468_v0  ;;  %1457 = vmatpush3.bf16.msra.mxu1 %v1468_v0  ;;  %s1554_s10 = scalar_lea.vmem %s1966_s0, %s1400_s30  ;;  %vm1595_vm3 = vmand %vm769_vm1, %vm770_vm2  ;;  %v1638_v41 = vld [vmem:[%s1969_s3] ss:$0 sm:$0xff]  ;;  %vm787_vm5 = vsmask.f32 256  ;;  %vm795_vm6 = vcmask 1041408  }
   0xe   : > { %1421 = vmatprep.subr.bf16.mxu0 %v1469_v1  ;;  %1456 = vmatprep.subr.bf16.mxu1 %v1469_v1  ;;  %v1470_v2 = vld [vmem:[%s1554_s10] sm:$0xff]   ;;  %v1472_v4 = vld [vmem:[%s1554_s10 + $0x8] sm:$0xff]   ;;  %v1474_v6 = vld [vmem:[%s1554_s10 + $0x10] sm:$0xff]   ;;  %s1592_s14 = scalar_lea.vmem %s1970_s4, %s1459_s11  ;;  %s1605_s17 = scalar_lea.vmem %s1971_s5, %s1459_s11  ;;  %vm796_vm7 = vsmask.f32 1280 }
   0xf   : > { %v1471_v3 = vld [vmem:[%s1554_s10 + $0x40] sm:$0xff]   ;;  %1423 = vmatprep.mubr.msk.bf16.mxu0 %vm445_vm0, %v1470_v2  ;;  %v1473_v5 = vld [vmem:[%s1554_s10 + $0x48] sm:$0xff]   ;;  %v1475_v7 = vld [vmem:[%s1554_s10 + $0x50] sm:$0xff]   ;;  %s1610_s20 = scalar_lea.vmem %s1972_s6, %s1459_s11  ;;  %s1615_s23 = scalar_lea.vmem %s1973_s7, %s1459_s11 }
  0x10   : > { %1439 = vmatprep.mubr.msk.bf16.mxu1 %vm445_vm0, %v1471_v3  ;;  %v1476_v8 = vld [vmem:[%s1554_s10 + $0x18] sm:$0xff]   ;;  %v1478_v10 = vld [vmem:[%s1554_s10 + $0x20] sm:$0xff]   ;;  %v1480_v12 = vld [vmem:[%s1554_s10 + $0x28] sm:$0xff]  }
  0x11   : > { %1422 = vmatpush3.bf16.msra.mxu0 %v1469_v1  ;;  %1458 = vmatpush3.bf16.msra.mxu1 %v1469_v1  ;;  %v1477_v9 = vld [vmem:[%s1554_s10 + $0x58] sm:$0xff]   ;;  %v1479_v11 = vld [vmem:[%s1554_s10 + $0x60] sm:$0xff]   ;;  %v1481_v13 = vld [vmem:[%s1554_s10 + $0x68] sm:$0xff]  }
  0x12   : > { %v1482_v14 = vld [vmem:[%s1554_s10 + $0x30] sm:$0xff]   ;;  %v1484_v16 = vld [vmem:[%s1554_s10 + $0x38] sm:$0xff]   ;;  %v772_v18 = vld [vmem:[%s1592_s14] sm:$0x7] }
  0x13   : > { %v1483_v15 = vld [vmem:[%s1554_s10 + $0x70] sm:$0xff]   ;;  %v1485_v17 = vld [vmem:[%s1554_s10 + $0x78] sm:$0xff]   ;;  %v773_v20 = vsel %vm1595_vm3, 0, %v772_v18  ;;  %v902_v21 = vld [vmem:[%s1605_s17] sm:$0x7] }
  0x14   : > { %1424 = vmatmul.mubr.msk.bf16.vlgmr.msra.gmra.mxu0 %vm445_vm0, %v1472_v4  ;;  %1440 = vmatmul.mubr.msk.bf16.vlgmr.msra.gmra.mxu1 %vm445_vm0, %v1473_v5  ;;  %774 = vst [vmem:[%s1592_s14] sm:$0x7] %v773_v20  ;;  %v1382_v22 = vld [vmem:[%s1610_s20 + $0x10] sm:$0x7]  ;;  %v903_v24 = vsel %vm1595_vm3, 0, %v902_v21  ;;  %vm1745_vm8 = vmand %vm786_vm4, %vm787_vm5 }
  0x15   : > { %1427 = vmatprep.mubr.msk.bf16.mxu0 %vm445_vm0, %v1474_v6  ;;  %1443 = vmatprep.mubr.msk.bf16.mxu1 %vm445_vm0, %v1475_v7  ;;  %v1390_v23 = vld [vmem:[%s1615_s23 + $0x10] sm:$0x7]  ;;  %v993_v25 = vsel %vm1595_vm3, 0, %v1382_v22  ;;  %904 = vst [vmem:[%s1605_s17] sm:$0x7] %v903_v24  ;;  %vm1755_vm9 = vmand %vm795_vm6, %vm796_vm7 }
  0x16   : > { %v1096_v26 = vsel %vm1595_vm3, 0, %v1390_v23  ;;  %1383 = vst [vmem:[%s1610_s20 + $0x10] sm:$0x7] %v993_v25 }
  0x17   : > { %1391 = vst [vmem:[%s1615_s23 + $0x10] sm:$0x7] %v1096_v26 }
  0x1c   : > { %1428 = vmatmul.mubr.msk.bf16.gmra.mxu0 %vm445_vm0, %v1476_v8  ;;  %1444 = vmatmul.mubr.msk.bf16.gmra.mxu1 %vm445_vm0, %v1477_v9 }
  0x1d   : > { %1431 = vmatprep.mubr.msk.bf16.mxu0 %vm445_vm0, %v1478_v10  ;;  %1447 = vmatprep.mubr.msk.bf16.mxu1 %vm445_vm0, %v1479_v11 }
  0x24   : > { %1432 = vmatmul.mubr.msk.bf16.gmra.mxu0 %vm445_vm0, %v1480_v12  ;;  %1448 = vmatmul.mubr.msk.bf16.gmra.mxu1 %vm445_vm0, %v1481_v13 }
  0x25   : > { %1435 = vmatprep.mubr.msk.bf16.mxu0 %vm445_vm0, %v1482_v14  ;;  %1451 = vmatprep.mubr.msk.bf16.mxu1 %vm445_vm0, %v1483_v15 }
  0x2c   : > { %1436 = vmatmul.mubr.msk.bf16.gmra.mxu0 %vm445_vm0, %v1484_v16  ;;  %1452 = vmatmul.mubr.msk.bf16.gmra.mxu1 %vm445_vm0, %v1485_v17 }
  0xd4   : > { %v1425_v27 = vpop.f32.mrf.mxu0  ;;  %v1441_v28 = vpop.f32.mrf.mxu1 }
  0xd5   : > { %v664_v39 = vmul.f32 %v1425_v27, %v1632_v35  ;;  %v680_v42 = vmul.f32 %v1441_v28, %v1632_v35 }
  0xd6   : > { %v528_v29 = vpop.f32.mrf.mxu0  ;;  %v592_v30 = vpop.f32.mrf.mxu1 }
  0xd7   : > { %v662_v43 = vmul.f32 %v1632_v35, %v528_v29  ;;  %v678_v45 = vmul.f32 %v1632_v35, %v592_v30  ;;  %v703_v52 = vadd.f32 %v1638_v41, %v664_v39  ;;  %v719_v56 = vadd.f32 %v1638_v41, %v680_v42 }
  0xd8   : > { %v1426_v31 = vpop.f32.mrf.mxu0  ;;  %v1442_v32 = vpop.f32.mrf.mxu1 }
  0xd9   : > { %v665_v46 = vmul.f32 %v1426_v31, %v1632_v35  ;;  %v681_v47 = vmul.f32 %v1442_v32, %v1632_v35  ;;  %v1652_v57 = vadd.f32 %v1638_v41, %v662_v43  ;;  %v717_v61 = vadd.f32 %v1638_v41, %v678_v45 }
  0xda   : > { %v531_v33 = vpop.f32.mrf.mxu0  ;;  %v595_v34 = vpop.f32.mrf.mxu1 }
  0xdb   : > { %v663_v49 = vmul.f32 %v1632_v35, %v531_v33  ;;  %v679_v50 = vmul.f32 %v1632_v35, %v595_v34  ;;  %v704_v62 = vadd.f32 %v1638_v41, %v665_v46  ;;  %v720_v63 = vadd.f32 %v1638_v41, %v681_v47 }
  0xdc   : > { %v1429_v36 = vpop.f32.mrf.mxu0  ;;  %v1445_v37 = vpop.f32.mrf.mxu1 }
  0xdd   : > { %v668_v53 = vmul.f32 %v1429_v36, %v1632_v35  ;;  %v684_v54 = vmul.f32 %v1445_v37, %v1632_v35  ;;  %v1661_v2 = vadd.f32 %v1638_v41, %v663_v49  ;;  %v1664_v3 = vadd.f32 %v1638_v41, %v679_v50 }
  0xde   : > { %v544_v38 = vpop.f32.mrf.mxu0  ;;  %v608_v40 = vpop.f32.mrf.mxu1 }
  0xdf   : > { %v666_v58 = vmul.f32 %v1632_v35, %v544_v38  ;;  %v682_v59 = vmul.f32 %v1632_v35, %v608_v40  ;;  %v1669_v7 = vadd.f32 %v1638_v41, %v668_v53  ;;  %v1672_v8 = vadd.f32 %v1638_v41, %v684_v54 }
  0xe0   : > { %v1430_v44 = vpop.f32.mrf.mxu0  ;;  %v1446_v48 = vpop.f32.mrf.mxu1 }
  0xe1   : > { %v669_v4 = vmul.f32 %v1430_v44, %v1632_v35  ;;  %v1677_v12 = vadd.f32 %v1638_v41, %v666_v58  ;;  %v1680_v13 = vadd.f32 %v1638_v41, %v682_v59  ;;  %v685_v17 = vmul.f32 %v1446_v48, %v1632_v35 }
  0xe2   : > { %v547_v51 = vpop.f32.mrf.mxu0  ;;  %v611_v55 = vpop.f32.mrf.mxu1 }
  0xe3   : > { %v1688_v23 = vadd.f32 %v1638_v41, %v669_v4  ;;  %v667_v28 = vmul.f32 %v1632_v35, %v547_v51  ;;  %v1699_v39 = vadd.f32 %v1638_v41, %v685_v17  ;;  %v683_v45 = vmul.f32 %v1632_v35, %v611_v55 }
  0xe4   : > { %v1433_v60 = vpop.f32.mrf.mxu0  ;;  %v1449_v1 = vpop.f32.mrf.mxu1 }
  0xe5   : > { %v672_v0 = vmul.f32 %v1433_v60, %v1632_v35  ;;  %v688_v5 = vmul.f32 %v1449_v1, %v1632_v35 }
  0xe6   : > { %v560_v6 = vpop.f32.mrf.mxu0  ;;  %v624_v11 = vpop.f32.mrf.mxu1 }
  0xe7   : > { %v711_v9 = vadd.f32 %v1638_v41, %v672_v0  ;;  %v670_v10 = vmul.f32 %v1632_v35, %v560_v6  ;;  %v727_v14 = vadd.f32 %v1638_v41, %v688_v5  ;;  %v686_v15 = vmul.f32 %v1632_v35, %v624_v11 }
  0xe8   : > { %v1434_v16 = vpop.f32.mrf.mxu0  ;;  %v1450_v22 = vpop.f32.mrf.mxu1  ;;  %v1722_v6 = vadd.f32 %v1638_v41, %v667_v28 }
  0xe9   : > { %v735_v18 = vmax.f32 %v703_v52, %v711_v9  ;;  %v709_v20 = vadd.f32 %v1638_v41, %v670_v10  ;;  %v673_v21 = vmul.f32 %v1434_v16, %v1632_v35  ;;  %v743_v24 = vmax.f32 %v719_v56, %v727_v14 }
  0xea   : > { %v725_v25 = vadd.f32 %v1638_v41, %v686_v15  ;;  %v689_v26 = vmul.f32 %v1450_v22, %v1632_v35  ;;  %v563_v27 = vpop.f32.mrf.mxu0  ;;  %v627_v32 = vpop.f32.mrf.mxu1 }
  0xeb   : > { %v733_v29 = vmax.f32 %v1652_v57, %v709_v20  ;;  %v712_v30 = vadd.f32 %v1638_v41, %v673_v21  ;;  %v671_v31 = vmul.f32 %v1632_v35, %v563_v27  ;;  %v751_v33 = vmax.f32 %v735_v18, %v743_v24 }
  0xec   : > { %v741_v34 = vmax.f32 %v717_v61, %v725_v25  ;;  %v728_v36 = vadd.f32 %v1638_v41, %v689_v26  ;;  %v687_v37 = vmul.f32 %v1632_v35, %v627_v32  ;;  %v1437_v38 = vpop.f32.mrf.mxu0  ;;  %v1453_v44 = vpop.f32.mrf.mxu1 }
  0xed   : > { %v736_v40 = vmax.f32 %v704_v62, %v712_v30  ;;  %v710_v42 = vadd.f32 %v1638_v41, %v671_v31  ;;  %v676_v43 = vmul.f32 %v1437_v38, %v1632_v35  ;;  %v759_v46 = vmax.f32 %v751_v33, 0.0 }
  0xee   : > { %v744_v47 = vmax.f32 %v720_v63, %v728_v36  ;;  %v726_v48 = vadd.f32 %v1638_v41, %v687_v37  ;;  %v576_v49 = vpop.f32.mrf.mxu0  ;;  %v692_v52 = vmul.f32 %v1453_v44, %v1632_v35  ;;  %v640_v54 = vpop.f32.mrf.mxu1  ;;  %v749_v56 = vmax.f32 %v733_v29, %v741_v34 }
  0xef   : > { %v734_v50 = vmax.f32 %v1661_v2, %v710_v42  ;;  %v715_v51 = vadd.f32 %v1638_v41, %v676_v43  ;;  %v674_v53 = vmul.f32 %v1632_v35, %v576_v49  ;;  %v690_v55 = vmul.f32 %v1632_v35, %v640_v54 }
  0xf0   : > { %v752_v57 = vmax.f32 %v736_v40, %v744_v47  ;;  %v742_v58 = vmax.f32 %v1664_v3, %v726_v48  ;;  %v1438_v59 = vpop.f32.mrf.mxu0  ;;  %v731_v61 = vadd.f32 %v1638_v41, %v692_v52  ;;  %v1454_v0 = vpop.f32.mrf.mxu1  ;;  %v757_v11 = vmax.f32 %v749_v56, 0.0 }
  0xf1   : > { %v739_v60 = vmax.f32 %v1669_v7, %v715_v51  ;;  %v1714_v62 = vadd.f32 %v1638_v41, %v674_v53  ;;  %v677_v63 = vmul.f32 %v1438_v59, %v1632_v35  ;;  %v1718_v4 = vadd.f32 %v1638_v41, %v690_v55  ;;  %v1376_v53 = vld [vmem:[%s1605_s17 + $0x8] sm:$0x7] }
  0xf2   : > { %v760_v1 = vmax.f32 %v752_v57, 0.0  ;;  %v750_v2 = vmax.f32 %v734_v50, %v742_v58  ;;  %v693_v3 = vmul.f32 %v1454_v0, %v1632_v35  ;;  %v579_v5 = vpop.f32.mrf.mxu0  ;;  %v1725_v7 = vadd.f32 %v1638_v41, %v683_v45 }
  0xf3   : > { %v747_v9 = vmax.f32 %v1672_v8, %v731_v61  ;;  %v1729_v10 = vadd.f32 %v1638_v41, %v677_v63  ;;  %v737_v16 = vmax.f32 %v1677_v12, %v1714_v62  ;;  %v745_v18 = vmax.f32 %v1680_v13, %v1718_v4 }
  0xf4   : > { %v766_v14 = vpack.c.bf16 %v760_v1, %v759_v46  ;;  %v758_v15 = vmax.f32 %v750_v2, 0.0  ;;  %v1738_v20 = vadd.f32 %v1638_v41, %v693_v3  ;;  %v1741_v21 = vmul.f32 %v1632_v35, %v579_v5 }
  0xf5   : > { %v1733_v17 = vmax.f32 %v739_v60, %v747_v9  ;;  %v740_v26 = vmax.f32 %v1688_v23, %v1729_v10  ;;  %v1392_v60 = vld [vmem:[%s1615_s23 + $0x4] sm:$0x7]  ;;  %v753_v23 = vmax.f32 %v737_v16, %v745_v18 }
  0xf6   : > { %v813_v22 = vshrl.u32 %v766_v14, 16  ;;  %v818_v24 = vrot.slane %v766_v14, 5  ;;  %v821_v25 = vrot.slane %v766_v14, 6  ;;  %v928_v27 = vrot.slane %v766_v14, 4 }
  0xf7   : > { %v930_v28 = vshll.u32 %v766_v14, 16  ;;  %v1020_v29 = vrot.slane %v766_v14, 1  ;;  %v1751_v30 = vpack.c.bf16 %v758_v15, %v757_v11  ;;  %v1023_v36 = vrot.slane %v766_v14, 2 }
  0xf8   : > { %v815_v32 = vrot.slane %v813_v22, 4  ;;  %v820_v33 = vrot.slane %v813_v22, 5  ;;  %v1022_v34 = vrot.slane %v813_v22, 1 }
  0xf9   : > { %v932_v37 = vrot.slane %v930_v28, 5  ;;  %v934_v38 = vrot.slane %v930_v28, 6  ;;  %v1025_v40 = vsel %vm1745_vm8, %v813_v22, %v1020_v29  ;;  %v1114_v42 = vrot.slane %v930_v28, 1 }
  0xfa   : > { %v823_v43 = vsel %vm1745_vm8, %v815_v32, %v818_v24  ;;  %v1028_v44 = vsel %vm786_vm4, %v1025_v40, %v1022_v34  ;;  %v1116_v45 = vrot.slane %v930_v28, 2  ;;  %v776_v46 = vshrl.u32 %v1751_v30, 16 }
  0xfb   : > { %v826_v47 = vsel %vm786_vm4, %v823_v43, %v820_v33  ;;  %v936_v48 = vsel %vm1745_vm8, %v928_v27, %v932_v37  ;;  %v1030_v49 = vsel %vm1755_vm9, %v1028_v44, %v1023_v36  ;;  %v1118_v50 = vsel %vm1745_vm8, %v766_v14, %v1114_v42  ;;  %v1384_v14 = vld [vmem:[%s1610_s20 + $0x4] sm:$0x7]  ;;  %v1368_v27 = vld [vmem:[%s1592_s14 + $0x8] sm:$0x7] }
  0xfc   : > { %v828_v51 = vsel %vm1755_vm9, %v826_v47, %v821_v25  ;;  %v939_v52 = vsel %vm786_vm4, %v936_v48, %v818_v24  ;;  %v1032_v54 = vshrl.u32 %v1030_v49, 16  ;;  %v1035_v56 = vshll.u32 %v1030_v49, 16  ;;  %v643_v49 = vpop.f32.mrf.mxu1 }
  0xfd   : > { %v830_v57 = vshrl.u32 %v828_v51, 16  ;;  %v833_v58 = vshll.u32 %v828_v51, 16  ;;  %v941_v55 = vsel %vm1755_vm9, %v939_v52, %v934_v38  ;;  %v1121_v59 = vsel %vm786_vm4, %v1118_v50, %v1020_v29 }
  0xfe   : > { %v943_v61 = vsel %vm795_vm6, %v941_v55, 0  ;;  %v1034_v63 = vrot.slane %v1032_v54, 7  ;;  %v1123_v0 = vsel %vm1755_vm9, %v1121_v59, %v1116_v45  ;;  %v778_v1 = vrot.slane %v776_v46, 4 }
  0xff   : > { %v832_v2 = vrot.slane %v830_v57, 7  ;;  %v947_v3 = vsel %vm1595_vm3, %v943_v61, %v1376_v53  ;;  %v1125_v5 = vsel %vm795_vm6, %v1123_v0, 0  ;;  %v781_v9 = vrot.slane %v1751_v30, 5 }
 0x100   : > { %1377 = vst [vmem:[%s1605_s17 + $0x8] sm:$0x7] %v947_v3  ;;  %v1037_v11 = vor.u32 %v1035_v56, %v1034_v63  ;;  %v1129_v15 = vsel %vm1595_vm3, %v1125_v5, %v1392_v60  ;;  %v783_v22 = vrot.slane %v776_v46, 5  ;;  %v784_v24 = vrot.slane %v1751_v30, 6  ;;  %v1366_v63 = vld [vmem:[%s1592_s14 + $0x4] sm:$0x7] }
 0x101   : > { %v835_v25 = vor.u32 %v833_v58, %v832_v2  ;;  %1393 = vst [vmem:[%s1615_s23 + $0x4] sm:$0x7] %v1129_v15  ;;  %v789_v28 = vsel %vm1745_vm8, %v778_v1, %v781_v9  ;;  %v905_v29 = vrot.slane %v1751_v30, 4  ;;  %v907_v32 = vshll.u32 %v1751_v30, 16  ;;  %v1374_v58 = vld [vmem:[%s1605_s17 + $0x4] sm:$0x7] }
 0x102   : > { %v1039_v33 = vsel %vm1745_vm8, 0, %v1037_v11  ;;  %v793_v34 = vsel %vm786_vm4, %v789_v28, %v783_v22  ;;  %v996_v36 = vrot.slane %v1751_v30, 1  ;;  %v998_v37 = vrot.slane %v776_v46, 1  ;;  %v1111_v11 = vld [vmem:[%s1615_s23] sm:$0x7] }
 0x103   : > { %v837_v38 = vsel %vm1745_vm8, 0, %v835_v25  ;;  %v1042_v40 = vsel %vm1595_vm3, %v1039_v33, %v1384_v14  ;;  %v798_v42 = vsel %vm1755_vm9, %v793_v34, %v784_v24  ;;  %v909_v43 = vrot.slane %v907_v32, 5  ;;  %v1016_v28 = vld [vmem:[%s1610_s20] sm:$0x7] }
 0x104   : > { %v840_v44 = vsel %vm1595_vm3, %v837_v38, %v1368_v27  ;;  %1385 = vst [vmem:[%s1610_s20 + $0x4] sm:$0x7] %v1042_v40  ;;  %v800_v45 = vshrl.u32 %v798_v42, 16  ;;  %v911_v47 = vrot.slane %v907_v32, 6  ;;  %v714_v48 = vadd.f32 %v1638_v41, %v1741_v21 }
 0x105   : > { %1369 = vst [vmem:[%s1592_s14 + $0x8] sm:$0x7] %v840_v44  ;;  %v913_v50 = vsel %vm1745_vm8, %v905_v29, %v909_v43  ;;  %v999_v51 = vrot.slane %v1751_v30, 2  ;;  %v1001_v52 = vsel %vm1745_vm8, %v776_v46, %v996_v36  ;;  %v1098_v53 = vrot.slane %v907_v32, 1 }
 0x106   : > { %v802_v54 = vrot.slane %v800_v45, 7  ;;  %v803_v56 = vshll.u32 %v798_v42, 16  ;;  %v916_v57 = vsel %vm786_vm4, %v913_v50, %v781_v9  ;;  %v1004_v21 = vsel %vm786_vm4, %v1001_v52, %v998_v37 }
 0x107   : > { %v918_v55 = vsel %vm1755_vm9, %v916_v57, %v911_v47  ;;  %v1006_v59 = vsel %vm1755_vm9, %v1004_v21, %v999_v51  ;;  %v1102_v46 = vsel %vm1745_vm8, %v1751_v30, %v1098_v53  ;;  %v691_v60 = vmul.f32 %v1632_v35, %v643_v49 }
 0x108   : > { %v805_v61 = vor.u32 %v803_v56, %v802_v54  ;;  %v922_v0 = vsel %vm795_vm6, %v918_v55, 0  ;;  %v1008_v1 = vshrl.u32 %v1006_v59, 16  ;;  %v1100_v2 = vrot.slane %v907_v32, 2 }
 0x109   : > { %v926_v3 = vsel %vm1595_vm3, %v922_v0, %v1374_v58  ;;  %v1011_v5 = vshll.u32 %v1006_v59, 16  ;;  %v1105_v9 = vsel %vm786_vm4, %v1102_v46, %v996_v36  ;;  %v748_v30 = vmax.f32 %v1699_v39, %v1738_v20  ;;  %v1380_v58 = vld [vmem:[%s1605_s17 + $0x10] sm:$0x7] }
 0x10a   : > { %v807_v35 = vsel %vm1745_vm8, 0, %v805_v61  ;;  %1375 = vst [vmem:[%s1605_s17 + $0x4] sm:$0x7] %v926_v3  ;;  %v1010_v14 = vrot.slane %v1008_v1, 7  ;;  %v1107_v15 = vsel %vm1755_vm9, %v1105_v9, %v1100_v2  ;;  %v738_v22 = vmax.f32 %v1722_v6, %v714_v48 }
 0x10b   : > { %v810_v24 = vsel %vm1595_vm3, %v807_v35, %v1366_v63  ;;  %v1109_v25 = vsel %vm795_vm6, %v1107_v15, 0  ;;  %v756_v39 = vmax.f32 %v740_v26, %v748_v30  ;;  %v730_v20 = vadd.f32 %v1638_v41, %v691_v60  ;;  %v1396_v63 = vld [vmem:[%s1615_s23 + $0xc] sm:$0x7] }
 0x10c   : > { %1367 = vst [vmem:[%s1592_s14 + $0x4] sm:$0x7] %v810_v24  ;;  %v1013_v27 = vor.u32 %v1011_v5, %v1010_v14  ;;  %v1112_v29 = vsel %vm1595_vm3, %v1109_v25, %v1111_v11  ;;  %v763_v6 = vmax.f32 %v1733_v17, 0.0  ;;  %v761_v17 = vmax.f32 %v753_v23, 0.0  ;;  %v1388_v14 = vld [vmem:[%s1610_s20 + $0xc] sm:$0x7] }
 0x10d   : > { %1113 = vst [vmem:[%s1615_s23] sm:$0x7] %v1112_v29  ;;  %v764_v10 = vmax.f32 %v756_v39, 0.0  ;;  %v746_v26 = vmax.f32 %v1725_v7, %v730_v20  ;;  %v1372_v39 = vld [vmem:[%s1592_s14 + $0x10] sm:$0x7] }
 0x10e   : > { %v1015_v41 = vsel %vm1745_vm8, 0, %v1013_v27 }
 0x10f   : > { %v1017_v32 = vsel %vm1595_vm3, %v1015_v41, %v1016_v28  ;;  %v768_v33 = vpack.c.bf16 %v764_v10, %v763_v6  ;;  %v754_v34 = vmax.f32 %v738_v22, %v746_v26 }
 0x110   : > { %1018 = vst [vmem:[%s1610_s20] sm:$0x7] %v1017_v32 }
 0x111   : > { %v873_v36 = vshrl.u32 %v768_v33, 16  ;;  %v878_v37 = vrot.slane %v768_v33, 5  ;;  %v881_v13 = vrot.slane %v768_v33, 6  ;;  %v970_v4 = vrot.slane %v768_v33, 4 }
 0x112   : > { %v972_v38 = vshll.u32 %v768_v33, 16  ;;  %v1070_v12 = vrot.slane %v768_v33, 1  ;;  %v762_v62 = vmax.f32 %v754_v34, 0.0  ;;  %v1073_v40 = vrot.slane %v768_v33, 2 }
 0x113   : > { %v875_v16 = vrot.slane %v873_v36, 4  ;;  %v880_v18 = vrot.slane %v873_v36, 5  ;;  %v1072_v7 = vrot.slane %v873_v36, 1 }
 0x114   : > { %v974_v42 = vrot.slane %v972_v38, 5  ;;  %v976_v43 = vrot.slane %v972_v38, 6  ;;  %v1075_v44 = vsel %vm1745_vm8, %v873_v36, %v1070_v12  ;;  %v1148_v45 = vrot.slane %v972_v38, 1 }
 0x115   : > { %v883_v47 = vsel %vm1745_vm8, %v875_v16, %v878_v37  ;;  %v1078_v48 = vsel %vm786_vm4, %v1075_v44, %v1072_v7  ;;  %v1150_v49 = vrot.slane %v972_v38, 2  ;;  %v1874_v50 = vpack.c.bf16 %v762_v62, %v761_v17  ;;  %v1378_v62 = vld [vmem:[%s1605_s17 + $0xc] sm:$0x7] }
 0x116   : > { %v886_v51 = vsel %vm786_vm4, %v883_v47, %v880_v18  ;;  %v978_v52 = vsel %vm1745_vm8, %v970_v4, %v974_v42  ;;  %v1080_v53 = vsel %vm1755_vm9, %v1078_v48, %v1073_v40  ;;  %v1152_v54 = vsel %vm1745_vm8, %v768_v33, %v1148_v45 }
 0x117   : > { %v888_v56 = vsel %vm1755_vm9, %v886_v51, %v881_v13  ;;  %v981_v57 = vsel %vm786_vm4, %v978_v52, %v878_v37  ;;  %v1082_v21 = vshrl.u32 %v1080_v53, 16  ;;  %v1085_v55 = vshll.u32 %v1080_v53, 16  ;;  %v1370_v51 = vld [vmem:[%s1592_s14 + $0xc] sm:$0x7] }
 0x118   : > { %v890_v59 = vshrl.u32 %v888_v56, 16  ;;  %v893_v46 = vshll.u32 %v888_v56, 16  ;;  %v983_v60 = vsel %vm1755_vm9, %v981_v57, %v976_v43  ;;  %v1155_v61 = vsel %vm786_vm4, %v1152_v54, %v1070_v12  ;;  %v1394_v54 = vld [vmem:[%s1615_s23 + $0x8] sm:$0x7] }
 0x119   : > { %v985_v0 = vsel %vm795_vm6, %v983_v60, 0  ;;  %v1084_v1 = vrot.slane %v1082_v21, 7  ;;  %v1157_v2 = vsel %vm1755_vm9, %v1155_v61, %v1150_v49  ;;  %v843_v3 = vshrl.u32 %v1874_v50, 16 }
 0x11a   : > { %v892_v5 = vrot.slane %v890_v59, 7  ;;  %v989_v9 = vsel %vm1595_vm3, %v985_v0, %v1380_v58  ;;  %v1159_v11 = vsel %vm795_vm6, %v1157_v2, 0  ;;  %v848_v30 = vrot.slane %v1874_v50, 5 }
 0x11b   : > { %1381 = vst [vmem:[%s1605_s17 + $0x10] sm:$0x7] %v989_v9  ;;  %v1087_v35 = vor.u32 %v1085_v55, %v1084_v1  ;;  %v1163_v15 = vsel %vm1595_vm3, %v1159_v11, %v1396_v63  ;;  %v845_v22 = vrot.slane %v843_v3, 4  ;;  %v850_v24 = vrot.slane %v843_v3, 5 }
 0x11c   : > { %v895_v25 = vor.u32 %v893_v46, %v892_v5  ;;  %1397 = vst [vmem:[%s1615_s23 + $0xc] sm:$0x7] %v1163_v15  ;;  %v851_v20 = vrot.slane %v1874_v50, 6  ;;  %v949_v27 = vrot.slane %v1874_v50, 4  ;;  %v951_v28 = vshll.u32 %v1874_v50, 16 }
 0x11d   : > { %v1089_v29 = vsel %vm1745_vm8, 0, %v1087_v35  ;;  %v853_v6 = vsel %vm1745_vm8, %v845_v22, %v848_v30  ;;  %v1045_v23 = vrot.slane %v1874_v50, 1  ;;  %v1047_v10 = vrot.slane %v843_v3, 1  ;;  %v1386_v46 = vld [vmem:[%s1610_s20 + $0x8] sm:$0x7] }
 0x11e   : > { %v897_v26 = vsel %vm1745_vm8, 0, %v895_v25  ;;  %v1092_v41 = vsel %vm1595_vm3, %v1089_v29, %v1388_v14  ;;  %v856_v32 = vsel %vm786_vm4, %v853_v6, %v850_v24  ;;  %v953_v33 = vrot.slane %v951_v28, 5 }
 0x11f   : > { %v900_v34 = vsel %vm1595_vm3, %v897_v26, %v1372_v39  ;;  %1389 = vst [vmem:[%s1610_s20 + $0xc] sm:$0x7] %v1092_v41  ;;  %v858_v17 = vsel %vm1755_vm9, %v856_v32, %v851_v20  ;;  %v955_v36 = vrot.slane %v951_v28, 6  ;;  %v1048_v4 = vrot.slane %v1874_v50, 2 }
 0x120   : > { %1373 = vst [vmem:[%s1592_s14 + $0x10] sm:$0x7] %v900_v34  ;;  %v860_v37 = vshrl.u32 %v858_v17, 16  ;;  %v957_v13 = vsel %vm1745_vm8, %v949_v27, %v953_v33  ;;  %v1050_v38 = vsel %vm1745_vm8, %v843_v3, %v1045_v23  ;;  %v1131_v18 = vrot.slane %v951_v28, 1 }
 0x121   : > { %v960_v12 = vsel %vm786_vm4, %v957_v13, %v848_v30  ;;  %v1053_v16 = vsel %vm786_vm4, %v1050_v38, %v1047_v10  ;;  %v863_v40 = vshll.u32 %v858_v17, 16  ;;  %v1133_v47 = vrot.slane %v951_v28, 2 }
 0x122   : > { %v862_v7 = vrot.slane %v860_v37, 7  ;;  %v962_v42 = vsel %vm1755_vm9, %v960_v12, %v955_v36  ;;  %v1055_v43 = vsel %vm1755_vm9, %v1053_v16, %v1048_v4  ;;  %v1135_v48 = vsel %vm1745_vm8, %v1874_v50, %v1131_v18 }
 0x123   : > { %v964_v44 = vsel %vm795_vm6, %v962_v42, 0  ;;  %v1057_v45 = vshrl.u32 %v1055_v43, 16  ;;  %v1138_v53 = vsel %vm786_vm4, %v1135_v48, %v1045_v23  ;;  %v1060_v57 = vshll.u32 %v1055_v43, 16 }
 0x124   : > { %v865_v49 = vor.u32 %v863_v40, %v862_v7  ;;  %v968_v52 = vsel %vm1595_vm3, %v964_v44, %v1378_v62  ;;  %v1140_v58 = vsel %vm1755_vm9, %v1138_v53, %v1133_v47 }
 0x125   : > { %1379 = vst [vmem:[%s1605_s17 + $0xc] sm:$0x7] %v968_v52  ;;  %v1059_v56 = vrot.slane %v1057_v45, 7  ;;  %v1142_v21 = vsel %vm795_vm6, %v1140_v58, 0 }
 0x126   : > { %v867_v50 = vsel %vm1745_vm8, 0, %v865_v49  ;;  %v1146_v60 = vsel %vm1595_vm3, %v1142_v21, %v1394_v54 }
 0x127   : > { %v870_v55 = vsel %vm1595_vm3, %v867_v50, %v1370_v51  ;;  %v1062_v59 = vor.u32 %v1060_v57, %v1059_v56  ;;  %1395 = vst [vmem:[%s1615_s23 + $0x8] sm:$0x7] %v1146_v60 }
 0x128   : > { %1371 = vst [vmem:[%s1592_s14 + $0xc] sm:$0x7] %v870_v55 }
 0x129   : > { %v1064_v61 = vsel %vm1745_vm8, 0, %v1062_v59 }
 0x12a   : > { %v1067_v31 = vsel %vm1595_vm3, %v1064_v61, %v1386_v46 }
 0x12b   : > { %1387 = vst [vmem:[%s1610_s20 + $0x8] sm:$0x7] %v1067_v31 }
 0x12c PF: > { %s18_s24 = sadd.s32 1, %s1492_s24  }
 0x12d   : > { %p15_p4 = scmp.ge.s32.totalorder %s18_s24, 4  }
 0x12f   :  { %17 = sbr.rel (!%p15_p4) target bundleno = 1 (0x1), region = 118 }

// kernel: plant_disease_forward.6
= control target key start
LH: loop header
LB: loop body
LE: loop exit
PB: predicated region body
PF: predicated region fallthrough
CT: control target
= control target key end

     0   :  { %s3728_s13 = smov 0   ;;  %s4218_s0 = inlined_call_operand.vmem [shape: bf16[2,3,3,64], index: 0, kind: input, shape index: {}]   ;;  %s4219_s1 = inlined_call_operand.vmem [shape: bf16[2,3,3,64], index: 1, kind: input, shape index: {}]   ;;  %s4220_s2 = inlined_call_operand.vmem [shape: bf16[2,3,3,64], index: 2, kind: input, shape index: {}]   ;;  %s4221_s3 = inlined_call_operand.vmem [shape: bf16[2,3,3,64], index: 3, kind: input, shape index: {}]   ;;  %s4222_s4 = inlined_call_operand.vmem [shape: bf16[9,64,128], index: 4, kind: input, shape index: {}]   ;;  %s4223_s5 = inlined_call_operand.vmem [shape: f32[1,128], index: 5, kind: input, shape index: {}]   ;;  %s4224_s6 = inlined_call_operand.vmem [shape: f32[1,128], index: 6, kind: input, shape index: {}]   ;;  %s4225_s7 = inlined_call_operand.vmem [shape: bf16[2,2,2,128], index: 7, kind: output, shape index: {0}]   ;;  %s4226_s8 = inlined_call_operand.vmem [shape: bf16[2,2,2,128], index: 8, kind: output, shape index: {1}]   ;;  %s4227_s9 = inlined_call_operand.vmem [shape: bf16[2,2,2,128], index: 9, kind: output, shape index: {2}]   ;;  %s4228_s10 = inlined_call_operand.vmem [shape: bf16[2,2,2,128], index: 10, kind: output, shape index: {3}]  }
   0x1 LB: > { %s3167_s14 = sadd.s32 4294967295, %s3667_s13   ;;  %p3171_p0 = scmp.ge.s32.totalorder %s3667_s13, 1  ;;  %s3667_s13 = sphi %s3728_s13, %s21_s13  }
   0x2   : > { %p349_p1 = scmp.lt.s32.totalorder %s3667_s13, 3 }
   0x4   : > { %p350_p2 = pnand %p3171_p0, %p349_p1 }
   0x5   : > { %p413_p3 = scmp.lt.s32.totalorder (!%p350_p2), %s3167_s14, 1 }
   0x6   : > { %353 = sbr.rel (%p350_p2) target bundleno = 332 (0x14c), region = 48 }
   0xb   : > { %v3604_v0 = vld [vmem:[%s4222_s4 + $0x18] sm:$0xff]   ;;  %v3669_v1 = vmov 0.0   ;;  %v3605_v2 = vld [vmem:[%s4222_s4 + $0x10] sm:$0xff]   ;;  %vm3670_vm0 = vmmov 0   ;;  %v472_v3 = vlaneseq  ;;  %s4232_s14 = smov (!%p413_p3, %s3167_s14), 1  ;;  %v3606_v6 = vld [vmem:[%s4222_s4 + $0x8] sm:$0xff]  }
   0xc   : > { %3483 = vmatprep.subr.bf16.mxu0 %v3669_v1  ;;  %3495 = vmatprep.subr.bf16.mxu1 %v3669_v1  ;;  %v3607_v4 = vld [vmem:[%s4222_s4 + $0x38] sm:$0xff]   ;;  %v3609_v5 = vld [vmem:[%s4222_s4 + $0x30] sm:$0xff]   ;;  %s3591_s25 = smul.u32 6, %s4232_s14  ;;  %v3671_v8 = vmov 1935823168   ;;  %v3608_v10 = vld [vmem:[%s4222_s4] sm:$0xff]  }
   0xd   : > { %3484 = vmatpush3.bf16.msra.mxu0 %v3604_v0  ;;  %3491 = vmatprep.mubr.msk.bf16.mxu0 %vm3670_vm0, %v3669_v1  ;;  %v473_v7 = vshrl.u32 %v472_v3, 7  ;;  %v470_v9 = vunpack.c.l.s4 %v3671_v8  ;;  %vm477_vm1 = vcmask 517120   ;;  %v3615_v11 = vld [vmem:[%s4222_s4 + $0x28] sm:$0xff]   ;;  %vm508_vm2 = vcmask 519170   ;;  %v3617_v28 = vld [vmem:[%s4222_s4 + $0x20] sm:$0xff]   ;;  %v3616_v62 = vld [vmem:[%s4222_s4 + $0x58] sm:$0xff]  }
   0xe   : > { %3485 = vmatprep.subr.bf16.mxu0 %v3669_v1  ;;  %3503 = vmatprep.mubr.msk.bf16.mxu1 %vm3670_vm0, %v3669_v1  ;;  %s3769_s30 = scalar_lea.vmem %s4218_s0, %s3591_s25  ;;  %s3774_s15 = scalar_lea.vmem %s4219_s1, %s3591_s25  ;;  %vm702_vm3 = vsmask.f32 256  ;;  %vm703_vm4 = vsmask.f32 1284  ;;  %vm705_vm6 = vsmask.f32 2312 }
   0xf   : > { %3496 = vmatpush3.bf16.msra.mxu1 %v3607_v4  ;;  %s3782_s20 = scalar_lea.vmem %s4220_s2, %s3591_s25  ;;  %v3180_v12 = vld.sshfl [vmem:[%s3769_s30] sm:$0x1 pattern:$0x73625140]  ;;  %v471_v13 = vunpack.c.0.s8 %v470_v9  ;;  %s3793_s23 = scalar_lea.vmem %s4221_s3, %s3591_s25  ;;  %vm704_vm5 = vmor %vm702_vm3, %vm703_vm4  ;;  %vm707_vm8 = vsmask.f32 3340 }
  0x10   : > { %3497 = vmatprep.subr.bf16.mxu1 %v3669_v1  ;;  %v3786_v14 = vld.sshfl [vmem:[%s3769_s30 + $0x2] sm:$0x1 pattern:$0x73625140]  ;;  %vm706_vm7 = vmor %vm704_vm5, %vm705_vm6  ;;  %vm709_vm10 = vsmask.f32 4368 }
  0x11   : > { %3486 = vmatpush3.bf16.msra.mxu0 %v3605_v2  ;;  %v468_v15 = vcombine.low %v3180_v12, %v3786_v14  ;;  %v3796_v16 = vsub.s32 %v471_v13, %v473_v7  ;;  %v3610_v17 = vld [vmem:[%s3774_s15] ss:$0 sps:$4 sm:$0x11]   ;;  %v3611_v18 = vld [vmem:[%s3774_s15 + $0x2] ss:$0 sps:$4 sm:$0x11]   ;;  %vm708_vm9 = vmor %vm706_vm7, %vm707_vm8 }
  0x12   : > { %3487 = vmatprep.subr.bf16.mxu0 %v3669_v1  ;;  %v3182_v19 = vld.sshfl [vmem:[%s3782_s20] sm:$0x1 pattern:$0x73625140]  ;;  %vm710_vm11 = vmor %vm708_vm9, %vm709_vm10  ;;  %vm711_vm12 = vsmask.f32 5396 }
  0x13   : > { %3498 = vmatpush3.bf16.msra.mxu1 %v3609_v5  ;;  %v475_v20 = vrot.slane %v468_v15, %v3796_v16  ;;  %v491_v21 = vrot.slane %v3610_v17, %v3796_v16  ;;  %v498_v22 = vrot.slane %v3611_v18, %v3796_v16  ;;  %v3805_v23 = vld.sshfl [vmem:[%s3782_s20 + $0x2] sm:$0x1 pattern:$0x73625140]  ;;  %vm713_vm13 = vsmask.f32 6424  ;;  %vm712_vm14 = vmor %vm710_vm11, %vm711_vm12 }
  0x14   : > { %3499 = vmatprep.subr.bf16.mxu1 %v3669_v1  ;;  %v528_v24 = vcombine.low %v3182_v19, %v3805_v23  ;;  %v3612_v25 = vld [vmem:[%s3793_s23] ss:$0 sps:$4 sm:$0x11]   ;;  %v3613_v26 = vld [vmem:[%s3793_s23 + $0x2] ss:$0 sps:$4 sm:$0x11]   ;;  %vm714_vm5 = vmor %vm712_vm14, %vm713_vm13 }
  0x15   : > { %3488 = vmatpush3.bf16.msra.mxu0 %v3606_v6  ;;  %478 = vst.msk [vmem:[#allocation2] sm:$0x3] %vm477_vm1, %v475_v20  ;;  %v499_v27 = vcombine.low %v491_v21, %v498_v22  ;;  %v550_v30 = vrot.slane %v3612_v25, %v3796_v16  ;;  %v557_v31 = vrot.slane %v3613_v26, %v3796_v16  ;;  %v3190_v33 = vld.sshfl [vmem:[%s3774_s15] sm:$0x1 pattern:$0x73625140] }
  0x16   : > { %3489 = vmatprep.subr.bf16.mxu0 %v3669_v1  ;;  %v3817_v29 = vrot.slane %v528_v24, %v3796_v16  ;;  %v3826_v35 = vld.sshfl [vmem:[%s3774_s15 + $0x2] sm:$0x1 pattern:$0x73625140]  ;;  %vm715_vm15 = vsmask.f32 7452 }
  0x17   : > { %3500 = vmatpush3.bf16.msra.mxu1 %v3615_v11  ;;  %v506_v32 = vrot.slane %v499_v27, %v3796_v16  ;;  %v558_v34 = vcombine.low %v550_v30, %v557_v31  ;;  %v3192_v36 = vld.sshfl [vmem:[%s3769_s30] sm:$0x11 pattern:$0x75316420]  ;;  %v672_v40 = vcombine.low %v3190_v33, %v3826_v35  ;;  %vm607_vm4 = vcmask 523264   ;;  %vm3837_vm6 = vmor %vm714_vm5, %vm715_vm15  ;;  %v3618_v15 = vld [vmem:[%s4222_s4 + $0x50] sm:$0xff]  }
  0x18   : > { %3501 = vmatprep.subr.bf16.mxu1 %v3669_v1  ;;  %537 = vst.msk [vmem:[#allocation2 + $0x4] sm:$0x3] %vm477_vm1, %v3817_v29  ;;  %v3193_v38 = vld.sshfl [vmem:[%s3769_s30 + $0x2] sm:$0x11 pattern:$0x75316420]  ;;  %v693_v39 = vcombine.high %v3192_v36, %v3192_v36 }
  0x19   : > { %3490 = vmatpush3.bf16.msra.mxu0 %v3608_v10  ;;  %509 = vst.msk [vmem:[#allocation2] sm:$0xc] %vm508_vm2, %v506_v32  ;;  %v565_v37 = vrot.slane %v558_v34, %v3796_v16  ;;  %v701_v41 = vcombine.high %v3193_v38, %v3193_v38  ;;  %v718_v42 = vshrl.u32 %v3192_v36, 16  ;;  %v727_v44 = vshrl.u32 %v3193_v38, 16  ;;  %s3176_s16 = sshll.u32 %s4232_s14, 1 }
  0x1a   : > { %3507 = vmatprep.subr.bf16.mxu0 %v3669_v1  ;;  %v723_v43 = vshll.u32 %v693_v39, 16  ;;  %v3196_v46 = vld.sshfl [vmem:[%s3793_s23] sm:$0x1 pattern:$0x73625140]  ;;  %v679_v53 = vrot.slane %v672_v40, %v3796_v16  ;;  %v3620_v39 = vld [vmem:[%s4222_s4 + $0x48] sm:$0xff]   ;;  %s4183_s18 = scalar_lea.vmem %s4225_s7, %s3176_s16  ;;  %s4193_s24 = scalar_lea.vmem %s4227_s9, %s3176_s16 }
  0x1b   : > { %3502 = vmatpush3.bf16.msra.mxu1 %v3617_v28  ;;  %567 = vst.msk [vmem:[#allocation2 + $0x4] sm:$0xc] %vm508_vm2, %v565_v37  ;;  %v732_v45 = vshll.u32 %v701_v41, 16  ;;  %s4198_s14 = scalar_lea.vmem %s4228_s10, %s3176_s16 }
  0x1c   : > { %3519 = vmatprep.subr.bf16.mxu1 %v3669_v1  ;;  %v3842_v48 = vld.sshfl [vmem:[%s3793_s23 + $0x2] sm:$0x1 pattern:$0x73625140]  ;;  %v3846_v49 = vsel %vm3837_vm6, %v718_v42, %v723_v43 }
  0x1d   : > { %v734_v50 = vsel %vm3837_vm6, %v727_v44, %v732_v45  ;;  %v779_v51 = vcombine.low %v3196_v46, %v3842_v48  ;;  %v3198_v52 = vld.sshfl [vmem:[%s3782_s20] sm:$0x11 pattern:$0x75316420]  ;;  %v735_v54 = vcombine.low %v3846_v49, %v3846_v49  ;;  %v987_v7 = vrot.slane %v3846_v49, %v3796_v16 }
  0x1e   : > { %v736_v55 = vcombine.low %v734_v50, %v734_v50  ;;  %v3199_v56 = vld.sshfl [vmem:[%s3782_s20 + $0x2] sm:$0x11 pattern:$0x75316420]  ;;  %v800_v57 = vcombine.high %v3198_v52, %v3198_v52  ;;  %v810_v60 = vshrl.u32 %v3198_v52, 16  ;;  %v3886_v19 = vrot.slane %v734_v50, %v3796_v16 }
  0x1f   : > { %v3857_v58 = vrot.slane %v779_v51, %v3796_v16  ;;  %v808_v59 = vcombine.high %v3199_v56, %v3199_v56  ;;  %v819_v61 = vshrl.u32 %v3199_v56, 16  ;;  %v743_v63 = vrot.slane %v735_v54, %v3796_v16  ;;  %v3220_v8 = vld.sshfl [vmem:[%s3774_s15] sm:$0x11 pattern:$0x75316420] }
  0x20   : > { %v3864_v0 = vrot.slane %v736_v55, %v3796_v16  ;;  %v815_v2 = vshll.u32 %v800_v57, 16  ;;  %v3221_v11 = vld.sshfl [vmem:[%s3774_s15 + $0x2] sm:$0x11 pattern:$0x75316420]  ;;  %v1016_v12 = vcombine.high %v3220_v8, %v3220_v8  ;;  %v1026_v13 = vshrl.u32 %v3220_v8, 16 }
  0x21   : > { %v824_v4 = vshll.u32 %v808_v59, 16  ;;  %v1035_v20 = vshrl.u32 %v3221_v11, 16  ;;  %v3228_v21 = vld.sshfl [vmem:[%s3793_s23] sm:$0x11 pattern:$0x75316420]  ;;  %v1024_v24 = vcombine.high %v3221_v11, %v3221_v11  ;;  %v995_v50 = vcombine.low %v987_v7, %v3886_v19 }
  0x22   : > { %v3614_v3 = vld [vmem:[#allocation2] sm:$0xff]   ;;  %v751_v5 = vcombine.low %v743_v63, %v3864_v0  ;;  %v817_v6 = vsel %vm3837_vm6, %v810_v60, %v815_v2  ;;  %v1031_v25 = vshll.u32 %v1016_v12, 16  ;;  %v1142_v31 = vcombine.high %v3228_v21, %v3228_v21  ;;  %v3621_v7 = vld [vmem:[%s4222_s4 + $0x78] sm:$0xff]  }
  0x23   : > { %681 = vst.msk [vmem:[#allocation2] sm:$0x3] %vm477_vm1, %v679_v53  ;;  %788 = vst.msk [vmem:[#allocation2 + $0x4] sm:$0x3] %vm477_vm1, %v3857_v58  ;;  %3492 = vmatmul.mubr.msk.bf16.vlgmr.msra.gmra.mxu0 %vm607_vm4, %v3614_v3  ;;  %v826_v9 = vsel %vm3837_vm6, %v819_v61, %v824_v4  ;;  %v827_v10 = vcombine.low %v817_v6, %v817_v6  ;;  %v1113_v26 = vrot.slane %v817_v6, %v3796_v16  ;;  %v3622_v55 = vld [vmem:[%s4222_s4 + $0x40] sm:$0xff]  }
  0x24   : > { %3508 = vmatpush3.bf16.msra.mxu0 %v3616_v62  ;;  %v758_v17 = vrot.slane %v751_v5, %v3796_v16  ;;  %v828_v18 = vcombine.low %v826_v9, %v826_v9  ;;  %3515 = vmatprep.mubr.msk.bf16.mxu0 %vm3670_vm0, %v3669_v1  ;;  %v3229_v27 = vld.sshfl [vmem:[%s3793_s23 + $0x2] sm:$0x11 pattern:$0x75316420]  ;;  %v3898_v30 = vrot.slane %v826_v9, %v3796_v16  ;;  %v1040_v34 = vshll.u32 %v1024_v24, 16 }
  0x25   : > { %3509 = vmatprep.subr.bf16.mxu0 %v3669_v1  ;;  %v835_v22 = vrot.slane %v827_v10, %v3796_v16  ;;  %v1150_v32 = vcombine.high %v3229_v27, %v3229_v27  ;;  %v1033_v33 = vsel %vm3837_vm6, %v1026_v13, %v1031_v25  ;;  %v1152_v36 = vshrl.u32 %v3228_v21, 16  ;;  %v3629_v49 = vld [vmem:[%s3793_s23] ss:$0 sps:$4 sm:$0x11]  }
  0x26   : > { %760 = vst.msk [vmem:[#allocation2] sm:$0xc] %vm508_vm2, %v758_v17  ;;  %v3895_v28 = vrot.slane %v828_v18, %v3796_v16  ;;  %v1161_v37 = vshrl.u32 %v3229_v27, 16  ;;  %v1043_v40 = vcombine.low %v1033_v33, %v1033_v33  ;;  %v1157_v41 = vshll.u32 %v1142_v31, 16 }
  0x27   : > { %v1042_v42 = vsel %vm3837_vm6, %v1035_v20, %v1040_v34  ;;  %v1166_v43 = vshll.u32 %v1150_v32, 16  ;;  %v1121_v51 = vcombine.low %v1113_v26, %v3898_v30  ;;  %v3630_v54 = vld [vmem:[%s3793_s23 + $0x2] ss:$0 sps:$4 sm:$0x11]   ;;  %v1002_v3 = vrot.slane %v995_v50, %v3796_v16  ;;  %v3623_v32 = vld [vmem:[%s4222_s4 + $0x70] sm:$0xff]  }
  0x28   : > { %3510 = vmatpush3.bf16.msra.mxu0 %v3618_v15  ;;  %v843_v38 = vcombine.low %v835_v22, %v3895_v28  ;;  %v1044_v45 = vcombine.low %v1042_v42, %v1042_v42  ;;  %v1051_v46 = vrot.slane %v1043_v40, %v3796_v16  ;;  %v1159_v52 = vsel %vm3837_vm6, %v1152_v36, %v1157_v41  ;;  %v3631_v60 = vld [vmem:[%s3774_s15 + $0x2] ss:$0 sps:$4 sm:$0x11]   ;;  %v3632_v2 = vld [vmem:[%s3774_s15 + $0x4] ss:$0 sps:$4 sm:$0x11]  }
  0x29   : > { %3511 = vmatprep.subr.bf16.mxu0 %v3669_v1  ;;  %v1168_v53 = vsel %vm3837_vm6, %v1161_v37, %v1166_v43  ;;  %v1169_v57 = vcombine.low %v1159_v52, %v1159_v52  ;;  %v3939_v4 = vrot.slane %v1121_v51, %v3796_v16  ;;  %v1325_v5 = vrot.slane %v3629_v49, %v3796_v16  ;;  %v3251_v12 = vld.sshfl [vmem:[%s3769_s30 + $0x4] sm:$0x1 pattern:$0x73625140]  ;;  %v3625_v41 = vld [vmem:[%s4222_s4 + $0x68] sm:$0xff]   ;;  %v3626_v42 = vld [vmem:[%s4222_s4 + $0x98] sm:$0xff]  }
  0x2a   : > { %v3910_v44 = vrot.slane %v843_v38, %v3796_v16  ;;  %v3927_v56 = vrot.slane %v1044_v45, %v3796_v16  ;;  %v1170_v59 = vcombine.low %v1168_v53, %v1168_v53  ;;  %v1332_v6 = vrot.slane %v3630_v54, %v3796_v16  ;;  %v3281_v15 = vld.sshfl [vmem:[%s3769_s30 + $0x4] sm:$0x11 pattern:$0x75316420]  ;;  %v3628_v49 = vld [vmem:[%s4222_s4 + $0x90] sm:$0xff]   ;;  %s4188_s30 = scalar_lea.vmem %s4226_s8, %s3176_s16 }
  0x2b   : > { %v1177_v62 = vrot.slane %v1169_v57, %v3796_v16  ;;  %v1385_v10 = vrot.slane %v3631_v60, %v3796_v16  ;;  %v1392_v11 = vrot.slane %v3632_v2, %v3796_v16  ;;  %v1632_v18 = vcombine.high %v3281_v15, %v3281_v15  ;;  %v3315_v25 = vld.sshfl [vmem:[%s3774_s15 + $0x4] sm:$0x11 pattern:$0x75316420]  ;;  %v3635_v60 = vld [vmem:[%s4222_s4 + $0xb8] sm:$0xff]  }
  0x2c   : > { %852 = vst.msk [vmem:[#allocation2 + $0x4] sm:$0xc] %vm508_vm2, %v3910_v44  ;;  %3512 = vmatpush3.bf16.msra.mxu0 %v3620_v39  ;;  %v1059_v61 = vcombine.low %v1051_v46, %v3927_v56  ;;  %v3934_v63 = vrot.slane %v1170_v59, %v3796_v16  ;;  %v1643_v20 = vshrl.u32 %v3281_v15, 16  ;;  %v1333_v21 = vcombine.low %v1325_v5, %v1332_v6  ;;  %v3627_v46 = vld [vmem:[%s4222_s4 + $0x60] sm:$0xff]  }
  0x2d   : > { %3513 = vmatprep.subr.bf16.mxu0 %v3669_v1  ;;  %v1362_v22 = vcombine.low %v3786_v14, %v3251_v12  ;;  %v1393_v24 = vcombine.low %v1385_v10, %v1392_v11  ;;  %v1648_v26 = vshll.u32 %v1632_v18, 16  ;;  %v1974_v27 = vcombine.high %v3315_v25, %v3315_v25  ;;  %v3277_v39 = vld.sshfl [vmem:[%s3774_s15 + $0x4] sm:$0x1 pattern:$0x73625140] }
  0x2e   : > { %v1066_v8 = vrot.slane %v1059_v61, %v3796_v16  ;;  %v1185_v9 = vcombine.low %v1177_v62, %v3934_v63  ;;  %v1985_v31 = vshrl.u32 %v3315_v25, 16  ;;  %v1340_v34 = vrot.slane %v1333_v21, %v3796_v16  ;;  %v3645_v57 = vld [vmem:[%s3774_s15 + $0x4] ss:$0 sps:$4 sm:$0x11]   ;;  %v3639_v21 = vld [vmem:[%s4222_s4 + $0xa8] sm:$0xff]  }
  0x2f   : > { %v1650_v14 = vsel %vm3837_vm6, %v1643_v20, %v1648_v26  ;;  %v1990_v33 = vshll.u32 %v1974_v27, 16  ;;  %v3975_v36 = vrot.slane %v1362_v22, %v3796_v16  ;;  %v1400_v37 = vrot.slane %v1393_v24, %v3796_v16  ;;  %v3375_v59 = vld.sshfl [vmem:[%s3782_s20 + $0x4] sm:$0x11 pattern:$0x75316420]  ;;  %v3640_v22 = vld [vmem:[%s4222_s4 + $0xd8] sm:$0xff]  }
  0x30   : > { %3514 = vmatpush3.bf16.msra.mxu0 %v3622_v55  ;;  %v3953_v13 = vrot.slane %v1185_v9, %v3796_v16  ;;  %v1652_v38 = vcombine.low %v1650_v14, %v1650_v14  ;;  %v1603_v50 = vcombine.low %v3826_v35, %v3277_v39  ;;  %v1944_v53 = vrot.slane %v1650_v14, %v3796_v16  ;;  %v3644_v55 = vld [vmem:[%s3774_s15 + $0x2] ss:$0 sps:$4 sm:$0x11]   ;;  %v3647_v62 = vld [vmem:[%s3793_s23 + $0x4] ss:$0 sps:$4 sm:$0x11]  }
  0x31   : > { %3531 = vmatprep.subr.bf16.mxu0 %v3669_v1  ;;  %v1992_v40 = vsel %vm3837_vm6, %v1985_v31, %v1990_v33  ;;  %v3646_v61 = vld [vmem:[%s3793_s23 + $0x2] ss:$0 sps:$4 sm:$0x11]   ;;  %v2456_v2 = vcombine.high %v3375_v59, %v3375_v59  ;;  %v2216_v15 = vrot.slane %v3647_v62, %v3796_v16  ;;  %v3642_v14 = vld [vmem:[%s4222_s4 + $0xd0] sm:$0xff]  }
  0x32   : > { %v1666_v43 = vrot.slane %v1652_v38, %v3796_v16  ;;  %v1994_v52 = vcombine.low %v1992_v40, %v1992_v40  ;;  %v4012_v35 = vrot.slane %v1603_v50, %v3796_v16  ;;  %v1945_v5 = vcombine.low %v3886_v19, %v1944_v53  ;;  %v3413_v9 = vld.sshfl [vmem:[%s3793_s23 + $0x4] sm:$0x11 pattern:$0x75316420]  ;;  %v3648_v40 = vld [vmem:[%s4222_s4 + $0xc8] sm:$0xff]  }
  0x33   : > { %v3619_v17 = vld [vmem:[#allocation2] sm:$0xff]   ;;  %v2149_v19 = vrot.slane %v3644_v55, %v3796_v16  ;;  %v2209_v12 = vrot.slane %v3646_v61, %v3796_v16  ;;  %v2798_v20 = vcombine.high %v3413_v9, %v3413_v9 }
  0x34   : > { %1004 = vst.msk [vmem:[#allocation2] sm:$0x3] %vm477_vm1, %v1002_v3  ;;  %1130 = vst.msk [vmem:[#allocation2 + $0x4] sm:$0x3] %vm477_vm1, %v3939_v4  ;;  %3504 = vmatmul.mubr.msk.bf16.vlgmr.msra.gmra.mxu1 %vm607_vm4, %v3619_v17  ;;  %v1667_v51 = vcombine.low %v3864_v0, %v1666_v43  ;;  %v2008_v54 = vrot.slane %v1994_v52, %v3796_v16  ;;  %v4052_v10 = vrot.slane %v1945_v5, %v3796_v16  ;;  %v3654_v52 = vld [vmem:[%s4222_s4 + $0x118] sm:$0xff]   ;;  %v3655_v55 = vld [vmem:[%s4222_s4 + $0xe0] sm:$0xff]  }
  0x35   : > { %1068 = vst.msk [vmem:[#allocation2] sm:$0xc] %vm508_vm2, %v1066_v8  ;;  %1194 = vst.msk [vmem:[#allocation2 + $0x4] sm:$0xc] %vm508_vm2, %v3953_v13  ;;  %3520 = vmatpush3.bf16.msra.mxu1 %v3621_v7  ;;  %3527 = vmatprep.mubr.msk.bf16.mxu1 %vm3670_vm0, %v3669_v1  ;;  %v2467_v7 = vshrl.u32 %v3375_v59, 16  ;;  %v2472_v8 = vshll.u32 %v2456_v2, 16  ;;  %v2217_v27 = vcombine.low %v2209_v12, %v2216_v15 }
  0x36   : > { %3521 = vmatprep.subr.bf16.mxu1 %v3669_v1  ;;  %v4015_v0 = vrot.slane %v1667_v51, %v3796_v16  ;;  %v2009_v6 = vcombine.low %v3927_v56, %v2008_v54  ;;  %v2156_v56 = vrot.slane %v3645_v57, %v3796_v16  ;;  %v3341_v17 = vld.sshfl [vmem:[%s3782_s20 + $0x4] sm:$0x1 pattern:$0x73625140]  ;;  %v3653_v51 = vld [vmem:[%s4222_s4 + $0xe8] sm:$0xff]  }
  0x37   : > { %v4064_v18 = vsel %vm3837_vm6, %v2467_v7, %v2472_v8  ;;  %v2186_v26 = vcombine.low %v3805_v23, %v3341_v17  ;;  %v3371_v38 = vld.sshfl [vmem:[%s3793_s23 + $0x4] sm:$0x1 pattern:$0x73625140] }
  0x38   : > { %v4055_v11 = vrot.slane %v2009_v6, %v3796_v16  ;;  %v2157_v25 = vcombine.low %v2149_v19, %v2156_v56  ;;  %v2476_v31 = vcombine.low %v4064_v18, %v4064_v18  ;;  %v2427_v47 = vcombine.low %v3842_v48, %v3371_v38 }
  0x39   : > { %3522 = vmatpush3.bf16.msra.mxu1 %v3623_v32  ;;  %v2814_v32 = vshll.u32 %v2798_v20, 16  ;;  %v2193_v33 = vrot.slane %v2186_v26, %v3796_v16 }
  0x3a   : > { %3523 = vmatprep.subr.bf16.mxu1 %v3669_v1  ;;  %v2164_v23 = vrot.slane %v2157_v25, %v3796_v16  ;;  %v2434_v48 = vrot.slane %v2427_v47, %v3796_v16 }
  0x3c   : > { %v3624_v45 = vld [vmem:[#allocation2] sm:$0xff]  }
  0x3d   : > { %1312 = vst.msk [vmem:[#allocation2] sm:$0x3] %vm477_vm1, %v3817_v29  ;;  %1371 = vst.msk [vmem:[#allocation2 + $0x4] sm:$0x3] %vm477_vm1, %v3975_v36  ;;  %3516 = vmatmul.mubr.msk.bf16.vlgmr.msra.gmra.mxu0 %vm607_vm4, %v3624_v45  ;;  %3524 = vmatpush3.bf16.msra.mxu1 %v3625_v41  ;;  %v3634_v29 = vld [vmem:[%s4222_s4 + $0x88] sm:$0xff]   ;;  %v3649_v41 = vld [vmem:[%s4222_s4 + $0xf8] sm:$0xff]  }
  0x3e   : > { %1342 = vst.msk [vmem:[#allocation2] sm:$0xc] %vm508_vm2, %v1340_v34  ;;  %1402 = vst.msk [vmem:[#allocation2 + $0x4] sm:$0xc] %vm508_vm2, %v1400_v37  ;;  %3532 = vmatpush3.bf16.msra.mxu0 %v3626_v42  ;;  %3525 = vmatprep.subr.bf16.mxu1 %v3669_v1  ;;  %v2224_v34 = vrot.slane %v2217_v27, %v3796_v16  ;;  %v2490_v37 = vrot.slane %v2476_v31, %v3796_v16 }
  0x3f   : > { %3533 = vmatprep.subr.bf16.mxu0 %v3669_v1  ;;  %3539 = vmatprep.mubr.msk.bf16.mxu0 %vm3670_vm0, %v3669_v1 }
  0x40   : > { %v2491_v43 = vcombine.low %v3895_v28, %v2490_v37 }
  0x41   : > { %3526 = vmatpush3.bf16.msra.mxu1 %v3627_v46  ;;  %v3650_v46 = vld [vmem:[%s4222_s4 + $0xc0] sm:$0xff]  }
  0x42   : > { %3534 = vmatpush3.bf16.msra.mxu0 %v3628_v49  ;;  %3543 = vmatprep.subr.bf16.mxu1 %v3669_v1  ;;  %v2498_v28 = vrot.slane %v2491_v43, %v3796_v16  ;;  %v2768_v49 = vrot.slane %v4064_v18, %v3796_v16 }
  0x43   : > { %3535 = vmatprep.subr.bf16.mxu0 %v3669_v1 }
  0x44   : > { %v2769_v53 = vcombine.low %v3898_v30, %v2768_v49  ;;  %v3431_v49 = vld [vmem:[%s4224_s6] ss:$0 sm:$0xff] }
  0x45   : > { %v3633_v3 = vld [vmem:[#allocation2] sm:$0xff]  }
  0x46   : > { %1520 = vst.msk [vmem:[#allocation2] sm:$0x3] %vm477_vm1, %v3857_v58  ;;  %1612 = vst.msk [vmem:[#allocation2 + $0x4] sm:$0x3] %vm477_vm1, %v4012_v35  ;;  %3528 = vmatmul.mubr.msk.bf16.vlgmr.msra.gmra.mxu1 %vm607_vm4, %v3633_v3  ;;  %3536 = vmatpush3.bf16.msra.mxu0 %v3634_v29  ;;  %v3636_v58 = vld [vmem:[%s4222_s4 + $0x80] sm:$0xff]   ;;  %v2776_v30 = vrot.slane %v2769_v53, %v3796_v16 }
  0x47   : > { %1584 = vst.msk [vmem:[#allocation2] sm:$0xc] %vm508_vm2, %v3910_v44  ;;  %1676 = vst.msk [vmem:[#allocation2 + $0x4] sm:$0xc] %vm508_vm2, %v4015_v0  ;;  %3544 = vmatpush3.bf16.msra.mxu1 %v3635_v60  ;;  %v3637_v44 = vld [vmem:[%s4222_s4 + $0xb0] sm:$0xff]   ;;  %3537 = vmatprep.subr.bf16.mxu0 %v3669_v1 }
  0x48   : > { %3545 = vmatprep.subr.bf16.mxu1 %v3669_v1  ;;  %3551 = vmatprep.mubr.msk.bf16.mxu1 %vm3670_vm0, %v3669_v1 }
  0x4a   : > { %3538 = vmatpush3.bf16.msra.mxu0 %v3636_v58 }
  0x4b   : > { %3546 = vmatpush3.bf16.msra.mxu1 %v3637_v44  ;;  %3555 = vmatprep.subr.bf16.mxu0 %v3669_v1 }
  0x4c   : > { %3547 = vmatprep.subr.bf16.mxu1 %v3669_v1 }
  0x4e   : > { %v3638_v24 = vld [vmem:[#allocation2] sm:$0xff]  }
  0x4f   : > { %1828 = vst.msk [vmem:[#allocation2] sm:$0x3] %vm477_vm1, %v3939_v4  ;;  %1954 = vst.msk [vmem:[#allocation2 + $0x4] sm:$0x3] %vm477_vm1, %v4052_v10  ;;  %3540 = vmatmul.mubr.msk.bf16.vlgmr.msra.gmra.mxu0 %vm607_vm4, %v3638_v24  ;;  %v2809_v4 = vshrl.u32 %v3413_v9, 16  ;;  %3548 = vmatpush3.bf16.msra.mxu1 %v3639_v21 }
  0x50   : > { %1892 = vst.msk [vmem:[#allocation2] sm:$0xc] %vm508_vm2, %v3953_v13  ;;  %2018 = vst.msk [vmem:[#allocation2 + $0x4] sm:$0xc] %vm508_vm2, %v4055_v11  ;;  %3556 = vmatpush3.bf16.msra.mxu0 %v3640_v22  ;;  %v3641_v13 = vld [vmem:[%s4222_s4 + $0xa0] sm:$0xff]   ;;  %3549 = vmatprep.subr.bf16.mxu1 %v3669_v1 }
  0x51   : > { %3557 = vmatprep.subr.bf16.mxu0 %v3669_v1  ;;  %3563 = vmatprep.mubr.msk.bf16.mxu0 %vm3670_vm0, %v3669_v1  ;;  %v2816_v39 = vsel %vm3837_vm6, %v2809_v4, %v2814_v32 }
  0x52   : > { %v2818_v45 = vcombine.low %v2816_v39, %v2816_v39 }
  0x53   : > { %3550 = vmatpush3.bf16.msra.mxu1 %v3641_v13 }
  0x54   : > { %3558 = vmatpush3.bf16.msra.mxu0 %v3642_v14  ;;  %3567 = vmatprep.subr.bf16.mxu1 %v3669_v1  ;;  %v2832_v50 = vrot.slane %v2818_v45, %v3796_v16 }
  0x55   : > { %3559 = vmatprep.subr.bf16.mxu0 %v3669_v1 }
  0x56   : > { %v2833_v54 = vcombine.low %v3934_v63, %v2832_v50 }
  0x57   : > { %v3643_v42 = vld [vmem:[#allocation2] sm:$0xff]  }
  0x58   : > { %2136 = vst.msk [vmem:[#allocation2] sm:$0x3] %vm477_vm1, %v3975_v36  ;;  %2195 = vst.msk [vmem:[#allocation2 + $0x4] sm:$0x3] %vm477_vm1, %v2193_v33  ;;  %3552 = vmatmul.mubr.msk.bf16.vlgmr.msra.gmra.mxu1 %vm607_vm4, %v3643_v42  ;;  %3560 = vmatpush3.bf16.msra.mxu0 %v3648_v40  ;;  %v3651_v36 = vld [vmem:[%s4222_s4 + $0xf0] sm:$0xff]   ;;  %v2840_v63 = vrot.slane %v2833_v54, %v3796_v16  ;;  %v3659_v16 = vld [vmem:[%s4222_s4 + $0x100] sm:$0xff]  }
  0x59   : > { %2166 = vst.msk [vmem:[#allocation2] sm:$0xc] %vm508_vm2, %v2164_v23  ;;  %2226 = vst.msk [vmem:[#allocation2 + $0x4] sm:$0xc] %vm508_vm2, %v2224_v34  ;;  %3568 = vmatpush3.bf16.msra.mxu1 %v3649_v41  ;;  %3561 = vmatprep.subr.bf16.mxu0 %v3669_v1 }
  0x5a   : > { %3569 = vmatprep.subr.bf16.mxu1 %v3669_v1  ;;  %3575 = vmatprep.mubr.msk.bf16.mxu1 %vm3670_vm0, %v3669_v1 }
  0x5c   : > { %3562 = vmatpush3.bf16.msra.mxu0 %v3650_v46 }
  0x5d   : > { %3570 = vmatpush3.bf16.msra.mxu1 %v3651_v36  ;;  %3579 = vmatprep.subr.bf16.mxu0 %v3669_v1  ;;  %v3430_v36 = vld [vmem:[%s4223_s5] ss:$0 sm:$0xff] }
  0x5e   : > { %3571 = vmatprep.subr.bf16.mxu1 %v3669_v1 }
  0x60   : > { %v3652_v29 = vld [vmem:[#allocation2] sm:$0xff]  }
  0x61   : > { %2344 = vst.msk [vmem:[#allocation2] sm:$0x3] %vm477_vm1, %v4012_v35  ;;  %2436 = vst.msk [vmem:[#allocation2 + $0x4] sm:$0x3] %vm477_vm1, %v2434_v48  ;;  %3564 = vmatmul.mubr.msk.bf16.vlgmr.msra.gmra.mxu0 %vm607_vm4, %v3652_v29  ;;  %3572 = vmatpush3.bf16.msra.mxu1 %v3653_v51  ;;  %v3656_v35 = vld [vmem:[%s4222_s4 + $0x110] sm:$0xff]  }
  0x62   : > { %2408 = vst.msk [vmem:[#allocation2] sm:$0xc] %vm508_vm2, %v4015_v0  ;;  %2500 = vst.msk [vmem:[#allocation2 + $0x4] sm:$0xc] %vm508_vm2, %v2498_v28  ;;  %3580 = vmatpush3.bf16.msra.mxu0 %v3654_v52  ;;  %3573 = vmatprep.subr.bf16.mxu1 %v3669_v1  ;;  %v3658_v0 = vld [vmem:[%s4222_s4 + $0x108] sm:$0xff]  }
  0x63   : > { %3581 = vmatprep.subr.bf16.mxu0 %v3669_v1  ;;  %3587 = vmatprep.mubr.msk.bf16.mxu0 %vm3670_vm0, %v3669_v1  ;;  %vm2968_vm0 = vcmask 1040384  }
  0x65   : > { %3574 = vmatpush3.bf16.msra.mxu1 %v3655_v55 }
  0x66   : > { %3582 = vmatpush3.bf16.msra.mxu0 %v3656_v35 }
  0x67   : > { %3583 = vmatprep.subr.bf16.mxu0 %v3669_v1 }
  0x69   : > { %v3657_v57 = vld [vmem:[#allocation2] sm:$0xff]  }
  0x6a   : > { %2652 = vst.msk [vmem:[#allocation2] sm:$0x3] %vm477_vm1, %v4052_v10  ;;  %2778 = vst.msk [vmem:[#allocation2 + $0x4] sm:$0x3] %vm477_vm1, %v2776_v30  ;;  %3576 = vmatmul.mubr.msk.bf16.vlgmr.msra.gmra.mxu1 %vm607_vm4, %v3657_v57  ;;  %3584 = vmatpush3.bf16.msra.mxu0 %v3658_v0 }
  0x6b   : > { %2716 = vst.msk [vmem:[#allocation2] sm:$0xc] %vm508_vm2, %v4055_v11  ;;  %2842 = vst.msk [vmem:[#allocation2 + $0x4] sm:$0xc] %vm508_vm2, %v2840_v63  ;;  %3585 = vmatprep.subr.bf16.mxu0 %v3669_v1  ;;  %v3672_v1 = vmov 0  }
  0x6c   : > { %2964 = vst [vmem:[%s4183_s18] sm:$0x1] %v3672_v1  ;;  %2973 = vst [vmem:[%s4188_s30] sm:$0x1] %v3672_v1 }
  0x6d   : > { %3434 = vst [vmem:[%s4193_s24 + $0x1] sm:$0x1] %v3672_v1  ;;  %3435 = vst [vmem:[%s4198_s14 + $0x1] sm:$0x1] %v3672_v1 }
  0x6e   : > { %3586 = vmatpush3.bf16.msra.mxu0 %v3659_v16  ;;  %vm2969_vm1 = vmand %vm2968_vm0, %vm702_vm3 }
  0x72   : > { %v3660_v59 = vld [vmem:[#allocation2] sm:$0xff]  }
  0x73   : > { %3588 = vmatmul.mubr.msk.bf16.vlgmr.msra.gmra.mxu0 %vm607_vm4, %v3660_v59 }
  0xe3   : > { %v645_v60 = vpop.f32.mrf.mxu0 }
  0xe5   : > { %v3493_v61 = vpop.f32.mrf.mxu0 }
  0xe7   : > { %v648_v62 = vpop.f32.mrf.mxu0 }
  0xe9   : > { %v3494_v2 = vpop.f32.mrf.mxu0 }
  0xf4   : > { %v930_v3 = vpop.f32.mrf.mxu1 }
  0xf5   : > { %v939_v27 = vadd.f32 %v930_v3, %v645_v60 }
  0xf6   : > { %v3505_v5 = vpop.f32.mrf.mxu1 }
  0xf8   : > { %v933_v6 = vpop.f32.mrf.mxu1 }
  0xf9   : > { %v940_v13 = vadd.f32 %v933_v6, %v648_v62 }
  0xfa   : > { %v3506_v7 = vpop.f32.mrf.mxu1 }
  0xfd   : > { %v1272_v8 = vpop.f32.mrf.mxu0 }
  0xfe   : > { %v1281_v4 = vadd.f32 %v1272_v8, %v939_v27 }
  0xff   : > { %v3517_v58 = vpop.f32.mrf.mxu0 }
 0x101   : > { %v1275_v44 = vpop.f32.mrf.mxu0 }
 0x102   : > { %v1282_v33 = vadd.f32 %v1275_v44, %v940_v13 }
 0x103   : > { %v3518_v9 = vpop.f32.mrf.mxu0 }
 0x106   : > { %v1480_v19 = vpop.f32.mrf.mxu1 }
 0x107   : > { %v1489_v14 = vadd.f32 %v1480_v19, %v1281_v4 }
 0x108   : > { %v3529_v56 = vpop.f32.mrf.mxu1 }
 0x10a   : > { %v1483_v10 = vpop.f32.mrf.mxu1 }
 0x10b   : > { %v1490_v38 = vadd.f32 %v1483_v10, %v1282_v33 }
 0x10c   : > { %v3530_v11 = vpop.f32.mrf.mxu1 }
 0x10f   : > { %v1754_v12 = vpop.f32.mrf.mxu0 }
 0x110   : > { %v1763_v34 = vadd.f32 %v1754_v12, %v1489_v14 }
 0x111   : > { %v3541_v15 = vpop.f32.mrf.mxu0 }
 0x113   : > { %v1757_v17 = vpop.f32.mrf.mxu0 }
 0x114   : > { %v1764_v41 = vadd.f32 %v1757_v17, %v1490_v38 }
 0x115   : > { %v3542_v18 = vpop.f32.mrf.mxu0 }
 0x118   : > { %v2096_v20 = vpop.f32.mrf.mxu1 }
 0x119   : > { %v2105_v39 = vadd.f32 %v2096_v20, %v1763_v34 }
 0x11a   : > { %v3553_v21 = vpop.f32.mrf.mxu1 }
 0x11c   : > { %v2099_v22 = vpop.f32.mrf.mxu1 }
 0x11d   : > { %v2106_v43 = vadd.f32 %v2099_v22, %v1764_v41 }
 0x11e   : > { %v3554_v24 = vpop.f32.mrf.mxu1 }
 0x121   : > { %v2304_v25 = vpop.f32.mrf.mxu0 }
 0x122   : > { %v2313_v42 = vadd.f32 %v2304_v25, %v2105_v39 }
 0x123   : > { %v3565_v26 = vpop.f32.mrf.mxu0 }
 0x125   : > { %v2307_v31 = vpop.f32.mrf.mxu0 }
 0x126   : > { %v2314_v48 = vadd.f32 %v2307_v31, %v2106_v43 }
 0x127   : > { %v3566_v32 = vpop.f32.mrf.mxu0 }
 0x12a   : > { %v2578_v23 = vpop.f32.mrf.mxu1 }
 0x12b   : > { %v2587_v45 = vadd.f32 %v2578_v23, %v2313_v42 }
 0x12c   : > { %v3577_v37 = vpop.f32.mrf.mxu1 }
 0x12e   : > { %v2581_v40 = vpop.f32.mrf.mxu1 }
 0x12f   : > { %v2588_v51 = vadd.f32 %v2581_v40, %v2314_v48 }
 0x130   : > { %v3578_v47 = vpop.f32.mrf.mxu1 }
 0x133   : > { %v2920_v46 = vpop.f32.mrf.mxu0 }
 0x134   : > { %v2929_v28 = vadd.f32 %v2920_v46, %v2587_v45 }
 0x135   : > { %v3589_v50 = vpop.f32.mrf.mxu0 }
 0x136   : > { %v2942_v52 = vmul.f32 %v3430_v36, %v2929_v28 }
 0x137   : > { %v2923_v29 = vpop.f32.mrf.mxu0 }
 0x138   : > { %v2951_v53 = vadd.f32 %v3431_v49, %v2942_v52  ;;  %v2930_v54 = vadd.f32 %v2923_v29, %v2588_v51 }
 0x139   : > { %v3590_v55 = vpop.f32.mrf.mxu0 }
 0x13a   : > { %v2943_v35 = vmul.f32 %v3430_v36, %v2930_v54  ;;  %v2954_v30 = vrot.slane %v2951_v53, 4 }
 0x13c   : > { %v2952_v63 = vadd.f32 %v3431_v49, %v2943_v35  ;;  %v2956_v57 = vmax.f32 %v2951_v53, %v2954_v30 }
 0x13e   : > { %v2958_v0 = vrot.slane %v2952_v63, 4 }
 0x140   : > { %v2960_v16 = vmax.f32 %v2952_v63, %v2958_v0 }
 0x142   : > { %v2961_v59 = vmax.f32 %v2956_v57, %v2960_v16 }
 0x144   : > { %v2962_v1 = vmax.f32 %v2961_v59, 0.0 }
 0x146   : > { %v2963_v60 = vpack.c.bf16 %v2962_v1, %v2962_v1 }
 0x148   : > { %v2966_v61 = vrot.slane %v2963_v60, 1  ;;  %v2979_v62 = vsel %vm2969_vm1, 0, %v2963_v60  ;;  %v2983_v2 = vsel %vm2969_vm1, %v2963_v60, 0 }
 0x149   : > { %2980 = vst [vmem:[%s4193_s24] sm:$0x1] %v2979_v62  ;;  %2984 = vst [vmem:[%s4198_s14] sm:$0x1] %v2983_v2 }
 0x14a   : > { %v2970_v3 = vsel %vm2969_vm1, 0, %v2966_v61  ;;  %v2974_v5 = vsel %vm2969_vm1, %v2966_v61, 0 }
 0x14b   : > { %3432 = vst [vmem:[%s4183_s18 + $0x1] sm:$0x1] %v2970_v3  ;;  %3433 = vst [vmem:[%s4188_s30 + $0x1] sm:$0x1] %v2974_v5 }
 0x14c PF: > { %s21_s13 = sadd.s32 1, %s3667_s13  }
 0x14d   : > { %p18_p4 = scmp.ge.s32.totalorder %s21_s13, 4  }
 0x14f   :  { %20 = sbr.rel (!%p18_p4) target bundleno = 1 (0x1), region = 139 }

// kernel: plant_disease_forward.5
= control target key start
LH: loop header
LB: loop body
LE: loop exit
PB: predicated region body
PF: predicated region fallthrough
CT: control target
= control target key end

     0   :  { %s5406_s13 = smov 0   ;;  %s6021_s0 = inlined_call_operand.vmem [shape: bf16[2,5,5,32], index: 0, kind: input, shape index: {}]   ;;  %s6022_s1 = inlined_call_operand.vmem [shape: bf16[2,5,5,32], index: 1, kind: input, shape index: {}]   ;;  %s6023_s2 = inlined_call_operand.vmem [shape: bf16[2,5,5,32], index: 2, kind: input, shape index: {}]   ;;  %s6024_s3 = inlined_call_operand.vmem [shape: bf16[2,5,5,32], index: 3, kind: input, shape index: {}]   ;;  %s6025_s4 = inlined_call_operand.vmem [shape: bf16[9,32,64], index: 4, kind: input, shape index: {}]   ;;  %s6026_s5 = inlined_call_operand.vmem [shape: f32[1,64], index: 5, kind: input, shape index: {}]   ;;  %s6027_s6 = inlined_call_operand.vmem [shape: f32[1,64], index: 6, kind: input, shape index: {}]   ;;  %s6028_s7 = inlined_call_operand.vmem [shape: bf16[2,3,3,64], index: 7, kind: output, shape index: {0}]   ;;  %s6029_s8 = inlined_call_operand.vmem [shape: bf16[2,3,3,64], index: 8, kind: output, shape index: {1}]   ;;  %s6030_s9 = inlined_call_operand.vmem [shape: bf16[2,3,3,64], index: 9, kind: output, shape index: {2}]   ;;  %s6031_s10 = inlined_call_operand.vmem [shape: bf16[2,3,3,64], index: 10, kind: output, shape index: {3}]  }
   0x1 LB: > { %s4740_s14 = sadd.s32 4294967295, %s5348_s13   ;;  %p4744_p0 = scmp.ge.s32.totalorder %s5348_s13, 1  ;;  %s5348_s13 = sphi %s5406_s13, %s21_s13  }
   0x2   : > { %p349_p1 = scmp.lt.s32.totalorder %s5348_s13, 3 }
   0x4   : > { %p350_p2 = pnand %p4744_p0, %p349_p1 }
   0x5   : > { %p417_p3 = scmp.lt.s32.totalorder (!%p350_p2), %s4740_s14, 1 }
   0x6   : > { %353 = sbr.rel (%p350_p2) target bundleno = 405 (0x195), region = 48 }
   0xb   : > { %v5216_v0 = vld [vmem:[%s6025_s4 + $0x8] sm:$0xff]   ;;  %v470_v1 = vlaneseq  ;;  %v5217_v2 = vld [vmem:[%s6025_s4] sm:$0xff]   ;;  %s6041_s14 = smov (!%p417_p3, %s4740_s14), 1  ;;  %v5350_v3 = vmov 1983009808   ;;  %v5426_v6 = vld [vmem:[%s6025_s4 + $0x18] sm:$0xff]  }
   0xc   : > { %5201 = vmatprep.subr.bf16.mxu1 %v5216_v0  ;;  %5093 = vmatprep.subr.bf16.mxu0 %v5216_v0  ;;  %v468_v4 = vunpack.c.l.s4 %v5350_v3  ;;  %s5205_s19 = smul.u32 20, %s6041_s14  ;;  %vm484_vm0 = vcmask 257024   ;;  %vm770_vm1 = vsmask.f32 1280  ;;  %vm771_vm2 = vsmask.f32 3336 }
   0xd   : > { %5203 = vmatpush3.bf16.msra.mxu1 %v5216_v0  ;;  %5094 = vmatpush3.bf16.msra.mxu0 %v5216_v0  ;;  %v471_v5 = vshrl.u32 %v470_v1, 7  ;;  %vm615_vm3 = vcmask 261120   ;;  %vm773_vm4 = vsmask.f32 5392  ;;  %vm775_vm5 = vsmask.f32 7448  ;;  %vm5469_vm6 = vmor %vm770_vm1, %vm771_vm2 }
   0xe   : > { %5202 = vmatprep.subr.bf16.mxu1 %v5217_v2  ;;  %5095 = vmatprep.subr.bf16.mxu0 %v5217_v2  ;;  %v469_v7 = vunpack.c.0.s8 %v468_v4  ;;  %s5431_s24 = scalar_lea.vmem %s6021_s0, %s5205_s19  ;;  %s5438_s27 = scalar_lea.vmem %s6022_s1, %s5205_s19  ;;  %v5238_v24 = vld [vmem:[%s6025_s4 + $0x28] sm:$0xff]   ;;  %vm774_vm7 = vmor %vm5469_vm6, %vm773_vm4  ;;  %v5240_v56 = vld [vmem:[%s6025_s4 + $0x20] sm:$0xff]   ;;  %vm693_vm9 = vcmask 523264   ;;  %vm4408_vm10 = vcmask 517120   ;;  %vm4421_vm12 = vcmask 1040384  }
   0xf   : > { %v5306_v9 = vld.sshfl [vmem:[%s5431_s24] sm:$0xf pattern:$0x76325410]  ;;  %s5446_s30 = scalar_lea.vmem %s6023_s2, %s5205_s19  ;;  %s5455_s15 = scalar_lea.vmem %s6024_s3, %s5205_s19  ;;  %vm5489_vm8 = vmor %vm774_vm7, %vm775_vm5  ;;  %vm4422_vm13 = vsmask.f32 256 }
  0x10   : > { %v5433_v8 = vsub.s32 %v469_v7, %v471_v5  ;;  %v5307_v10 = vld.sshfl [vmem:[%s5431_s24 + $0x8] sm:$0xf pattern:$0x76325410]  ;;  %485 = vst.msk [vmem:[#allocation2] sm:$0xf] %vm484_vm0, %v5306_v9  ;;  %vm5840_vm11 = vmand %vm4408_vm10, %vm770_vm1 }
  0x11   : > { %5204 = vmatpush3.bf16.msra.mxu1 %v5217_v2  ;;  %5096 = vmatpush3.bf16.msra.mxu0 %v5217_v2  ;;  %v5310_v11 = vld.sshfl [vmem:[%s5438_s27] sm:$0xf pattern:$0x76325410]  ;;  %486 = vst.msk [vmem:[#allocation2 + $0x4] sm:$0xf] %vm484_vm0, %v5307_v10  ;;  %vm5946_vm14 = vmand %vm4421_vm12, %vm4422_vm13 }
  0x12   : > { %5105 = vmatprep.subr.bf16.mxu1 %v5426_v6  ;;  %v5311_v12 = vld.sshfl [vmem:[%s5438_s27 + $0x8] sm:$0xf pattern:$0x76325410]  ;;  %5117 = vmatprep.subr.bf16.mxu0 %v5238_v24 }
  0x13   : > { %v5308_v13 = vld.sshfl [vmem:[%s5446_s30] sm:$0xf pattern:$0x76325410]  ;;  %v5508_v9 = vld [vmem:[%s6025_s4 + $0x48] sm:$0xff]  }
  0x14   : > { %v5309_v14 = vld.sshfl [vmem:[%s5446_s30 + $0x8] sm:$0xf pattern:$0x76325410]  ;;  %541 = vst.msk [vmem:[#allocation2 + $0x10] sm:$0xf] %vm484_vm0, %v5308_v13 }
  0x15   : > { %v5314_v15 = vld.sshfl [vmem:[%s5455_s15] sm:$0xf pattern:$0x76325410]  ;;  %542 = vst.msk [vmem:[#allocation2 + $0x14] sm:$0xf] %vm484_vm0, %v5309_v14 }
  0x16   : > { %v5315_v16 = vld.sshfl [vmem:[%s5455_s15 + $0x8] sm:$0xf pattern:$0x76325410] }
  0x17   : > { %v5312_v17 = vld.sshfl [vmem:[%s5438_s27] sm:$0xf pattern:$0x76325410] }
  0x18   : > { %v5313_v18 = vld.sshfl [vmem:[%s5438_s27 + $0x8] sm:$0xf pattern:$0x76325410]  ;;  %v5220_v25 = vld [vmem:[#allocation2] sm:$0xff]  }
  0x19   : > { %v4763_v19 = vld.sshfl [vmem:[%s5431_s24] sm:$0x13 pattern:$0x76325410]  ;;  %728 = vst.msk [vmem:[#allocation2] sm:$0xf] %vm484_vm0, %v5310_v11  ;;  %5097 = vmatprep.mubr.msk.bf16.mxu0 %vm615_vm3, %v5220_v25 }
  0x1a   : > { %v4764_v20 = vld.sshfl [vmem:[%s5431_s24 + $0x4] sm:$0x13 pattern:$0x76325410]  ;;  %v745_v21 = vcombine.high %v4763_v19, %v4763_v19  ;;  %v778_v23 = vshrl.u32 %v4763_v19, 16  ;;  %v781_v27 = vshll.u32 %v4763_v19, 16 }
  0x1b   : > { %v753_v26 = vcombine.high %v4764_v20, %v4764_v20  ;;  %729 = vst.msk [vmem:[#allocation2 + $0x4] sm:$0xf] %vm484_vm0, %v5311_v12  ;;  %513 = vst.msk [vmem:[#allocation2 + $0x8] sm:$0xf] %vm484_vm0, %v5312_v17  ;;  %v792_v34 = vshrl.u32 %v4764_v20, 16  ;;  %v795_v37 = vshll.u32 %v4764_v20, 16 }
  0x1c   : > { %514 = vst.msk [vmem:[#allocation2 + $0xc] sm:$0xf] %vm484_vm0, %v5313_v18  ;;  %v4765_v28 = vld.sshfl [vmem:[%s5431_s24 + $0x8] sm:$0x13 pattern:$0x76325410] }
  0x1d   : > { %v780_v29 = vrot.slane %v778_v23, 6  ;;  %v787_v30 = vshll.u32 %v745_v21, 16  ;;  %v4766_v31 = vld.sshfl [vmem:[%s5431_s24 + $0xc] sm:$0x13 pattern:$0x76325410]  ;;  %v761_v32 = vcombine.high %v4765_v28, %v4765_v28 }
  0x1e   : > { %v783_v33 = vrot.slane %v781_v27, 7  ;;  %v769_v35 = vcombine.high %v4766_v31, %v4766_v31  ;;  %v801_v38 = vshll.u32 %v753_v26, 16  ;;  %v5225_v39 = vld [vmem:[#allocation2 + $0x10] sm:$0xff]   ;;  %v794_v41 = vrot.slane %v792_v34, 6 }
  0x1f   : > { %v789_v36 = vrot.slane %v787_v30, 7  ;;  %879 = vst.msk [vmem:[#allocation2 + $0x10] sm:$0xf] %vm484_vm0, %v5314_v15  ;;  %880 = vst.msk [vmem:[#allocation2 + $0x14] sm:$0xf] %vm484_vm0, %v5315_v16  ;;  %v797_v43 = vrot.slane %v795_v37, 7  ;;  %5101 = vmatprep.mubr.msk.bf16.mxu1 %vm615_vm3, %v5225_v39 }
  0x20   : > { %v784_v40 = vor.u32 %v783_v33, %v780_v29  ;;  %v803_v44 = vrot.slane %v801_v38, 7  ;;  %v806_v45 = vshrl.u32 %v4765_v28, 16  ;;  %v809_v46 = vshll.u32 %v4765_v28, 16 }
  0x21   : > { %v815_v48 = vshll.u32 %v761_v32, 16  ;;  %v820_v49 = vshrl.u32 %v4766_v31, 16  ;;  %v823_v50 = vshll.u32 %v4766_v31, 16  ;;  %v798_v51 = vor.u32 %v797_v43, %v794_v41 }
  0x22   : > { %v785_v47 = vrot.slane %v784_v40, 2  ;;  %v808_v52 = vrot.slane %v806_v45, 6  ;;  %v811_v53 = vrot.slane %v809_v46, 7  ;;  %v829_v54 = vshll.u32 %v769_v35, 16  ;;  %v5236_v5 = vld [vmem:[#allocation2] sm:$0xff]   ;;  %v5235_v40 = vld [vmem:[%s6025_s4 + $0x10] sm:$0xff]  }
  0x23   : > { %v5316_v55 = vld.sshfl [vmem:[%s5455_s15] sm:$0xf pattern:$0x76325410]  ;;  %v5231_v57 = vld [vmem:[#allocation2 + $0x8] sm:$0xff]   ;;  %v817_v59 = vrot.slane %v815_v48, 7 }
  0x24   : > { %v790_v58 = vsel %vm5489_vm8, %v785_v47, %v789_v36  ;;  %v799_v60 = vrot.slane %v798_v51, 2  ;;  %v812_v61 = vor.u32 %v811_v53, %v808_v52  ;;  %v822_v62 = vrot.slane %v820_v49, 6  ;;  %v5317_v0 = vld.sshfl [vmem:[%s5455_s15 + $0x8] sm:$0xf pattern:$0x76325410]  ;;  %5098 = vmatmul.mubr.msk.bf16.vlgmr.msra.gmra.mxu0 %vm615_vm3, %v5231_v57 }
  0x25   : > { %v825_v63 = vrot.slane %v823_v50, 7  ;;  %v831_v1 = vrot.slane %v829_v54, 7  ;;  %v4789_v7 = vld.sshfl [vmem:[%s5438_s27] sm:$0x13 pattern:$0x76325410]  ;;  %5118 = vmatpush3.bf16.msra.mxu0 %v5238_v24 }
  0x26   : > { %v804_v2 = vsel %vm5489_vm8, %v799_v60, %v803_v44  ;;  %v813_v3 = vrot.slane %v812_v61, 2  ;;  %569 = vst.msk [vmem:[#allocation2 + $0x18] sm:$0xf] %vm484_vm0, %v5316_v55  ;;  %v1274_v12 = vcombine.high %v4789_v7, %v4789_v7  ;;  %v1300_v13 = vshrl.u32 %v4789_v7, 16  ;;  %5119 = vmatprep.subr.bf16.mxu0 %v5240_v56  ;;  %570 = vst.msk [vmem:[#allocation2 + $0x1c] sm:$0xf] %vm484_vm0, %v5317_v0 }
  0x27   : > { %v826_v4 = vor.u32 %v825_v63, %v822_v62  ;;  %v833_v10 = vcombine.low %v790_v58, %v804_v2  ;;  %v4790_v11 = vld.sshfl [vmem:[%s5438_s27 + $0x4] sm:$0x13 pattern:$0x76325410]  ;;  %v1303_v14 = vshll.u32 %v4789_v7, 16 }
  0x28   : > { %v818_v15 = vsel %vm5489_vm8, %v813_v3, %v817_v59  ;;  %v4791_v17 = vld.sshfl [vmem:[%s5438_s27 + $0x8] sm:$0x13 pattern:$0x76325410]  ;;  %v1282_v18 = vcombine.high %v4790_v11, %v4790_v11  ;;  %v1314_v19 = vshrl.u32 %v4790_v11, 16  ;;  %v1302_v23 = vrot.slane %v1300_v13, 6 }
  0x29   : > { %v827_v16 = vrot.slane %v826_v4, 2  ;;  %v840_v20 = vrot.slane %v833_v10, %v5433_v8  ;;  %v4792_v21 = vld.sshfl [vmem:[%s5438_s27 + $0xc] sm:$0x13 pattern:$0x76325410]  ;;  %v1290_v22 = vcombine.high %v4791_v17, %v4791_v17  ;;  %v1305_v24 = vrot.slane %v1303_v14, 7  ;;  %5120 = vmatpush3.bf16.msra.mxu0 %v5240_v56 }
  0x2a   : > { %v1298_v26 = vcombine.high %v4792_v21, %v4792_v21  ;;  %v1309_v27 = vshll.u32 %v1274_v12, 16  ;;  %v1316_v28 = vrot.slane %v1314_v19, 6  ;;  %v1317_v31 = vshll.u32 %v4790_v11, 16  ;;  %5141 = vmatprep.subr.bf16.mxu0 %v5508_v9  ;;  %v5239_v59 = vld [vmem:[%s6025_s4 + $0x38] sm:$0xff]  }
  0x2b   : > { %v832_v25 = vsel %vm5489_vm8, %v827_v16, %v831_v1  ;;  %851 = vst.msk [vmem:[#allocation2 + $0x8] sm:$0xf] %vm484_vm0, %v840_v20  ;;  %1257 = vst.msk [vmem:[#allocation2] sm:$0xf] %vm484_vm0, %v840_v20  ;;  %v1306_v30 = vor.u32 %v1305_v24, %v1302_v23  ;;  %v1323_v32 = vshll.u32 %v1282_v18, 16  ;;  %v1328_v33 = vshrl.u32 %v4791_v17, 16 }
  0x2c   : > { %v841_v29 = vcombine.low %v818_v15, %v832_v25  ;;  %v1331_v34 = vshll.u32 %v4791_v17, 16  ;;  %v1337_v35 = vshll.u32 %v1290_v22, 16  ;;  %v1311_v38 = vrot.slane %v1309_v27, 7  ;;  %v5249_v15 = vld [vmem:[%s6025_s4 + $0x30] sm:$0xff]  }
  0x2d   : > { %v1307_v37 = vrot.slane %v1306_v30, 2  ;;  %v1319_v39 = vrot.slane %v1317_v31, 7  ;;  %v1330_v41 = vrot.slane %v1328_v33, 6  ;;  %v1342_v44 = vshrl.u32 %v4792_v21, 16  ;;  %v5234_v45 = vld [vmem:[#allocation2 + $0x18] sm:$0xff]  }
  0x2e   : > { %v848_v36 = vrot.slane %v841_v29, %v5433_v8  ;;  %v1333_v43 = vrot.slane %v1331_v34, 7  ;;  %v1325_v47 = vrot.slane %v1323_v32, 7  ;;  %v1345_v48 = vshll.u32 %v4792_v21, 16  ;;  %5102 = vmatmul.mubr.msk.bf16.vlgmr.msra.gmra.mxu1 %vm615_vm3, %v5234_v45 }
  0x2f   : > { %v1320_v46 = vor.u32 %v1319_v39, %v1316_v28  ;;  %v1351_v49 = vshll.u32 %v1298_v26, 16  ;;  %v1339_v51 = vrot.slane %v1337_v35, 7  ;;  %v1344_v52 = vrot.slane %v1342_v44, 6  ;;  %5106 = vmatpush3.bf16.msra.mxu1 %v5426_v6  ;;  %5109 = vmatprep.mubr.msk.bf16.mxu1 %vm615_vm3, %v5236_v5  ;;  %v5241_v6 = vld [vmem:[#allocation2 + $0x10] sm:$0xff]  }
  0x30   : > { %852 = vst.msk [vmem:[#allocation2 + $0xc] sm:$0xf] %vm484_vm0, %v848_v36  ;;  %1258 = vst.msk [vmem:[#allocation2 + $0x4] sm:$0xf] %vm484_vm0, %v848_v36  ;;  %v1334_v50 = vor.u32 %v1333_v43, %v1330_v41  ;;  %v1312_v54 = vsel %vm5489_vm8, %v1307_v37, %v1311_v38  ;;  %v1347_v56 = vrot.slane %v1345_v48, 7  ;;  %5107 = vmatprep.subr.bf16.mxu1 %v5235_v40  ;;  %v5559_v38 = vld [vmem:[%s6025_s4 + $0x58] sm:$0xff]  }
  0x31   : > { %v4793_v53 = vld.sshfl [vmem:[%s5446_s30] sm:$0x13 pattern:$0x76325410]  ;;  %v1321_v55 = vrot.slane %v1320_v46, 2  ;;  %v1353_v0 = vrot.slane %v1351_v49, 7 }
  0x32   : > { %v1390_v57 = vcombine.high %v4793_v53, %v4793_v53  ;;  %v1335_v58 = vrot.slane %v1334_v50, 2  ;;  %v1416_v60 = vshrl.u32 %v4793_v53, 16  ;;  %v1419_v61 = vshll.u32 %v4793_v53, 16 }
  0x33   : > { %v1326_v62 = vsel %vm5489_vm8, %v1321_v55, %v1325_v47  ;;  %v1348_v63 = vor.u32 %v1347_v56, %v1344_v52  ;;  %v4794_v1 = vld.sshfl [vmem:[%s5446_s30 + $0x4] sm:$0x13 pattern:$0x76325410]  ;;  %5108 = vmatpush3.bf16.msra.mxu1 %v5235_v40 }
  0x34   : > { %v1425_v2 = vshll.u32 %v1390_v57, 16  ;;  %v1355_v3 = vcombine.low %v1312_v54, %v1326_v62  ;;  %v4795_v4 = vld.sshfl [vmem:[%s5446_s30 + $0x8] sm:$0x13 pattern:$0x76325410]  ;;  %v1398_v5 = vcombine.high %v4794_v1, %v4794_v1  ;;  %v1418_v7 = vrot.slane %v1416_v60, 6  ;;  %5129 = vmatprep.subr.bf16.mxu1 %v5239_v59 }
  0x35   : > { %v1340_v10 = vsel %vm5489_vm8, %v1335_v58, %v1339_v51  ;;  %v1349_v11 = vrot.slane %v1348_v63, 2  ;;  %v4796_v12 = vld.sshfl [vmem:[%s5446_s30 + $0xc] sm:$0x13 pattern:$0x76325410]  ;;  %v1406_v13 = vcombine.high %v4795_v4, %v4795_v4  ;;  %v1421_v14 = vrot.slane %v1419_v61, 7 }
  0x36   : > { %v1362_v17 = vrot.slane %v1355_v3, %v5433_v8  ;;  %v1414_v18 = vcombine.high %v4796_v12, %v4796_v12  ;;  %v1427_v19 = vrot.slane %v1425_v2, 7  ;;  %v1430_v20 = vshrl.u32 %v4794_v1, 16  ;;  %v5318_v43 = vld.sshfl [vmem:[%s5446_s30] sm:$0xf pattern:$0x76325410] }
  0x37   : > { %v5237_v16 = vld [vmem:[#allocation2 + $0x8] sm:$0xff]   ;;  %v5242_v21 = vld [vmem:[#allocation2] sm:$0xff]   ;;  %v1354_v22 = vsel %vm5489_vm8, %v1349_v11, %v1353_v0  ;;  %v1422_v23 = vor.u32 %v1421_v14, %v1418_v7  ;;  %v1433_v24 = vshll.u32 %v4794_v1, 16  ;;  %v1439_v25 = vshll.u32 %v1398_v5, 16 }
  0x38   : > { %v1363_v26 = vcombine.low %v1340_v10, %v1354_v22  ;;  %1373 = vst.msk [vmem:[#allocation2 + $0x8] sm:$0xf] %vm484_vm0, %v1362_v17  ;;  %v1432_v27 = vrot.slane %v1430_v20, 6  ;;  %v1444_v28 = vshrl.u32 %v4795_v4, 16  ;;  %v1447_v29 = vshll.u32 %v4795_v4, 16  ;;  %5121 = vmatprep.mubr.msk.bf16.mxu0 %vm615_vm3, %v5242_v21  ;;  %5110 = vmatmul.mubr.msk.bf16.vlgmr.msra.gmra.mxu1 %vm615_vm3, %v5237_v16 }
  0x39   : > { %v1423_v30 = vrot.slane %v1422_v23, 2  ;;  %v1435_v31 = vrot.slane %v1433_v24, 7  ;;  %v1441_v32 = vrot.slane %v1439_v25, 7  ;;  %v1453_v33 = vshll.u32 %v1406_v13, 16  ;;  %5130 = vmatpush3.bf16.msra.mxu1 %v5239_v59  ;;  %5113 = vmatprep.mubr.msk.bf16.mxu1 %vm615_vm3, %v5241_v6  ;;  %1779 = vst.msk [vmem:[#allocation2] sm:$0xf] %vm484_vm0, %v5318_v43 }
  0x3a   : > { %v1370_v34 = vrot.slane %v1363_v26, %v5433_v8  ;;  %v1446_v35 = vrot.slane %v1444_v28, 6  ;;  %v1449_v36 = vrot.slane %v1447_v29, 7  ;;  %v1458_v37 = vshrl.u32 %v4796_v12, 16  ;;  %5131 = vmatprep.subr.bf16.mxu1 %v5249_v15  ;;  %v5261_v13 = vld [vmem:[%s6025_s4 + $0x40] sm:$0xff]  }
  0x3b   : > { %v1436_v39 = vor.u32 %v1435_v31, %v1432_v27  ;;  %v1455_v40 = vrot.slane %v1453_v33, 7  ;;  %v1461_v41 = vshll.u32 %v4796_v12, 16  ;;  %v5319_v44 = vld.sshfl [vmem:[%s5446_s30 + $0x8] sm:$0xf pattern:$0x76325410]  ;;  %v1428_v45 = vsel %vm5489_vm8, %v1423_v30, %v1427_v19 }
  0x3c   : > { %1374 = vst.msk [vmem:[#allocation2 + $0xc] sm:$0xf] %vm484_vm0, %v1370_v34  ;;  %v1450_v46 = vor.u32 %v1449_v36, %v1446_v35  ;;  %v1460_v47 = vrot.slane %v1458_v37, 6  ;;  %v1467_v48 = vshll.u32 %v1414_v18, 16  ;;  %1780 = vst.msk [vmem:[#allocation2 + $0x4] sm:$0xf] %vm484_vm0, %v5319_v44 }
  0x3d   : > { %v4797_v49 = vld.sshfl [vmem:[%s5455_s15] sm:$0x13 pattern:$0x76325410]  ;;  %v1437_v50 = vrot.slane %v1436_v39, 2  ;;  %v1463_v51 = vrot.slane %v1461_v41, 7  ;;  %5132 = vmatpush3.bf16.msra.mxu1 %v5249_v15 }
  0x3e   : > { %v4798_v52 = vld.sshfl [vmem:[%s5455_s15 + $0x4] sm:$0x13 pattern:$0x76325410]  ;;  %v1451_v53 = vrot.slane %v1450_v46, 2  ;;  %v1469_v54 = vrot.slane %v1467_v48, 7  ;;  %v1506_v56 = vcombine.high %v4797_v49, %v4797_v49  ;;  %5153 = vmatprep.subr.bf16.mxu1 %v5559_v38 }
  0x3f   : > { %v4799_v55 = vld.sshfl [vmem:[%s5455_s15 + $0x8] sm:$0x13 pattern:$0x76325410]  ;;  %v1514_v57 = vcombine.high %v4798_v52, %v4798_v52  ;;  %v1442_v58 = vsel %vm5489_vm8, %v1437_v50, %v1441_v32  ;;  %v1464_v59 = vor.u32 %v1463_v51, %v1460_v47  ;;  %v1532_v62 = vshrl.u32 %v4797_v49, 16 }
  0x40   : > { %v4800_v60 = vld.sshfl [vmem:[%s5455_s15 + $0xc] sm:$0x13 pattern:$0x76325410]  ;;  %v1522_v61 = vcombine.high %v4799_v55, %v4799_v55  ;;  %v1456_v63 = vsel %vm5489_vm8, %v1451_v53, %v1455_v40  ;;  %v1471_v0 = vcombine.low %v1428_v45, %v1442_v58  ;;  %v1535_v2 = vshll.u32 %v4797_v49, 16 }
  0x41   : > { %v1530_v1 = vcombine.high %v4800_v60, %v4800_v60  ;;  %v1465_v3 = vrot.slane %v1464_v59, 2  ;;  %v1534_v6 = vrot.slane %v1532_v62, 6  ;;  %v1541_v4 = vshll.u32 %v1506_v56, 16  ;;  %v5599_v36 = vld [vmem:[%s6025_s4 + $0x68] sm:$0xff]  }
  0x42   : > { %v1546_v5 = vshrl.u32 %v4798_v52, 16  ;;  %v5578_v7 = vrot.slane %v1471_v0, %v5433_v8  ;;  %v1537_v10 = vrot.slane %v1535_v2, 7  ;;  %v1549_v11 = vshll.u32 %v4798_v52, 16  ;;  %v5269_v2 = vld [vmem:[%s6025_s4 + $0x50] sm:$0xff]  }
  0x43   : > { %v1555_v12 = vshll.u32 %v1514_v57, 16  ;;  %v1470_v14 = vsel %vm5489_vm8, %v1465_v3, %v1469_v54  ;;  %v1543_v15 = vrot.slane %v1541_v4, 7  ;;  %v1560_v17 = vshrl.u32 %v4799_v55, 16  ;;  %v5246_v18 = vld [vmem:[#allocation2 + $0x8] sm:$0xff]   ;;  %v5254_v51 = vld [vmem:[#allocation2] sm:$0xff]  }
  0x44   : > { %v1548_v16 = vrot.slane %v1546_v5, 6  ;;  %v1479_v19 = vcombine.low %v1456_v63, %v1470_v14  ;;  %1489 = vst.msk [vmem:[#allocation2 + $0x10] sm:$0xf] %vm484_vm0, %v5578_v7  ;;  %995 = vst.msk [vmem:[#allocation2 + $0x18] sm:$0xf] %vm484_vm0, %v5578_v7  ;;  %v1538_v20 = vor.u32 %v1537_v10, %v1534_v6  ;;  %v1551_v21 = vrot.slane %v1549_v11, 7  ;;  %5122 = vmatmul.mubr.msk.bf16.vlgmr.msra.gmra.mxu0 %vm615_vm3, %v5246_v18 }
  0x45   : > { %v1557_v22 = vrot.slane %v1555_v12, 7  ;;  %v5320_v23 = vld.sshfl [vmem:[%s5455_s15] sm:$0xf pattern:$0x76325410]  ;;  %v1562_v24 = vrot.slane %v1560_v17, 6  ;;  %5142 = vmatpush3.bf16.msra.mxu0 %v5508_v9 }
  0x46   : > { %v1563_v25 = vshll.u32 %v4799_v55, 16  ;;  %v1569_v26 = vshll.u32 %v1522_v61, 16  ;;  %v1574_v27 = vshrl.u32 %v4800_v60, 16  ;;  %v5593_v29 = vrot.slane %v1479_v19, %v5433_v8  ;;  %5143 = vmatprep.subr.bf16.mxu0 %v5261_v13  ;;  %1807 = vst.msk [vmem:[#allocation2 + $0x8] sm:$0xf] %vm484_vm0, %v5320_v23 }
  0x47   : > { %v5321_v28 = vld.sshfl [vmem:[%s5455_s15 + $0x8] sm:$0xf pattern:$0x76325410]  ;;  %v1539_v30 = vrot.slane %v1538_v20, 2  ;;  %v1552_v31 = vor.u32 %v1551_v21, %v1548_v16  ;;  %v1577_v32 = vshll.u32 %v4800_v60, 16 }
  0x48   : > { %v1565_v33 = vrot.slane %v1563_v25, 7  ;;  %v1576_v34 = vrot.slane %v1574_v27, 6  ;;  %v1583_v35 = vshll.u32 %v1530_v1, 16  ;;  %1490 = vst.msk [vmem:[#allocation2 + $0x14] sm:$0xf] %vm484_vm0, %v5593_v29  ;;  %v1571_v41 = vrot.slane %v1569_v26, 7 }
  0x49   : > { %996 = vst.msk [vmem:[#allocation2 + $0x1c] sm:$0xf] %vm484_vm0, %v5593_v29  ;;  %v1544_v9 = vsel %vm5489_vm8, %v1539_v30, %v1543_v15  ;;  %v1553_v37 = vrot.slane %v1552_v31, 2  ;;  %v1579_v39 = vrot.slane %v1577_v32, 7  ;;  %5144 = vmatpush3.bf16.msra.mxu0 %v5261_v13  ;;  %1808 = vst.msk [vmem:[#allocation2 + $0xc] sm:$0xf] %vm484_vm0, %v5321_v28 }
  0x4a   : > { %v1566_v40 = vor.u32 %v1565_v33, %v1562_v24  ;;  %v1585_v43 = vrot.slane %v1583_v35, 7  ;;  %v5322_v46 = vld.sshfl [vmem:[%s5431_s24 + $0x4] sm:$0xf pattern:$0x76325410]  ;;  %5165 = vmatprep.subr.bf16.mxu0 %v5599_v36  ;;  %v5655_v15 = vld [vmem:[%s6025_s4 + $0x78] sm:$0xff]  }
  0x4b   : > { %v1558_v44 = vsel %vm5489_vm8, %v1553_v37, %v1557_v22  ;;  %v1580_v45 = vor.u32 %v1579_v39, %v1576_v34  ;;  %v5323_v47 = vld.sshfl [vmem:[%s5431_s24 + $0xc] sm:$0xf pattern:$0x76325410]  ;;  %v5279_v39 = vld [vmem:[%s6025_s4 + $0x60] sm:$0xff]  }
  0x4c   : > { %v1567_v48 = vrot.slane %v1566_v40, 2  ;;  %v1587_v49 = vcombine.low %v1544_v9, %v1558_v44  ;;  %v5324_v55 = vld.sshfl [vmem:[%s5455_s15] sm:$0xf pattern:$0x76325410] }
  0x4d   : > { %v1581_v50 = vrot.slane %v1580_v45, 2  ;;  %v5325_v56 = vld.sshfl [vmem:[%s5455_s15 + $0x8] sm:$0xf pattern:$0x76325410] }
  0x4e   : > { %v1572_v52 = vsel %vm5489_vm8, %v1567_v48, %v1571_v41  ;;  %v1594_v53 = vrot.slane %v1587_v49, %v5433_v8  ;;  %v5326_v61 = vld.sshfl [vmem:[%s5438_s27 + $0x4] sm:$0xf pattern:$0x76325410]  ;;  %2039 = vst.msk [vmem:[#allocation2] sm:$0xf] %vm484_vm0, %v5324_v55 }
  0x4f   : > { %v1586_v54 = vsel %vm5489_vm8, %v1581_v50, %v1585_v43  ;;  %v5251_v59 = vld [vmem:[#allocation2 + $0x10] sm:$0xff]   ;;  %2040 = vst.msk [vmem:[#allocation2 + $0x4] sm:$0xf] %vm484_vm0, %v5325_v56 }
  0x50   : > { %v5245_v57 = vld [vmem:[#allocation2 + $0x18] sm:$0xff]   ;;  %v1595_v58 = vcombine.low %v1572_v52, %v1586_v54  ;;  %1836 = vst.msk [vmem:[#allocation2 + $0x10] sm:$0xf] %vm484_vm0, %v5322_v46  ;;  %1837 = vst.msk [vmem:[#allocation2 + $0x14] sm:$0xf] %vm484_vm0, %v5323_v47  ;;  %5125 = vmatprep.mubr.msk.bf16.mxu0 %vm615_vm3, %v5251_v59  ;;  %v5260_v63 = vld [vmem:[#allocation2 + $0x8] sm:$0xff]  }
  0x51   : > { %1605 = vst.msk [vmem:[#allocation2 + $0x18] sm:$0xf] %vm484_vm0, %v1594_v53  ;;  %5114 = vmatmul.mubr.msk.bf16.gmra.mxu1 %vm615_vm3, %v5245_v57  ;;  %v5327_v62 = vld.sshfl [vmem:[%s5438_s27 + $0xc] sm:$0xf pattern:$0x76325410] }
  0x52   : > { %v1602_v60 = vrot.slane %v1595_v58, %v5433_v8  ;;  %5133 = vmatprep.mubr.msk.bf16.mxu1 %vm615_vm3, %v5254_v51  ;;  %2155 = vst.msk [vmem:[#allocation2 + $0x8] sm:$0xf] %vm484_vm0, %v5578_v7  ;;  %2156 = vst.msk [vmem:[#allocation2 + $0xc] sm:$0xf] %vm484_vm0, %v5593_v29 }
  0x53   : > { %v5328_v0 = vld.sshfl [vmem:[%s5438_s27 + $0x4] sm:$0xf pattern:$0x76325410] }
  0x54   : > { %1606 = vst.msk [vmem:[#allocation2 + $0x1c] sm:$0xf] %vm484_vm0, %v1602_v60  ;;  %v5329_v1 = vld.sshfl [vmem:[%s5438_s27 + $0xc] sm:$0xf pattern:$0x76325410] }
  0x55   : > { %v4849_v3 = vld.sshfl [vmem:[%s5431_s24 + $0x4] sm:$0x13 pattern:$0x76325410] }
  0x56   : > { %v2200_v4 = vcombine.high %v4849_v3, %v4849_v3  ;;  %v2226_v5 = vshrl.u32 %v4849_v3, 16  ;;  %v5265_v10 = vld [vmem:[#allocation2] sm:$0xff]   ;;  %v2229_v11 = vshll.u32 %v4849_v3, 16 }
  0x57   : > { %v5262_v6 = vld [vmem:[#allocation2 + $0x10] sm:$0xff]   ;;  %2561 = vst.msk [vmem:[#allocation2] sm:$0xf] %vm484_vm0, %v5578_v7  ;;  %2562 = vst.msk [vmem:[#allocation2 + $0x4] sm:$0xf] %vm484_vm0, %v5593_v29 }
  0x58   : > { %2183 = vst.msk [vmem:[#allocation2 + $0x10] sm:$0xf] %vm484_vm0, %v5328_v0  ;;  %2184 = vst.msk [vmem:[#allocation2 + $0x14] sm:$0xf] %vm484_vm0, %v5329_v1  ;;  %v2228_v13 = vrot.slane %v2226_v5, 6  ;;  %v2235_v14 = vshll.u32 %v2200_v4, 16 }
  0x59   : > { %5134 = vmatmul.mubr.msk.bf16.vlgmr.msra.gmra.mxu1 %vm615_vm3, %v5260_v63  ;;  %v4850_v16 = vld.sshfl [vmem:[%s5431_s24 + $0x8] sm:$0x13 pattern:$0x76325410]  ;;  %v2231_v17 = vrot.slane %v2229_v11, 7 }
  0x5a   : > { %5137 = vmatprep.mubr.msk.bf16.mxu1 %vm615_vm3, %v5262_v6  ;;  %5154 = vmatpush3.bf16.msra.mxu1 %v5559_v38  ;;  %v5268_v7 = vld [vmem:[#allocation2 + $0x8] sm:$0xff]   ;;  %v2208_v19 = vcombine.high %v4850_v16, %v4850_v16  ;;  %v2237_v20 = vrot.slane %v2235_v14, 7  ;;  %v2240_v38 = vshrl.u32 %v4850_v16, 16  ;;  %v2243_v24 = vshll.u32 %v4850_v16, 16 }
  0x5b   : > { %v5257_v12 = vld [vmem:[#allocation2 + $0x18] sm:$0xff]   ;;  %5155 = vmatprep.subr.bf16.mxu1 %v5269_v2  ;;  %v4851_v18 = vld.sshfl [vmem:[%s5431_s24 + $0xc] sm:$0x13 pattern:$0x76325410]  ;;  %v2232_v23 = vor.u32 %v2231_v17, %v2228_v13 }
  0x5c   : > { %1865 = vst.msk [vmem:[#allocation2 + $0x18] sm:$0xf] %vm484_vm0, %v5326_v61  ;;  %1866 = vst.msk [vmem:[#allocation2 + $0x1c] sm:$0xf] %vm484_vm0, %v5327_v62  ;;  %5126 = vmatmul.mubr.msk.bf16.gmra.mxu0 %vm615_vm3, %v5257_v12  ;;  %v2216_v22 = vcombine.high %v4851_v18, %v4851_v18  ;;  %v2254_v25 = vshrl.u32 %v4851_v18, 16  ;;  %v2242_v27 = vrot.slane %v2240_v38, 6 }
  0x5d   : > { %2677 = vst.msk [vmem:[#allocation2 + $0x8] sm:$0xf] %vm484_vm0, %v1594_v53  ;;  %2678 = vst.msk [vmem:[#allocation2 + $0xc] sm:$0xf] %vm484_vm0, %v1602_v60  ;;  %5145 = vmatprep.mubr.msk.bf16.mxu0 %vm615_vm3, %v5265_v10  ;;  %v2249_v28 = vshll.u32 %v2208_v19, 16  ;;  %v2257_v29 = vshll.u32 %v4851_v18, 16 }
  0x5e   : > { %v4852_v21 = vld.sshfl [vmem:[%s5431_s24 + $0x10] sm:$0x13 pattern:$0x76325410]  ;;  %5156 = vmatpush3.bf16.msra.mxu1 %v5269_v2  ;;  %v2233_v30 = vrot.slane %v2232_v23, 2  ;;  %v2245_v31 = vrot.slane %v2243_v24, 7 }
  0x5f   : > { %v2224_v26 = vcombine.high %v4852_v21, %v4852_v21  ;;  %v2256_v32 = vrot.slane %v2254_v25, 6  ;;  %v2263_v33 = vshll.u32 %v2216_v22, 16  ;;  %5177 = vmatprep.subr.bf16.mxu1 %v5655_v15  ;;  %v2251_v34 = vrot.slane %v2249_v28, 7  ;;  %v5270_v51 = vld [vmem:[#allocation2 + $0x10] sm:$0xff]   ;;  %v5272_v54 = vld [vmem:[#allocation2] sm:$0xff]   ;;  %v5683_v60 = vld [vmem:[%s6025_s4 + $0x88] sm:$0xff]  }
  0x60   : > { %v2259_v35 = vrot.slane %v2257_v29, 7  ;;  %v2268_v9 = vshrl.u32 %v4852_v21, 16  ;;  %v2271_v37 = vshll.u32 %v4852_v21, 16  ;;  %v2246_v40 = vor.u32 %v2245_v31, %v2242_v27 }
  0x61   : > { %v2265_v41 = vrot.slane %v2263_v33, 7  ;;  %v2277_v43 = vshll.u32 %v2224_v26, 16  ;;  %v2238_v47 = vsel %vm5489_vm8, %v2233_v30, %v2237_v20  ;;  %v4887_v53 = vld.sshfl [vmem:[%s5438_s27 + $0x4] sm:$0x13 pattern:$0x76325410] }
  0x62   : > { %v2260_v45 = vor.u32 %v2259_v35, %v2256_v32  ;;  %v2270_v46 = vrot.slane %v2268_v9, 6  ;;  %v2247_v48 = vrot.slane %v2246_v40, 2  ;;  %v2273_v49 = vrot.slane %v2271_v37, 7 }
  0x63   : > { %v5267_v44 = vld [vmem:[#allocation2 + $0x18] sm:$0xff]   ;;  %v2279_v50 = vrot.slane %v2277_v43, 7  ;;  %v4888_v57 = vld.sshfl [vmem:[%s5438_s27 + $0x8] sm:$0x13 pattern:$0x76325410]  ;;  %v2810_v58 = vcombine.high %v4887_v53, %v4887_v53 }
  0x64   : > { %5138 = vmatmul.mubr.msk.bf16.gmra.mxu1 %vm615_vm3, %v5267_v44  ;;  %v2261_v52 = vrot.slane %v2260_v45, 2  ;;  %5146 = vmatmul.mubr.msk.bf16.vlgmr.msra.gmra.mxu0 %vm615_vm3, %v5268_v7  ;;  %v2252_v55 = vsel %vm5489_vm8, %v2247_v48, %v2251_v34  ;;  %v2274_v56 = vor.u32 %v2273_v49, %v2270_v46  ;;  %v2836_v59 = vshrl.u32 %v4887_v53, 16  ;;  %v4889_v62 = vld.sshfl [vmem:[%s5438_s27 + $0xc] sm:$0x13 pattern:$0x76325410] }
  0x65   : > { %5149 = vmatprep.mubr.msk.bf16.mxu0 %vm615_vm3, %v5270_v51  ;;  %5166 = vmatpush3.bf16.msra.mxu0 %v5599_v36  ;;  %v2281_v61 = vcombine.low %v2238_v47, %v2252_v55  ;;  %v2818_v63 = vcombine.high %v4888_v57, %v4888_v57  ;;  %v2839_v0 = vshll.u32 %v4887_v53, 16  ;;  %v5276_v1 = vld [vmem:[#allocation2 + $0x8] sm:$0xff]   ;;  %v4890_v6 = vld.sshfl [vmem:[%s5438_s27 + $0x10] sm:$0x13 pattern:$0x76325410]  ;;  %v2826_v4 = vcombine.high %v4889_v62, %v4889_v62 }
  0x66   : > { %5157 = vmatprep.mubr.msk.bf16.mxu1 %vm615_vm3, %v5272_v54  ;;  %5167 = vmatprep.subr.bf16.mxu0 %v5279_v39  ;;  %v2266_v2 = vsel %vm5489_vm8, %v2261_v52, %v2265_v41  ;;  %v2275_v3 = vrot.slane %v2274_v56, 2  ;;  %v2838_v36 = vrot.slane %v2836_v59, 6  ;;  %v2834_v10 = vcombine.high %v4890_v6, %v4890_v6  ;;  %v5291_v7 = vld [vmem:[%s6025_s4 + $0x70] sm:$0xff]  }
  0x67   : > { %v5691_v5 = vrot.slane %v2281_v61, %v5433_v8  ;;  %v2841_v11 = vrot.slane %v2839_v0, 7  ;;  %v2845_v12 = vshll.u32 %v2810_v58, 16  ;;  %v2850_v14 = vshrl.u32 %v4888_v57, 16 }
  0x68   : > { %v2280_v13 = vsel %vm5489_vm8, %v2275_v3, %v2279_v50  ;;  %v2853_v16 = vshll.u32 %v4888_v57, 16  ;;  %v2859_v17 = vshll.u32 %v2818_v63, 16  ;;  %v2864_v38 = vshrl.u32 %v4889_v62, 16 }
  0x69   : > { %5168 = vmatpush3.bf16.msra.mxu0 %v5279_v39  ;;  %v2289_v18 = vcombine.low %v2266_v2, %v2280_v13  ;;  %2299 = vst.msk [vmem:[#allocation2 + $0x18] sm:$0xf] %vm484_vm0, %v5691_v5  ;;  %2793 = vst.msk [vmem:[#allocation2 + $0x10] sm:$0xf] %vm484_vm0, %v5691_v5  ;;  %v2842_v19 = vor.u32 %v2841_v11, %v2838_v36  ;;  %v2847_v20 = vrot.slane %v2845_v12, 7  ;;  %v2852_v21 = vrot.slane %v2850_v14, 6 }
  0x6a   : > { %5189 = vmatprep.subr.bf16.mxu0 %v5683_v60  ;;  %v2855_v22 = vrot.slane %v2853_v16, 7  ;;  %v2861_v23 = vrot.slane %v2859_v17, 7  ;;  %v2867_v24 = vshll.u32 %v4889_v62, 16  ;;  %v2866_v28 = vrot.slane %v2864_v38, 6  ;;  %v5299_v2 = vld [vmem:[%s6025_s4 + $0x80] sm:$0xff]  }
  0x6b   : > { %v5330_v25 = vld.sshfl [vmem:[%s5431_s24 + $0x4] sm:$0xf pattern:$0x76325410]  ;;  %v5705_v26 = vrot.slane %v2289_v18, %v5433_v8  ;;  %v2843_v27 = vrot.slane %v2842_v19, 2  ;;  %v2873_v29 = vshll.u32 %v2826_v4, 16 }
  0x6c   : > { %v5331_v30 = vld.sshfl [vmem:[%s5431_s24 + $0xc] sm:$0xf pattern:$0x76325410]  ;;  %5158 = vmatmul.mubr.msk.bf16.vlgmr.msra.gmra.mxu1 %vm615_vm3, %v5276_v1  ;;  %v2856_v31 = vor.u32 %v2855_v22, %v2852_v21  ;;  %v2869_v32 = vrot.slane %v2867_v24, 7  ;;  %v2878_v33 = vshrl.u32 %v4890_v6, 16 }
  0x6d   : > { %v2881_v34 = vshll.u32 %v4890_v6, 16  ;;  %5178 = vmatpush3.bf16.msra.mxu1 %v5655_v15  ;;  %2300 = vst.msk [vmem:[#allocation2 + $0x1c] sm:$0xf] %vm484_vm0, %v5705_v26  ;;  %2794 = vst.msk [vmem:[#allocation2 + $0x14] sm:$0xf] %vm484_vm0, %v5705_v26  ;;  %v2848_v35 = vsel %vm5489_vm8, %v2843_v27, %v2847_v20  ;;  %v2875_v9 = vrot.slane %v2873_v29, 7 }
  0x6e   : > { %v2887_v37 = vshll.u32 %v2834_v10, 16  ;;  %5179 = vmatprep.subr.bf16.mxu1 %v5291_v7  ;;  %v2857_v39 = vrot.slane %v2856_v31, 2  ;;  %v2870_v40 = vor.u32 %v2869_v32, %v2866_v28  ;;  %v2880_v41 = vrot.slane %v2878_v33, 6  ;;  %3083 = vst.msk [vmem:[#allocation2] sm:$0xf] %vm484_vm0, %v5330_v25 }
  0x6f   : > { %v2883_v43 = vrot.slane %v2881_v34, 7  ;;  %3084 = vst.msk [vmem:[#allocation2 + $0x4] sm:$0xf] %vm484_vm0, %v5331_v30 }
  0x70   : > { %v2862_v15 = vsel %vm5489_vm8, %v2857_v39, %v2861_v23  ;;  %v2871_v44 = vrot.slane %v2870_v40, 2  ;;  %v2889_v46 = vrot.slane %v2887_v37, 7  ;;  %v5332_v48 = vld.sshfl [vmem:[%s5438_s27 + $0x4] sm:$0xf pattern:$0x76325410] }
  0x71   : > { %v2884_v45 = vor.u32 %v2883_v43, %v2880_v41  ;;  %5180 = vmatpush3.bf16.msra.mxu1 %v5291_v7  ;;  %v2891_v47 = vcombine.low %v2848_v35, %v2862_v15  ;;  %v5333_v49 = vld.sshfl [vmem:[%s5438_s27 + $0xc] sm:$0xf pattern:$0x76325410]  ;;  %3111 = vst.msk [vmem:[#allocation2 + $0x8] sm:$0xf] %vm484_vm0, %v5332_v48 }
  0x72   : > { %v2876_v50 = vsel %vm5489_vm8, %v2871_v44, %v2875_v9  ;;  %3112 = vst.msk [vmem:[#allocation2 + $0xc] sm:$0xf] %vm484_vm0, %v5333_v49  ;;  %v5334_v57 = vld.sshfl [vmem:[%s5446_s30 + $0x4] sm:$0xf pattern:$0x76325410] }
  0x73   : > { %v2885_v51 = vrot.slane %v2884_v45, 2  ;;  %v5725_v52 = vrot.slane %v2891_v47, %v5433_v8  ;;  %v5335_v58 = vld.sshfl [vmem:[%s5446_s30 + $0xc] sm:$0xf pattern:$0x76325410] }
  0x74   : > { %v5271_v53 = vld [vmem:[#allocation2 + $0x18] sm:$0xff]   ;;  %v5280_v56 = vld [vmem:[#allocation2 + $0x10] sm:$0xff]   ;;  %v5336_v61 = vld.sshfl [vmem:[%s5455_s15 + $0x4] sm:$0xf pattern:$0x76325410] }
  0x75   : > { %v2890_v54 = vsel %vm5489_vm8, %v2885_v51, %v2889_v46  ;;  %2909 = vst.msk [vmem:[#allocation2 + $0x18] sm:$0xf] %vm484_vm0, %v5725_v52  ;;  %5150 = vmatmul.mubr.msk.bf16.gmra.mxu0 %vm615_vm3, %v5271_v53  ;;  %5161 = vmatprep.mubr.msk.bf16.mxu1 %vm615_vm3, %v5280_v56  ;;  %v5337_v62 = vld.sshfl [vmem:[%s5455_s15 + $0xc] sm:$0xf pattern:$0x76325410] }
  0x76   : > { %v2899_v55 = vcombine.low %v2876_v50, %v2890_v54  ;;  %v5286_v63 = vld [vmem:[#allocation2] sm:$0xff]   ;;  %3140 = vst.msk [vmem:[#allocation2 + $0x10] sm:$0xf] %vm484_vm0, %v5334_v57  ;;  %3141 = vst.msk [vmem:[#allocation2 + $0x14] sm:$0xf] %vm484_vm0, %v5335_v58 }
  0x77   : > { %5169 = vmatprep.mubr.msk.bf16.mxu0 %vm615_vm3, %v5286_v63  ;;  %v5338_v0 = vld.sshfl [vmem:[%s5438_s27 + $0x4] sm:$0xf pattern:$0x76325410] }
  0x78   : > { %v2906_v59 = vrot.slane %v2899_v55, %v5433_v8  ;;  %v5339_v1 = vld.sshfl [vmem:[%s5438_s27 + $0xc] sm:$0xf pattern:$0x76325410]  ;;  %3343 = vst.msk [vmem:[#allocation2] sm:$0xf] %vm484_vm0, %v5338_v0 }
  0x79   : > { %v5290_v3 = vld [vmem:[#allocation2 + $0x8] sm:$0xff]   ;;  %3344 = vst.msk [vmem:[#allocation2 + $0x4] sm:$0xf] %vm484_vm0, %v5339_v1  ;;  %s5828_s27 = smul.u32 6, %s6041_s14 }
  0x7a   : > { %2910 = vst.msk [vmem:[#allocation2 + $0x1c] sm:$0xf] %vm484_vm0, %v2906_v59  ;;  %3459 = vst.msk [vmem:[#allocation2 + $0x8] sm:$0xf] %vm484_vm0, %v5691_v5 }
  0x7b   : > { %3460 = vst.msk [vmem:[#allocation2 + $0xc] sm:$0xf] %vm484_vm0, %v5705_v26  ;;  %v5340_v6 = vld.sshfl [vmem:[%s5455_s15 + $0x4] sm:$0xf pattern:$0x76325410]  ;;  %s5834_s17 = scalar_lea.vmem %s6028_s7, %s5828_s27  ;;  %s5855_s19 = scalar_lea.vmem %s6029_s8, %s5828_s27 }
  0x7c   : > { %v5341_v36 = vld.sshfl [vmem:[%s5455_s15 + $0xc] sm:$0xf pattern:$0x76325410]  ;;  %s5861_s22 = scalar_lea.vmem %s6030_s9, %s5828_s27  ;;  %s5875_s26 = scalar_lea.vmem %s6031_s10, %s5828_s27 }
  0x7d   : > { %5170 = vmatmul.mubr.msk.bf16.vlgmr.msra.gmra.mxu0 %vm615_vm3, %v5290_v3  ;;  %v5292_v10 = vld [vmem:[#allocation2 + $0x10] sm:$0xff]   ;;  %v4955_v11 = vld.sshfl [vmem:[%s5446_s30 + $0x4] sm:$0x13 pattern:$0x76325410] }
  0x7e   : > { %5190 = vmatpush3.bf16.msra.mxu0 %v5683_v60  ;;  %5173 = vmatprep.mubr.msk.bf16.mxu0 %vm615_vm3, %v5292_v10  ;;  %3487 = vst.msk [vmem:[#allocation2 + $0x10] sm:$0xf] %vm484_vm0, %v5340_v6  ;;  %v4956_v12 = vld.sshfl [vmem:[%s5446_s30 + $0x8] sm:$0x13 pattern:$0x76325410]  ;;  %v3504_v13 = vcombine.high %v4955_v11, %v4955_v11 }
  0x7f   : > { %5191 = vmatprep.subr.bf16.mxu0 %v5299_v2  ;;  %v3530_v14 = vshrl.u32 %v4955_v11, 16  ;;  %v3533_v16 = vshll.u32 %v4955_v11, 16  ;;  %3488 = vst.msk [vmem:[#allocation2 + $0x14] sm:$0xf] %vm484_vm0, %v5341_v36  ;;  %v3512_v17 = vcombine.high %v4956_v12, %v4956_v12  ;;  %v3544_v7 = vshrl.u32 %v4956_v12, 16 }
  0x80   : > { %v4957_v60 = vld.sshfl [vmem:[%s5446_s30 + $0xc] sm:$0x13 pattern:$0x76325410]  ;;  %v3547_v18 = vshll.u32 %v4956_v12, 16  ;;  %v3539_v23 = vshll.u32 %v3504_v13, 16 }
  0x81   : > { %v5283_v4 = vld [vmem:[#allocation2 + $0x18] sm:$0xff]   ;;  %v4958_v19 = vld.sshfl [vmem:[%s5446_s30 + $0x10] sm:$0x13 pattern:$0x76325410]  ;;  %v3520_v20 = vcombine.high %v4957_v60, %v4957_v60  ;;  %v3532_v38 = vrot.slane %v3530_v14, 6 }
  0x82   : > { %3169 = vst.msk [vmem:[#allocation2 + $0x18] sm:$0xf] %vm484_vm0, %v5336_v61  ;;  %3170 = vst.msk [vmem:[#allocation2 + $0x1c] sm:$0xf] %vm484_vm0, %v5337_v62  ;;  %5162 = vmatmul.mubr.msk.bf16.gmra.mxu1 %vm615_vm3, %v5283_v4  ;;  %5192 = vmatpush3.bf16.msra.mxu0 %v5299_v2  ;;  %v3535_v21 = vrot.slane %v3533_v16, 7  ;;  %v3528_v22 = vcombine.high %v4958_v19, %v4958_v19  ;;  %v3546_v24 = vrot.slane %v3544_v7, 6 }
  0x83   : > { %v3549_v25 = vrot.slane %v3547_v18, 7  ;;  %v5296_v27 = vld [vmem:[#allocation2] sm:$0xff]   ;;  %v3553_v29 = vshll.u32 %v3512_v17, 16  ;;  %v3558_v30 = vshrl.u32 %v4957_v60, 16  ;;  %v3561_v31 = vshll.u32 %v4957_v60, 16  ;;  %v5298_v32 = vld [vmem:[#allocation2 + $0x8] sm:$0xff]  }
  0x84   : > { %v3536_v28 = vor.u32 %v3535_v21, %v3532_v38  ;;  %3865 = vst.msk [vmem:[#allocation2] sm:$0xf] %vm484_vm0, %v5691_v5  ;;  %3866 = vst.msk [vmem:[#allocation2 + $0x4] sm:$0xf] %vm484_vm0, %v5705_v26  ;;  %v3541_v34 = vrot.slane %v3539_v23, 7  ;;  %5181 = vmatprep.mubr.msk.bf16.mxu1 %vm615_vm3, %v5296_v27  ;;  %v3567_v41 = vshll.u32 %v3520_v20, 16 }
  0x85   : > { %v3550_v35 = vor.u32 %v3549_v25, %v3546_v24  ;;  %3981 = vst.msk [vmem:[#allocation2 + $0x8] sm:$0xf] %vm484_vm0, %v5725_v52  ;;  %3982 = vst.msk [vmem:[#allocation2 + $0xc] sm:$0xf] %vm484_vm0, %v2906_v59  ;;  %v3555_v37 = vrot.slane %v3553_v29, 7  ;;  %v3560_v39 = vrot.slane %v3558_v30, 6 }
  0x86   : > { %v3537_v9 = vrot.slane %v3536_v28, 2  ;;  %v3563_v40 = vrot.slane %v3561_v31, 7  ;;  %v3572_v26 = vshrl.u32 %v4958_v19, 16  ;;  %v3575_v43 = vshll.u32 %v4958_v19, 16  ;;  %v5300_v46 = vld [vmem:[#allocation2 + $0x10] sm:$0xff]  }
  0x87   : > { %v3551_v5 = vrot.slane %v3550_v35, 2  ;;  %v3581_v45 = vshll.u32 %v3528_v22, 16  ;;  %v3569_v48 = vrot.slane %v3567_v41, 7 }
  0x88   : > { %v3542_v15 = vsel %vm5489_vm8, %v3537_v9, %v3541_v34  ;;  %v3564_v44 = vor.u32 %v3563_v40, %v3560_v39  ;;  %v3574_v49 = vrot.slane %v3572_v26, 6  ;;  %v3577_v50 = vrot.slane %v3575_v43, 7  ;;  %v5001_v55 = vld.sshfl [vmem:[%s5455_s15 + $0x4] sm:$0x13 pattern:$0x76325410] }
  0x89   : > { %v5295_v33 = vld [vmem:[#allocation2 + $0x18] sm:$0xff]   ;;  %v3556_v47 = vsel %vm5489_vm8, %v3551_v5, %v3555_v37  ;;  %v3583_v52 = vrot.slane %v3581_v45, 7  ;;  %v5002_v57 = vld.sshfl [vmem:[%s5455_s15 + $0x8] sm:$0x13 pattern:$0x76325410]  ;;  %v4114_v58 = vcombine.high %v5001_v55, %v5001_v55 }
  0x8a   : > { %5174 = vmatmul.mubr.msk.bf16.gmra.mxu0 %vm615_vm3, %v5295_v33  ;;  %5182 = vmatmul.mubr.msk.bf16.vlgmr.msra.gmra.mxu1 %vm615_vm3, %v5298_v32  ;;  %v3565_v51 = vrot.slane %v3564_v44, 2  ;;  %v3585_v53 = vcombine.low %v3542_v15, %v3556_v47  ;;  %v3578_v54 = vor.u32 %v3577_v50, %v3574_v49  ;;  %v4140_v59 = vshrl.u32 %v5001_v55, 16  ;;  %v5003_v0 = vld.sshfl [vmem:[%s5455_s15 + $0xc] sm:$0x13 pattern:$0x76325410] }
  0x8b   : > { %5185 = vmatprep.mubr.msk.bf16.mxu1 %vm615_vm3, %v5300_v46  ;;  %v5302_v61 = vld [vmem:[#allocation2] sm:$0xff]   ;;  %v4122_v1 = vcombine.high %v5002_v57, %v5002_v57  ;;  %v4143_v2 = vshll.u32 %v5001_v55, 16  ;;  %v5004_v3 = vld.sshfl [vmem:[%s5455_s15 + $0x10] sm:$0x13 pattern:$0x76325410]  ;;  %v4130_v6 = vcombine.high %v5003_v0, %v5003_v0 }
  0x8c   : > { %v3592_v56 = vrot.slane %v3585_v53, %v5433_v8  ;;  %v3570_v62 = vsel %vm5489_vm8, %v3565_v51, %v3569_v48  ;;  %v3579_v63 = vrot.slane %v3578_v54, 2  ;;  %v4142_v4 = vrot.slane %v4140_v59, 6  ;;  %5193 = vmatprep.mubr.msk.bf16.mxu0 %vm615_vm3, %v5302_v61  ;;  %v5303_v17 = vld [vmem:[#allocation2 + $0x8] sm:$0xff]  }
  0x8d   : > { %v4149_v36 = vshll.u32 %v4114_v58, 16  ;;  %v4145_v11 = vrot.slane %v4143_v2, 7  ;;  %v4154_v12 = vshrl.u32 %v5002_v57, 16  ;;  %v4138_v14 = vcombine.high %v5004_v3, %v5004_v3 }
  0x8e   : > { %3603 = vst.msk [vmem:[#allocation2 + $0x18] sm:$0xf] %vm484_vm0, %v3592_v56  ;;  %4097 = vst.msk [vmem:[#allocation2 + $0x10] sm:$0xf] %vm484_vm0, %v3592_v56  ;;  %v3584_v10 = vsel %vm5489_vm8, %v3579_v63, %v3583_v52  ;;  %v4157_v16 = vshll.u32 %v5002_v57, 16  ;;  %v4163_v60 = vshll.u32 %v4122_v1, 16 }
  0x8f   : > { %v3593_v13 = vcombine.low %v3570_v62, %v3584_v10  ;;  %v4146_v7 = vor.u32 %v4145_v11, %v4142_v4  ;;  %v4156_v18 = vrot.slane %v4154_v12, 6  ;;  %v4168_v19 = vshrl.u32 %v5003_v0, 16 }
  0x90   : > { %v4171_v20 = vshll.u32 %v5003_v0, 16  ;;  %v4151_v21 = vrot.slane %v4149_v36, 7  ;;  %v4159_v22 = vrot.slane %v4157_v16, 7  ;;  %v4177_v23 = vshll.u32 %v4130_v6, 16 }
  0x91   : > { %v3600_v38 = vrot.slane %v3593_v13, %v5433_v8  ;;  %v4147_v24 = vrot.slane %v4146_v7, 2  ;;  %v4170_v25 = vrot.slane %v4168_v19, 6  ;;  %v4182_v28 = vshrl.u32 %v5004_v3, 16 }
  0x92   : > { %5194 = vmatmul.mubr.msk.bf16.vlgmr.msra.gmra.mxu0 %vm615_vm3, %v5303_v17  ;;  %v4173_v27 = vrot.slane %v4171_v20, 7  ;;  %v4160_v29 = vor.u32 %v4159_v22, %v4156_v18  ;;  %v4165_v30 = vrot.slane %v4163_v60, 7  ;;  %v4185_v31 = vshll.u32 %v5004_v3, 16  ;;  %v4410_v18 = vld [vmem:[%s5834_s17] sm:$0x3] }
  0x93   : > { %3604 = vst.msk [vmem:[#allocation2 + $0x1c] sm:$0xf] %vm484_vm0, %v3600_v38  ;;  %4098 = vst.msk [vmem:[#allocation2 + $0x14] sm:$0xf] %vm484_vm0, %v3600_v38  ;;  %v4191_v32 = vshll.u32 %v4138_v14, 16  ;;  %v4184_v34 = vrot.slane %v4182_v28, 6  ;;  %v4152_v35 = vsel %vm5489_vm8, %v4147_v24, %v4151_v21 }
  0x94   : > { %v4174_v33 = vor.u32 %v4173_v27, %v4170_v25  ;;  %v4161_v9 = vrot.slane %v4160_v29, 2  ;;  %v4179_v37 = vrot.slane %v4177_v23, 7  ;;  %v4187_v39 = vrot.slane %v4185_v31, 7 }
  0x95   : > { %v4193_v26 = vrot.slane %v4191_v32, 7  ;;  %v4411_v21 = vsel %vm5840_vm11, 0, %v4410_v18 }
  0x96   : > { %v4175_v40 = vrot.slane %v4174_v33, 2  ;;  %v4166_v5 = vsel %vm5489_vm8, %v4161_v9, %v4165_v30  ;;  %v4188_v41 = vor.u32 %v4187_v39, %v4184_v34  ;;  %4412 = vst [vmem:[%s5834_s17] sm:$0x3] %v4411_v21  ;;  %v5029_v39 = vld [vmem:[%s5861_s22 + $0x4] sm:$0x3] }
  0x97   : > { %v4195_v43 = vcombine.low %v4152_v35, %v4166_v5 }
  0x98   : > { %v4180_v15 = vsel %vm5489_vm8, %v4175_v40, %v4179_v37  ;;  %v4189_v44 = vrot.slane %v4188_v41, 2  ;;  %v4456_v37 = vld [vmem:[%s5855_s19] sm:$0x3] }
  0x99   : > { %v4202_v46 = vrot.slane %v4195_v43, %v5433_v8  ;;  %v4457_v41 = vsel %vm5840_vm11, 0, %v4456_v37 }
  0x9a   : > { %v5301_v45 = vld [vmem:[#allocation2 + $0x18] sm:$0xff]   ;;  %v4194_v47 = vsel %vm5489_vm8, %v4189_v44, %v4193_v26  ;;  %v5304_v48 = vld [vmem:[#allocation2 + $0x10] sm:$0xff]   ;;  %v4489_v26 = vsel %vm5840_vm11, 0, %v5029_v39  ;;  %4458 = vst [vmem:[%s5855_s19] sm:$0x3] %v4457_v41 }
  0x9b   : > { %5186 = vmatmul.mubr.msk.bf16.gmra.mxu1 %vm615_vm3, %v5301_v45  ;;  %v4203_v49 = vcombine.low %v4180_v15, %v4194_v47  ;;  %4213 = vst.msk [vmem:[#allocation2 + $0x18] sm:$0xf] %vm484_vm0, %v4202_v46  ;;  %5197 = vmatprep.mubr.msk.bf16.mxu0 %vm615_vm3, %v5304_v48  ;;  %5030 = vst [vmem:[%s5861_s22 + $0x4] sm:$0x3] %v4489_v26  ;;  %v5033_v46 = vld [vmem:[%s5875_s26 + $0x4] sm:$0x3] }
  0x9d   : > { %v4210_v50 = vrot.slane %v4203_v49, %v5433_v8  ;;  %v4527_v49 = vsel %vm5840_vm11, 0, %v5033_v46 }
  0x9e   : > { %5034 = vst [vmem:[%s5875_s26 + $0x4] sm:$0x3] %v4527_v49 }
  0x9f   : > { %4214 = vst.msk [vmem:[#allocation2 + $0x1c] sm:$0xf] %vm484_vm0, %v4210_v50 }
  0xa6   : > { %v5305_v51 = vld [vmem:[#allocation2 + $0x18] sm:$0xff]  }
  0xa7   : > { %5198 = vmatmul.mubr.msk.bf16.gmra.mxu0 %vm615_vm3, %v5305_v51 }
  0xe4   : > { %v5099_v52 = vpop.f32.mrf.mxu0 }
  0xe5   : > { %696 = vst.msk [vmem:[#allocation3 + $0x10] sm:$0xff] %vm693_vm9, %v5099_v52 }
  0xe6   : > { %v662_v42 = vpop.f32.mrf.mxu0 }
  0xe7   : > { %694 = vst.msk [vmem:[#allocation3] sm:$0xff] %vm693_vm9, %v662_v42 }
  0xe8   : > { %v5100_v53 = vpop.f32.mrf.mxu0 }
  0xe9   : > { %697 = vst.msk [vmem:[#allocation3 + $0x18] sm:$0xff] %vm693_vm9, %v5100_v53 }
  0xea   : > { %v665_v54 = vpop.f32.mrf.mxu0 }
  0xeb   : > { %695 = vst.msk [vmem:[#allocation3 + $0x8] sm:$0xff] %vm693_vm9, %v665_v54 }
  0xec   : > { %v1121_v58 = vld [vmem:[#allocation3 + $0x10] sm:$0xff] }
  0xee   : > { %v5103_v55 = vpop.f32.mrf.mxu1  ;;  %v1119_v61 = vld [vmem:[#allocation3] sm:$0xff] }
  0xef   : > { %700 = vst.msk [vmem:[#allocation3 + $0x30] sm:$0xff] %vm693_vm9, %v5103_v55 }
  0xf0   : > { %v678_v8 = vpop.f32.mrf.mxu1  ;;  %v1122_v0 = vld [vmem:[#allocation3 + $0x18] sm:$0xff] }
  0xf1   : > { %698 = vst.msk [vmem:[#allocation3 + $0x20] sm:$0xff] %vm693_vm9, %v678_v8 }
  0xf2   : > { %v5104_v56 = vpop.f32.mrf.mxu1  ;;  %v1120_v3 = vld [vmem:[#allocation3 + $0x8] sm:$0xff] }
  0xf3   : > { %701 = vst.msk [vmem:[#allocation3 + $0x38] sm:$0xff] %vm693_vm9, %v5104_v56 }
  0xf4   : > { %v681_v57 = vpop.f32.mrf.mxu1 }
  0xf5   : > { %699 = vst.msk [vmem:[#allocation3 + $0x28] sm:$0xff] %vm693_vm9, %v681_v57 }
  0xf6   : > { %v1125_v24 = vld [vmem:[#allocation3 + $0x30] sm:$0xff] }
  0xf8   : > { %v5111_v59 = vpop.f32.mrf.mxu1  ;;  %v1123_v28 = vld [vmem:[#allocation3 + $0x20] sm:$0xff] }
  0xf9   : > { %v1129_v62 = vadd.f32 %v5111_v59, %v1121_v58 }
  0xfa   : > { %v1088_v63 = vpop.f32.mrf.mxu1  ;;  %v1126_v31 = vld [vmem:[#allocation3 + $0x38] sm:$0xff] }
  0xfb   : > { %1137 = vst.msk [vmem:[#allocation3 + $0x10] sm:$0xff] %vm693_vm9, %v1129_v62  ;;  %v1127_v1 = vadd.f32 %v1119_v61, %v1088_v63 }
  0xfc   : > { %v5112_v2 = vpop.f32.mrf.mxu1  ;;  %v1124_v34 = vld [vmem:[#allocation3 + $0x28] sm:$0xff] }
  0xfd   : > { %1135 = vst.msk [vmem:[#allocation3] sm:$0xff] %vm693_vm9, %v1127_v1  ;;  %v1130_v6 = vadd.f32 %v5112_v2, %v1122_v0 }
  0xfe   : > { %v1091_v4 = vpop.f32.mrf.mxu1 }
  0xff   : > { %1138 = vst.msk [vmem:[#allocation3 + $0x18] sm:$0xff] %vm693_vm9, %v1130_v6  ;;  %v1128_v36 = vadd.f32 %v1120_v3, %v1091_v4 }
 0x101   : > { %1136 = vst.msk [vmem:[#allocation3 + $0x8] sm:$0xff] %vm693_vm9, %v1128_v36 }
 0x102   : > { %v1731_v10 = vld [vmem:[#allocation3 + $0x10] sm:$0xff] }
 0x104   : > { %v5123_v11 = vpop.f32.mrf.mxu0  ;;  %v1729_v12 = vld [vmem:[#allocation3] sm:$0xff] }
 0x105   : > { %v1739_v13 = vadd.f32 %v5123_v11, %v1731_v10 }
 0x106   : > { %v1698_v14 = vpop.f32.mrf.mxu0  ;;  %v1732_v16 = vld [vmem:[#allocation3 + $0x18] sm:$0xff] }
 0x107   : > { %1747 = vst.msk [vmem:[#allocation3 + $0x10] sm:$0xff] %vm693_vm9, %v1739_v13  ;;  %v1737_v60 = vadd.f32 %v1729_v12, %v1698_v14 }
 0x108   : > { %v5124_v17 = vpop.f32.mrf.mxu0  ;;  %v1730_v7 = vld [vmem:[#allocation3 + $0x8] sm:$0xff] }
 0x109   : > { %1745 = vst.msk [vmem:[#allocation3] sm:$0xff] %vm693_vm9, %v1737_v60  ;;  %v1740_v19 = vadd.f32 %v5124_v17, %v1732_v16 }
 0x10a   : > { %v1701_v38 = vpop.f32.mrf.mxu0 }
 0x10b   : > { %1748 = vst.msk [vmem:[#allocation3 + $0x18] sm:$0xff] %vm693_vm9, %v1740_v19  ;;  %v1738_v22 = vadd.f32 %v1730_v7, %v1701_v38 }
 0x10d   : > { %1746 = vst.msk [vmem:[#allocation3 + $0x8] sm:$0xff] %vm693_vm9, %v1738_v22 }
 0x10e   : > { %v1991_v35 = vld [vmem:[#allocation3 + $0x10] sm:$0xff] }
 0x110   : > { %v1989_v5 = vld [vmem:[#allocation3] sm:$0xff] }
 0x111   : > { %v5115_v23 = vpop.f32.mrf.mxu1 }
 0x112   : > { %v1133_v25 = vadd.f32 %v5115_v23, %v1125_v24  ;;  %v1992_v45 = vld [vmem:[#allocation3 + $0x18] sm:$0xff] }
 0x113   : > { %v1104_v27 = vpop.f32.mrf.mxu1 }
 0x114   : > { %1141 = vst.msk [vmem:[#allocation3 + $0x30] sm:$0xff] %vm693_vm9, %v1133_v25  ;;  %v1131_v29 = vadd.f32 %v1123_v28, %v1104_v27  ;;  %v1990_v42 = vld [vmem:[#allocation3 + $0x8] sm:$0xff] }
 0x115   : > { %v5116_v30 = vpop.f32.mrf.mxu1 }
 0x116   : > { %1139 = vst.msk [vmem:[#allocation3 + $0x20] sm:$0xff] %vm693_vm9, %v1131_v29  ;;  %v1134_v32 = vadd.f32 %v5116_v30, %v1126_v31 }
 0x117   : > { %v1107_v33 = vpop.f32.mrf.mxu1 }
 0x118   : > { %1142 = vst.msk [vmem:[#allocation3 + $0x38] sm:$0xff] %vm693_vm9, %v1134_v32  ;;  %v1132_v9 = vadd.f32 %v1124_v34, %v1107_v33 }
 0x119   : > { %v5135_v40 = vpop.f32.mrf.mxu1 }
 0x11a   : > { %1140 = vst.msk [vmem:[#allocation3 + $0x28] sm:$0xff] %vm693_vm9, %v1132_v9  ;;  %v1999_v43 = vadd.f32 %v5135_v40, %v1991_v35 }
 0x11b   : > { %v1735_v15 = vld [vmem:[#allocation3 + $0x30] sm:$0xff]  ;;  %v1958_v44 = vpop.f32.mrf.mxu1 }
 0x11c   : > { %v5127_v47 = vpop.f32.mrf.mxu0  ;;  %2007 = vst.msk [vmem:[#allocation3 + $0x10] sm:$0xff] %vm693_vm9, %v1999_v43  ;;  %v1997_v48 = vadd.f32 %v1989_v5, %v1958_v44 }
 0x11d   : > { %v1743_v50 = vadd.f32 %v5127_v47, %v1735_v15  ;;  %v1733_v51 = vld [vmem:[#allocation3 + $0x20] sm:$0xff]  ;;  %v5136_v52 = vpop.f32.mrf.mxu1 }
 0x11e   : > { %v1714_v53 = vpop.f32.mrf.mxu0  ;;  %2005 = vst.msk [vmem:[#allocation3] sm:$0xff] %vm693_vm9, %v1997_v48  ;;  %v2000_v54 = vadd.f32 %v5136_v52, %v1992_v45 }
 0x11f   : > { %1751 = vst.msk [vmem:[#allocation3 + $0x30] sm:$0xff] %vm693_vm9, %v1743_v50  ;;  %v1741_v55 = vadd.f32 %v1733_v51, %v1714_v53  ;;  %v1736_v8 = vld [vmem:[#allocation3 + $0x38] sm:$0xff]  ;;  %v1961_v56 = vpop.f32.mrf.mxu1 }
 0x120   : > { %v5128_v57 = vpop.f32.mrf.mxu0  ;;  %2008 = vst.msk [vmem:[#allocation3 + $0x18] sm:$0xff] %vm693_vm9, %v2000_v54  ;;  %v1998_v58 = vadd.f32 %v1990_v42, %v1961_v56 }
 0x121   : > { %1749 = vst.msk [vmem:[#allocation3 + $0x20] sm:$0xff] %vm693_vm9, %v1741_v55  ;;  %v1744_v59 = vadd.f32 %v5128_v57, %v1736_v8  ;;  %v1734_v61 = vld [vmem:[#allocation3 + $0x28] sm:$0xff] }
 0x122   : > { %v1717_v62 = vpop.f32.mrf.mxu0  ;;  %2006 = vst.msk [vmem:[#allocation3 + $0x8] sm:$0xff] %vm693_vm9, %v1998_v58 }
 0x123   : > { %1752 = vst.msk [vmem:[#allocation3 + $0x38] sm:$0xff] %vm693_vm9, %v1744_v59  ;;  %v1742_v63 = vadd.f32 %v1734_v61, %v1717_v62  ;;  %v2425_v0 = vld [vmem:[#allocation3 + $0x10] sm:$0xff] }
 0x124   : > { %v5139_v1 = vpop.f32.mrf.mxu1  ;;  %v5147_v2 = vpop.f32.mrf.mxu0 }
 0x125   : > { %1750 = vst.msk [vmem:[#allocation3 + $0x28] sm:$0xff] %vm693_vm9, %v1742_v63  ;;  %v2433_v3 = vadd.f32 %v5147_v2, %v2425_v0  ;;  %v2423_v6 = vld [vmem:[#allocation3] sm:$0xff] }
 0x126   : > { %v1995_v4 = vld [vmem:[#allocation3 + $0x30] sm:$0xff]  ;;  %v1974_v36 = vpop.f32.mrf.mxu1  ;;  %v2392_v10 = vpop.f32.mrf.mxu0 }
 0x127   : > { %v2003_v11 = vadd.f32 %v5139_v1, %v1995_v4  ;;  %2441 = vst.msk [vmem:[#allocation3 + $0x10] sm:$0xff] %vm693_vm9, %v2433_v3  ;;  %v2431_v12 = vadd.f32 %v2423_v6, %v2392_v10  ;;  %v2426_v13 = vld [vmem:[#allocation3 + $0x18] sm:$0xff] }
 0x128   : > { %v1993_v14 = vld [vmem:[#allocation3 + $0x20] sm:$0xff]  ;;  %v5140_v16 = vpop.f32.mrf.mxu1  ;;  %v5148_v60 = vpop.f32.mrf.mxu0 }
 0x129   : > { %2011 = vst.msk [vmem:[#allocation3 + $0x30] sm:$0xff] %vm693_vm9, %v2003_v11  ;;  %v2001_v17 = vadd.f32 %v1993_v14, %v1974_v36  ;;  %2439 = vst.msk [vmem:[#allocation3] sm:$0xff] %vm693_vm9, %v2431_v12  ;;  %v2434_v7 = vadd.f32 %v5148_v60, %v2426_v13  ;;  %v2424_v18 = vld [vmem:[#allocation3 + $0x8] sm:$0xff] }
 0x12a   : > { %v1996_v19 = vld [vmem:[#allocation3 + $0x38] sm:$0xff]  ;;  %v1977_v38 = vpop.f32.mrf.mxu1  ;;  %v2395_v21 = vpop.f32.mrf.mxu0 }
 0x12b   : > { %2009 = vst.msk [vmem:[#allocation3 + $0x20] sm:$0xff] %vm693_vm9, %v2001_v17  ;;  %v2004_v22 = vadd.f32 %v5140_v16, %v1996_v19  ;;  %2442 = vst.msk [vmem:[#allocation3 + $0x18] sm:$0xff] %vm693_vm9, %v2434_v7  ;;  %v2432_v23 = vadd.f32 %v2424_v18, %v2395_v21 }
 0x12c   : > { %v1994_v24 = vld [vmem:[#allocation3 + $0x28] sm:$0xff]  ;;  %v5159_v25 = vpop.f32.mrf.mxu1 }
 0x12d   : > { %2012 = vst.msk [vmem:[#allocation3 + $0x38] sm:$0xff] %vm693_vm9, %v2004_v22  ;;  %v2002_v27 = vadd.f32 %v1994_v24, %v1977_v38  ;;  %2440 = vst.msk [vmem:[#allocation3 + $0x8] sm:$0xff] %vm693_vm9, %v2432_v23 }
 0x12e   : > { %v3035_v28 = vld [vmem:[#allocation3 + $0x10] sm:$0xff]  ;;  %v3002_v29 = vpop.f32.mrf.mxu1 }
 0x12f   : > { %2010 = vst.msk [vmem:[#allocation3 + $0x28] sm:$0xff] %vm693_vm9, %v2002_v27  ;;  %v3043_v30 = vadd.f32 %v5159_v25, %v3035_v28 }
 0x130   : > { %v3033_v31 = vld [vmem:[#allocation3] sm:$0xff]  ;;  %v5160_v32 = vpop.f32.mrf.mxu1  ;;  %v2429_v39 = vld [vmem:[#allocation3 + $0x30] sm:$0xff] }
 0x131   : > { %3051 = vst.msk [vmem:[#allocation3 + $0x10] sm:$0xff] %vm693_vm9, %v3043_v30  ;;  %v3041_v33 = vadd.f32 %v3033_v31, %v3002_v29 }
 0x132   : > { %v3036_v34 = vld [vmem:[#allocation3 + $0x18] sm:$0xff]  ;;  %v3005_v9 = vpop.f32.mrf.mxu1  ;;  %v2427_v41 = vld [vmem:[#allocation3 + $0x20] sm:$0xff] }
 0x133   : > { %3049 = vst.msk [vmem:[#allocation3] sm:$0xff] %vm693_vm9, %v3041_v33  ;;  %v3044_v35 = vadd.f32 %v5160_v32, %v3036_v34 }
 0x134   : > { %v3034_v37 = vld [vmem:[#allocation3 + $0x8] sm:$0xff]  ;;  %v2430_v15 = vld [vmem:[#allocation3 + $0x38] sm:$0xff] }
 0x135   : > { %3052 = vst.msk [vmem:[#allocation3 + $0x18] sm:$0xff] %vm693_vm9, %v3044_v35  ;;  %v3042_v40 = vadd.f32 %v3034_v37, %v3005_v9  ;;  %v5151_v5 = vpop.f32.mrf.mxu0 }
 0x136   : > { %v2437_v26 = vadd.f32 %v5151_v5, %v2429_v39  ;;  %v2428_v46 = vld [vmem:[#allocation3 + $0x28] sm:$0xff] }
 0x137   : > { %3050 = vst.msk [vmem:[#allocation3 + $0x8] sm:$0xff] %vm693_vm9, %v3042_v40  ;;  %v2408_v43 = vpop.f32.mrf.mxu0 }
 0x138   : > { %2445 = vst.msk [vmem:[#allocation3 + $0x30] sm:$0xff] %vm693_vm9, %v2437_v26  ;;  %v2435_v44 = vadd.f32 %v2427_v41, %v2408_v43  ;;  %v3295_v50 = vld [vmem:[#allocation3 + $0x10] sm:$0xff] }
 0x139   : > { %v5152_v45 = vpop.f32.mrf.mxu0 }
 0x13a   : > { %2443 = vst.msk [vmem:[#allocation3 + $0x20] sm:$0xff] %vm693_vm9, %v2435_v44  ;;  %v2438_v47 = vadd.f32 %v5152_v45, %v2430_v15  ;;  %v3293_v52 = vld [vmem:[#allocation3] sm:$0xff] }
 0x13b   : > { %v2411_v48 = vpop.f32.mrf.mxu0 }
 0x13c   : > { %2446 = vst.msk [vmem:[#allocation3 + $0x38] sm:$0xff] %vm693_vm9, %v2438_v47  ;;  %v2436_v49 = vadd.f32 %v2428_v46, %v2411_v48  ;;  %v3296_v55 = vld [vmem:[#allocation3 + $0x18] sm:$0xff] }
 0x13d   : > { %v5171_v51 = vpop.f32.mrf.mxu0 }
 0x13e   : > { %2444 = vst.msk [vmem:[#allocation3 + $0x28] sm:$0xff] %vm693_vm9, %v2436_v49  ;;  %v3303_v53 = vadd.f32 %v5171_v51, %v3295_v50  ;;  %v3294_v61 = vld [vmem:[#allocation3 + $0x8] sm:$0xff] }
 0x13f   : > { %v3039_v42 = vld [vmem:[#allocation3 + $0x30] sm:$0xff]  ;;  %v3262_v54 = vpop.f32.mrf.mxu0 }
 0x140   : > { %3311 = vst.msk [vmem:[#allocation3 + $0x10] sm:$0xff] %vm693_vm9, %v3303_v53  ;;  %v3301_v57 = vadd.f32 %v3293_v52, %v3262_v54 }
 0x141   : > { %v3037_v56 = vld [vmem:[#allocation3 + $0x20] sm:$0xff]  ;;  %v5172_v59 = vpop.f32.mrf.mxu0 }
 0x142   : > { %v5163_v8 = vpop.f32.mrf.mxu1  ;;  %3309 = vst.msk [vmem:[#allocation3] sm:$0xff] %vm693_vm9, %v3301_v57  ;;  %v3304_v0 = vadd.f32 %v5172_v59, %v3296_v55 }
 0x143   : > { %v3047_v58 = vadd.f32 %v5163_v8, %v3039_v42  ;;  %v3040_v63 = vld [vmem:[#allocation3 + $0x38] sm:$0xff]  ;;  %v3265_v2 = vpop.f32.mrf.mxu0 }
 0x144   : > { %v3018_v62 = vpop.f32.mrf.mxu1  ;;  %3312 = vst.msk [vmem:[#allocation3 + $0x18] sm:$0xff] %vm693_vm9, %v3304_v0  ;;  %v3302_v4 = vadd.f32 %v3294_v61, %v3265_v2 }
 0x145   : > { %3055 = vst.msk [vmem:[#allocation3 + $0x30] sm:$0xff] %vm693_vm9, %v3047_v58  ;;  %v3045_v1 = vadd.f32 %v3037_v56, %v3018_v62  ;;  %v3038_v6 = vld [vmem:[#allocation3 + $0x28] sm:$0xff] }
 0x146   : > { %v5164_v3 = vpop.f32.mrf.mxu1  ;;  %3310 = vst.msk [vmem:[#allocation3 + $0x8] sm:$0xff] %vm693_vm9, %v3302_v4 }
 0x147   : > { %3053 = vst.msk [vmem:[#allocation3 + $0x20] sm:$0xff] %vm693_vm9, %v3045_v1  ;;  %v3048_v36 = vadd.f32 %v5164_v3, %v3040_v63  ;;  %v3729_v12 = vld [vmem:[#allocation3 + $0x10] sm:$0xff] }
 0x148   : > { %v3021_v10 = vpop.f32.mrf.mxu1 }
 0x149   : > { %3056 = vst.msk [vmem:[#allocation3 + $0x38] sm:$0xff] %vm693_vm9, %v3048_v36  ;;  %v3046_v11 = vadd.f32 %v3038_v6, %v3021_v10  ;;  %v3727_v60 = vld [vmem:[#allocation3] sm:$0xff] }
 0x14a   : > { %v5175_v13 = vpop.f32.mrf.mxu0  ;;  %v5183_v14 = vpop.f32.mrf.mxu1  ;;  %v5019_v10 = vld [vmem:[%s6026_s5] ss:$0 sm:$0xff] }
 0x14b   : > { %3054 = vst.msk [vmem:[#allocation3 + $0x28] sm:$0xff] %vm693_vm9, %v3046_v11  ;;  %v3737_v16 = vadd.f32 %v5183_v14, %v3729_v12  ;;  %v3730_v21 = vld [vmem:[#allocation3 + $0x18] sm:$0xff] }
 0x14c   : > { %v3299_v17 = vld [vmem:[#allocation3 + $0x30] sm:$0xff]  ;;  %v3278_v7 = vpop.f32.mrf.mxu0  ;;  %v3696_v18 = vpop.f32.mrf.mxu1 }
 0x14d   : > { %v3307_v19 = vadd.f32 %v5175_v13, %v3299_v17  ;;  %3745 = vst.msk [vmem:[#allocation3 + $0x10] sm:$0xff] %vm693_vm9, %v3737_v16  ;;  %v3735_v38 = vadd.f32 %v3727_v60, %v3696_v18  ;;  %v3728_v28 = vld [vmem:[#allocation3 + $0x8] sm:$0xff]  ;;  %v5020_v18 = vld [vmem:[%s6027_s6] ss:$0 sm:$0xff] }
 0x14e   : > { %v3297_v22 = vld [vmem:[#allocation3 + $0x20] sm:$0xff]  ;;  %v5176_v23 = vpop.f32.mrf.mxu0  ;;  %v5184_v24 = vpop.f32.mrf.mxu1 }
 0x14f   : > { %3315 = vst.msk [vmem:[#allocation3 + $0x30] sm:$0xff] %vm693_vm9, %v3307_v19  ;;  %v3305_v25 = vadd.f32 %v3297_v22, %v3278_v7  ;;  %3743 = vst.msk [vmem:[#allocation3] sm:$0xff] %vm693_vm9, %v3735_v38  ;;  %v3738_v27 = vadd.f32 %v5184_v24, %v3730_v21 }
 0x150   : > { %v3300_v29 = vld [vmem:[#allocation3 + $0x38] sm:$0xff]  ;;  %v3699_v30 = vpop.f32.mrf.mxu1  ;;  %v3281_v33 = vpop.f32.mrf.mxu0 }
 0x151   : > { %3313 = vst.msk [vmem:[#allocation3 + $0x20] sm:$0xff] %vm693_vm9, %v3305_v25  ;;  %v3308_v31 = vadd.f32 %v5176_v23, %v3300_v29  ;;  %3746 = vst.msk [vmem:[#allocation3 + $0x18] sm:$0xff] %vm693_vm9, %v3738_v27  ;;  %v3736_v32 = vadd.f32 %v3728_v28, %v3699_v30 }
 0x152   : > { %v3298_v34 = vld [vmem:[#allocation3 + $0x28] sm:$0xff]  ;;  %v5195_v37 = vpop.f32.mrf.mxu0 }
 0x153   : > { %3316 = vst.msk [vmem:[#allocation3 + $0x38] sm:$0xff] %vm693_vm9, %v3308_v31  ;;  %v3306_v35 = vadd.f32 %v3298_v34, %v3281_v33  ;;  %3744 = vst.msk [vmem:[#allocation3 + $0x8] sm:$0xff] %vm693_vm9, %v3736_v32 }
 0x154   : > { %v4339_v9 = vld [vmem:[#allocation3 + $0x10] sm:$0xff]  ;;  %v4306_v5 = vpop.f32.mrf.mxu0 }
 0x155   : > { %3314 = vst.msk [vmem:[#allocation3 + $0x28] sm:$0xff] %vm693_vm9, %v3306_v35  ;;  %v4347_v39 = vadd.f32 %v5195_v37, %v4339_v9 }
 0x156   : > { %v4337_v40 = vld [vmem:[#allocation3] sm:$0xff]  ;;  %v5196_v43 = vpop.f32.mrf.mxu0  ;;  %v3733_v47 = vld [vmem:[#allocation3 + $0x30] sm:$0xff] }
 0x157   : > { %4355 = vst.msk [vmem:[#allocation3 + $0x10] sm:$0xff] %vm693_vm9, %v4347_v39  ;;  %v4345_v41 = vadd.f32 %v4337_v40, %v4306_v5 }
 0x158   : > { %v4340_v26 = vld [vmem:[#allocation3 + $0x18] sm:$0xff]  ;;  %v4309_v45 = vpop.f32.mrf.mxu0  ;;  %v3731_v49 = vld [vmem:[#allocation3 + $0x20] sm:$0xff] }
 0x159   : > { %4353 = vst.msk [vmem:[#allocation3] sm:$0xff] %vm693_vm9, %v4345_v41  ;;  %v4348_v15 = vadd.f32 %v5196_v43, %v4340_v26 }
 0x15a   : > { %v4338_v44 = vld [vmem:[#allocation3 + $0x8] sm:$0xff]  ;;  %v3734_v52 = vld [vmem:[#allocation3 + $0x38] sm:$0xff] }
 0x15b   : > { %4356 = vst.msk [vmem:[#allocation3 + $0x18] sm:$0xff] %vm693_vm9, %v4348_v15  ;;  %v4346_v46 = vadd.f32 %v4338_v44, %v4309_v45  ;;  %v5187_v48 = vpop.f32.mrf.mxu1 }
 0x15c   : > { %v3741_v50 = vadd.f32 %v5187_v48, %v3733_v47  ;;  %v3732_v54 = vld [vmem:[#allocation3 + $0x28] sm:$0xff] }
 0x15d   : > { %4354 = vst.msk [vmem:[#allocation3 + $0x8] sm:$0xff] %vm693_vm9, %v4346_v46  ;;  %v3712_v51 = vpop.f32.mrf.mxu1 }
 0x15e   : > { %3749 = vst.msk [vmem:[#allocation3 + $0x30] sm:$0xff] %vm693_vm9, %v3741_v50  ;;  %v3739_v42 = vadd.f32 %v3731_v49, %v3712_v51  ;;  %v4363_v11 = vld [vmem:[#allocation3 + $0x10] sm:$0xff] }
 0x15f   : > { %v5188_v53 = vpop.f32.mrf.mxu1  ;;  %v4378_v7 = vmul.f32 %v5019_v10, %v4363_v11 }
 0x160   : > { %3747 = vst.msk [vmem:[#allocation3 + $0x20] sm:$0xff] %vm693_vm9, %v3739_v42  ;;  %v3742_v55 = vadd.f32 %v5188_v53, %v3734_v52  ;;  %v4361_v4 = vld [vmem:[#allocation3] sm:$0xff] }
 0x161   : > { %v3715_v8 = vpop.f32.mrf.mxu1  ;;  %v4376_v12 = vmul.f32 %v5019_v10, %v4361_v4  ;;  %v4393_v29 = vadd.f32 %v5020_v18, %v4378_v7 }
 0x162   : > { %3750 = vst.msk [vmem:[#allocation3 + $0x38] sm:$0xff] %vm693_vm9, %v3742_v55  ;;  %v3740_v56 = vadd.f32 %v3732_v54, %v3715_v8  ;;  %v4364_v60 = vld [vmem:[#allocation3 + $0x18] sm:$0xff] }
 0x163   : > { %v4391_v21 = vadd.f32 %v5020_v18, %v4376_v12  ;;  %v4379_v23 = vmul.f32 %v5019_v10, %v4364_v60 }
 0x164   : > { %3748 = vst.msk [vmem:[#allocation3 + $0x28] sm:$0xff] %vm693_vm9, %v3740_v56  ;;  %v4362_v13 = vld [vmem:[#allocation3 + $0x8] sm:$0xff] }
 0x165   : > { %v4343_v57 = vld [vmem:[#allocation3 + $0x30] sm:$0xff]  ;;  %v4377_v19 = vmul.f32 %v5019_v10, %v4362_v13  ;;  %v4399_v33 = vmax.f32 %v4391_v21, %v4393_v29  ;;  %v4394_v34 = vadd.f32 %v5020_v18, %v4379_v23 }
 0x167   : > { %v5199_v58 = vpop.f32.mrf.mxu0  ;;  %v4341_v59 = vld [vmem:[#allocation3 + $0x20] sm:$0xff]  ;;  %v4392_v30 = vadd.f32 %v5020_v18, %v4377_v19 }
 0x168   : > { %v4351_v61 = vadd.f32 %v5199_v58, %v4343_v57 }
 0x169   : > { %v4322_v62 = vpop.f32.mrf.mxu0  ;;  %v4344_v63 = vld [vmem:[#allocation3 + $0x38] sm:$0xff]  ;;  %v4400_v37 = vmax.f32 %v4392_v30, %v4394_v34 }
 0x16a   : > { %4359 = vst.msk [vmem:[#allocation3 + $0x30] sm:$0xff] %vm693_vm9, %v4351_v61  ;;  %v4349_v0 = vadd.f32 %v4341_v59, %v4322_v62  ;;  %v5025_v61 = vld [vmem:[%s5855_s19 + $0x2] sm:$0x3] }
 0x16b   : > { %v5200_v1 = vpop.f32.mrf.mxu0  ;;  %v4342_v2 = vld [vmem:[#allocation3 + $0x28] sm:$0xff] }
 0x16c   : > { %4357 = vst.msk [vmem:[#allocation3 + $0x20] sm:$0xff] %vm693_vm9, %v4349_v0  ;;  %v4352_v3 = vadd.f32 %v5200_v1, %v4344_v63 }
 0x16d   : > { %v4325_v6 = vpop.f32.mrf.mxu0 }
 0x16e   : > { %4360 = vst.msk [vmem:[#allocation3 + $0x38] sm:$0xff] %vm693_vm9, %v4352_v3  ;;  %v4350_v36 = vadd.f32 %v4342_v2, %v4325_v6  ;;  %v5027_v6 = vld [vmem:[%s5855_s19 + $0x4] sm:$0x3] }
 0x170   : > { %4358 = vst.msk [vmem:[#allocation3 + $0x28] sm:$0xff] %vm693_vm9, %v4350_v36 }
 0x171   : > { %v4367_v14 = vld [vmem:[#allocation3 + $0x30] sm:$0xff] }
 0x172   : > { %v4382_v16 = vmul.f32 %v5019_v10, %v4367_v14 }
 0x173   : > { %v4365_v17 = vld [vmem:[#allocation3 + $0x20] sm:$0xff] }
 0x174   : > { %v4380_v38 = vmul.f32 %v5019_v10, %v4365_v17  ;;  %v4397_v24 = vadd.f32 %v5020_v18, %v4382_v16 }
 0x175   : > { %v4368_v22 = vld [vmem:[#allocation3 + $0x38] sm:$0xff] }
 0x176   : > { %v4395_v25 = vadd.f32 %v5020_v18, %v4380_v38  ;;  %v4383_v27 = vmul.f32 %v5019_v10, %v4368_v22  ;;  %v4535_v38 = vld [vmem:[%s5875_s26] sm:$0x3]  ;;  %v5021_v22 = vld [vmem:[%s5834_s17 + $0x2] sm:$0x3] }
 0x177   : > { %v4366_v28 = vld [vmem:[#allocation3 + $0x28] sm:$0xff] }
 0x178   : > { %v4401_v31 = vmax.f32 %v4395_v25, %v4397_v24  ;;  %v4381_v32 = vmul.f32 %v5019_v10, %v4366_v28  ;;  %v4398_v35 = vadd.f32 %v5020_v18, %v4383_v27  ;;  %v5023_v24 = vld [vmem:[%s5834_s17 + $0x4] sm:$0x3] }
 0x17a   : > { %v4396_v9 = vadd.f32 %v5020_v18, %v4381_v32  ;;  %v4403_v39 = vmax.f32 %v4399_v33, %v4401_v31  ;;  %v4504_v18 = vld [vmem:[%s5861_s22] sm:$0x3] }
 0x17c   : > { %v4402_v40 = vmax.f32 %v4396_v9, %v4398_v35  ;;  %v4405_v41 = vmax.f32 %v4403_v39, 0.0  ;;  %v5035_v9 = vld [vmem:[%s5875_s26 + $0x2] sm:$0x3] }
 0x17e   : > { %v4404_v5 = vmax.f32 %v4400_v37, %v4402_v40 }
 0x180   : > { %v4406_v26 = vmax.f32 %v4404_v5, 0.0  ;;  %v5031_v5 = vld [vmem:[%s5861_s22 + $0x2] sm:$0x3] }
 0x182   : > { %v5941_v43 = vpack.c.bf16 %v4406_v26, %v4405_v41 }
 0x184   : > { %v4414_v15 = vshrl.u32 %v5941_v43, 16  ;;  %v4419_v44 = vrot.slane %v5941_v43, 3  ;;  %v4440_v46 = vrot.slane %v5941_v43, 7  ;;  %v4459_v47 = vrot.slane %v5941_v43, 2 }
 0x185   : > { %v4461_v48 = vshll.u32 %v5941_v43, 16  ;;  %v4475_v49 = vrot.slane %v5941_v43, 6  ;;  %v4492_v50 = vrot.slane %v5941_v43, 1  ;;  %v4509_v51 = vrot.slane %v5941_v43, 5 }
 0x186   : > { %v4416_v52 = vrot.slane %v4414_v15, 2  ;;  %v4438_v42 = vrot.slane %v4414_v15, 6  ;;  %v4507_v53 = vrot.slane %v4414_v15, 4  ;;  %v4538_v54 = vrot.slane %v5941_v43, 4 }
 0x187   : > { %v4463_v55 = vrot.slane %v4461_v48, 3  ;;  %v4477_v8 = vrot.slane %v4461_v48, 7  ;;  %v4494_v56 = vsel %vm5946_vm14, %v4414_v15, %v4492_v50  ;;  %v4529_v57 = vrot.slane %v4461_v48, 1 }
 0x188   : > { %v4424_v58 = vsel %vm5946_vm14, %v4416_v52, %v4419_v44  ;;  %v4442_v59 = vsel %vm5946_vm14, %v4438_v42, %v4440_v46  ;;  %v4496_v62 = vshrl.u32 %v4494_v56, 16  ;;  %v4499_v63 = vshll.u32 %v4494_v56, 16 }
 0x189   : > { %v4426_v0 = vshrl.u32 %v4424_v58, 16  ;;  %v4429_v1 = vshll.u32 %v4424_v58, 16  ;;  %v4444_v2 = vshrl.u32 %v4442_v59, 16  ;;  %v4447_v3 = vshll.u32 %v4442_v59, 16 }
 0x18a   : > { %v4465_v4 = vsel %vm5946_vm14, %v4459_v47, %v4463_v55  ;;  %v4479_v36 = vsel %vm5946_vm14, %v4475_v49, %v4477_v8  ;;  %v4498_v10 = vrot.slane %v4496_v62, 7  ;;  %v4511_v11 = vsel %vm5946_vm14, %v4507_v53, %v4509_v51 }
 0x18b   : > { %v4428_v12 = vrot.slane %v4426_v0, 7  ;;  %v4446_v13 = vrot.slane %v4444_v2, 7  ;;  %v4469_v14 = vsel %vm4421_vm12, %v4465_v4, 0  ;;  %v4481_v16 = vsel %vm4421_vm12, %v4479_v36, 0 }
 0x18c   : > { %v4473_v60 = vsel %vm5840_vm11, %v4469_v14, %v5025_v61  ;;  %v4485_v17 = vsel %vm5840_vm11, %v4481_v16, %v5027_v6  ;;  %v4501_v7 = vor.u32 %v4499_v63, %v4498_v10  ;;  %v4513_v19 = vshrl.u32 %v4511_v11, 16 }
 0x18d   : > { %v4431_v21 = vor.u32 %v4429_v1, %v4428_v12  ;;  %v4449_v23 = vor.u32 %v4447_v3, %v4446_v13  ;;  %5026 = vst [vmem:[%s5855_s19 + $0x2] sm:$0x3] %v4473_v60  ;;  %5028 = vst [vmem:[%s5855_s19 + $0x4] sm:$0x3] %v4485_v17  ;;  %v4516_v25 = vshll.u32 %v4511_v11, 16  ;;  %v4531_v27 = vsel %vm5946_vm14, %v5941_v43, %v4529_v57 }
 0x18e   : > { %v4503_v28 = vsel %vm5946_vm14, 0, %v4501_v7  ;;  %v4515_v29 = vrot.slane %v4513_v19, 7  ;;  %v4533_v30 = vsel %vm4421_vm12, %v4531_v27, 0  ;;  %v4540_v31 = vrot.slane %v4461_v48, 5 }
 0x18f   : > { %v4433_v32 = vsel %vm5946_vm14, 0, %v4431_v21  ;;  %v4451_v33 = vsel %vm5946_vm14, 0, %v4449_v23  ;;  %v4505_v34 = vsel %vm5840_vm11, %v4503_v28, %v4504_v18  ;;  %v4536_v35 = vsel %vm5840_vm11, %v4533_v30, %v4535_v38 }
 0x190   : > { %v4436_v37 = vsel %vm5840_vm11, %v4433_v32, %v5021_v22  ;;  %v4454_v39 = vsel %vm5840_vm11, %v4451_v33, %v5023_v24  ;;  %4506 = vst [vmem:[%s5861_s22] sm:$0x3] %v4505_v34  ;;  %v4518_v40 = vor.u32 %v4516_v25, %v4515_v29  ;;  %4537 = vst [vmem:[%s5875_s26] sm:$0x3] %v4536_v35 }
 0x191   : > { %v4542_v41 = vsel %vm5946_vm14, %v4538_v54, %v4540_v31  ;;  %5022 = vst [vmem:[%s5834_s17 + $0x2] sm:$0x3] %v4436_v37  ;;  %5024 = vst [vmem:[%s5834_s17 + $0x4] sm:$0x3] %v4454_v39 }
 0x192   : > { %v4544_v26 = vsel %vm4421_vm12, %v4542_v41, 0  ;;  %v4520_v43 = vsel %vm5946_vm14, 0, %v4518_v40 }
 0x193   : > { %v4548_v15 = vsel %vm5840_vm11, %v4544_v26, %v5035_v9  ;;  %v4523_v44 = vsel %vm5840_vm11, %v4520_v43, %v5031_v5 }
 0x194   : > { %5036 = vst [vmem:[%s5875_s26 + $0x2] sm:$0x3] %v4548_v15  ;;  %5032 = vst [vmem:[%s5861_s22 + $0x2] sm:$0x3] %v4523_v44 }
 0x195 PF: > { %s21_s13 = sadd.s32 1, %s5348_s13  }
 0x196   : > { %p18_p4 = scmp.ge.s32.totalorder %s21_s13, 4  }
 0x198   :  { %20 = sbr.rel (!%p18_p4) target bundleno = 1 (0x1), region = 143 }

// kernel: plant_disease_forward.7
= control target key start
LH: loop header
LB: loop body
LE: loop exit
PB: predicated region body
PF: predicated region fallthrough
CT: control target
= control target key end

     0   :  { %s4249_s0 = inlined_call_operand.vmem [shape: bf16[2,2,2,128], index: 0, kind: input, shape index: {}]   ;;  %s4250_s1 = inlined_call_operand.vmem [shape: bf16[2,2,2,128], index: 1, kind: input, shape index: {}]   ;;  %s4251_s2 = inlined_call_operand.vmem [shape: bf16[2,2,2,128], index: 2, kind: input, shape index: {}]   ;;  %s4252_s3 = inlined_call_operand.vmem [shape: bf16[2,2,2,128], index: 3, kind: input, shape index: {}]   ;;  %s4253_s4 = inlined_call_operand.vmem [shape: bf16[9,128,256], index: 4, kind: input, shape index: {}]   ;;  %s4254_s5 = inlined_call_operand.vmem [shape: f32[1,256], index: 5, kind: input, shape index: {}]   ;;  %s4255_s6 = inlined_call_operand.vmem [shape: f32[1,256], index: 6, kind: input, shape index: {}]   ;;  %s4256_s7 = inlined_call_operand.vmem [shape: bf16[256,128], index: 7, kind: input, shape index: {}]   ;;  %s4257_s8 = inlined_call_operand.vmem [shape: f32[1,128], index: 8, kind: input, shape index: {}]   ;;  %s4258_s9 = inlined_call_operand.vmem [shape: bf16[128,128], index: 9, kind: input, shape index: {}]   ;;  %s4259_s10 = inlined_call_operand.vmem [shape: f32[1,128], index: 10, kind: input, shape index: {}]   ;;  %s4260_s11 = inlined_call_operand.hbm [shape: f32[2,1,128], index: 11, kind: output, shape index: {}]  }
   0x1   :  { %4262 = sst [smem:[#allocation9_spill]] %s4249_s0 }
   0x2   :  { %4263 = sst [smem:[#allocation10_spill]] %s4250_s1 }
   0x3   :  { %16 = vsyncpa [#allocation5], 0 }
   0x4   :  { %18 = vsyncpa [#allocation5 + $0x1], 0  ;;  %s3426_s17 = smov 0   ;;  %s3428_s18 = smov 0  }
   0x5   :  { %s3430_s19 = smov 0   ;;  %s3432_s20 = smov 0  }
   0x6 LB: > { %4264 = sst [smem:[#allocation7_spill]] %s3355_s19  ;;  %s3447_s21 = sadd.s32 4294967295, %s3359_s20   ;;  %s3359_s20 = sphi %s3432_s20, %s4282_s20   ;;  %s3355_s19 = sphi %s3430_s19, %s4279_s19   ;;  %s3351_s18 = sphi %s3428_s18, %s4281_s18   ;;  %s3347_s17 = sphi %s3426_s17, %s4280_s17  }
   0x7   : > { %s2611_s22 = sadd.s32 4294967294, %s3359_s20   ;;  %s3451_s23 = sadd.s32 1, %s3359_s20  }
   0x8   : > { %s282_s24 = sadd.s32 1, %s3355_s19  ;;  %s279_s25 = ssub.s32 %s3359_s20, %s3451_s23 }
   0x9   : > { %p292_p0 = scmp.ne.s32.totalorder %s3355_s19, %s3351_s18  ;;  %p280_p1 = scmp.eq.s32.totalorder %s279_s25, 0 }
   0xa   : > { %p293_p2 = scmp.eq.s32.totalorder %s3447_s21, 1  ;;  %p298_p3 = scmp.ne.s32.totalorder %s3351_s18, %s3347_s17 }
   0xb   : > { %p299_p4 = scmp.eq.s32.totalorder %s2611_s22, 1  ;;  %p2614_p7 = scmp.ge.s32.totalorder %s3359_s20, 1 }
   0xc   : > { %s3462_s26 = scalar_select %p280_p1, %s3355_s19, %s282_s24  }
   0xd   : > { %p3464_p5 = por %p293_p2, %p292_p0  ;;  %p3468_p6 = por %p299_p4, %p298_p3 }
   0xe   : > { %4265 = sst [smem:[#allocation8_spill]] %s3462_s26  ;;  %p366_p8 = scmp.lt.s32.totalorder %s3359_s20, 3 }
  0x10   : > { %p367_p9 = pnand %p2614_p7, %p366_p8 }
  0x11   : > { %p416_p10 = scmp.lt.s32.totalorder (!%p367_p9), %s3447_s21, 1  ;;  %s4268_s0 = sld [smem:[#allocation9_spill]] (!%p367_p9) }
  0x12   : > { %370 = sbr.rel (%p367_p9) target bundleno = 837 (0x345), region = 64  ;;  %s4269_s1 = sld [smem:[#allocation10_spill]] (!%p367_p9) }
  0x17   : > { %v3047_v0 = vld [vmem:[%s4253_s4 + $0x74] ss:$8 sps:$4 sm:$0xff]   ;;  %v3049_v1 = vld [vmem:[%s4253_s4 + $0x70] ss:$8 sps:$4 sm:$0xff]   ;;  %v3361_v2 = vmov 0   ;;  %s417_s12 = scalar_select %p416_p10, %s3447_s21, 1  ;;  %v464_v17 = vlaneseq }
  0x18   : > { %623 = vmatprep.mubr.bf16.mxu0 %v3361_v2  ;;  %803 = vmatprep.mubr.bf16.mxu1 %v3361_v2  ;;  %v3050_v3 = vld [vmem:[%s4253_s4 + $0x64] ss:$8 sps:$4 sm:$0xff]   ;;  %v3052_v4 = vld [vmem:[%s4253_s4 + $0x60] ss:$8 sps:$4 sm:$0xff]   ;;  %v3053_v5 = vld [vmem:[%s4253_s4 + $0x54] ss:$8 sps:$4 sm:$0xff]  }
  0x19   : > { %591 = vmatprep.subr.bf16.mxu0 %v3047_v0  ;;  %v3058_v6 = vld [vmem:[%s4253_s4 + $0xf4] ss:$8 sps:$4 sm:$0xff]   ;;  %v3061_v7 = vld [vmem:[%s4253_s4 + $0xf0] ss:$8 sps:$4 sm:$0xff]   ;;  %v3056_v9 = vld [vmem:[%s4253_s4 + $0x44] ss:$8 sps:$4 sm:$0xff]  }
  0x1a   : > { %592 = vmatpush1.bf16.msra.mxu0 %v3049_v1  ;;  %v3055_v8 = vld [vmem:[%s4253_s4 + $0x50] ss:$8 sps:$4 sm:$0xff]   ;;  %771 = vmatprep.subr.bf16.mxu1 %v3058_v6  ;;  %v3064_v10 = vld [vmem:[%s4253_s4 + $0xe4] ss:$8 sps:$4 sm:$0xff]   ;;  %v3067_v11 = vld [vmem:[%s4253_s4 + $0xe0] ss:$8 sps:$4 sm:$0xff]  }
  0x1b   : > { %593 = vmatprep.subr.bf16.mxu0 %v3050_v3  ;;  %772 = vmatpush1.bf16.msra.mxu1 %v3061_v7  ;;  %v3060_v12 = vld [vmem:[%s4253_s4 + $0x40] ss:$8 sps:$4 sm:$0xff]   ;;  %v3062_v13 = vld [vmem:[%s4253_s4 + $0x34] ss:$8 sps:$4 sm:$0xff]   ;;  %v3362_v15 = vmov 1935823168  }
  0x1c   : > { %773 = vmatprep.subr.bf16.mxu1 %v3064_v10  ;;  %v3070_v14 = vld [vmem:[%s4253_s4 + $0xd4] ss:$8 sps:$4 sm:$0xff]   ;;  %v462_v16 = vunpack.c.l.s4 %v3362_v15  ;;  %v3073_v18 = vld [vmem:[%s4253_s4 + $0xd0] ss:$8 sps:$4 sm:$0xff]   ;;  %v3076_v19 = vld [vmem:[%s4253_s4 + $0xc4] ss:$8 sps:$4 sm:$0xff]  }
  0x1d   : > { %vm434_vm0 = vcmask 1040384   ;;  %v3066_v20 = vld [vmem:[%s4253_s4 + $0x30] ss:$8 sps:$4 sm:$0xff]   ;;  %s2615_s14 = sshll.u32 %s417_s12, 1  ;;  %v3529_v22 = vshrl.u32 %v464_v17, 7  ;;  %vm469_vm1 = vcmask 1041409  }
  0x1e   : > { %594 = vmatpush1.bf16.msra.mxu0 %v3052_v4  ;;  %v463_v21 = vunpack.c.0.s8 %v462_v16  ;;  %v3068_v23 = vld [vmem:[%s4253_s4 + $0x24] ss:$8 sps:$4 sm:$0xff]   ;;  %v3079_v24 = vld [vmem:[%s4253_s4 + $0xc0] ss:$8 sps:$4 sm:$0xff]   ;;  %s3540_s30 = scalar_lea.vmem %s4268_s0, %s2615_s14  ;;  %v3082_v25 = vld [vmem:[%s4253_s4 + $0xb4] ss:$8 sps:$4 sm:$0xff]   ;;  %s3551_s24 = scalar_lea.vmem %s4251_s2, %s2615_s14 }
  0x1f   : > { %595 = vmatprep.subr.bf16.mxu0 %v3053_v5  ;;  %774 = vmatpush1.bf16.msra.mxu1 %v3067_v11  ;;  %vm435_vm2 = vsmask.f32 256  ;;  %v3072_v26 = vld [vmem:[%s4253_s4 + $0x20] ss:$8 sps:$4 sm:$0xff]   ;;  %vm470_vm3 = vsmask.f32 1280  ;;  %s3562_s13 = scalar_lea.vmem %s4269_s1, %s2615_s14  ;;  %s3574_s0 = scalar_lea.vmem %s4252_s3, %s2615_s14 }
  0x20   : > { %775 = vmatprep.subr.bf16.mxu1 %v3070_v14  ;;  %v3074_v27 = vld [vmem:[%s4253_s4 + $0x14] ss:$8 sps:$4 sm:$0xff]   ;;  %v3085_v28 = vld [vmem:[%s4253_s4 + $0xb0] ss:$8 sps:$4 sm:$0xff]   ;;  %v433_v29 = vld [vmem:[%s3540_s30] sm:$0x1]  ;;  %v3566_v30 = vsub.s32 %v463_v21, %v3529_v22 }
  0x21   : > { %v3086_v31 = vld [vmem:[%s4253_s4 + $0xa4] ss:$8 sps:$4 sm:$0xff]   ;;  %vm3577_vm4 = vmand %vm434_vm0, %vm435_vm2  ;;  %v437_v33 = vld [vmem:[#allocation2] sm:$0x1]  ;;  %vm453_vm6 = vsmask.f32 7938 }
  0x22   : > { %596 = vmatpush1.bf16.msra.mxu0 %v3055_v8  ;;  %v3078_v34 = vld [vmem:[%s4253_s4 + $0x10] ss:$8 sps:$4 sm:$0xff]   ;;  %v438_v35 = vsel %vm3577_vm4, %v433_v29, %v437_v33  ;;  %v3091_v36 = vld [vmem:[%s3551_s24] ss:$0 sps:$4 sm:$0x11]   ;;  %vm3593_vm5 = vmand %vm469_vm1, %vm470_vm3  ;;  %vm3364_vm10 = vmmov 0  }
  0x23   : > { %597 = vmatprep.subr.bf16.mxu0 %v3056_v9  ;;  %776 = vmatpush1.bf16.msra.mxu1 %v3073_v18  ;;  %v3080_v37 = vld [vmem:[%s4253_s4 + $0x4] ss:$8 sps:$4 sm:$0xff]   ;;  %439 = vst [vmem:[#allocation2] sm:$0x1] %v438_v35  ;;  %v472_v40 = vld [vmem:[#allocation2] sm:$0x2]  ;;  %v467_v41 = vrot.slane %v3091_v36, %v3566_v30  ;;  %vm3614_vm7 = vmand %vm434_vm0, %vm453_vm6 }
  0x24   : > { %777 = vmatprep.subr.bf16.mxu1 %v3076_v19  ;;  %v2619_v38 = vld.sshfl [vmem:[%s3562_s13] sm:$0x1 pattern:$0x73625140]  ;;  %v3093_v45 = vld [vmem:[%s4253_s4 + $0x94] ss:$8 sps:$4 sm:$0xff]  }
  0x25   : > { %v3599_v42 = vld.sshfl [vmem:[%s3574_s0] sm:$0x1 pattern:$0x73625140]  ;;  %v473_v44 = vsel %vm3593_vm5, %v467_v41, %v472_v40  ;;  %v450_v47 = vshll.u32 %v2619_v38, 16  ;;  %v3276_v49 = vld [vmem:[%s4256_s7 + $0x38] sm:$0xff]  }
  0x26   : > { %598 = vmatpush1.bf16.msra.mxu0 %v3060_v12  ;;  %v3092_v43 = vld [vmem:[%s4253_s4 + $0xa0] ss:$8 sps:$4 sm:$0xff]   ;;  %474 = vst [vmem:[#allocation2] sm:$0x2] %v473_v44  ;;  %v485_v48 = vshll.u32 %v3599_v42, 16  ;;  %v3277_v56 = vld [vmem:[%s4256_s7 + $0x70] sm:$0xff]  }
  0x27   : > { %599 = vmatprep.subr.bf16.mxu0 %v3062_v13  ;;  %778 = vmatpush1.bf16.msra.mxu1 %v3079_v24  ;;  %v3084_v46 = vld [vmem:[%s4253_s4] ss:$8 sps:$4 sm:$0xff]   ;;  %v3090_v50 = vld [vmem:[%s4253_s4 + $0x174] ss:$8 sps:$4 sm:$0xff]   ;;  %vm489_vm8 = vsmask.f32 7942 }
  0x28   : > { %779 = vmatprep.subr.bf16.mxu1 %v3082_v25  ;;  %v3098_v51 = vld [vmem:[%s4253_s4 + $0x90] ss:$8 sps:$4 sm:$0xff]   ;;  %v3099_v53 = vld [vmem:[%s4253_s4 + $0x84] ss:$8 sps:$4 sm:$0xff]   ;;  %v487_v55 = vrot.slane %v485_v48, 7  ;;  %vm3632_vm9 = vmand %vm469_vm1, %vm489_vm8 }
  0x29   : > { %v3104_v57 = vld [vmem:[%s4253_s4 + $0x80] ss:$8 sps:$4 sm:$0xff]   ;;  %v3115_v61 = vld [vmem:[%s4253_s4 + $0x1f4] ss:$8 sps:$4 sm:$0xff]   ;;  %v3088_v1 = vld [vmem:[%s4253_s4 + $0x170] ss:$8 sps:$4 sm:$0xff]  }
  0x2a   : > { %600 = vmatpush1.bf16.msra.mxu0 %v3066_v20  ;;  %v455_v52 = vld [vmem:[#allocation2] sm:$0x1]  ;;  %v3097_v4 = vld [vmem:[%s4253_s4 + $0x164] ss:$8 sps:$4 sm:$0xff]   ;;  %v3103_v10 = vld [vmem:[%s4253_s4 + $0x154] ss:$8 sps:$4 sm:$0xff]  }
  0x2b   : > { %601 = vmatprep.subr.bf16.mxu0 %v3068_v23  ;;  %780 = vmatpush1.bf16.msra.mxu1 %v3085_v28  ;;  %v456_v54 = vsel %vm3614_vm7, %v450_v47, %v455_v52  ;;  %v3105_v60 = vld [vmem:[%s3574_s0] ss:$0 sps:$4 sm:$0x11]   ;;  %v3101_v11 = vld [vmem:[%s4253_s4 + $0x150] ss:$8 sps:$4 sm:$0xff]  }
  0x2c   : > { %781 = vmatprep.subr.bf16.mxu1 %v3086_v31  ;;  %457 = vst [vmem:[#allocation2] sm:$0x1] %v456_v54  ;;  %v637_v62 = vld [vmem:[%s3562_s13] sm:$0x1]  ;;  %v654_v0 = vrot.slane %v3105_v60, %v3566_v30  ;;  %v3109_v14 = vld [vmem:[%s4253_s4 + $0x144] ss:$8 sps:$4 sm:$0xff]  }
  0x2d   : > { %v491_v58 = vld [vmem:[#allocation2] sm:$0x2]  ;;  %v3106_v9 = vld [vmem:[%s3551_s24] ss:$0 sps:$4 sm:$0x11]  }
  0x2e   : > { %602 = vmatpush1.bf16.msra.mxu0 %v3072_v26  ;;  %v492_v59 = vsel %vm3632_vm9, %v487_v55, %v491_v58  ;;  %v3095_v8 = vld [vmem:[%s4253_s4 + $0x160] ss:$8 sps:$4 sm:$0xff]   ;;  %v668_v13 = vrot.slane %v3106_v9, %v3566_v30  ;;  %v3112_v23 = vld [vmem:[%s4253_s4 + $0x134] ss:$8 sps:$4 sm:$0xff]   ;;  %v3110_v25 = vld [vmem:[%s4253_s4 + $0x130] ss:$8 sps:$4 sm:$0xff]  }
  0x2f   : > { %603 = vmatprep.subr.bf16.mxu0 %v3074_v27  ;;  %782 = vmatpush1.bf16.msra.mxu1 %v3092_v43  ;;  %493 = vst [vmem:[#allocation2] sm:$0x2] %v492_v59  ;;  %v641_v12 = vld [vmem:[%s3540_s30] sm:$0x1]  ;;  %v3118_v27 = vld [vmem:[%s4253_s4 + $0x124] ss:$8 sps:$4 sm:$0xff]  }
  0x30   : > { %783 = vmatprep.subr.bf16.mxu1 %v3093_v45  ;;  %v3674_v15 = vld.sshfl [vmem:[%s3551_s24] sm:$0x1 pattern:$0x73625140]  ;;  %v3113_v29 = vld [vmem:[%s4253_s4 + $0x1f0] ss:$8 sps:$4 sm:$0xff]  }
  0x31   : > { %v3107_v19 = vld [vmem:[%s4253_s4 + $0x140] ss:$8 sps:$4 sm:$0xff]   ;;  %v851_v24 = vshrl.u32 %v3674_v15, 16  ;;  %v3121_v33 = vld [vmem:[%s4253_s4 + $0x1e4] ss:$8 sps:$4 sm:$0xff]  }
  0x32   : > { %604 = vmatpush1.bf16.msra.mxu0 %v3078_v34  ;;  %v2669_v21 = vld.sshfl [vmem:[%s3540_s30] sm:$0x1 pattern:$0x73625140]  ;;  %v3124_v40 = vld [vmem:[%s4253_s4 + $0x114] ss:$8 sps:$4 sm:$0xff]  }
  0x33   : > { %605 = vmatprep.subr.bf16.mxu0 %v3080_v37  ;;  %784 = vmatpush1.bf16.msra.mxu1 %v3098_v51  ;;  %v638_v63 = vld [vmem:[#allocation2] sm:$0x1]  ;;  %v829_v26 = vshrl.u32 %v2669_v21, 16  ;;  %v853_v28 = vrot.slane %v851_v24, 7  ;;  %v3127_v44 = vld [vmem:[%s4253_s4 + $0x1d4] ss:$8 sps:$4 sm:$0xff]  }
  0x34   : > { %785 = vmatprep.subr.bf16.mxu1 %v3099_v53  ;;  %v639_v3 = vsel %vm3577_vm4, %v637_v62, %v638_v63  ;;  %v3116_v31 = vld [vmem:[%s4253_s4 + $0x120] ss:$8 sps:$4 sm:$0xff]   ;;  %v3122_v45 = vld [vmem:[%s4253_s4 + $0x110] ss:$8 sps:$4 sm:$0xff]   ;;  %v3130_v47 = vld [vmem:[%s4253_s4 + $0x104] ss:$8 sps:$4 sm:$0xff]  }
  0x35   : > { %v3119_v38 = vld [vmem:[%s4253_s4 + $0x1e0] ss:$8 sps:$4 sm:$0xff]   ;;  %v3133_v52 = vld [vmem:[%s4253_s4 + $0x1c4] ss:$8 sps:$4 sm:$0xff]   ;;  %v3140_v58 = vld [vmem:[%s4253_s4 + $0x274] ss:$8 sps:$4 sm:$0xff]  }
  0x36   : > { %606 = vmatpush1.bf16.msra.mxu0 %v3084_v46  ;;  %v494_v5 = vld [vmem:[#allocation2] sm:$0x3]  ;;  %v3125_v46 = vld [vmem:[%s4253_s4 + $0x1d0] ss:$8 sps:$4 sm:$0xff]   ;;  %v3162_v42 = vld [vmem:[%s4253_s4 + $0x234] ss:$8 sps:$4 sm:$0xff]  }
  0x37   : > { %970 = vmatprep.subr.bf16.mxu0 %v3090_v50  ;;  %786 = vmatpush1.bf16.msra.mxu1 %v3104_v57  ;;  %v656_v6 = vld [vmem:[#allocation2] sm:$0x2]  ;;  %640 = vst [vmem:[#allocation2] sm:$0x1] %v639_v3  ;;  %v837_v50 = vld [vmem:[%s3562_s13] sm:$0x1] }
  0x38   : > { %1169 = vmatprep.subr.bf16.mxu1 %v3115_v61  ;;  %v657_v7 = vsel %vm3593_vm5, %v654_v0, %v656_v6  ;;  %v3134_v43 = vld [vmem:[%s3574_s0] ss:$0 sps:$4 sm:$0x11]   ;;  %v3137_v61 = vld [vmem:[%s4253_s4 + $0x1b4] ss:$8 sps:$4 sm:$0xff]  }
  0x39   : > { %624 = vmatmul.mubr.bf16.vlgmr.msra.gmra.mxu0 %v494_v5  ;;  %658 = vst [vmem:[#allocation2] sm:$0x2] %v657_v7  ;;  %v867_v51 = vrot.slane %v3134_v43, %v3566_v30  ;;  %v3128_v53 = vld [vmem:[%s4253_s4 + $0x100] ss:$8 sps:$4 sm:$0xff]   ;;  %v3135_v63 = vld [vmem:[%s4253_s4 + $0x1b0] ss:$8 sps:$4 sm:$0xff]  }
  0x3a   : > { %971 = vmatpush1.bf16.msra.mxu0 %v3088_v1  ;;  %1002 = vmatprep.mubr.bf16.mxu0 %v3361_v2  ;;  %v3131_v59 = vld [vmem:[%s4253_s4 + $0x1c0] ss:$8 sps:$4 sm:$0xff]   ;;  %v3138_v0 = vld [vmem:[%s4253_s4 + $0x270] ss:$8 sps:$4 sm:$0xff]   ;;  %v3143_v1 = vld [vmem:[%s4253_s4 + $0x1a4] ss:$8 sps:$4 sm:$0xff]  }
  0x3b   : > { %972 = vmatprep.subr.bf16.mxu0 %v3097_v4  ;;  %v3159_v62 = vld [vmem:[%s3540_s30 + $0x1] ss:$0 sps:$4 sm:$0x11]   ;;  %v1018_v3 = vld [vmem:[%s3551_s24] sm:$0x1] }
  0x3c   : > { %v1048_v4 = vrot.slane %v3159_v62, %v3566_v30  ;;  %v3141_v5 = vld [vmem:[%s4253_s4 + $0x1a0] ss:$8 sps:$4 sm:$0xff]   ;;  %v3146_v6 = vld [vmem:[%s4253_s4 + $0x264] ss:$8 sps:$4 sm:$0xff]  }
  0x3d   : > { %v3178_v62 = vld [vmem:[%s4253_s4 + $0x200] ss:$8 sps:$4 sm:$0xff]  }
  0x3e   : > { %973 = vmatpush1.bf16.msra.mxu0 %v3095_v8  ;;  %v642_v16 = vld [vmem:[#allocation2] sm:$0x1]  ;;  %v3769_v8 = vld.sshfl [vmem:[%s3562_s13 + $0x1] sm:$0x1 pattern:$0x73625140] }
  0x3f   : > { %974 = vmatprep.subr.bf16.mxu0 %v3103_v10  ;;  %v643_v17 = vsel %vm3614_vm7, %v641_v12, %v642_v16  ;;  %v3149_v12 = vld [vmem:[%s4253_s4 + $0x194] ss:$8 sps:$4 sm:$0xff]   ;;  %v1064_v16 = vshll.u32 %v3769_v8, 16  ;;  %v3210_v15 = vld [vmem:[%s3562_s13 + $0x1] ss:$0 sps:$4 sm:$0x11]  }
  0x40   : > { %v670_v18 = vld [vmem:[#allocation2] sm:$0x2]  ;;  %644 = vst [vmem:[#allocation2] sm:$0x1] %v643_v17  ;;  %v3152_v17 = vld [vmem:[%s4253_s4 + $0x254] ss:$8 sps:$4 sm:$0xff]  }
  0x41   : > { %v671_v20 = vsel %vm3632_vm9, %v668_v13, %v670_v18  ;;  %v3147_v18 = vld [vmem:[%s4253_s4 + $0x190] ss:$8 sps:$4 sm:$0xff]   ;;  %v1066_v21 = vrot.slane %v1064_v16, 7  ;;  %v3236_v8 = vld [vmem:[%s3574_s0 + $0x1] ss:$0 sps:$4 sm:$0x11]  }
  0x42   : > { %975 = vmatpush1.bf16.msra.mxu0 %v3101_v11  ;;  %672 = vst [vmem:[#allocation2] sm:$0x2] %v671_v20  ;;  %v3150_v20 = vld [vmem:[%s4253_s4 + $0x250] ss:$8 sps:$4 sm:$0xff]  }
  0x43   : > { %976 = vmatprep.subr.bf16.mxu0 %v3109_v14  ;;  %v3144_v14 = vld [vmem:[%s4253_s4 + $0x260] ss:$8 sps:$4 sm:$0xff]  }
  0x44   : > { %v3262_v32 = vld [vmem:[%s3574_s0 + $0x1] ss:$0 sps:$4 sm:$0x11]  }
  0x45   : > { %v2027_v39 = vrot.slane %v3262_v32, %v3566_v30 }
  0x46   : > { %977 = vmatpush1.bf16.msra.mxu0 %v3107_v19  ;;  %v3155_v19 = vld [vmem:[%s4253_s4 + $0x184] ss:$8 sps:$4 sm:$0xff]  }
  0x47   : > { %978 = vmatprep.subr.bf16.mxu0 %v3112_v23  ;;  %v834_v34 = vld [vmem:[#allocation2] sm:$0x1]  ;;  %v3158_v23 = vld [vmem:[%s4253_s4 + $0x244] ss:$8 sps:$4 sm:$0xff]  }
  0x48   : > { %v835_v36 = vsel %vm3577_vm4, %v829_v26, %v834_v34  ;;  %v3160_v34 = vld [vmem:[%s4253_s4 + $0x230] ss:$8 sps:$4 sm:$0xff]  }
  0x49   : > { %v673_v35 = vld [vmem:[#allocation2] sm:$0x3] }
  0x4a   : > { %979 = vmatpush1.bf16.msra.mxu0 %v3110_v25  ;;  %v855_v37 = vld [vmem:[#allocation2] sm:$0x2]  ;;  %804 = vmatmul.mubr.bf16.vlgmr.msra.gmra.mxu1 %v673_v35  ;;  %836 = vst [vmem:[#allocation2] sm:$0x1] %v835_v36  ;;  %v3168_v35 = vld [vmem:[%s4253_s4 + $0x224] ss:$8 sps:$4 sm:$0xff]  }
  0x4b   : > { %980 = vmatprep.subr.bf16.mxu0 %v3118_v27  ;;  %v856_v41 = vsel %vm3593_vm5, %v853_v28, %v855_v37  ;;  %1170 = vmatpush1.bf16.msra.mxu1 %v3113_v29  ;;  %v3153_v25 = vld [vmem:[%s4253_s4 + $0x180] ss:$8 sps:$4 sm:$0xff]   ;;  %v3165_v29 = vld [vmem:[%s4253_s4 + $0x2f4] ss:$8 sps:$4 sm:$0xff]  }
  0x4c   : > { %857 = vst [vmem:[#allocation2] sm:$0x2] %v856_v41  ;;  %1201 = vmatprep.mubr.bf16.mxu1 %v3361_v2  ;;  %1171 = vmatprep.subr.bf16.mxu1 %v3121_v33  ;;  %v1217_v36 = vld [vmem:[%s3574_s0] sm:$0x1]  ;;  %v3171_v41 = vld [vmem:[%s4253_s4 + $0x2e4] ss:$8 sps:$4 sm:$0xff]  }
  0x4e   : > { %981 = vmatpush1.bf16.msra.mxu0 %v3116_v31  ;;  %v3156_v31 = vld [vmem:[%s4253_s4 + $0x240] ss:$8 sps:$4 sm:$0xff]  }
  0x4f   : > { %982 = vmatprep.subr.bf16.mxu0 %v3124_v40  ;;  %1172 = vmatpush1.bf16.msra.mxu1 %v3119_v38  ;;  %v3163_v38 = vld [vmem:[%s4253_s4 + $0x2f0] ss:$8 sps:$4 sm:$0xff]   ;;  %v3166_v40 = vld [vmem:[%s4253_s4 + $0x220] ss:$8 sps:$4 sm:$0xff]  }
  0x50   : > { %1173 = vmatprep.subr.bf16.mxu1 %v3127_v44 }
  0x51   : > { %v838_v54 = vld [vmem:[#allocation2] sm:$0x1] }
  0x52   : > { %983 = vmatpush1.bf16.msra.mxu0 %v3122_v45  ;;  %v839_v55 = vsel %vm3614_vm7, %v837_v50, %v838_v54  ;;  %v3169_v45 = vld [vmem:[%s4253_s4 + $0x2e0] ss:$8 sps:$4 sm:$0xff]   ;;  %v3174_v50 = vld [vmem:[%s4253_s4 + $0x214] ss:$8 sps:$4 sm:$0xff]   ;;  %v3172_v54 = vld [vmem:[%s4253_s4 + $0x210] ss:$8 sps:$4 sm:$0xff]  }
  0x53   : > { %984 = vmatprep.subr.bf16.mxu0 %v3130_v47  ;;  %v869_v57 = vld [vmem:[#allocation2] sm:$0x2]  ;;  %1174 = vmatpush1.bf16.msra.mxu1 %v3125_v46  ;;  %840 = vst [vmem:[#allocation2] sm:$0x1] %v839_v55  ;;  %v3175_v55 = vld [vmem:[%s4253_s4 + $0x2d0] ss:$8 sps:$4 sm:$0xff]  }
  0x54   : > { %v870_v60 = vsel %vm3632_vm9, %v867_v51, %v869_v57  ;;  %1175 = vmatprep.subr.bf16.mxu1 %v3133_v52  ;;  %v3185_v52 = vld [vmem:[%s3540_s30 + $0x1] ss:$0 sps:$4 sm:$0x11]   ;;  %v3180_v57 = vld [vmem:[%s4253_s4 + $0x204] ss:$8 sps:$4 sm:$0xff]  }
  0x55   : > { %871 = vst [vmem:[#allocation2] sm:$0x2] %v870_v60  ;;  %v1248_v60 = vrot.slane %v3185_v52, %v3566_v30 }
  0x56   : > { %985 = vmatpush1.bf16.msra.mxu0 %v3128_v53  ;;  %v3177_v53 = vld [vmem:[%s4253_s4 + $0x2d4] ss:$8 sps:$4 sm:$0xff]  }
  0x57   : > { %1351 = vmatprep.subr.bf16.mxu0 %v3140_v58  ;;  %1176 = vmatpush1.bf16.msra.mxu1 %v3131_v59  ;;  %v3183_v58 = vld [vmem:[%s4253_s4 + $0x2c4] ss:$8 sps:$4 sm:$0xff]   ;;  %v1221_v59 = vld [vmem:[%s3551_s24] sm:$0x1] }
  0x58   : > { %1177 = vmatprep.subr.bf16.mxu1 %v3137_v61  ;;  %v3866_v61 = vld.sshfl [vmem:[%s3540_s30 + $0x1] sm:$0x1 pattern:$0x73625140] }
  0x5a   : > { %v1019_v7 = vld [vmem:[#allocation2] sm:$0x1] }
  0x5b   : > { %1178 = vmatpush1.bf16.msra.mxu1 %v3135_v63  ;;  %v1020_v10 = vsel %vm3577_vm4, %v1018_v3, %v1019_v7  ;;  %v3191_v3 = vld [vmem:[%s4253_s4 + $0x374] ss:$8 sps:$4 sm:$0xff]  }
  0x5c   : > { %v872_v9 = vld [vmem:[#allocation2] sm:$0x3]  ;;  %1179 = vmatprep.subr.bf16.mxu1 %v3143_v1  ;;  %v3188_v7 = vld [vmem:[%s4253_s4 + $0x2b4] ss:$8 sps:$4 sm:$0xff]  }
  0x5d   : > { %v1050_v11 = vld [vmem:[#allocation2] sm:$0x2]  ;;  %1003 = vmatmul.mubr.bf16.vlgmr.msra.gmra.mxu0 %v872_v9  ;;  %1021 = vst [vmem:[#allocation2] sm:$0x1] %v1020_v10  ;;  %v3186_v9 = vld [vmem:[%s4253_s4 + $0x2b0] ss:$8 sps:$4 sm:$0xff]  }
  0x5e   : > { %v1051_v13 = vsel %vm3593_vm5, %v1048_v4, %v1050_v11  ;;  %1352 = vmatpush1.bf16.msra.mxu0 %v3138_v0  ;;  %1383 = vmatprep.mubr.bf16.mxu0 %v3361_v2  ;;  %v3181_v4 = vld [vmem:[%s4253_s4 + $0x2c0] ss:$8 sps:$4 sm:$0xff]   ;;  %v3189_v11 = vld [vmem:[%s4253_s4 + $0x370] ss:$8 sps:$4 sm:$0xff]  }
  0x5f   : > { %1052 = vst [vmem:[#allocation2] sm:$0x2] %v1051_v13  ;;  %1353 = vmatprep.subr.bf16.mxu0 %v3146_v6  ;;  %1180 = vmatpush1.bf16.msra.mxu1 %v3141_v5  ;;  %v1431_v6 = vshrl.u32 %v3866_v61, 16  ;;  %v3192_v13 = vld [vmem:[%s4253_s4 + $0x2a0] ss:$8 sps:$4 sm:$0xff]  }
  0x60   : > { %1181 = vmatprep.subr.bf16.mxu1 %v3149_v12  ;;  %v3194_v12 = vld [vmem:[%s4253_s4 + $0x2a4] ss:$8 sps:$4 sm:$0xff]   ;;  %v3271_v61 = vld [vmem:[%s4253_s4 + $0x414] ss:$8 sps:$4 sm:$0xff]  }
  0x61   : > { %v1433_v10 = vrot.slane %v1431_v6, 7 }
  0x62   : > { %1354 = vmatpush1.bf16.msra.mxu0 %v3144_v14  ;;  %v3197_v14 = vld [vmem:[%s4253_s4 + $0x364] ss:$8 sps:$4 sm:$0xff]  }
  0x63   : > { %1355 = vmatprep.subr.bf16.mxu0 %v3152_v17  ;;  %1182 = vmatpush1.bf16.msra.mxu1 %v3147_v18 }
  0x64   : > { %v1035_v26 = vld [vmem:[#allocation2] sm:$0x1]  ;;  %1183 = vmatprep.subr.bf16.mxu1 %v3155_v19 }
  0x65   : > { %v1036_v27 = vsel %vm3614_vm7, %v485_v48, %v1035_v26  ;;  %v3184_v48 = vld [vmem:[%s3562_s13 + $0x1] ss:$0 sps:$4 sm:$0x11]   ;;  %v3203_v26 = vld [vmem:[%s4253_s4 + $0x354] ss:$8 sps:$4 sm:$0xff]  }
  0x66   : > { %v1068_v28 = vld [vmem:[#allocation2] sm:$0x2]  ;;  %1356 = vmatpush1.bf16.msra.mxu0 %v3150_v20  ;;  %1037 = vst [vmem:[#allocation2] sm:$0x1] %v1036_v27  ;;  %v1234_v37 = vrot.slane %v3184_v48, %v3566_v30  ;;  %v3198_v27 = vld [vmem:[%s4253_s4 + $0x290] ss:$8 sps:$4 sm:$0xff]  }
  0x67   : > { %v1069_v33 = vsel %vm3632_vm9, %v1066_v21, %v1068_v28  ;;  %1357 = vmatprep.subr.bf16.mxu0 %v3158_v23  ;;  %1184 = vmatpush1.bf16.msra.mxu1 %v3153_v25  ;;  %v3195_v21 = vld [vmem:[%s4253_s4 + $0x360] ss:$8 sps:$4 sm:$0xff]   ;;  %v3200_v23 = vld [vmem:[%s4253_s4 + $0x294] ss:$8 sps:$4 sm:$0xff]   ;;  %v3206_v28 = vld [vmem:[%s4253_s4 + $0x284] ss:$8 sps:$4 sm:$0xff]  }
  0x68   : > { %1070 = vst [vmem:[#allocation2] sm:$0x2] %v1069_v33  ;;  %1550 = vmatprep.subr.bf16.mxu1 %v3165_v29  ;;  %v1417_v33 = vld [vmem:[%s3574_s0] sm:$0x1] }
  0x69   : > { %v3204_v48 = vld [vmem:[%s4253_s4 + $0x280] ss:$8 sps:$4 sm:$0xff]  }
  0x6a   : > { %1358 = vmatpush1.bf16.msra.mxu0 %v3156_v31  ;;  %v3201_v31 = vld [vmem:[%s4253_s4 + $0x350] ss:$8 sps:$4 sm:$0xff]  }
  0x6b   : > { %1359 = vmatprep.subr.bf16.mxu0 %v3162_v42  ;;  %v1447_v42 = vrot.slane %v3210_v15, %v3566_v30 }
  0x6d   : > { %v1218_v43 = vld [vmem:[#allocation2] sm:$0x1] }
  0x6e   : > { %1360 = vmatpush1.bf16.msra.mxu0 %v3160_v34  ;;  %v1219_v46 = vsel %vm3577_vm4, %v1217_v36, %v1218_v43  ;;  %v3209_v34 = vld [vmem:[%s4253_s4 + $0x344] ss:$8 sps:$4 sm:$0xff]   ;;  %v3217_v43 = vld [vmem:[%s4253_s4 + $0x3f4] ss:$8 sps:$4 sm:$0xff]  }
  0x6f   : > { %v1071_v44 = vld [vmem:[#allocation2] sm:$0x3]  ;;  %1361 = vmatprep.subr.bf16.mxu0 %v3168_v35 }
  0x70   : > { %v1236_v47 = vld [vmem:[#allocation2] sm:$0x2]  ;;  %1202 = vmatmul.mubr.bf16.vlgmr.msra.gmra.mxu1 %v1071_v44  ;;  %1220 = vst [vmem:[#allocation2] sm:$0x1] %v1219_v46  ;;  %v3212_v46 = vld [vmem:[%s4253_s4 + $0x330] ss:$8 sps:$4 sm:$0xff]  }
  0x71   : > { %v1237_v51 = vsel %vm3593_vm5, %v1234_v37, %v1236_v47  ;;  %1551 = vmatpush1.bf16.msra.mxu1 %v3163_v38  ;;  %1582 = vmatprep.mubr.bf16.mxu1 %v3361_v2  ;;  %v3207_v35 = vld [vmem:[%s4253_s4 + $0x340] ss:$8 sps:$4 sm:$0xff]  }
  0x72   : > { %1238 = vst [vmem:[#allocation2] sm:$0x2] %v1237_v51  ;;  %1552 = vmatprep.subr.bf16.mxu1 %v3171_v41  ;;  %1362 = vmatpush1.bf16.msra.mxu0 %v3166_v40  ;;  %v3211_v40 = vld [vmem:[%s3551_s24 + $0x1] ss:$0 sps:$4 sm:$0x11]  }
  0x73   : > { %1363 = vmatprep.subr.bf16.mxu0 %v3174_v50  ;;  %v3214_v41 = vld [vmem:[%s4253_s4 + $0x334] ss:$8 sps:$4 sm:$0xff]   ;;  %v2811_v47 = vld [vmem:[%s3540_s30 + $0x1] sm:$0x1]  ;;  %v3220_v50 = vld [vmem:[%s4253_s4 + $0x324] ss:$8 sps:$4 sm:$0xff]   ;;  %v1628_v52 = vrot.slane %v3211_v40, %v3566_v30 }
  0x74   : > { %v3215_v51 = vld [vmem:[%s4253_s4 + $0x3f0] ss:$8 sps:$4 sm:$0xff]  }
  0x75   : > { %1553 = vmatpush1.bf16.msra.mxu1 %v3169_v45 }
  0x76   : > { %1554 = vmatprep.subr.bf16.mxu1 %v3177_v53  ;;  %1364 = vmatpush1.bf16.msra.mxu0 %v3172_v54  ;;  %v3223_v53 = vld [vmem:[%s4253_s4 + $0x3e4] ss:$8 sps:$4 sm:$0xff]   ;;  %v3218_v54 = vld [vmem:[%s4253_s4 + $0x320] ss:$8 sps:$4 sm:$0xff]  }
  0x77   : > { %v1222_v63 = vld [vmem:[#allocation2] sm:$0x1]  ;;  %1365 = vmatprep.subr.bf16.mxu0 %v3180_v57  ;;  %v3226_v57 = vld [vmem:[%s4253_s4 + $0x314] ss:$8 sps:$4 sm:$0xff]  }
  0x78   : > { %v1223_v0 = vsel %vm3614_vm7, %v1221_v59, %v1222_v63 }
  0x79   : > { %v1250_v1 = vld [vmem:[#allocation2] sm:$0x2]  ;;  %1555 = vmatpush1.bf16.msra.mxu1 %v3175_v55  ;;  %1224 = vst [vmem:[#allocation2] sm:$0x1] %v1223_v0  ;;  %v3229_v0 = vld [vmem:[%s4253_s4 + $0x3d4] ss:$8 sps:$4 sm:$0xff]  }
  0x7a   : > { %v1251_v5 = vsel %vm3632_vm9, %v1248_v60, %v1250_v1  ;;  %1556 = vmatprep.subr.bf16.mxu1 %v3183_v58  ;;  %1366 = vmatpush1.bf16.msra.mxu0 %v3178_v62  ;;  %v3221_v62 = vld [vmem:[%s4253_s4 + $0x3e0] ss:$8 sps:$4 sm:$0xff]   ;;  %v3224_v1 = vld [vmem:[%s4253_s4 + $0x310] ss:$8 sps:$4 sm:$0xff]  }
  0x7b   : > { %1252 = vst [vmem:[#allocation2] sm:$0x2] %v1251_v5  ;;  %1749 = vmatprep.subr.bf16.mxu0 %v3191_v3  ;;  %v3232_v3 = vld [vmem:[%s4253_s4 + $0x304] ss:$8 sps:$4 sm:$0xff]  }
  0x7c   : > { %v3235_v5 = vld [vmem:[%s4253_s4 + $0x3c4] ss:$8 sps:$4 sm:$0xff]  }
  0x7d   : > { %1557 = vmatpush1.bf16.msra.mxu1 %v3181_v4  ;;  %v3227_v4 = vld [vmem:[%s4253_s4 + $0x3d0] ss:$8 sps:$4 sm:$0xff]  }
  0x7e   : > { %1558 = vmatprep.subr.bf16.mxu1 %v3188_v7  ;;  %v3230_v7 = vld [vmem:[%s4253_s4 + $0x300] ss:$8 sps:$4 sm:$0xff]  }
  0x80   : > { %v1414_v17 = vld [vmem:[#allocation2] sm:$0x1] }
  0x81   : > { %v1415_v19 = vsel %vm3577_vm4, %v851_v24, %v1414_v17  ;;  %1559 = vmatpush1.bf16.msra.mxu1 %v3186_v9  ;;  %v2816_v24 = vld.sshfl [vmem:[%s3574_s0 + $0x1] sm:$0x1 pattern:$0x73625140]  ;;  %v3237_v17 = vld [vmem:[%s4253_s4 + $0x3b0] ss:$8 sps:$4 sm:$0xff]  }
  0x82   : > { %v1253_v18 = vld [vmem:[#allocation2] sm:$0x3]  ;;  %1560 = vmatprep.subr.bf16.mxu1 %v3194_v12  ;;  %v1644_v29 = vshll.u32 %v2816_v24, 16  ;;  %v3242_v12 = vld [vmem:[%s4253_s4 + $0x474] ss:$8 sps:$4 sm:$0xff]   ;;  %s2950_s0 = sshll.u32 %s3447_s21, 4 }
  0x83   : > { %v1435_v20 = vld [vmem:[#allocation2] sm:$0x2]  ;;  %1384 = vmatmul.mubr.bf16.vlgmr.msra.gmra.mxu0 %v1253_v18  ;;  %1416 = vst [vmem:[#allocation2] sm:$0x1] %v1415_v19  ;;  %v1814_v19 = vrot.slane %v3236_v8, %v3566_v30  ;;  %v3279_v8 = vld [vmem:[%s4256_s7 + $0x68] sm:$0xff]   ;;  %s4208_s1 = scalar_lea.hbm %s4260_s11, %s2950_s0  ;;  %s3365_s21 = smov [#allocation4]  }
  0x84   : > { %v1436_v25 = vsel %vm3593_vm5, %v1433_v10, %v1435_v20  ;;  %1750 = vmatpush1.bf16.msra.mxu0 %v3189_v11  ;;  %1781 = vmatprep.mubr.bf16.mxu0 %v3361_v2  ;;  %v1646_v44 = vrot.slane %v1644_v29, 7  ;;  %v2849_v18 = vld [vmem:[%s3562_s13 + $0x1] sm:$0x1]  ;;  %v3245_v20 = vld [vmem:[%s4253_s4 + $0x3a4] ss:$8 sps:$4 sm:$0xff]   ;;  %s3303_s25 = sshll.u32 %s3365_s21, 4  ;;  %s3304_s25 = int_to_ptr.vmem [resolvable:$false] %s3303_s25 }
  0x85   : > { %1437 = vst [vmem:[#allocation2] sm:$0x2] %v1436_v25  ;;  %1751 = vmatprep.subr.bf16.mxu0 %v3197_v14  ;;  %1561 = vmatpush1.bf16.msra.mxu1 %v3192_v13  ;;  %v3233_v13 = vld [vmem:[%s4253_s4 + $0x3c0] ss:$8 sps:$4 sm:$0xff]   ;;  %v3248_v25 = vld [vmem:[%s4253_s4 + $0x464] ss:$8 sps:$4 sm:$0xff]  }
  0x86   : > { %1562 = vmatprep.subr.bf16.mxu1 %v3200_v23  ;;  %v3251_v29 = vld [vmem:[%s4253_s4 + $0x394] ss:$8 sps:$4 sm:$0xff]   ;;  %s3305_s19 = scalar_lea.vmem %s3304_s25, 32 }
  0x88   : > { %1752 = vmatpush1.bf16.msra.mxu0 %v3195_v21  ;;  %v3240_v21 = vld [vmem:[%s4253_s4 + $0x470] ss:$8 sps:$4 sm:$0xff]  }
  0x89   : > { %1753 = vmatprep.subr.bf16.mxu0 %v3203_v26  ;;  %1563 = vmatpush1.bf16.msra.mxu1 %v3198_v27  ;;  %v3243_v27 = vld [vmem:[%s4253_s4 + $0x3a0] ss:$8 sps:$4 sm:$0xff]  }
  0x8a   : > { %v1418_v36 = vld [vmem:[#allocation2] sm:$0x1]  ;;  %1564 = vmatprep.subr.bf16.mxu1 %v3206_v28 }
  0x8b   : > { %v1419_v37 = vsel %vm3614_vm7, %v1417_v33, %v1418_v36  ;;  %v3261_v33 = vld [vmem:[%s3551_s24 + $0x1] ss:$0 sps:$4 sm:$0x11]  }
  0x8c   : > { %v1449_v38 = vld [vmem:[#allocation2] sm:$0x2]  ;;  %1754 = vmatpush1.bf16.msra.mxu0 %v3201_v31  ;;  %1420 = vst [vmem:[#allocation2] sm:$0x1] %v1419_v37  ;;  %v1828_v36 = vrot.slane %v3261_v33, %v3566_v30 }
  0x8d   : > { %v1450_v45 = vsel %vm3632_vm9, %v1447_v42, %v1449_v38  ;;  %1755 = vmatprep.subr.bf16.mxu0 %v3209_v34  ;;  %1565 = vmatpush1.bf16.msra.mxu1 %v3204_v48  ;;  %v3246_v31 = vld [vmem:[%s4253_s4 + $0x460] ss:$8 sps:$4 sm:$0xff]   ;;  %v3254_v42 = vld [vmem:[%s4253_s4 + $0x454] ss:$8 sps:$4 sm:$0xff]   ;;  %v3249_v48 = vld [vmem:[%s4253_s4 + $0x390] ss:$8 sps:$4 sm:$0xff]  }
  0x8e   : > { %1451 = vst [vmem:[#allocation2] sm:$0x2] %v1450_v45  ;;  %1931 = vmatprep.subr.bf16.mxu1 %v3217_v43  ;;  %v3257_v34 = vld [vmem:[%s4253_s4 + $0x384] ss:$8 sps:$4 sm:$0xff]   ;;  %v3255_v37 = vld [vmem:[%s4253_s4 + $0x380] ss:$8 sps:$4 sm:$0xff]  }
  0x8f   : > { %v3260_v38 = vld [vmem:[%s4253_s4 + $0x444] ss:$8 sps:$4 sm:$0xff]   ;;  %v3258_v45 = vld [vmem:[%s4253_s4 + $0x440] ss:$8 sps:$4 sm:$0xff]  }
  0x90   : > { %1756 = vmatpush1.bf16.msra.mxu0 %v3207_v35  ;;  %v2850_v35 = vld [vmem:[%s3540_s30 + $0x1] sm:$0x1] }
  0x91   : > { %1757 = vmatprep.subr.bf16.mxu0 %v3214_v41  ;;  %v2890_v41 = vld.sshfl [vmem:[%s3551_s24 + $0x1] sm:$0x1 pattern:$0x73625140]  ;;  %s414_s24 = sand.u32 1, %s3351_s18  }
  0x92   : > { %v3289_v33 = vld [vmem:[%s4256_s7 + $0x40] sm:$0xff]   ;;  %s415_s26 = scalar_lea.vmem [#allocation4], %s414_s24  ;;  %s2508_s22 = scalar_lea.sflag [#allocation5], %s414_s24 }
  0x93   : > { %v1599_v55 = vld [vmem:[#allocation2] sm:$0x1]  ;;  %s2520_s14 = sshll.u32 %s415_s26, 4  ;;  %s4210_s14 = int_to_ptr.vmem [resolvable:$true] %s2520_s14 }
  0x94   : > { %v1600_v59 = vsel %vm3577_vm4, %v2811_v47, %v1599_v55  ;;  %1758 = vmatpush1.bf16.msra.mxu0 %v3212_v46  ;;  %v2011_v47 = vshrl.u32 %v2890_v41, 16  ;;  %v3292_v41 = vld [vmem:[%s4258_s9 + $0x30] sm:$0xff]   ;;  %s3299_s30 = scalar_lea.vmem %s4210_s14, 16  ;;  %p3306_p0 = scmp.lt.s32.totalorder %s4210_s14, %s3304_s25 }
  0x95   : > { %v1452_v58 = vld [vmem:[#allocation2] sm:$0x3]  ;;  %1759 = vmatprep.subr.bf16.mxu0 %v3220_v50  ;;  %v3265_v50 = vld [vmem:[%s4253_s4 + $0x434] ss:$8 sps:$4 sm:$0xff]   ;;  %p3300_p11 = scmp.ne.s32.totalorder %s4210_s14, %s3299_s30  ;;  %p3307_p1 = scmp.lt.s32.totalorder %s3305_s19, %s3299_s30 }
  0x96   : > { %v1630_v60 = vld [vmem:[#allocation2] sm:$0x2]  ;;  %1583 = vmatmul.mubr.bf16.vlgmr.msra.gmra.mxu1 %v1452_v58  ;;  %1601 = vst [vmem:[#allocation2] sm:$0x1] %v1600_v59 }
  0x97   : > { %v1631_v63 = vsel %vm3593_vm5, %v1628_v52, %v1630_v60  ;;  %1932 = vmatpush1.bf16.msra.mxu1 %v3215_v51  ;;  %1963 = vmatprep.mubr.bf16.mxu1 %v3361_v2  ;;  %v3263_v51 = vld [vmem:[%s4253_s4 + $0x430] ss:$8 sps:$4 sm:$0xff]   ;;  %v2013_v52 = vrot.slane %v2011_v47, 7  ;;  %v3266_v59 = vld [vmem:[%s4253_s4 + $0x420] ss:$8 sps:$4 sm:$0xff]   ;;  %p3301_p12 = pnand %p3300_p11, %p3464_p5  ;;  %p3308_p2 = por %p3307_p1, %p3306_p0 }
  0x98   : > { %1632 = vst [vmem:[#allocation2] sm:$0x2] %v1631_v63  ;;  %1933 = vmatprep.subr.bf16.mxu1 %v3223_v53  ;;  %1760 = vmatpush1.bf16.msra.mxu0 %v3218_v54  ;;  %v3268_v53 = vld [vmem:[%s4253_s4 + $0x424] ss:$8 sps:$4 sm:$0xff]   ;;  %v2888_v63 = vld [vmem:[%s3562_s13 + $0x1] sm:$0x1] }
  0x99   : > { %1761 = vmatprep.subr.bf16.mxu0 %v3226_v57  ;;  %v3295_v47 = vld [vmem:[%s4258_s9 + $0x18] sm:$0xff]   ;;  %p3302_p13 = pneg %p3301_p12 }
  0x9b   : > { %1934 = vmatpush1.bf16.msra.mxu1 %v3221_v62  ;;  %v3274_v62 = vld [vmem:[%s4253_s4 + $0x404] ss:$8 sps:$4 sm:$0xff]   ;;  %p3309_p3 = pnand %p3308_p2, %p3302_p13 }
  0x9c   : > { %1935 = vmatprep.subr.bf16.mxu1 %v3229_v0  ;;  %1762 = vmatpush1.bf16.msra.mxu0 %v3224_v1  ;;  %v3272_v1 = vld [vmem:[%s4253_s4 + $0x400] ss:$8 sps:$4 sm:$0xff]  }
  0x9d   : > { %v1615_v9 = vld [vmem:[#allocation2] sm:$0x1]  ;;  %1763 = vmatprep.subr.bf16.mxu0 %v3232_v3 }
  0x9e   : > { %v1616_v10 = vsel %vm3614_vm7, %v1064_v16, %v1615_v9  ;;  %v3239_v16 = vld [vmem:[%s4253_s4 + $0x3b4] ss:$8 sps:$4 sm:$0xff]  }
  0x9f   : > { %v1648_v11 = vld [vmem:[#allocation2] sm:$0x2]  ;;  %1936 = vmatpush1.bf16.msra.mxu1 %v3227_v4  ;;  %1617 = vst [vmem:[#allocation2] sm:$0x1] %v1616_v10 }
  0xa0   : > { %v1649_v14 = vsel %vm3632_vm9, %v1646_v44, %v1648_v11  ;;  %1937 = vmatprep.subr.bf16.mxu1 %v3235_v5  ;;  %1764 = vmatpush1.bf16.msra.mxu0 %v3230_v7  ;;  %v3275_v11 = vld [vmem:[%s4256_s7 + $0x78] sm:$0xff]  }
  0xa1   : > { %1650 = vst [vmem:[#allocation2] sm:$0x2] %v1649_v14  ;;  %2130 = vmatprep.subr.bf16.mxu0 %v3242_v12  ;;  %v3278_v14 = vld [vmem:[%s4256_s7 + $0x30] sm:$0xff]  }
  0xa3   : > { %1938 = vmatpush1.bf16.msra.mxu1 %v3233_v13 }
  0xa4   : > { %1939 = vmatprep.subr.bf16.mxu1 %v3239_v16  ;;  %v3280_v16 = vld [vmem:[%s4256_s7 + $0x28] sm:$0xff]  }
  0xa6   : > { %v1798_v23 = vld [vmem:[#allocation2] sm:$0x1] }
  0xa7   : > { %v1799_v24 = vsel %vm3577_vm4, %v2849_v18, %v1798_v23  ;;  %1940 = vmatpush1.bf16.msra.mxu1 %v3237_v17 }
  0xa8   : > { %v1651_v15 = vld [vmem:[#allocation2] sm:$0x3]  ;;  %1941 = vmatprep.subr.bf16.mxu1 %v3245_v20 }
  0xa9   : > { %v1816_v26 = vld [vmem:[#allocation2] sm:$0x2]  ;;  %1782 = vmatmul.mubr.bf16.vlgmr.msra.gmra.mxu0 %v1651_v15  ;;  %1800 = vst [vmem:[#allocation2] sm:$0x1] %v1799_v24  ;;  %v3283_v24 = vld [vmem:[%s4256_s7 + $0x58] sm:$0xff]  }
  0xaa   : > { %v1817_v28 = vsel %vm3593_vm5, %v1814_v19, %v1816_v26  ;;  %2131 = vmatpush1.bf16.msra.mxu0 %v3240_v21  ;;  %2162 = vmatprep.mubr.bf16.mxu0 %v3361_v2  ;;  %v3252_v2 = vld [vmem:[%s4253_s4 + $0x450] ss:$8 sps:$4 sm:$0xff]   ;;  %v3281_v19 = vld [vmem:[%s4256_s7 + $0x60] sm:$0xff]  }
  0xab   : > { %1818 = vst [vmem:[#allocation2] sm:$0x2] %v1817_v28  ;;  %2132 = vmatprep.subr.bf16.mxu0 %v3248_v25  ;;  %1942 = vmatpush1.bf16.msra.mxu1 %v3243_v27  ;;  %v3282_v21 = vld [vmem:[%s4256_s7 + $0x20] sm:$0xff]   ;;  %v3284_v26 = vld [vmem:[%s4256_s7 + $0x18] sm:$0xff]   ;;  %v3285_v27 = vld [vmem:[%s4256_s7 + $0x50] sm:$0xff]  }
  0xac   : > { %1943 = vmatprep.subr.bf16.mxu1 %v3251_v29  ;;  %v3286_v28 = vld [vmem:[%s4256_s7 + $0x10] sm:$0xff]   ;;  %v3287_v29 = vld [vmem:[%s4256_s7 + $0x48] sm:$0xff]  }
  0xae   : > { %2133 = vmatpush1.bf16.msra.mxu0 %v3246_v31  ;;  %v3288_v31 = vld [vmem:[%s4256_s7 + $0x8] sm:$0xff]  }
  0xaf   : > { %2134 = vmatprep.subr.bf16.mxu0 %v3254_v42  ;;  %1944 = vmatpush1.bf16.msra.mxu1 %v3249_v48  ;;  %v3290_v42 = vld [vmem:[%s4256_s7] sm:$0xff]  }
  0xb0   : > { %v1802_v40 = vld [vmem:[#allocation2] sm:$0x1]  ;;  %1945 = vmatprep.subr.bf16.mxu1 %v3257_v34 }
  0xb1   : > { %v1803_v43 = vsel %vm3614_vm7, %v2850_v35, %v1802_v40  ;;  %v3363_v40 = vmov 0.0  }
  0xb2   : > { %v1830_v44 = vld [vmem:[#allocation2] sm:$0x2]  ;;  %2135 = vmatpush1.bf16.msra.mxu0 %v3252_v2  ;;  %1804 = vst [vmem:[#allocation2] sm:$0x1] %v1803_v43  ;;  %v3293_v43 = vld [vmem:[%s4258_s9 + $0x28] sm:$0xff]  }
  0xb3   : > { %v1831_v46 = vsel %vm3632_vm9, %v1828_v36, %v1830_v44  ;;  %2136 = vmatprep.subr.bf16.mxu0 %v3260_v38  ;;  %1946 = vmatpush1.bf16.msra.mxu1 %v3255_v37  ;;  %v3291_v38 = vld [vmem:[%s4258_s9 + $0x38] sm:$0xff]   ;;  %v3294_v44 = vld [vmem:[%s4258_s9 + $0x20] sm:$0xff]  }
  0xb4   : > { %1832 = vst [vmem:[#allocation2] sm:$0x2] %v1831_v46  ;;  %2953 = vmatprep.subr.bf16.mxu1 %v3275_v11  ;;  %v2179_v11 = vld [vmem:[%s4254_s5] sm:$0x3] }
  0xb6   : > { %2137 = vmatpush1.bf16.msra.mxu0 %v3258_v45 }
  0xb7   : > { %2138 = vmatprep.subr.bf16.mxu0 %v3265_v50 }
  0xb9   : > { %v1994_v54 = vld [vmem:[#allocation2] sm:$0x1] }
  0xba   : > { %v1995_v57 = vsel %vm3577_vm4, %v1431_v6, %v1994_v54  ;;  %2139 = vmatpush1.bf16.msra.mxu0 %v3263_v51  ;;  %v3269_v6 = vld [vmem:[%s4253_s4 + $0x410] ss:$8 sps:$4 sm:$0xff]  }
  0xbb   : > { %v1833_v55 = vld [vmem:[#allocation2] sm:$0x3]  ;;  %2140 = vmatprep.subr.bf16.mxu0 %v3268_v53 }
  0xbc   : > { %v2015_v58 = vld [vmem:[#allocation2] sm:$0x2]  ;;  %1964 = vmatmul.mubr.bf16.vlgmr.msra.gmra.mxu1 %v1833_v55  ;;  %1996 = vst [vmem:[#allocation2] sm:$0x1] %v1995_v57 }
  0xbd   : > { %v2016_v60 = vsel %vm3593_vm5, %v2013_v52, %v2015_v58  ;;  %2954 = vmatpush3.bf16.msra.mxu1 %v3276_v49 }
  0xbe   : > { %2017 = vst [vmem:[#allocation2] sm:$0x2] %v2016_v60  ;;  %2141 = vmatpush1.bf16.msra.mxu0 %v3266_v59  ;;  %2955 = vmatprep.subr.bf16.mxu1 %v3277_v56 }
  0xbf   : > { %2142 = vmatprep.subr.bf16.mxu0 %v3271_v61 }
  0xc1   : > { %2956 = vmatpush3.bf16.msra.mxu1 %v3278_v14 }
  0xc2   : > { %2143 = vmatpush1.bf16.msra.mxu0 %v3269_v6  ;;  %2957 = vmatprep.subr.bf16.mxu1 %v3279_v8 }
  0xc3   : > { %v1998_v0 = vld [vmem:[#allocation2] sm:$0x1]  ;;  %2144 = vmatprep.subr.bf16.mxu0 %v3274_v62 }
  0xc4   : > { %v1999_v3 = vsel %vm3614_vm7, %v2888_v63, %v1998_v0 }
  0xc5   : > { %v2029_v4 = vld [vmem:[#allocation2] sm:$0x2]  ;;  %2000 = vst [vmem:[#allocation2] sm:$0x1] %v1999_v3  ;;  %2958 = vmatpush3.bf16.msra.mxu1 %v3280_v16 }
  0xc6   : > { %v2030_v5 = vsel %vm3632_vm9, %v2027_v39, %v2029_v4  ;;  %2145 = vmatpush1.bf16.msra.mxu0 %v3272_v1  ;;  %2959 = vmatprep.subr.bf16.mxu1 %v3281_v19 }
  0xc7   : > { %2031 = vst [vmem:[#allocation2] sm:$0x2] %v2030_v5  ;;  %2984 = vmatprep.subr.bf16.mxu0 %v3363_v40 }
  0xc9   : > { %2960 = vmatpush3.bf16.msra.mxu1 %v3282_v21 }
  0xca   : > { %2961 = vmatprep.subr.bf16.mxu1 %v3283_v24 }
  0xcd   : > { %2962 = vmatpush3.bf16.msra.mxu1 %v3284_v26 }
  0xce   : > { %v2032_v7 = vld [vmem:[#allocation2] sm:$0x3]  ;;  %2963 = vmatprep.subr.bf16.mxu1 %v3285_v27 }
  0xcf   : > { %2163 = vmatmul.mubr.bf16.vlgmr.msra.gmra.mxu0 %v2032_v7 }
  0xd0   : > { %2985 = vmatpush3.bf16.msra.mxu0 %v3291_v38  ;;  %3000 = vmatprep.mubr.msk.bf16.mxu0 %vm3364_vm10, %v3363_v40 }
  0xd1   : > { %2964 = vmatpush3.bf16.msra.mxu1 %v3286_v28  ;;  %2986 = vmatprep.subr.bf16.mxu0 %v3363_v40 }
  0xd2   : > { %2965 = vmatprep.subr.bf16.mxu1 %v3287_v29 }
  0xd4   : > { %2987 = vmatpush3.bf16.msra.mxu0 %v3292_v41  ;;  %v3296_v41 = vld [vmem:[%s4258_s9 + $0x10] sm:$0xff]  }
  0xd5   : > { %2966 = vmatpush3.bf16.msra.mxu1 %v3288_v31  ;;  %2988 = vmatprep.subr.bf16.mxu0 %v3363_v40 }
  0xd6   : > { %2967 = vmatprep.subr.bf16.mxu1 %v3289_v33 }
  0xd8   : > { %2989 = vmatpush3.bf16.msra.mxu0 %v3293_v43  ;;  %v3297_v43 = vld [vmem:[%s4258_s9 + $0x8] sm:$0xff]  }
  0xd9   : > { %2968 = vmatpush3.bf16.msra.mxu1 %v3290_v42  ;;  %2990 = vmatprep.subr.bf16.mxu0 %v3363_v40 }
  0xdc   : > { %2991 = vmatpush3.bf16.msra.mxu0 %v3294_v44 }
  0xdd   : > { %2992 = vmatprep.subr.bf16.mxu0 %v3363_v40 }
  0xe0   : > { %2993 = vmatpush3.bf16.msra.mxu0 %v3295_v47 }
  0xe1   : > { %2994 = vmatprep.subr.bf16.mxu0 %v3363_v40 }
  0xe4   : > { %2995 = vmatpush3.bf16.msra.mxu0 %v3296_v41 }
  0xe5   : > { %2996 = vmatprep.subr.bf16.mxu0 %v3363_v40 }
  0xe8   : > { %2997 = vmatpush3.bf16.msra.mxu0 %v3297_v43 }
  0xe9   : > { %2998 = vmatprep.subr.bf16.mxu0 %v3363_v40 }
  0xf9   : > { %v625_v30 = vpop.f32.mrf.mxu0 }
  0xfb   : > { %v627_v9 = vpop.f32.mrf.mxu0 }
  0xfc   : > { %v634_v10 = vcombine.low %v625_v30, %v627_v9  ;;  %v2183_v9 = vsub.s32 0, %v3529_v22 }
  0xfd   : > { %v629_v12 = vpop.f32.mrf.mxu0 }
  0xfe   : > { %v2192_v12 = vld [vmem:[%s4255_s6] sm:$0x3]  ;;  %v2184_v14 = vrot.slane %v2179_v11, %v2183_v9 }
  0xff   : > { %v630_v13 = vpop.f32.mrf.mxu0 }
 0x10a   : > { %v805_v17 = vpop.f32.mrf.mxu1 }
 0x10c   : > { %v807_v18 = vpop.f32.mrf.mxu1 }
 0x10d   : > { %v815_v20 = vcombine.low %v805_v17, %v807_v18  ;;  %v2197_v18 = vrot.slane %v2192_v12, %v2183_v9 }
 0x10e   : > { %v809_v23 = vpop.f32.mrf.mxu1 }
 0x10f   : > { %v817_v25 = vadd.f32 %v815_v20, %v634_v10  ;;  %v2187_v10 = vsub.s32 1, %v3529_v22 }
 0x110   : > { %v810_v15 = vpop.f32.mrf.mxu1 }
 0x111   : > { %v2188_v8 = vrot.slane %v2179_v11, %v2187_v10  ;;  %v2201_v19 = vrot.slane %v2192_v12, %v2187_v10 }
 0x113   : > { %v2202_v26 = vcombine.low %v2197_v18, %v2201_v19 }
 0x11d   : > { %v1004_v48 = vpop.f32.mrf.mxu0 }
 0x11f   : > { %v1006_v34 = vpop.f32.mrf.mxu0 }
 0x120   : > { %v1014_v2 = vcombine.low %v1004_v48, %v1006_v34  ;;  %v2224_v34 = vsub.s32 4, %v3529_v22  ;;  %v3298_v22 = vld [vmem:[%s4258_s9] sm:$0xff]  }
 0x121   : > { %v1008_v35 = vpop.f32.mrf.mxu0  ;;  %2999 = vmatpush3.bf16.msra.mxu0 %v3298_v22 }
 0x122   : > { %v1016_v36 = vadd.f32 %v1014_v2, %v817_v25  ;;  %v2189_v25 = vcombine.low %v2184_v14, %v2188_v8 }
 0x123   : > { %v1009_v37 = vpop.f32.mrf.mxu0 }
 0x130   : > { %v1203_v45 = vpop.f32.mrf.mxu1 }
 0x132   : > { %v1205_v46 = vpop.f32.mrf.mxu1 }
 0x133   : > { %v1213_v50 = vcombine.low %v1203_v45, %v1205_v46  ;;  %v2262_v45 = vld [vmem:[%s4257_s8] sm:$0x1] }
 0x134   : > { %v1207_v51 = vpop.f32.mrf.mxu1 }
 0x135   : > { %v1215_v52 = vadd.f32 %v1213_v50, %v1016_v36 }
 0x136   : > { %v1208_v53 = vpop.f32.mrf.mxu1 }
 0x143   : > { %v1385_v54 = vpop.f32.mrf.mxu0 }
 0x145   : > { %v1387_v55 = vpop.f32.mrf.mxu0 }
 0x146   : > { %v1395_v57 = vcombine.low %v1385_v54, %v1387_v55  ;;  %v2417_v55 = vld [vmem:[%s4259_s10] sm:$0x1] }
 0x147   : > { %v1389_v58 = vpop.f32.mrf.mxu0 }
 0x148   : > { %v1397_v59 = vadd.f32 %v1395_v57, %v1215_v52 }
 0x149   : > { %v1390_v60 = vpop.f32.mrf.mxu0 }
 0x156   : > { %v1584_v61 = vpop.f32.mrf.mxu1 }
 0x158   : > { %v1586_v32 = vpop.f32.mrf.mxu1 }
 0x159   : > { %v1594_v30 = vcombine.low %v1584_v61, %v1586_v32 }
 0x15a   : > { %v1588_v6 = vpop.f32.mrf.mxu1 }
 0x15b   : > { %v1596_v56 = vadd.f32 %v1594_v30, %v1397_v59 }
 0x15c   : > { %v1589_v62 = vpop.f32.mrf.mxu1 }
 0x169   : > { %v1783_v63 = vpop.f32.mrf.mxu0 }
 0x16b   : > { %v1785_v39 = vpop.f32.mrf.mxu0 }
 0x16c   : > { %v1793_v49 = vcombine.low %v1783_v63, %v1785_v39 }
 0x16d   : > { %v1787_v0 = vpop.f32.mrf.mxu0 }
 0x16e   : > { %v1795_v17 = vadd.f32 %v1793_v49, %v1596_v56 }
 0x16f   : > { %v1788_v1 = vpop.f32.mrf.mxu0 }
 0x17c   : > { %v1965_v3 = vpop.f32.mrf.mxu1 }
 0x17e   : > { %v1967_v4 = vpop.f32.mrf.mxu1 }
 0x17f   : > { %v1975_v13 = vcombine.low %v1965_v3, %v1967_v4 }
 0x180   : > { %v1969_v5 = vpop.f32.mrf.mxu1 }
 0x181   : > { %v1977_v21 = vadd.f32 %v1975_v13, %v1795_v17 }
 0x182   : > { %v1970_v7 = vpop.f32.mrf.mxu1 }
 0x18f   : > { %v2164_v16 = vpop.f32.mrf.mxu0 }
 0x191   : > { %v2166_v20 = vpop.f32.mrf.mxu0 }
 0x192   : > { %v2174_v23 = vcombine.low %v2164_v16, %v2166_v20 }
 0x193   : > { %v2168_v15 = vpop.f32.mrf.mxu0 }
 0x194   : > { %v2176_v24 = vadd.f32 %v2174_v23, %v1977_v21 }
 0x195   : > { %v2169_v27 = vpop.f32.mrf.mxu0 }
 0x196   : > { %v2191_v28 = vmul.f32 %v2189_v25, %v2176_v24 }
 0x198   : > { %v2204_v29 = vadd.f32 %v2202_v26, %v2191_v28 }
 0x19a   : > { %v2924_v31 = vrot.slane %v2204_v29, 9 }
 0x19c   : > { %v2209_v33 = vmax.f32 %v2204_v29, %v2924_v31 }
 0x19e   : > { %v2925_v42 = vrot.slane %v2209_v33, 10 }
 0x1a0   : > { %v2214_v48 = vmax.f32 %v2209_v33, %v2925_v42 }
 0x1a2   : > { %v2215_v2 = vmax.f32 %v2214_v48, 0.0 }
 0x1a4   : > { %v2225_v35 = vrot.slane %v2215_v2, %v2224_v34  ;;  %v2221_v36 = vrot.slane %v2215_v2, %v2183_v9 }
 0x1a6   : > { %v2229_v37 = vpack.c.bf16 %v2225_v35, %v2225_v35  ;;  %v2228_v38 = vpack.c.bf16 %v2221_v36, %v2221_v36 }
 0x1a8   : > { %2391 = vmatprep.mubr.bf16.mxu1 %v2229_v37 }
 0x1a9   : > { %2392 = vmatmul.mubr.bf16.vlgmr.msra.gmra.mxu1 %v2228_v38 }
 0x269   : > { %v2969_v44 = vpop.f32.mrf.mxu1 }
 0x26b   : > { %v2970_v46 = vpop.f32.mrf.mxu1 }
 0x26c   : > { %v2971_v47 = vadd.f32 %v2970_v46, %v2969_v44 }
 0x26d   : > { %v2972_v50 = vpop.f32.mrf.mxu1 }
 0x26e   : > { %v2394_v51 = vadd.f32 %v2971_v47, %v2262_v45 }
 0x26f   : > { %v2973_v52 = vpop.f32.mrf.mxu1 }
 0x270   : > { %v2399_v53 = vmax.f32 %v2394_v51, 0.0 }
 0x272   : > { %v2400_v54 = vpack.c.bf16 %v2399_v53, %v2399_v53 }
 0x274   : > { %3001 = vmatmul.mubr.bf16.vlgmr.msra.gmra.mxu0 %v2400_v54 }
 0x334   : > { %v2500_v40 = vpop.f32.mrf.mxu0 }
 0x335   : > { %v2501_v57 = vadd.f32 %v2500_v40, %v2417_v55 }
 0x336   : > { %v3002_v58 = vpop.f32.mrf.mxu0 }
 0x337   : > { %2506 = vst [vmem:[%s415_s26] sm:$0x1] %v2501_v57 }
 0x338   : > { %v2503_v59 = vpop.f32.mrf.mxu0 }
 0x339   : > { %3312 = shalt.err (!%p3309_p3)
}
 0x33a   : > { %s3313_s29 = scalar_lea.hbm %s4208_s1, 16  ;;  %s3317_s13 = scalar_lea.hbm %s4260_s11, 32 }
 0x33b   : > { %p3314_p4 = scmp.ne.s32.totalorder %s4208_s1, %s3313_s29  ;;  %p3318_p9 = scmp.lt.s32.totalorder %s4208_s1, %s4260_s11 }
 0x33c   : > { %p3319_p10 = scmp.lt.s32.totalorder %s3317_s13, %s3313_s29 }
 0x33d   : > { %p3315_p7 = pnand %p3314_p4, %p3464_p5 }
 0x33e   : > { %p3320_p11 = por %p3319_p10, %p3318_p9 }
 0x33f   : > { %p3316_p8 = pneg %p3315_p7 }
 0x341   : > { %p3321_p12 = pnand %p3320_p11, %p3316_p8 }
 0x343   : > { %3324 = shalt.err (!%p3321_p12)
}
 0x344   : > { %3004 = dma.vmem_to_hbm [thread:$0]  (%p3464_p5), %s4210_s14, 16, %s4208_s1, %s2508_s22   ;;  %v3003_v60 = vpop.f32.mrf.mxu0 }
 0x345 PF: > { %p3010_p13 = scmp.ge.s32.totalorder %s3359_s20, 2  ;;  %s2532_s15 = sand.u32 1, %s3347_s17  }
 0x346   : > { %s2533_s16 = scalar_lea.sflag [#allocation5], %s2532_s15 }
 0x347   : > { %p3007_p0 = pnand %p3010_p13, %p3468_p6 }
 0x349   : > { %p3008_p1 = pneg %p3007_p0 }
 0x34b   : > { %3342 = dma.done.wait (%p3008_p1), %s2533_s16, 16  }
 0x34c   : > { %3344 = vsyncadd (%p3008_p1), %s2533_s16, 4294967280  ;;  %s4278_s30 = sld [smem:[#allocation7_spill]]  ;;  %p21_p2 = scmp.ge.s32.totalorder %s3451_s23, 4  }
 0x34d   : > { %s4279_s19 = sld [smem:[#allocation8_spill]]  ;;  %s4280_s17 = smov %s3351_s18 }
 0x34e   : > { %s4282_s20 = smov %s3451_s23  ;;  %23 = sbr.rel (!%p21_p2) target bundleno = 6 (0x6), region = 120 }
 0x352   : > { %s4281_s18 = smov %s4278_s30 }
 0x353   :  { %2537 = vsyncpa [#allocation5], 1 }
 0x354   :  { %2539 = vsyncpa [#allocation5 + $0x1], 1 }

</bundles_post_ra>
